<compile_context>
chip_gen: v7x
topology: tpu7x:2x2x1
jax: 0.10.0
libtpu: 0.0.40
codegen_flags: <defaults>
</compile_context>

<pallas_src>
import functools

import jax
import jax.numpy as jnp
from jax.experimental import pallas as pl
from jax.experimental.pallas import tpu as pltpu


def _round_up(x, m):
    return ((x + m - 1) // m) * m


# ----------------------------------------------------------------------------
# Fused kernel: one grid step = one batch element.
#   pad0 scratch : zero-padded, channel-packed [up_x | skip] "concat" input
#   pad1 scratch : zero-padded conv_a output (stays in VMEM, no HBM round trip)
# ----------------------------------------------------------------------------
def _fused_upsample_block_kernel(x_ref, s_ref, w1_ref, b1_ref, w2_ref, b2_ref,
                                 o_ref, pad0_ref, pad1_ref, *,
                                 cx, cs, neg_slope):
    H = o_ref.shape[1]
    W = o_ref.shape[2]
    Cp = o_ref.shape[3]

    def conv3x3_lrelu(src_ref, w_ref, b_ref):
        # Single im2col matmul: (H*W, 9*Cp) @ (9*Cp, Cp) -> one MXU contraction
        # with K folded, accumulated in f32 inside the MXU.
        patches = []
        for k in range(9):
            dy, dx = k // 3, k % 3
            patches.append(src_ref[dy:dy + H, dx:dx + W, :].reshape(H * W, Cp))
        pm = jnp.concatenate(patches, axis=-1)                     # (H*W, 9*Cp) bf16
        acc = jnp.dot(pm, w_ref[...], preferred_element_type=jnp.float32)
        acc = acc + b_ref[...]                                     # (H*W, Cp) f32
        # LeakyReLU with 0 < neg_slope < 1:  max(x, a*x)  (one vmul + one vmax)
        return jnp.maximum(acc, neg_slope * acc)

    # Stage 0: zero-padded, channel-packed concat input in VMEM (bf16).
    # Full re-zero each step keeps halos / channel padding correct regardless
    # of how the batch axis is split across cores; the interior is then
    # overwritten with real data below.
    pad0_ref[...] = jnp.zeros_like(pad0_ref)
    pad0_ref[1:H + 1, 1:W + 1, 0:cx] = x_ref[0].astype(pad0_ref.dtype)
    pad0_ref[1:H + 1, 1:W + 1, cx:cx + cs] = s_ref[0].astype(pad0_ref.dtype)

    # conv_block_a
    y1 = conv3x3_lrelu(pad0_ref, w1_ref, b1_ref)

    # Stage 1: zero-padded intermediate kept entirely in VMEM (bf16), one cast.
    pad1_ref[...] = jnp.zeros_like(pad1_ref)
    pad1_ref[1:H + 1, 1:W + 1, :] = y1.reshape(H, W, Cp).astype(pad1_ref.dtype)

    # conv_block_b
    y2 = conv3x3_lrelu(pad1_ref, w2_ref, b2_ref)
    o_ref[0] = y2.reshape(H, W, Cp).astype(o_ref.dtype)


def _prep_weight(w_oihw, cin_pad, cout_pad):
    """(Cout, Cin, 3, 3) PyTorch weight -> (9*cin_pad, cout_pad) bf16 matrix."""
    cout, cin = w_oihw.shape[0], w_oihw.shape[1]
    w = jnp.transpose(w_oihw, (2, 3, 1, 0)).reshape(9, cin, cout)   # k = 3*dy+dx
    w = jnp.pad(w, ((0, 0), (0, cin_pad - cin), (0, cout_pad - cout)))
    return w.reshape(9 * cin_pad, cout_pad).astype(jnp.bfloat16)


# ----------------------------------------------------------------------------
# Bilinear upsample (align_corners=True) via separable interpolation matrices.
# TODO(synk): fuse the two interpolation matmuls (and the NCHW<->NHWC
# transposes) into the kernel for large images; kept as tiny XLA glue here.
# ----------------------------------------------------------------------------
def _interp_matrix(out_size, in_size):
    if out_size == 1:
        return jnp.zeros((1, in_size), jnp.float32).at[0, 0].set(1.0)
    src = jnp.arange(out_size, dtype=jnp.float32) * (in_size - 1) / (out_size - 1)
    lo = jnp.clip(jnp.floor(src).astype(jnp.int32), 0, in_size - 1)
    hi = jnp.clip(lo + 1, 0, in_size - 1)
    frac = src - lo.astype(jnp.float32)
    rows = jnp.arange(out_size)
    m = jnp.zeros((out_size, in_size), jnp.float32)
    m = m.at[rows, lo].add(1.0 - frac)
    m = m.at[rows, hi].add(frac)
    return m


def upsample_interpolate_forward(x_nchw, skip_nchw, params, neg_slope=0.1):
    """Equivalent of UpSampleInterpolate.forward. Inputs/outputs are NCHW."""
    N, Cx, Hi, Wi = x_nchw.shape
    _, Cs, Hs, Ws = skip_nchw.shape
    Cout = params['wa'].shape[0]
    Cin = Cx + Cs
    assert params['wa'].shape[1] == Cin
    Cp = _round_up(max(Cin, Cout), 128)   # lane-dense channel padding

    # --- plain-JAX glue: layout + bilinear upsample (align_corners=True) ---
    x_nhwc = jnp.transpose(x_nchw, (0, 2, 3, 1))
    skip_nhwc = jnp.transpose(skip_nchw, (0, 2, 3, 1))
    Lh = _interp_matrix(Hs, Hi)
    Lw = _interp_matrix(Ws, Wi)
    up_nhwc = jnp.einsum('Hh,nhwc,Ww->nHWc', Lh, x_nhwc, Lw)

    w1 = _prep_weight(params['wa'], Cp, Cp)
    w2 = _prep_weight(params['wb'], Cp, Cp)
    b1 = jnp.pad(params['ba'], (0, Cp - Cout)).reshape(1, Cp).astype(jnp.float32)
    b2 = jnp.pad(params['bb'], (0, Cp - Cout)).reshape(1, Cp).astype(jnp.float32)

    kernel = functools.partial(_fused_upsample_block_kernel,
                               cx=Cx, cs=Cs, neg_slope=neg_slope)
    out_pad = pl.pallas_call(
        kernel,
        out_shape=jax.ShapeDtypeStruct((N, Hs, Ws, Cp), x_nchw.dtype),
        grid_spec=pltpu.PrefetchScalarGridSpec(
            num_scalar_prefetch=0,
            # TODO(synk): add an H-row tiling grid axis (with 1-row halos) for
            # large images so blocks stay within the v7x 64 MiB VMEM budget.
            grid=(N,),
            in_specs=[
                pl.BlockSpec((1, Hs, Ws, Cx), lambda n: (n, 0, 0, 0)),
                pl.BlockSpec((1, Hs, Ws, Cs), lambda n: (n, 0, 0, 0)),
                pl.BlockSpec((9 * Cp, Cp), lambda n: (0, 0)),
                pl.BlockSpec((1, Cp), lambda n: (0, 0)),
                pl.BlockSpec((9 * Cp, Cp), lambda n: (0, 0)),
                pl.BlockSpec((1, Cp), lambda n: (0, 0)),
            ],
            out_specs=pl.BlockSpec((1, Hs, Ws, Cp), lambda n: (n, 0, 0, 0)),
            scratch_shapes=[
                pltpu.VMEM((Hs + 2, Ws + 2, Cp), jnp.bfloat16),
                pltpu.VMEM((Hs + 2, Ws + 2, Cp), jnp.bfloat16),
            ],
        ),
        compiler_params=pltpu.CompilerParams(
            dimension_semantics=("parallel",)),
    )(up_nhwc, skip_nhwc, w1, b1, w2, b2)

    out = out_pad[..., :Cout]              # drop channel padding (fuses w/ transpose)
    return jnp.transpose(out, (0, 3, 1, 2))


# ----------------------------------------------------------------------------
# Pure-JAX reference (matches the PyTorch module) for a correctness check.
# ----------------------------------------------------------------------------
def _reference_forward(x_nchw, skip_nchw, params, neg_slope=0.1):
    Hs, Ws = skip_nchw.shape[2], skip_nchw.shape[3]
    Lh = _interp_matrix(Hs, x_nchw.shape[2])
    Lw = _interp_matrix(Ws, x_nchw.shape[3])
    up = jnp.einsum('Hh,nchw,Ww->ncHW', Lh, x_nchw, Lw)
    h = jnp.concatenate([up, skip_nchw], axis=1)

    def conv_lrelu(h, w, b):
        y = jax.lax.conv_general_dilated(
            h, w, (1, 1), ((1, 1), (1, 1)),
            dimension_numbers=('NCHW', 'OIHW', 'NCHW'))
        y = y + b[None, :, None, None]
        return jnp.where(y >= 0, y, neg_slope * y)

    h = conv_lrelu(h, params['wa'], params['ba'])
    return conv_lrelu(h, params['wb'], params['bb'])


def init_params(key, skip_input, output_features):
    ka, kb, kc, kd = jax.random.split(key, 4)
    return {
        'wa': 0.05 * jax.random.normal(ka, (output_features, skip_input, 3, 3), jnp.float32),
        'ba': 0.05 * jax.random.normal(kb, (output_features,), jnp.float32),
        'wb': 0.05 * jax.random.normal(kc, (output_features, output_features, 3, 3), jnp.float32),
        'bb': 0.05 * jax.random.normal(kd, (output_features,), jnp.float32),
    }


if __name__ == "__main__":
    key = jax.random.PRNGKey(0)
    kx, ks, kp = jax.random.split(key, 3)

    # NCHW inputs, matching the PyTorch module convention.
    N, Cx, Hx, Wx = 2, 8, 8, 8           # low-resolution feature map
    Cskip, Hs, Ws = 4, 16, 16            # skip connection (target spatial size)
    x = jax.random.normal(kx, (N, Cx, Hx, Wx), jnp.float32)
    skip = jax.random.normal(ks, (N, Cskip, Hs, Ws), jnp.float32)

    skip_input = Cx + Cskip              # channels after concat
    output_features = 8
    params = init_params(kp, skip_input, output_features)

    out = upsample_interpolate_forward(x, skip, params)
    out = jax.block_until_ready(out)
    assert out.shape == (N, output_features, Hs, Ws), out.shape

    # Correctness vs pure-JAX reference (bf16 MXU operands -> relaxed tolerance).
    ref = jax.block_until_ready(_reference_forward(x, skip, params))
    max_err = float(jnp.max(jnp.abs(out - ref)))
    assert max_err < 5e-2, f"max abs error too large: {max_err}"

    print("KERNEL_OK")
</pallas_src>

<mosaic_0001>
module attributes {stable_mosaic.version = 11 : i64} {
  func.func @_fused_upsample_block_kernel(%arg0: i32, %arg1: memref<1x16x16x8xf32, #tpu.memory_space<vmem>>, %arg2: memref<1x16x16x4xf32, #tpu.memory_space<vmem>>, %arg3: memref<1152x128xbf16, #tpu.memory_space<vmem>>, %arg4: memref<1x128xf32, #tpu.memory_space<vmem>>, %arg5: memref<1152x128xbf16, #tpu.memory_space<vmem>>, %arg6: memref<1x128xf32, #tpu.memory_space<vmem>>, %arg7: memref<1x16x16x128xf32, #tpu.memory_space<vmem>>, %arg8: memref<18x18x128xbf16, #tpu.memory_space<vmem>>, %arg9: memref<18x18x128xbf16, #tpu.memory_space<vmem>>) attributes {dimension_semantics = [#tpu.dimension_semantics<parallel>], iteration_bounds = array<i64: 2>, scalar_prefetch = 0 : i64, scratch_operands = 2 : i64, tpu.core_type = #tpu.core_type<tc>, window_params = [{transform_indices = @transform_0, window_bounds = array<i64: 1, 16, 16, 8>}, {transform_indices = @transform_1, window_bounds = array<i64: 1, 16, 16, 4>}, {pipeline_mode = #tpu.pipeline_mode<synchronous>, transform_indices = @transform_2, window_bounds = array<i64: 1152, 128>}, {pipeline_mode = #tpu.pipeline_mode<synchronous>, transform_indices = @transform_3, window_bounds = array<i64: 1, 128>}, {pipeline_mode = #tpu.pipeline_mode<synchronous>, transform_indices = @transform_4, window_bounds = array<i64: 1152, 128>}, {pipeline_mode = #tpu.pipeline_mode<synchronous>, transform_indices = @transform_5, window_bounds = array<i64: 1, 128>}, {transform_indices = @transform_6, window_bounds = array<i64: 1, 16, 16, 128>}]} {
    %cst = arith.constant 0.000000e+00 : bf16
    %0 = vector.broadcast %cst : bf16 to vector<18x18x128xbf16>
    %c0 = arith.constant 0 : index
    %c0_0 = arith.constant 0 : index
    %c0_1 = arith.constant 0 : index
    %1 = vector.load %arg8[%c0, %c0_0, %c0_1] : memref<18x18x128xbf16, #tpu.memory_space<vmem>>, vector<18x18x128xbf16>
    tpu.vector_store %arg8[%c0, %c0_0, %c0_1], %0 {strides = array<i32>} : memref<18x18x128xbf16, #tpu.memory_space<vmem>>, vector<18x18x128xbf16>,
    %c0_2 = arith.constant 0 : index
    %c0_3 = arith.constant 0 : index
    %c0_4 = arith.constant 0 : index
    %c0_5 = arith.constant 0 : index
    %2 = vector.load %arg1[%c0_2, %c0_3, %c0_4, %c0_5] : memref<1x16x16x8xf32, #tpu.memory_space<vmem>>, vector<1x16x16x8xf32>
    %3 = vector.shape_cast %2 : vector<1x16x16x8xf32> to vector<16x16x8xf32>
    %4 = arith.truncf %3 : vector<16x16x8xf32> to vector<16x16x8xbf16>
    %c1 = arith.constant 1 : index
    %c1_6 = arith.constant 1 : index
    %c0_7 = arith.constant 0 : index
    %5 = vector.load %arg8[%c1, %c1_6, %c0_7] : memref<18x18x128xbf16, #tpu.memory_space<vmem>>, vector<16x16x8xbf16>
    tpu.vector_store %arg8[%c1, %c1_6, %c0_7], %4 {strides = array<i32>} : memref<18x18x128xbf16, #tpu.memory_space<vmem>>, vector<16x16x8xbf16>,
    %c0_8 = arith.constant 0 : index
    %c0_9 = arith.constant 0 : index
    %c0_10 = arith.constant 0 : index
    %c0_11 = arith.constant 0 : index
    %6 = vector.load %arg2[%c0_8, %c0_9, %c0_10, %c0_11] : memref<1x16x16x4xf32, #tpu.memory_space<vmem>>, vector<1x16x16x4xf32>
    %7 = vector.shape_cast %6 : vector<1x16x16x4xf32> to vector<16x16x4xf32>
    %8 = arith.truncf %7 : vector<16x16x4xf32> to vector<16x16x4xbf16>
    %c1_12 = arith.constant 1 : index
    %c1_13 = arith.constant 1 : index
    %c8 = arith.constant 8 : index
    %9 = vector.load %arg8[%c1_12, %c1_13, %c8] : memref<18x18x128xbf16, #tpu.memory_space<vmem>>, vector<16x16x4xbf16>
    tpu.vector_store %arg8[%c1_12, %c1_13, %c8], %8 {strides = array<i32>} : memref<18x18x128xbf16, #tpu.memory_space<vmem>>, vector<16x16x4xbf16>,
    %c0_14 = arith.constant 0 : index
    %c0_15 = arith.constant 0 : index
    %c0_16 = arith.constant 0 : index
    %10 = vector.load %arg8[%c0_14, %c0_15, %c0_16] : memref<18x18x128xbf16, #tpu.memory_space<vmem>>, vector<16x16x128xbf16>
    %11 = vector.shape_cast %10 : vector<16x16x128xbf16> to vector<256x128xbf16>
    %c0_17 = arith.constant 0 : index
    %c1_18 = arith.constant 1 : index
    %c0_19 = arith.constant 0 : index
    %12 = vector.load %arg8[%c0_17, %c1_18, %c0_19] : memref<18x18x128xbf16, #tpu.memory_space<vmem>>, vector<16x16x128xbf16>
    %13 = vector.shape_cast %12 : vector<16x16x128xbf16> to vector<256x128xbf16>
    %c0_20 = arith.constant 0 : index
    %c2 = arith.constant 2 : index
    %c0_21 = arith.constant 0 : index
    %14 = vector.load %arg8[%c0_20, %c2, %c0_21] : memref<18x18x128xbf16, #tpu.memory_space<vmem>>, vector<16x16x128xbf16>
    %15 = vector.shape_cast %14 : vector<16x16x128xbf16> to vector<256x128xbf16>
    %c1_22 = arith.constant 1 : index
    %c0_23 = arith.constant 0 : index
    %c0_24 = arith.constant 0 : index
    %16 = vector.load %arg8[%c1_22, %c0_23, %c0_24] : memref<18x18x128xbf16, #tpu.memory_space<vmem>>, vector<16x16x128xbf16>
    %17 = vector.shape_cast %16 : vector<16x16x128xbf16> to vector<256x128xbf16>
    %c1_25 = arith.constant 1 : index
    %c1_26 = arith.constant 1 : index
    %c0_27 = arith.constant 0 : index
    %18 = vector.load %arg8[%c1_25, %c1_26, %c0_27] : memref<18x18x128xbf16, #tpu.memory_space<vmem>>, vector<16x16x128xbf16>
    %19 = vector.shape_cast %18 : vector<16x16x128xbf16> to vector<256x128xbf16>
    %c1_28 = arith.constant 1 : index
    %c2_29 = arith.constant 2 : index
    %c0_30 = arith.constant 0 : index
    %20 = vector.load %arg8[%c1_28, %c2_29, %c0_30] : memref<18x18x128xbf16, #tpu.memory_space<vmem>>, vector<16x16x128xbf16>
    %21 = vector.shape_cast %20 : vector<16x16x128xbf16> to vector<256x128xbf16>
    %c2_31 = arith.constant 2 : index
    %c0_32 = arith.constant 0 : index
    %c0_33 = arith.constant 0 : index
    %22 = vector.load %arg8[%c2_31, %c0_32, %c0_33] : memref<18x18x128xbf16, #tpu.memory_space<vmem>>, vector<16x16x128xbf16>
    %23 = vector.shape_cast %22 : vector<16x16x128xbf16> to vector<256x128xbf16>
    %c2_34 = arith.constant 2 : index
    %c1_35 = arith.constant 1 : index
    %c0_36 = arith.constant 0 : index
    %24 = vector.load %arg8[%c2_34, %c1_35, %c0_36] : memref<18x18x128xbf16, #tpu.memory_space<vmem>>, vector<16x16x128xbf16>
    %25 = vector.shape_cast %24 : vector<16x16x128xbf16> to vector<256x128xbf16>
    %c2_37 = arith.constant 2 : index
    %c2_38 = arith.constant 2 : index
    %c0_39 = arith.constant 0 : index
    %26 = vector.load %arg8[%c2_37, %c2_38, %c0_39] : memref<18x18x128xbf16, #tpu.memory_space<vmem>>, vector<16x16x128xbf16>
    %27 = vector.shape_cast %26 : vector<16x16x128xbf16> to vector<256x128xbf16>
    %28 = tpu.concatenate %11, %13, %15, %17, %19, %21, %23, %25, %27 in 1 : vector<256x128xbf16>, vector<256x128xbf16>, vector<256x128xbf16>, vector<256x128xbf16>, vector<256x128xbf16>, vector<256x128xbf16>, vector<256x128xbf16>, vector<256x128xbf16>, vector<256x128xbf16> -> vector<256x1152xbf16>
    %c0_40 = arith.constant 0 : index
    %c0_41 = arith.constant 0 : index
    %29 = vector.load %arg3[%c0_40, %c0_41] : memref<1152x128xbf16, #tpu.memory_space<vmem>>, vector<1152x128xbf16>
    %cst_42 = arith.constant dense<0.000000e+00> : vector<256x128xf32>
    %30 = tpu.matmul %28, %29, %cst_42 {dimension_numbers = #tpu.dot_dimension_numbers<[1], [0], [0], [1], [0, 0, 1, 1], [], []>} : vector<256x1152xbf16>, vector<1152x128xbf16>, vector<256x128xf32> -> vector<256x128xf32>
    %c0_43 = arith.constant 0 : index
    %c0_44 = arith.constant 0 : index
    %31 = vector.load %arg4[%c0_43, %c0_44] : memref<1x128xf32, #tpu.memory_space<vmem>>, vector<1x128xf32>
    %32 = vector.broadcast %31 : vector<1x128xf32> to vector<256x128xf32>
    %33 = arith.addf %30, %32 : vector<256x128xf32>
    %cst_45 = arith.constant 1.000000e-01 : f32
    %34 = vector.broadcast %cst_45 : f32 to vector<256x128xf32>
    %35 = arith.mulf %34, %33 : vector<256x128xf32>
    %36 = arith.maximumf %33, %35 : vector<256x128xf32>
    %cst_46 = arith.constant 0.000000e+00 : bf16
    %37 = vector.broadcast %cst_46 : bf16 to vector<18x18x128xbf16>
    %c0_47 = arith.constant 0 : index
    %c0_48 = arith.constant 0 : index
    %c0_49 = arith.constant 0 : index
    %38 = vector.load %arg9[%c0_47, %c0_48, %c0_49] : memref<18x18x128xbf16, #tpu.memory_space<vmem>>, vector<18x18x128xbf16>
    tpu.vector_store %arg9[%c0_47, %c0_48, %c0_49], %37 {strides = array<i32>} : memref<18x18x128xbf16, #tpu.memory_space<vmem>>, vector<18x18x128xbf16>,
    %39 = vector.shape_cast %36 : vector<256x128xf32> to vector<16x16x128xf32>
    %40 = arith.truncf %39 : vector<16x16x128xf32> to vector<16x16x128xbf16>
    %c1_50 = arith.constant 1 : index
    %c1_51 = arith.constant 1 : index
    %c0_52 = arith.constant 0 : index
    %41 = vector.load %arg9[%c1_50, %c1_51, %c0_52] : memref<18x18x128xbf16, #tpu.memory_space<vmem>>, vector<16x16x128xbf16>
    tpu.vector_store %arg9[%c1_50, %c1_51, %c0_52], %40 {strides = array<i32>} : memref<18x18x128xbf16, #tpu.memory_space<vmem>>, vector<16x16x128xbf16>,
    %c0_53 = arith.constant 0 : index
    %c0_54 = arith.constant 0 : index
    %c0_55 = arith.constant 0 : index
    %42 = vector.load %arg9[%c0_53, %c0_54, %c0_55] : memref<18x18x128xbf16, #tpu.memory_space<vmem>>, vector<16x16x128xbf16>
    %43 = vector.shape_cast %42 : vector<16x16x128xbf16> to vector<256x128xbf16>
    %c0_56 = arith.constant 0 : index
    %c1_57 = arith.constant 1 : index
    %c0_58 = arith.constant 0 : index
    %44 = vector.load %arg9[%c0_56, %c1_57, %c0_58] : memref<18x18x128xbf16, #tpu.memory_space<vmem>>, vector<16x16x128xbf16>
    %45 = vector.shape_cast %44 : vector<16x16x128xbf16> to vector<256x128xbf16>
    %c0_59 = arith.constant 0 : index
    %c2_60 = arith.constant 2 : index
    %c0_61 = arith.constant 0 : index
    %46 = vector.load %arg9[%c0_59, %c2_60, %c0_61] : memref<18x18x128xbf16, #tpu.memory_space<vmem>>, vector<16x16x128xbf16>
    %47 = vector.shape_cast %46 : vector<16x16x128xbf16> to vector<256x128xbf16>
    %c1_62 = arith.constant 1 : index
    %c0_63 = arith.constant 0 : index
    %c0_64 = arith.constant 0 : index
    %48 = vector.load %arg9[%c1_62, %c0_63, %c0_64] : memref<18x18x128xbf16, #tpu.memory_space<vmem>>, vector<16x16x128xbf16>
    %49 = vector.shape_cast %48 : vector<16x16x128xbf16> to vector<256x128xbf16>
    %c1_65 = arith.constant 1 : index
    %c1_66 = arith.constant 1 : index
    %c0_67 = arith.constant 0 : index
    %50 = vector.load %arg9[%c1_65, %c1_66, %c0_67] : memref<18x18x128xbf16, #tpu.memory_space<vmem>>, vector<16x16x128xbf16>
    %51 = vector.shape_cast %50 : vector<16x16x128xbf16> to vector<256x128xbf16>
    %c1_68 = arith.constant 1 : index
    %c2_69 = arith.constant 2 : index
    %c0_70 = arith.constant 0 : index
    %52 = vector.load %arg9[%c1_68, %c2_69, %c0_70] : memref<18x18x128xbf16, #tpu.memory_space<vmem>>, vector<16x16x128xbf16>
    %53 = vector.shape_cast %52 : vector<16x16x128xbf16> to vector<256x128xbf16>
    %c2_71 = arith.constant 2 : index
    %c0_72 = arith.constant 0 : index
    %c0_73 = arith.constant 0 : index
    %54 = vector.load %arg9[%c2_71, %c0_72, %c0_73] : memref<18x18x128xbf16, #tpu.memory_space<vmem>>, vector<16x16x128xbf16>
    %55 = vector.shape_cast %54 : vector<16x16x128xbf16> to vector<256x128xbf16>
    %c2_74 = arith.constant 2 : index
    %c1_75 = arith.constant 1 : index
    %c0_76 = arith.constant 0 : index
    %56 = vector.load %arg9[%c2_74, %c1_75, %c0_76] : memref<18x18x128xbf16, #tpu.memory_space<vmem>>, vector<16x16x128xbf16>
    %57 = vector.shape_cast %56 : vector<16x16x128xbf16> to vector<256x128xbf16>
    %c2_77 = arith.constant 2 : index
    %c2_78 = arith.constant 2 : index
    %c0_79 = arith.constant 0 : index
    %58 = vector.load %arg9[%c2_77, %c2_78, %c0_79] : memref<18x18x128xbf16, #tpu.memory_space<vmem>>, vector<16x16x128xbf16>
    %59 = vector.shape_cast %58 : vector<16x16x128xbf16> to vector<256x128xbf16>
    %60 = tpu.concatenate %43, %45, %47, %49, %51, %53, %55, %57, %59 in 1 : vector<256x128xbf16>, vector<256x128xbf16>, vector<256x128xbf16>, vector<256x128xbf16>, vector<256x128xbf16>, vector<256x128xbf16>, vector<256x128xbf16>, vector<256x128xbf16>, vector<256x128xbf16> -> vector<256x1152xbf16>
    %c0_80 = arith.constant 0 : index
    %c0_81 = arith.constant 0 : index
    %61 = vector.load %arg5[%c0_80, %c0_81] : memref<1152x128xbf16, #tpu.memory_space<vmem>>, vector<1152x128xbf16>
    %cst_82 = arith.constant dense<0.000000e+00> : vector<256x128xf32>
    %62 = tpu.matmul %60, %61, %cst_82 {dimension_numbers = #tpu.dot_dimension_numbers<[1], [0], [0], [1], [0, 0, 1, 1], [], []>} : vector<256x1152xbf16>, vector<1152x128xbf16>, vector<256x128xf32> -> vector<256x128xf32>
    %c0_83 = arith.constant 0 : index
    %c0_84 = arith.constant 0 : index
    %63 = vector.load %arg6[%c0_83, %c0_84] : memref<1x128xf32, #tpu.memory_space<vmem>>, vector<1x128xf32>
    %64 = vector.broadcast %63 : vector<1x128xf32> to vector<256x128xf32>
    %65 = arith.addf %62, %64 : vector<256x128xf32>
    %cst_85 = arith.constant 1.000000e-01 : f32
    %66 = vector.broadcast %cst_85 : f32 to vector<256x128xf32>
    %67 = arith.mulf %66, %65 : vector<256x128xf32>
    %68 = arith.maximumf %65, %67 : vector<256x128xf32>
    %69 = vector.shape_cast %68 : vector<256x128xf32> to vector<16x16x128xf32>
    %c0_86 = arith.constant 0 : index
    %c0_87 = arith.constant 0 : index
    %c0_88 = arith.constant 0 : index
    %c0_89 = arith.constant 0 : index
    %70 = vector.load %arg7[%c0_86, %c0_87, %c0_88, %c0_89] : memref<1x16x16x128xf32, #tpu.memory_space<vmem>>, vector<1x16x16x128xf32>
    %71 = vector.shape_cast %70 : vector<1x16x16x128xf32> to vector<16x16x128xf32>
    %72 = vector.shape_cast %69 : vector<16x16x128xf32> to vector<1x16x16x128xf32>
    tpu.vector_store %arg7[%c0_86, %c0_87, %c0_88, %c0_89], %72 {strides = array<i32>} : memref<1x16x16x128xf32, #tpu.memory_space<vmem>>, vector<1x16x16x128xf32>,
    return
  }
  func.func @transform_0(%arg0: i32) -> (i32, i32, i32, i32) {
    %c0_i32 = arith.constant 0 : i32
    %c0_i32_0 = arith.constant 0 : i32
    %c0_i32_1 = arith.constant 0 : i32
    %c0_i32_2 = arith.constant 0 : i32
    return %arg0, %c0_i32, %c0_i32_0, %c0_i32_1 : i32, i32, i32, i32
  }
  func.func @transform_1(%arg0: i32) -> (i32, i32, i32, i32) {
    %c0_i32 = arith.constant 0 : i32
    %c0_i32_0 = arith.constant 0 : i32
    %c0_i32_1 = arith.constant 0 : i32
    %c0_i32_2 = arith.constant 0 : i32
    return %arg0, %c0_i32, %c0_i32_0, %c0_i32_1 : i32, i32, i32, i32
  }
  func.func @transform_2(%arg0: i32) -> (i32, i32) {
    %c0_i32 = arith.constant 0 : i32
    %c0_i32_0 = arith.constant 0 : i32
    %c0_i32_1 = arith.constant 0 : i32
    return %c0_i32, %c0_i32_0 : i32, i32
  }
  func.func @transform_3(%arg0: i32) -> (i32, i32) {
    %c0_i32 = arith.constant 0 : i32
    %c0_i32_0 = arith.constant 0 : i32
    %c0_i32_1 = arith.constant 0 : i32
    return %c0_i32, %c0_i32_0 : i32, i32
  }
  func.func @transform_4(%arg0: i32) -> (i32, i32) {
    %c0_i32 = arith.constant 0 : i32
    %c0_i32_0 = arith.constant 0 : i32
    %c0_i32_1 = arith.constant 0 : i32
    return %c0_i32, %c0_i32_0 : i32, i32
  }
  func.func @transform_5(%arg0: i32) -> (i32, i32) {
    %c0_i32 = arith.constant 0 : i32
    %c0_i32_0 = arith.constant 0 : i32
    %c0_i32_1 = arith.constant 0 : i32
    return %c0_i32, %c0_i32_0 : i32, i32
  }
  func.func @transform_6(%arg0: i32) -> (i32, i32, i32, i32) {
    %c0_i32 = arith.constant 0 : i32
    %c0_i32_0 = arith.constant 0 : i32
    %c0_i32_1 = arith.constant 0 : i32
    %c0_i32_2 = arith.constant 0 : i32
    return %arg0, %c0_i32, %c0_i32_0, %c0_i32_1 : i32, i32, i32, i32
  }
}

</mosaic_0001>

<bundles_post_ra>
// kernel: tpu_custom_call.1
= control target key start
LH: loop header
LB: loop body
LE: loop exit
PB: predicated region body
PF: predicated region fallthrough
CT: control target
= control target key end

     0   :  { %11 = vsyncpa [#allocation5], 0  ;;  %s17318_s0 = inlined_call_operand.vmem [shape: f32[2,16,16,8], index: 0, kind: input, shape index: {}]   ;;  %s17319_s1 = inlined_call_operand.vmem [shape: f32[2,16,16,4], index: 1, kind: input, shape index: {}]   ;;  %s17320_s2 = inlined_call_operand.vmem [shape: bf16[1152,128], index: 2, kind: input, shape index: {}]   ;;  %s17321_s3 = inlined_call_operand.vmem [shape: f32[1,128], index: 3, kind: input, shape index: {}]   ;;  %s17322_s4 = inlined_call_operand.vmem [shape: bf16[1152,128], index: 4, kind: input, shape index: {}]   ;;  %s17323_s5 = inlined_call_operand.vmem [shape: f32[1,128], index: 5, kind: input, shape index: {}]   ;;  %s17324_s6 = inlined_call_operand.hbm [shape: f32[2,16,16,128], index: 6, kind: output, shape index: {}]  }
   0x1   :  { %13 = vsyncpa [#allocation5 + $0x1], 0  ;;  %s12298_s21 = smov 0   ;;  %s12300_s22 = smov 0  }
   0x2   :  { %s12302_s23 = smov 0   ;;  %s12304_s24 = smov 0  }
   0x3 LB: > { %s12319_s25 = sadd.s32 4294967295, %s12257_s24   ;;  %s10071_s26 = sadd.s32 4294967294, %s12257_s24   ;;  %s12257_s24 = sphi %s12304_s24, %s17604_s24   ;;  %s12253_s23 = sphi %s12302_s23, %s17603_s23   ;;  %s12249_s22 = sphi %s12300_s22, %s17602_s22   ;;  %s12245_s21 = sphi %s12298_s21, %s17601_s21  }
   0x4   : > { %s12323_s27 = sadd.s32 1, %s12257_s24   ;;  %s162_s28 = sadd.s32 1, %s12253_s23 }
   0x5   : > { %s159_s29 = ssub.s32 %s12257_s24, %s12323_s27  ;;  %p172_p0 = scmp.ne.s32.totalorder %s12253_s23, %s12249_s22 }
   0x6   : > { %p160_p1 = scmp.eq.s32.totalorder %s159_s29, 0  ;;  %p173_p2 = scmp.eq.s32.totalorder %s12319_s25, 1 }
   0x7   : > { %p178_p3 = scmp.ne.s32.totalorder %s12249_s22, %s12245_s21  ;;  %p179_p4 = scmp.eq.s32.totalorder %s10071_s26, 1 }
   0x8   : > { %s12334_s30 = scalar_select %p160_p1, %s12253_s23, %s162_s28  }
   0x9   : > { %p12336_p5 = por %p173_p2, %p172_p0  ;;  %p12340_p6 = por %p179_p4, %p178_p3 }
   0xa   : > { %p10074_p7 = scmp.ge.s32.totalorder %s12257_s24, 1  ;;  %p225_p8 = scmp.lt.s32.totalorder %s12257_s24, 3 }
   0xc   : > { %p226_p9 = pnand %p10074_p7, %p225_p8 }
   0xe   : > { %229 = sbr.rel (%p226_p9) target bundleno = 1378 (0x562), region = 44 }
  0x15   : > { %p260_p10 = scmp.lt.s32.totalorder %s12319_s25, 1  ;;  %v12353_v0 = vld [vmem:[%s17320_s2 + $0x40] sm:$0xff]   ;;  %v12259_v1 = vmov 0   ;;  %vm453_vm0 = vsmask.f32 256  ;;  %v17367_v28 = vmov 0 }
  0x16   : > { %274 = vst [vmem:[#allocation2 + $0xc] sm:$0xf] %v12259_v1  ;;  %271 = vst [vmem:[#allocation2] sm:$0xf] %v12259_v1  ;;  %v11893_v2 = vld [vmem:[%s17320_s2] sm:$0xff]   ;;  %10810 = vmatprep.subr.bf16.mxu0 %v12353_v0  ;;  %s12260_s28 = smov 8  }
  0x17   : > { %s12348_s9 = scalar_select %p260_p10, %s12319_s25, 1  ;;  %272 = vst [vmem:[#allocation2 + $0x4] sm:$0xf] %v12259_v1  ;;  %273 = vst [vmem:[#allocation2 + $0x8] sm:$0x1] %v12259_v1  ;;  %v11894_v3 = vld [vmem:[%s17320_s2 + $0xc0] sm:$0xff]   ;;  %10811 = vmatpush3.bf16.msra.mxu0 %v11893_v2 }
  0x18   : > { %275 = vst [vmem:[#allocation2 + $0x10] sm:$0xf] %v12259_v1  ;;  %276 = vst [vmem:[#allocation2 + $0x14] sm:$0x1] %v12259_v1  ;;  %v11895_v4 = vld [vmem:[%s17320_s2 + $0x80] sm:$0xff]   ;;  %10922 = vmatprep.subr.bf16.mxu1 %v11894_v3  ;;  %v11896_v56 = vld [vmem:[%s17320_s2 + $0x48] sm:$0xff]  }
  0x19   : > { %277 = vst [vmem:[#allocation2 + $0x18] sm:$0xf] %v12259_v1  ;;  %278 = vst [vmem:[#allocation2 + $0x1c] sm:$0xf] %v12259_v1  ;;  %s10711_s14 = sshll.u32 %s12348_s9, 8  ;;  %10923 = vmatpush3.bf16.msra.mxu1 %v11895_v4  ;;  %v11897_v61 = vld [vmem:[%s17320_s2 + $0x8] sm:$0xff]   ;;  %10812 = vmatprep.subr.bf16.mxu0 %v11896_v56 }
  0x1a   : > { %279 = vst [vmem:[#allocation2 + $0x20] sm:$0x1] %v12259_v1  ;;  %280 = vst [vmem:[#allocation2 + $0x24] sm:$0xf] %v12259_v1  ;;  %s12476_s19 = scalar_lea.vmem %s17319_s1, %s10711_s14  ;;  %vm454_vm1 = vsmask.f32 4368  ;;  %s12697_s17 = scalar_lea.vmem %s17318_s0, %s10711_s14 }
  0x1b   : > { %281 = vst [vmem:[#allocation2 + $0x28] sm:$0xf] %v12259_v1  ;;  %282 = vst [vmem:[#allocation2 + $0x2c] sm:$0x1] %v12259_v1  ;;  %v895_v5 = vld [vmem:[%s12476_s19] sm:$0xff]  ;;  %v896_v6 = vld [vmem:[%s12476_s19 + $0x8] sm:$0xff]  ;;  %10813 = vmatpush3.bf16.msra.mxu0 %v11897_v61 }
  0x1c   : > { %283 = vst [vmem:[#allocation2 + $0x30] sm:$0xf] %v12259_v1  ;;  %284 = vst [vmem:[#allocation2 + $0x34] sm:$0xf] %v12259_v1  ;;  %v897_v7 = vld [vmem:[%s12476_s19 + $0x10] sm:$0xff]  ;;  %v10745_v8 = vpack.c.bf16 %v895_v5, %v895_v5  ;;  %v10746_v9 = vpack.c.bf16 %v896_v6, %v896_v6  ;;  %v898_v11 = vld [vmem:[%s12476_s19 + $0x18] sm:$0xff] }
  0x1d   : > { %285 = vst [vmem:[#allocation2 + $0x38] sm:$0x1] %v12259_v1  ;;  %286 = vst [vmem:[#allocation2 + $0x3c] sm:$0xf] %v12259_v1  ;;  %v10747_v10 = vpack.c.bf16 %v897_v7, %v897_v7  ;;  %v899_v12 = vld [vmem:[%s12476_s19 + $0x20] sm:$0xff]  ;;  %v900_v13 = vld [vmem:[%s12476_s19 + $0x28] sm:$0xff]  ;;  %v10748_v14 = vpack.c.bf16 %v898_v11, %v898_v11 }
  0x1e   : > { %287 = vst [vmem:[#allocation2 + $0x40] sm:$0xf] %v12259_v1  ;;  %288 = vst [vmem:[#allocation2 + $0x44] sm:$0x1] %v12259_v1  ;;  %v10749_v15 = vpack.c.bf16 %v899_v12, %v899_v12  ;;  %v10750_v16 = vpack.c.bf16 %v900_v13, %v900_v13  ;;  %v1024_v17 = vshrl.u32 %v10745_v8, 16  ;;  %v1027_v18 = vshll.u32 %v10745_v8, 16 }
  0x1f   : > { %289 = vst [vmem:[#allocation2 + $0x48] sm:$0xf] %v12259_v1  ;;  %290 = vst [vmem:[#allocation2 + $0x4c] sm:$0xf] %v12259_v1  ;;  %v1032_v19 = vshrl.u32 %v10746_v9, 16  ;;  %v1035_v20 = vshll.u32 %v10746_v9, 16 }
  0x20   : > { %291 = vst [vmem:[#allocation2 + $0x50] sm:$0x1] %v12259_v1  ;;  %292 = vst [vmem:[#allocation2 + $0x54] sm:$0xf] %v12259_v1  ;;  %v1041_v21 = vshrl.u32 %v10747_v10, 16  ;;  %v1044_v22 = vshll.u32 %v10747_v10, 16 }
  0x21   : > { %293 = vst [vmem:[#allocation2 + $0x58] sm:$0xf] %v12259_v1  ;;  %294 = vst [vmem:[#allocation2 + $0x5c] sm:$0x1] %v12259_v1  ;;  %v1049_v23 = vshrl.u32 %v10748_v14, 16  ;;  %v1052_v24 = vshll.u32 %v10748_v14, 16 }
  0x22   : > { %295 = vst [vmem:[#allocation2 + $0x60] sm:$0xf] %v12259_v1  ;;  %296 = vst [vmem:[#allocation2 + $0x64] sm:$0xf] %v12259_v1  ;;  %v1026_v25 = vrot.slane %v1024_v17, 7  ;;  %v1034_v26 = vrot.slane %v1032_v19, 7 }
  0x23   : > { %297 = vst [vmem:[#allocation2 + $0x68] sm:$0x1] %v12259_v1  ;;  %298 = vst [vmem:[#allocation2 + $0x6c] sm:$0xf] %v12259_v1  ;;  %v1058_v27 = vshrl.u32 %v10749_v15, 16  ;;  %v1043_v29 = vrot.slane %v1041_v21, 7 }
  0x24   : > { %299 = vst [vmem:[#allocation2 + $0x70] sm:$0xf] %v12259_v1  ;;  %300 = vst [vmem:[#allocation2 + $0x74] sm:$0x1] %v12259_v1  ;;  %v12493_v30 = vrot.slane %v1049_v23, 7  ;;  %v1066_v31 = vshrl.u32 %v10750_v16, 16  ;;  %v1029_v34 = vor.u32 %v1027_v18, %v1026_v25  ;;  %v1037_v37 = vor.u32 %v1035_v20, %v1034_v26 }
  0x25   : > { %301 = vst [vmem:[#allocation2 + $0x78] sm:$0xf] %v12259_v1  ;;  %302 = vst [vmem:[#allocation2 + $0x7c] sm:$0xf] %v12259_v1  ;;  %v1069_v32 = vshll.u32 %v10750_v16, 16  ;;  %v901_v33 = vld [vmem:[%s12476_s19 + $0x30] sm:$0xff]  ;;  %v1046_v41 = vor.u32 %v1044_v22, %v1043_v29 }
  0x26   : > { %303 = vst [vmem:[#allocation2 + $0x80] sm:$0x1] %v12259_v1  ;;  %304 = vst [vmem:[#allocation2 + $0x84] sm:$0xf] %v12259_v1  ;;  %v1030_v35 = vrot.slane %v1026_v25, 4  ;;  %v1039_v36 = vrot.slane %v1034_v26, 4  ;;  %v1054_v43 = vor.u32 %v1052_v24, %v12493_v30  ;;  %1295 = vrot.lane.b32.xlu0 %v1029_v34, %s12260_s28  ;;  %v10751_v48 = vpack.c.bf16 %v901_v33, %v901_v33 }
  0x27   : > { %305 = vst [vmem:[#allocation2 + $0x88] sm:$0xf] %v12259_v1  ;;  %306 = vst [vmem:[#allocation2 + $0x8c] sm:$0x1] %v12259_v1  ;;  %v902_v38 = vld [vmem:[%s12476_s19 + $0x38] sm:$0xff]  ;;  %v903_v39 = vld [vmem:[%s12476_s19 + $0x40] sm:$0xff] }
  0x28   : > { %307 = vst [vmem:[#allocation2 + $0x90] sm:$0xf] %v12259_v1  ;;  %308 = vst [vmem:[#allocation2 + $0x94] sm:$0xf] %v12259_v1  ;;  %v904_v40 = vld [vmem:[%s12476_s19 + $0x48] sm:$0xff]  ;;  %v1047_v42 = vrot.slane %v1043_v29, 4  ;;  %1299 = vrot.lane.b32.xlu1 %v1039_v36, %s12260_s28  ;;  %v10752_v51 = vpack.c.bf16 %v902_v38, %v902_v38  ;;  %v10753_v52 = vpack.c.bf16 %v903_v39, %v903_v39 }
  0x29   : > { %309 = vst [vmem:[#allocation2 + $0x98] sm:$0x1] %v12259_v1  ;;  %310 = vst [vmem:[#allocation2 + $0x9c] sm:$0xf] %v12259_v1  ;;  %v1061_v44 = vshll.u32 %v10749_v15, 16  ;;  %v1056_v45 = vrot.slane %v12493_v30, 4  ;;  %v10754_v53 = vpack.c.bf16 %v904_v40, %v904_v40 }
  0x2a   : > { %311 = vst [vmem:[#allocation2 + $0xa0] sm:$0xf] %v12259_v1  ;;  %312 = vst [vmem:[#allocation2 + $0xa4] sm:$0x1] %v12259_v1  ;;  %v1060_v46 = vrot.slane %v1058_v27, 7  ;;  %v12503_v47 = vrot.slane %v1066_v31, 7 }
  0x2b   : > { %313 = vst [vmem:[#allocation2 + $0xa8] sm:$0xf] %v12259_v1  ;;  %314 = vst [vmem:[#allocation2 + $0xac] sm:$0xf] %v12259_v1  ;;  %v905_v49 = vld [vmem:[%s12476_s19 + $0x50] sm:$0xff]  ;;  %v906_v54 = vld [vmem:[%s12476_s19 + $0x58] sm:$0xff] }
  0x2c   : > { %315 = vst [vmem:[#allocation2 + $0xb0] sm:$0x1] %v12259_v1  ;;  %316 = vst [vmem:[#allocation2 + $0xb4] sm:$0xf] %v12259_v1  ;;  %v907_v55 = vld [vmem:[%s12476_s19 + $0x60] sm:$0xff]  ;;  %v1064_v58 = vrot.slane %v1060_v46, 4  ;;  %v1071_v59 = vor.u32 %v1069_v32, %v12503_v47  ;;  %1301 = vrot.lane.b32.xlu1 %v1046_v41, %s12260_s28  ;;  %v1063_v3 = vor.u32 %v1061_v44, %v1060_v46 }
  0x2d   : > { %317 = vst [vmem:[#allocation2 + $0xb8] sm:$0xf] %v12259_v1  ;;  %318 = vst [vmem:[#allocation2 + $0xbc] sm:$0x1] %v12259_v1  ;;  %v1073_v60 = vrot.slane %v12503_v47, 4  ;;  %v11898_v62 = vld [vmem:[%s17320_s2 + $0xc8] sm:$0xff]   ;;  %v10755_v11 = vpack.c.bf16 %v905_v49, %v905_v49  ;;  %v10756_v14 = vpack.c.bf16 %v906_v54, %v906_v54  ;;  %v10757_v15 = vpack.c.bf16 %v907_v55, %v907_v55 }
  0x2e   : > { %319 = vst [vmem:[#allocation2 + $0xc0] sm:$0xf] %v12259_v1  ;;  %320 = vst [vmem:[#allocation2 + $0xc4] sm:$0xf] %v12259_v1  ;;  %v1075_v63 = vshrl.u32 %v10751_v48, 16  ;;  %v1078_v0 = vshll.u32 %v10751_v48, 16  ;;  %10924 = vmatprep.subr.bf16.mxu1 %v11898_v62 }
  0x2f   : > { %321 = vst [vmem:[#allocation2 + $0xc8] sm:$0x1] %v12259_v1  ;;  %322 = vst [vmem:[#allocation2 + $0xcc] sm:$0xf] %v12259_v1  ;;  %v1086_v2 = vshll.u32 %v10752_v51, 16  ;;  %v1092_v4 = vshrl.u32 %v10753_v52, 16 }
  0x30   : > { %323 = vst [vmem:[#allocation2 + $0xd0] sm:$0xf] %v12259_v1  ;;  %324 = vst [vmem:[#allocation2 + $0xd4] sm:$0x1] %v12259_v1  ;;  %v1095_v5 = vshll.u32 %v10753_v52, 16  ;;  %v1100_v6 = vshrl.u32 %v10754_v53, 16  ;;  %1305 = vrot.lane.b32.xlu1 %v1056_v45, %s12260_s28 }
  0x31   : > { %5463 = vst [vmem:[#allocation3] sm:$0xf] %v12259_v1  ;;  %5464 = vst [vmem:[#allocation3 + $0x4] sm:$0xf] %v12259_v1  ;;  %v11899_v7 = vld [vmem:[%s17320_s2 + $0x88] sm:$0xff]   ;;  %v1077_v8 = vrot.slane %v1075_v63, 7 }
  0x32   : > { %5465 = vst [vmem:[#allocation3 + $0x8] sm:$0x1] %v12259_v1  ;;  %5466 = vst [vmem:[#allocation3 + $0xc] sm:$0xf] %v12259_v1  ;;  %v1103_v10 = vshll.u32 %v10754_v53, 16  ;;  %v1094_v12 = vrot.slane %v1092_v4, 7  ;;  %10925 = vmatpush3.bf16.msra.mxu1 %v11899_v7 }
  0x33   : > { %5467 = vst [vmem:[#allocation3 + $0x10] sm:$0xf] %v12259_v1  ;;  %5468 = vst [vmem:[#allocation3 + $0x14] sm:$0x1] %v12259_v1  ;;  %v12530_v13 = vrot.slane %v1100_v6, 7  ;;  %v908_v16 = vld [vmem:[%s12476_s19 + $0x68] sm:$0xff]  ;;  %v1080_v25 = vor.u32 %v1078_v0, %v1077_v8 }
  0x34   : > { %5469 = vst [vmem:[#allocation3 + $0x18] sm:$0xf] %v12259_v1  ;;  %5470 = vst [vmem:[#allocation3 + $0x1c] sm:$0xf] %v12259_v1  ;;  %v909_v17 = vld [vmem:[%s12476_s19 + $0x70] sm:$0xff]  ;;  %v1081_v19 = vrot.slane %v1077_v8, 4  ;;  %v12548_v31 = vor.u32 %v1095_v5, %v1094_v12 }
  0x35   : > { %5471 = vst [vmem:[#allocation3 + $0x20] sm:$0x1] %v12259_v1  ;;  %5472 = vst [vmem:[#allocation3 + $0x24] sm:$0xf] %v12259_v1  ;;  %v910_v22 = vld [vmem:[%s12476_s19 + $0x78] sm:$0xff]  ;;  %v911_v23 = vld [vmem:[%s12476_s19 + $0x80] sm:$0xff]  ;;  %v1105_v27 = vor.u32 %v1103_v10, %v12530_v13  ;;  %v10759_v44 = vpack.c.bf16 %v909_v17, %v909_v17 }
  0x36   : > { %5473 = vst [vmem:[#allocation3 + $0x28] sm:$0xf] %v12259_v1  ;;  %5474 = vst [vmem:[#allocation3 + $0x2c] sm:$0x1] %v12259_v1  ;;  %v11900_v24 = vld [vmem:[%s17320_s2 + $0x50] sm:$0xff]   ;;  %v1098_v26 = vrot.slane %v1094_v12, 4  ;;  %v10760_v48 = vpack.c.bf16 %v910_v22, %v910_v22  ;;  %v10761_v49 = vpack.c.bf16 %v911_v23, %v911_v23 }
  0x37   : > { %5475 = vst [vmem:[#allocation3 + $0x30] sm:$0xf] %v12259_v1  ;;  %5476 = vst [vmem:[#allocation3 + $0x34] sm:$0xf] %v12259_v1  ;;  %v1107_v29 = vrot.slane %v12530_v13, 4  ;;  %v912_v30 = vld [vmem:[%s12476_s19 + $0x88] sm:$0xff]  ;;  %10814 = vmatprep.subr.bf16.mxu0 %v11900_v24 }
  0x38   : > { %5477 = vst [vmem:[#allocation3 + $0x38] sm:$0x1] %v12259_v1  ;;  %5478 = vst [vmem:[#allocation3 + $0x3c] sm:$0xf] %v12259_v1  ;;  %v1109_v32 = vshrl.u32 %v10755_v11, 16  ;;  %v1112_v33 = vshll.u32 %v10755_v11, 16  ;;  %v10762_v54 = vpack.c.bf16 %v912_v30, %v912_v30 }
  0x39   : > { %5479 = vst [vmem:[#allocation3 + $0x40] sm:$0xf] %v12259_v1  ;;  %5480 = vst [vmem:[#allocation3 + $0x44] sm:$0x1] %v12259_v1  ;;  %v1117_v34 = vshrl.u32 %v10756_v14, 16  ;;  %v1126_v38 = vshrl.u32 %v10757_v15, 16 }
  0x3a   : > { %5481 = vst [vmem:[#allocation3 + $0x48] sm:$0xf] %v12259_v1  ;;  %5482 = vst [vmem:[#allocation3 + $0x4c] sm:$0xf] %v12259_v1  ;;  %v1129_v39 = vshll.u32 %v10757_v15, 16  ;;  %v11902_v40 = vld [vmem:[%s17320_s2 + $0xd0] sm:$0xff]  }
  0x3b   : > { %5483 = vst [vmem:[#allocation3 + $0x50] sm:$0x1] %v12259_v1  ;;  %5484 = vst [vmem:[#allocation3 + $0x54] sm:$0xf] %v12259_v1  ;;  %v1111_v41 = vrot.slane %v1109_v32, 7  ;;  %v1128_v46 = vrot.slane %v1126_v38, 7  ;;  %10926 = vmatprep.subr.bf16.mxu1 %v11902_v40 }
  0x3c   : > { %5485 = vst [vmem:[#allocation3 + $0x58] sm:$0xf] %v12259_v1  ;;  %5486 = vst [vmem:[#allocation3 + $0x5c] sm:$0x1] %v12259_v1  ;;  %v913_v55 = vld [vmem:[%s12476_s19 + $0x90] sm:$0xff]  ;;  %v11904_v56 = vld [vmem:[%s17320_s2 + $0x58] sm:$0xff]  }
  0x3d   : > { %5487 = vst [vmem:[#allocation3 + $0x60] sm:$0xf] %v12259_v1  ;;  %5488 = vst [vmem:[#allocation3 + $0x64] sm:$0xf] %v12259_v1  ;;  %v11906_v63 = vld [vmem:[%s17320_s2 + $0xd8] sm:$0xff]   ;;  %v12583_v0 = vor.u32 %v1129_v39, %v1128_v46  ;;  %v1154_v7 = vshll.u32 %v10760_v48, 16 }
  0x3e   : > { %5489 = vst [vmem:[#allocation3 + $0x68] sm:$0x1] %v12259_v1  ;;  %5490 = vst [vmem:[#allocation3 + $0x6c] sm:$0xf] %v12259_v1  ;;  %v11907_v4 = vld [vmem:[%s17320_s2 + $0x98] sm:$0xff]   ;;  %v1160_v8 = vshrl.u32 %v10761_v49, 16 }
  0x3f   : > { %5491 = vst [vmem:[#allocation3 + $0x70] sm:$0xf] %v12259_v1  ;;  %5492 = vst [vmem:[#allocation3 + $0x74] sm:$0x1] %v12259_v1  ;;  %v914_v10 = vld [vmem:[%s12476_s19 + $0x98] sm:$0xff]  ;;  %v1168_v15 = vshrl.u32 %v10762_v54, 16 }
  0x40   : > { %5493 = vst [vmem:[#allocation3 + $0x78] sm:$0xf] %v12259_v1  ;;  %5494 = vst [vmem:[#allocation3 + $0x7c] sm:$0xf] %v12259_v1  ;;  %v1171_v17 = vshll.u32 %v10762_v54, 16  ;;  %v916_v24 = vld [vmem:[%s12476_s19 + $0xa8] sm:$0xff] }
  0x41   : > { %5495 = vst [vmem:[#allocation3 + $0x80] sm:$0x1] %v12259_v1  ;;  %5496 = vst [vmem:[#allocation3 + $0x84] sm:$0xf] %v12259_v1  ;;  %v12622_v32 = vrot.slane %v1168_v15, 7  ;;  %v10766_v39 = vpack.c.bf16 %v916_v24, %v916_v24  ;;  %v918_v40 = vld [vmem:[%s12476_s19 + $0xb8] sm:$0xff] }
  0x42   : > { %5497 = vst [vmem:[#allocation3 + $0x88] sm:$0xf] %v12259_v1  ;;  %5498 = vst [vmem:[#allocation3 + $0x8c] sm:$0x1] %v12259_v1  ;;  %v922_v15 = vld [vmem:[%s12476_s19 + $0xd8] sm:$0xff]  ;;  %v11914_v13 = vld [vmem:[%s17320_s2 + $0xe8] sm:$0xff]  }
  0x43   : > { %5499 = vst [vmem:[#allocation3 + $0x90] sm:$0xf] %v12259_v1  ;;  %5500 = vst [vmem:[#allocation3 + $0x94] sm:$0xf] %v12259_v1  ;;  %vm777_vm3 = vcmask 60416   ;;  %vm785_vm5 = vcmask 57344  }
  0x44   : > { %5501 = vst [vmem:[#allocation3 + $0x98] sm:$0x1] %v12259_v1  ;;  %5502 = vst [vmem:[#allocation3 + $0x9c] sm:$0xf] %v12259_v1  ;;  %vm778_vm4 = vsmask.f32 7938 }
  0x45   : > { %5503 = vst [vmem:[#allocation3 + $0xa0] sm:$0xf] %v12259_v1  ;;  %5504 = vst [vmem:[#allocation3 + $0xa4] sm:$0x1] %v12259_v1  ;;  %vm1604_vm8 = vsmask.f32 3328 }
  0x46   : > { %5505 = vst [vmem:[#allocation3 + $0xa8] sm:$0xf] %v12259_v1  ;;  %5506 = vst [vmem:[#allocation3 + $0xac] sm:$0xf] %v12259_v1  ;;  %vm1605_vm9 = vsmask.f32 7440 }
  0x47   : > { %5507 = vst [vmem:[#allocation3 + $0xb0] sm:$0x1] %v12259_v1  ;;  %5508 = vst [vmem:[#allocation3 + $0xb4] sm:$0xf] %v12259_v1  ;;  %vm2055_vm10 = vcmask 1042432   ;;  %vm2056_vm12 = vcmask 1046532  }
  0x48   : > { %5509 = vst [vmem:[#allocation3 + $0xb8] sm:$0xf] %v12259_v1  ;;  %5510 = vst [vmem:[#allocation3 + $0xbc] sm:$0x1] %v12259_v1  ;;  %vm1439_vm14 = vcmask 93248   ;;  %vm1446_vm15 = vcmask 90176  }
  0x49   : > { %5511 = vst [vmem:[#allocation3 + $0xc0] sm:$0xf] %v12259_v1  ;;  %5512 = vst [vmem:[#allocation3 + $0xc4] sm:$0xf] %v12259_v1  ;;  %s257_s14 = sand.u32 1, %s12249_s22   ;;  %s10809_s11 = sshll.u32 %s12319_s25, 12 }
  0x4a   : > { %5513 = vst [vmem:[#allocation3 + $0xc8] sm:$0x1] %v12259_v1  ;;  %5514 = vst [vmem:[#allocation3 + $0xcc] sm:$0xf] %v12259_v1  ;;  %s10075_s29 = sshll.u32 %s257_s14, 8  ;;  %s17267_s13 = scalar_lea.hbm %s17324_s6, %s10809_s11 }
  0x4b   : > { %5515 = vst [vmem:[#allocation3 + $0xd0] sm:$0xf] %v12259_v1  ;;  %5516 = vst [vmem:[#allocation3 + $0xd4] sm:$0x1] %v12259_v1  ;;  %v1083_v1 = vshrl.u32 %v10752_v51, 16  ;;  %v1115_v51 = vrot.slane %v1111_v41, 4 }
  0x4c   : > { %vm12489_vm2 = vmor %vm453_vm0, %vm454_vm1  ;;  %s17203_s10 = scalar_lea.vmem [#allocation4], %s10075_s29  ;;  %s17276_s25 = scalar_lea.sflag [#allocation5], %s257_s14 }
  0x4d   : > { %v17368_v28 = vsel %vm12489_vm2, 4294967295, %v17367_v28  ;;  %v1038_v50 = vsel %vm12489_vm2, %v1030_v35, %v1037_v37  ;;  %v1055_v57 = vsel %vm12489_vm2, %v1047_v42, %v1054_v43  ;;  %v12528_v9 = vrot.slane %v1083_v1, 7  ;;  %v11901_v35 = vld [vmem:[%s17320_s2 + $0x10] sm:$0xff]   ;;  %vm12793_vm6 = vmand %vm777_vm3, %vm778_vm4  ;;  %s12261_s16 = smov [#allocation4]  }
  0x4e   : > { %17369 = vst [vmem:[#allocation7_spill] sm:$0xff] %v17368_v28  ;;  %1297 = vrot.lane.b32.xlu0 %v1038_v50, %s12260_s28  ;;  %v1072_v18 = vsel %vm12489_vm2, %v1064_v58, %v1071_v59  ;;  %v1120_v37 = vshll.u32 %v10756_v14, 16  ;;  %v12558_v42 = vrot.slane %v1117_v34, 7  ;;  %v10758_v43 = vpack.c.bf16 %v908_v16, %v908_v16  ;;  %10815 = vmatpush3.bf16.msra.mxu0 %v11901_v35  ;;  %v11903_v50 = vld [vmem:[%s17320_s2 + $0x90] sm:$0xff]   ;;  %v915_v16 = vld [vmem:[%s12476_s19 + $0xa0] sm:$0xff]  ;;  %vm12800_vm7 = vmand %vm785_vm5, %vm453_vm0  ;;  %s12199_s18 = sshll.u32 %s12261_s16, 4  ;;  %s12200_s18 = int_to_ptr.vmem [resolvable:$false] %s12199_s18 }
  0x4f   : > { %v1088_v20 = vor.u32 %v1086_v2, %v12528_v9  ;;  %v1090_v21 = vrot.slane %v12528_v9, 4  ;;  %1309 = vrot.lane.b32.xlu1 %v1072_v18, %s12260_s28  ;;  %v12564_v45 = vsel %vm12489_vm2, %v1098_v26, %v1105_v27  ;;  %v12578_v58 = vor.u32 %v1112_v33, %v1111_v41  ;;  %10927 = vmatpush3.bf16.msra.mxu1 %v11903_v50  ;;  %v917_v33 = vld [vmem:[%s12476_s19 + $0xb0] sm:$0xff]  ;;  %v11909_v41 = vld [vmem:[%s17320_s2 + $0x20] sm:$0xff]   ;;  %vm12869_vm11 = vmor %vm1604_vm8, %vm1605_vm9  ;;  %s12201_s20 = scalar_lea.vmem %s12200_s18, 8192 }
  0x50   : > { %v1122_v52 = vor.u32 %v1120_v37, %v12558_v42  ;;  %v1124_v53 = vrot.slane %v12558_v42, 4  ;;  %v1132_v59 = vrot.slane %v1128_v46, 4  ;;  %v1134_v61 = vshrl.u32 %v10758_v43, 16  ;;  %10816 = vmatprep.subr.bf16.mxu0 %v11904_v56  ;;  %10928 = vmatprep.subr.bf16.mxu1 %v11906_v63  ;;  %v11910_v50 = vld [vmem:[%s17320_s2 + $0xe0] sm:$0xff]   ;;  %v11913_v63 = vld [vmem:[%s17320_s2 + $0x28] sm:$0xff]   ;;  %vm12879_vm13 = vmor %vm2055_vm10, %vm2056_vm12 }
  0x51   : > { %v1089_v36 = vsel %vm12489_vm2, %v1081_v19, %v1088_v20  ;;  %v1137_v62 = vshll.u32 %v10758_v43, 16  ;;  %v1143_v1 = vshrl.u32 %v10759_v44, 16  ;;  %v1146_v2 = vshll.u32 %v10759_v44, 16  ;;  %vm13103_vm1 = vmand %vm1439_vm14, %vm778_vm4 }
  0x52   : > { %1303 = vrot.lane.b32.xlu0 %v1055_v57, %s12260_s28  ;;  %v11905_v57 = vld [vmem:[%s17320_s2 + $0x18] sm:$0xff]   ;;  %v12594_v5 = vsel %vm12489_vm2, %v1115_v51, %v1122_v52  ;;  %v12596_v6 = vrot.slane %v1134_v61, 7  ;;  %v1163_v14 = vshll.u32 %v10761_v49, 16  ;;  %v12603_v18 = vpack.c.bf16 %v913_v55, %v913_v55  ;;  %v919_v49 = vld [vmem:[%s12476_s19 + $0xc0] sm:$0xff]  ;;  %vm13110_vm5 = vmand %vm1446_vm15, %vm453_vm0 }
  0x53   : > { %1313 = vrot.lane.b32.xlu1 %v1080_v25, %s12260_s28  ;;  %v1145_v11 = vrot.slane %v1143_v1, 7  ;;  %10817 = vmatpush3.bf16.msra.mxu0 %v11905_v57  ;;  %v11908_v25 = vld [vmem:[%s17320_s2 + $0x60] sm:$0xff]   ;;  %v10764_v9 = vpack.c.bf16 %v914_v10, %v914_v10  ;;  %v1175_v37 = vrot.slane %v12622_v32, 4  ;;  %v10765_v38 = vpack.c.bf16 %v915_v16, %v915_v16  ;;  %v11912_v57 = vld [vmem:[%s17320_s2 + $0x68] sm:$0xff]  }
  0x54   : > { %v1139_v47 = vor.u32 %v1137_v62, %v12596_v6  ;;  %10929 = vmatpush3.bf16.msra.mxu1 %v11907_v4  ;;  %v1141_v19 = vrot.slane %v12596_v6, 4  ;;  %v1177_v35 = vshrl.u32 %v12603_v18, 16  ;;  %10818 = vmatprep.subr.bf16.mxu0 %v11908_v25  ;;  %v11911_v51 = vld [vmem:[%s17320_s2 + $0xa0] sm:$0xff]   ;;  %v1202_v56 = vshrl.u32 %v10766_v39, 16  ;;  %v920_v62 = vld [vmem:[%s12476_s19 + $0xc8] sm:$0xff]  ;;  %v925_v6 = vld [vmem:[%s12476_s19 + $0xf0] sm:$0xff] }
  0x55   : > { %v12606_v20 = vor.u32 %v1146_v2, %v1145_v11  ;;  %v1149_v22 = vrot.slane %v1145_v11, 4  ;;  %v1185_v44 = vshrl.u32 %v10764_v9, 16  ;;  %v1188_v46 = vshll.u32 %v10764_v9, 16  ;;  %10930 = vmatprep.subr.bf16.mxu1 %v11910_v50 }
  0x56   : > { %1307 = vrot.lane.b32.xlu0 %v1063_v3, %s12260_s28  ;;  %v1151_v3 = vshrl.u32 %v10760_v48, 16  ;;  %v12619_v26 = vsel %vm12489_vm2, %v1132_v59, %v1139_v47  ;;  %v1179_v43 = vrot.slane %v1177_v35, 7  ;;  %v12635_v48 = vpack.c.bf16 %v917_v33, %v917_v33  ;;  %v923_v33 = vld [vmem:[%s12476_s19 + $0xe0] sm:$0xff] }
  0x57   : > { %1317 = vrot.lane.b32.xlu1 %v1090_v21, %s12260_s28  ;;  %v1173_v21 = vor.u32 %v1171_v17, %v12622_v32  ;;  %v1194_v54 = vshrl.u32 %v10765_v38, 16  ;;  %v1197_v55 = vshll.u32 %v10765_v38, 16  ;;  %v12659_v61 = vrot.slane %v1185_v44, 7  ;;  %10819 = vmatpush3.bf16.msra.mxu0 %v11909_v41  ;;  %v11915_v38 = vld [vmem:[%s17320_s2 + $0xa8] sm:$0xff]  }
  0x58   : > { %v12599_v12 = vrot.slane %v1151_v3, 7  ;;  %v12665_v2 = vrot.slane %v1202_v56, 7  ;;  %v1211_v3 = vshrl.u32 %v12635_v48, 16  ;;  %v1214_v4 = vshll.u32 %v12635_v48, 16  ;;  %10931 = vmatpush3.bf16.msra.mxu1 %v11911_v51  ;;  %10820 = vmatprep.subr.bf16.mxu0 %v11912_v57  ;;  %v325_v56 = vld [vmem:[%s12697_s17] sm:$0xff]  ;;  %v11918_v57 = vld [vmem:[%s17320_s2 + $0xf0] sm:$0xff]  }
  0x59   : > { %v1196_v1 = vrot.slane %v1194_v54, 7  ;;  %v1192_v10 = vrot.slane %v12659_v61, 4  ;;  %v10768_v11 = vpack.c.bf16 %v918_v40, %v918_v40  ;;  %10932 = vmatprep.subr.bf16.mxu1 %v11914_v13  ;;  %v10772_v44 = vpack.c.bf16 %v922_v15, %v922_v15 }
  0x5a   : > { %1311 = vrot.lane.b32.xlu0 %v1073_v60, %s12260_s28  ;;  %v1162_v60 = vrot.slane %v1160_v8, 7  ;;  %v1156_v23 = vor.u32 %v1154_v7, %v12599_v12  ;;  %v1158_v27 = vrot.slane %v12599_v12, 4  ;;  %v921_v7 = vld [vmem:[%s12476_s19 + $0xd0] sm:$0xff]  ;;  %v1190_v8 = vor.u32 %v1188_v46, %v12659_v61 }
  0x5b   : > { %1321 = vrot.lane.b32.xlu1 %v12564_v45, %s12260_s28  ;;  %v1205_v45 = vshll.u32 %v10766_v39, 16  ;;  %v1200_v47 = vrot.slane %v1196_v1, 4  ;;  %v1209_v17 = vrot.slane %v12665_v2, 4  ;;  %v1222_v24 = vshll.u32 %v10768_v11, 16  ;;  %10821 = vmatpush3.bf16.msra.mxu0 %v11913_v63  ;;  %v11916_v39 = vld [vmem:[%s17320_s2 + $0x70] sm:$0xff]  }
  0x5c   : > { %v1166_v30 = vrot.slane %v1162_v60, 4  ;;  %v12625_v34 = vor.u32 %v1163_v14, %v1162_v60  ;;  %v12650_v52 = vsel %vm12489_vm2, %v1149_v22, %v1156_v23  ;;  %v10769_v14 = vpack.c.bf16 %v919_v49, %v919_v49  ;;  %v11917_v46 = vld [vmem:[%s17320_s2 + $0x30] sm:$0xff]   ;;  %10933 = vmatpush3.bf16.msra.mxu1 %v11915_v38  ;;  %10822 = vmatprep.subr.bf16.mxu0 %v11916_v39 }
  0x5d   : > { %v1207_v60 = vor.u32 %v1205_v45, %v12665_v2  ;;  %v1213_v22 = vrot.slane %v1211_v3, 7  ;;  %v1219_v23 = vshrl.u32 %v10768_v11, 16  ;;  %v10773_v63 = vpack.c.bf16 %v923_v33, %v923_v33  ;;  %v327_v3 = vld [vmem:[%s12697_s17 + $0x10] sm:$0xff]  ;;  %10934 = vmatprep.subr.bf16.mxu1 %v11918_v57 }
  0x5e   : > { %1315 = vrot.lane.b32.xlu0 %v1089_v36, %s12260_s28  ;;  %v1180_v36 = vshll.u32 %v12603_v18, 16  ;;  %v12657_v59 = vsel %vm12489_vm2, %v1166_v30, %v1173_v21  ;;  %v12682_v18 = vor.u32 %v1197_v55, %v1196_v1  ;;  %v1231_v25 = vshll.u32 %v10769_v14, 16  ;;  %v326_v1 = vld [vmem:[%s12697_s17 + $0x8] sm:$0xff] }
  0x5f   : > { %1325 = vrot.lane.b32.xlu1 %v12578_v58, %s12260_s28  ;;  %v1228_v58 = vshrl.u32 %v10769_v14, 16  ;;  %v10770_v30 = vpack.c.bf16 %v920_v62, %v920_v62  ;;  %v12701_v35 = vsel %vm12489_vm2, %v1200_v47, %v1207_v60  ;;  %v12703_v9 = vrot.slane %v1219_v23, 7  ;;  %10823 = vmatpush3.bf16.msra.mxu0 %v11917_v46  ;;  %v328_v14 = vld [vmem:[%s12697_s17 + $0x18] sm:$0xff] }
  0x60   : > { %v12678_v16 = vor.u32 %v1180_v36, %v1179_v43  ;;  %v1217_v36 = vrot.slane %v1213_v22, 4  ;;  %v10771_v21 = vpack.c.bf16 %v921_v7, %v921_v7  ;;  %v12722_v42 = vor.u32 %v1214_v4, %v1213_v22 }
  0x61   : > { %v1230_v40 = vrot.slane %v1228_v58, 7  ;;  %v1236_v41 = vshrl.u32 %v10770_v30, 16  ;;  %v1224_v48 = vor.u32 %v1222_v24, %v12703_v9  ;;  %v1226_v49 = vrot.slane %v12703_v9, 4  ;;  %v11920_v58 = vld [vmem:[%s17320_s2 + $0x78] sm:$0xff]  }
  0x62   : > { %1319 = vrot.lane.b32.xlu0 %v12548_v31, %s12260_s28  ;;  %v1183_v31 = vrot.slane %v1179_v43, 4  ;;  %v1239_v43 = vshll.u32 %v10770_v30, 16  ;;  %v1245_v50 = vshrl.u32 %v10771_v21, 16  ;;  %v1248_v51 = vshll.u32 %v10771_v21, 16  ;;  %10824 = vmatprep.subr.bf16.mxu0 %v11920_v58 }
  0x63   : > { %1329 = vrot.lane.b32.xlu1 %v1124_v53, %s12260_s28  ;;  %v1234_v53 = vrot.slane %v1230_v40, 4  ;;  %v12724_v54 = vrot.slane %v1236_v41, 7  ;;  %v1253_v55 = vshrl.u32 %v10772_v44, 16  ;;  %v1256_v62 = vshll.u32 %v10772_v44, 16 }
  0x64   : > { %v1247_v45 = vrot.slane %v1245_v50, 7  ;;  %v12745_v15 = vsel %vm12489_vm2, %v1217_v36, %v1224_v48  ;;  %v1262_v60 = vshrl.u32 %v10773_v63, 16  ;;  %v1265_v22 = vshll.u32 %v10773_v63, 16  ;;  %v780_v50 = vld [vmem:[#allocation2 + $0xc] sm:$0xf] }
  0x65   : > { %v1241_v4 = vor.u32 %v1239_v43, %v12724_v54  ;;  %v1243_v7 = vrot.slane %v12724_v54, 4  ;;  %v10713_v33 = vpack.c.bf16 %v325_v56, %v325_v56  ;;  %v10714_v36 = vpack.c.bf16 %v326_v1, %v326_v1  ;;  %v787_v56 = vld [vmem:[#allocation2 + $0x14] sm:$0x1] }
  0x66   : > { %1323 = vrot.lane.b32.xlu0 %v1107_v29, %s12260_s28  ;;  %v12689_v29 = vsel %vm12489_vm2, %v1183_v31, %v1190_v8  ;;  %v12730_v31 = vor.u32 %v1231_v25, %v1230_v40  ;;  %v12740_v8 = vrot.slane %v1253_v55, 7  ;;  %v1251_v47 = vrot.slane %v1247_v45, 4 }
  0x67   : > { %1333 = vrot.lane.b32.xlu1 %v12619_v26, %s12260_s28  ;;  %v12752_v26 = vsel %vm12489_vm2, %v1234_v53, %v1241_v4  ;;  %v12754_v23 = vor.u32 %v1248_v51, %v1247_v45  ;;  %v12760_v25 = vrot.slane %v1262_v60, 7  ;;  %v10715_v39 = vpack.c.bf16 %v327_v3, %v327_v3  ;;  %v11922_v53 = vld [vmem:[%s17320_s2 + $0xf8] sm:$0xff]  }
  0x68   : > { %v1258_v24 = vor.u32 %v1256_v62, %v12740_v8  ;;  %v1260_v21 = vrot.slane %v12740_v8, 4  ;;  %v10716_v40 = vpack.c.bf16 %v328_v14, %v328_v14  ;;  %v457_v44 = vshrl.u32 %v10713_v33, 16  ;;  %v790_v4 = vld [vmem:[#allocation2 + $0x18] sm:$0xf] }
  0x69   : > { %v12775_v43 = vor.u32 %v1265_v22, %v12760_v25  ;;  %v460_v46 = vshll.u32 %v10713_v33, 16  ;;  %v465_v51 = vshrl.u32 %v10714_v36, 16  ;;  %v474_v57 = vshrl.u32 %v10715_v39, 16  ;;  %v794_v22 = vld [vmem:[#allocation2 + $0x20] sm:$0x1] }
  0x6a   : > { %1327 = vrot.lane.b32.xlu0 %v12594_v5, %s12260_s28  ;;  %v924_v5 = vld [vmem:[%s12476_s19 + $0xe8] sm:$0xff]  ;;  %v12772_v41 = vsel %vm12489_vm2, %v1251_v47, %v1258_v24  ;;  %v459_v55 = vrot.slane %v457_v44, 7  ;;  %v477_v45 = vshll.u32 %v10715_v39, 16  ;;  %v482_v62 = vshrl.u32 %v10716_v40, 16  ;;  %v12810_v44 = vld [vmem:[#allocation2] sm:$0xf] }
  0x6b   : > { %v10774_v11 = vpack.c.bf16 %v924_v5, %v924_v5  ;;  %1337 = vrot.lane.b32.xlu1 %v12606_v20, %s12260_s28  ;;  %v1268_v20 = vrot.slane %v12760_v25, 4  ;;  %v468_v5 = vshll.u32 %v10714_v36, 16  ;;  %v467_v3 = vrot.slane %v465_v51, 7 }
  0x6c   : > { %v10775_v14 = vpack.c.bf16 %v925_v6, %v925_v6  ;;  %v462_v47 = vor.u32 %v460_v46, %v459_v55  ;;  %v463_v12 = vrot.slane %v459_v55, 4  ;;  %v484_v60 = vrot.slane %v482_v62, 7  ;;  %v11926_v46 = vld [vmem:[%s17320_s2 + $0x140] sm:$0xff]  }
  0x6d   : > { %v1270_v13 = vshrl.u32 %v10774_v11, 16  ;;  %v1273_v30 = vshll.u32 %v10774_v11, 16  ;;  %v485_v11 = vshll.u32 %v10716_v40, 16  ;;  %v472_v24 = vrot.slane %v467_v3, 4  ;;  %v12834_v55 = vld [vmem:[#allocation2 + $0x4] sm:$0xf] }
  0x6e   : > { %1331 = vrot.lane.b32.xlu0 %v12583_v0, %s12260_s28  ;;  %v11919_v0 = vld [vmem:[%s17320_s2 + $0xb0] sm:$0xff]   ;;  %v1279_v58 = vshrl.u32 %v10775_v14, 16  ;;  %v1282_v25 = vshll.u32 %v10775_v14, 16  ;;  %v781_v33 = vsel %vm12793_vm6, %v462_v47, %v780_v50  ;;  %v489_v50 = vrot.slane %v484_v60, 4 }
  0x6f   : > { %10935 = vmatpush3.bf16.msra.mxu1 %v11919_v0  ;;  %v12768_v38 = vrot.slane %v1270_v13, 7  ;;  %1341 = vrot.lane.b32.xlu1 %v1158_v27, %s12260_s28  ;;  %v476_v27 = vrot.slane %v474_v57, 7  ;;  %v11923_v0 = vld [vmem:[%s17320_s2 + $0xb8] sm:$0xff]   ;;  %v470_v13 = vor.u32 %v468_v5, %v467_v3  ;;  %v487_v40 = vor.u32 %v485_v11, %v484_v60  ;;  %782 = vst [vmem:[#allocation2 + $0xc] sm:$0xf] %v781_v33  ;;  %v329_v57 = vld [vmem:[%s12697_s17 + $0x20] sm:$0xff] }
  0x70   : > { %10936 = vmatprep.subr.bf16.mxu1 %v11922_v53  ;;  %v788_v6 = vsel %vm12800_vm7, %v472_v24, %v787_v56  ;;  %v12823_v51 = vrot.slane %v1279_v58, 7  ;;  %v12836_v56 = vld [vmem:[#allocation2 + $0x8] sm:$0x1]  ;;  %v1608_v3 = vshrl.u32 %v12810_v44, 16  ;;  %v1617_v14 = vshll.u32 %v12834_v55, 16 }
  0x71   : > { %v1275_v48 = vor.u32 %v1273_v30, %v12768_v38  ;;  %v1277_v1 = vrot.slane %v12768_v38, 4  ;;  %v926_v30 = vld [vmem:[%s12476_s19 + $0xf8] sm:$0xff]  ;;  %v479_v36 = vor.u32 %v477_v45, %v476_v27  ;;  %v480_v39 = vrot.slane %v476_v27, 4  ;;  %789 = vst [vmem:[#allocation2 + $0x14] sm:$0x1] %v788_v6  ;;  %v330_v27 = vld [vmem:[%s12697_s17 + $0x28] sm:$0xff] }
  0x72   : > { %1335 = vrot.lane.b32.xlu0 %v1141_v19, %s12260_s28  ;;  %v11921_v19 = vld [vmem:[%s17320_s2 + $0x38] sm:$0xff]   ;;  %v10776_v53 = vpack.c.bf16 %v926_v30, %v926_v30  ;;  %v1285_v45 = vrot.slane %v12823_v51, 4  ;;  %v1621_v47 = vshrl.u32 %v12834_v55, 16  ;;  %v2063_v24 = vrot.slane %v12836_v56, 5  ;;  %v1991_v33 = vld [vmem:[#allocation2] sm:$0xe] }
  0x73   : > { %10825 = vmatpush3.bf16.msra.mxu0 %v11921_v19  ;;  %10937 = vmatpush3.bf16.msra.mxu1 %v11923_v0  ;;  %v471_v19 = vsel %vm12489_vm2, %v463_v12, %v470_v13  ;;  %v12827_v5 = vsel %vm12489_vm2, %v1268_v20, %v1275_v48  ;;  %v12841_v20 = vor.u32 %v1282_v25, %v12823_v51  ;;  %v1627_v12 = vshll.u32 %v12836_v56, 16  ;;  %v331_v6 = vld [vmem:[%s12697_s17 + $0x30] sm:$0xff]  ;;  %v11948_v38 = vld [vmem:[%s17320_s2 + $0x128] sm:$0xff]   ;;  %s9997_s19 = sshll.u32 %s17203_s10, 4  ;;  %s17270_s19 = int_to_ptr.vmem [resolvable:$true] %s9997_s19 }
  0x74   : > { %1345 = vrot.lane.b32.xlu1 %v12657_v59, %s12260_s28  ;;  %784 = vst.msk [vmem:[#allocation2 + $0x10] sm:$0xf] %vm777_vm3, %v471_v19  ;;  %v488_v59 = vsel %vm12489_vm2, %v480_v39, %v487_v40  ;;  %11034 = vmatprep.subr.bf16.mxu0 %v11926_v46  ;;  %v795_v48 = vsel %vm12800_vm7, %v489_v50, %v794_v22  ;;  %v1287_v62 = vshrl.u32 %v10776_v53, 16  ;;  %v1290_v11 = vshll.u32 %v10776_v53, 16  ;;  %v332_v19 = vld [vmem:[%s12697_s17 + $0x38] sm:$0xff]  ;;  %s12195_s15 = scalar_lea.vmem %s17270_s19, 4096  ;;  %p12202_p0 = scmp.lt.s32.totalorder %s17270_s19, %s12200_s18 }
  0x75   : > { %793 = vst.msk [vmem:[#allocation2 + $0x1c] sm:$0xf] %vm777_vm3, %v488_v59  ;;  %796 = vst [vmem:[#allocation2 + $0x20] sm:$0x1] %v795_v48  ;;  %v1610_v22 = vrot.slane %v1608_v3, 4  ;;  %v1619_v13 = vrot.slane %v1617_v14, 5  ;;  %v10718_v30 = vpack.c.bf16 %v330_v27, %v330_v27  ;;  %v10720_v14 = vpack.c.bf16 %v332_v19, %v332_v19  ;;  %p12196_p11 = scmp.ne.s32.totalorder %s17270_s19, %s12195_s15  ;;  %p12203_p1 = scmp.lt.s32.totalorder %s12201_s20, %s12195_s15 }
  0x76   : > { %1339 = vrot.lane.b32.xlu0 %v12650_v52, %s12260_s28  ;;  %v17372_v52 = vmov 0  ;;  %v12857_v60 = vrot.slane %v1287_v62, 7  ;;  %v1623_v32 = vrot.slane %v1621_v47, 4  ;;  %v1629_v25 = vrot.slane %v1627_v12, 5  ;;  %v801_v62 = vld [vmem:[#allocation2 + $0x2c] sm:$0x1] }
  0x77   : > { %v17373_v52 = vsel %vm12800_vm7, 4294967295, %v17372_v52  ;;  %v499_v59 = vshrl.u32 %v10718_v30, 16  ;;  %v502_v61 = vshll.u32 %v10718_v30, 16  ;;  %v2060_v48 = vrot.slane %v12834_v55, 5  ;;  %p12197_p12 = pnand %p12196_p11, %p12336_p5  ;;  %p12204_p2 = por %p12203_p1, %p12202_p0 }
  0x78   : > { %17374 = vst [vmem:[#allocation8_spill] sm:$0xff] %v17373_v52  ;;  %1349 = vrot.lane.b32.xlu1 %v12678_v16, %s12260_s28  ;;  %v10717_v16 = vpack.c.bf16 %v329_v57, %v329_v57  ;;  %v1624_v39 = vor.u32 %v1623_v32, %v1619_v13  ;;  %v12876_v50 = vor.u32 %v1290_v11, %v12857_v60  ;;  %v10144_v57 = vrot.slane %v1991_v33, 9 }
  0x79   : > { %v10719_v11 = vpack.c.bf16 %v331_v6, %v331_v6  ;;  %v516_v33 = vshrl.u32 %v10720_v14, 16  ;;  %p12198_p13 = pneg %p12197_p12 }
  0x7a   : > { %1343 = vrot.lane.b32.xlu0 %v12625_v34, %s12260_s28  ;;  %v791_v34 = vsel %vm12793_vm6, %v479_v36, %v790_v4  ;;  %v1611_v4 = vshll.u32 %v12810_v44, 16  ;;  %v17375_v36 = vmov 0  ;;  %v491_v40 = vshrl.u32 %v10717_v16, 16 }
  0x7b   : > { %792 = vst [vmem:[#allocation2 + $0x18] sm:$0xf] %v791_v34  ;;  %v17376_v36 = vsel %vm12869_vm11, 4294967295, %v17375_v36  ;;  %v494_v46 = vshll.u32 %v10717_v16, 16  ;;  %v797_v34 = vld [vmem:[#allocation2 + $0x24] sm:$0xf]  ;;  %p12205_p3 = pnand %p12204_p2, %p12198_p13 }
  0x7c   : > { %v1613_v0 = vrot.slane %v1611_v4, 5  ;;  %1353 = vrot.lane.b32.xlu1 %v1192_v10, %s12260_s28  ;;  %17377 = vst [vmem:[#allocation9_spill] sm:$0xff] %v17376_v36  ;;  %v1625_v53 = vrot.slane %v1624_v39, 4  ;;  %v493_v56 = vrot.slane %v491_v40, 7  ;;  %v501_v4 = vrot.slane %v499_v59, 7  ;;  %v334_v39 = vld [vmem:[%s12697_s17 + $0x48] sm:$0xff] }
  0x7d   : > { %v2062_v16 = vrot.slane %v2060_v48, 4  ;;  %v511_v30 = vshll.u32 %v10719_v11, 16  ;;  %v335_v40 = vld [vmem:[%s12697_s17 + $0x50] sm:$0xff]  ;;  %v519_v59 = vshll.u32 %v10720_v14, 16  ;;  %v10722_v2 = vpack.c.bf16 %v334_v39, %v334_v39 }
  0x7e   : > { %1347 = vrot.lane.b32.xlu0 %v1175_v37, %s12260_s28  ;;  %v10192_v37 = vcombine.low %v12810_v44, %v12834_v55  ;;  %v1614_v58 = vor.u32 %v1613_v0, %v1610_v22  ;;  %v1630_v47 = vsel %vm12869_vm11, %v1625_v53, %v1629_v25  ;;  %v496_v12 = vor.u32 %v494_v46, %v493_v56  ;;  %v336_v46 = vld [vmem:[%s12697_s17 + $0x58] sm:$0xff]  ;;  %v804_v53 = vld [vmem:[#allocation2 + $0x30] sm:$0xf] }
  0x7f   : > { %v497_v27 = vrot.slane %v493_v56, 4  ;;  %v12894_v22 = vsel %vm12879_vm13, %v10144_v57, %v2060_v48  ;;  %v506_v32 = vrot.slane %v501_v4, 4  ;;  %v508_v25 = vshrl.u32 %v10719_v11, 16  ;;  %v11935_v55 = vld [vmem:[%s17320_s2 + $0x150] sm:$0xff]  }
  0x80   : > { %1357 = vrot.lane.b32.xlu1 %v12701_v35, %s12260_s28  ;;  %v333_v35 = vld [vmem:[%s12697_s17 + $0x40] sm:$0xff]  ;;  %v12909_v19 = vsel %vm12879_vm13, %v2062_v16, %v2063_v24  ;;  %v518_v57 = vrot.slane %v516_v33, 7  ;;  %v536_v44 = vshll.u32 %v10722_v2, 16 }
  0x81   : > { %v10224_v24 = vcombine.low %v12894_v22, %v12909_v19  ;;  %v510_v56 = vrot.slane %v508_v25, 7  ;;  %v10721_v48 = vpack.c.bf16 %v333_v35, %v333_v35  ;;  %v815_v35 = vld [vmem:[#allocation2 + $0x44] sm:$0x1] }
  0x82   : > { %1351 = vrot.lane.b32.xlu0 %v12689_v29, %s12260_s28  ;;  %v1615_v29 = vrot.slane %v1614_v58, 4  ;;  %v798_v58 = vsel %vm12793_vm6, %v496_v12, %v797_v34  ;;  %v11931_v34 = vld [vmem:[%s17320_s2 + $0x148] sm:$0xff]   ;;  %v521_v14 = vor.u32 %v519_v59, %v518_v57  ;;  %v1451_v63 = vld [vmem:[#allocation2 + $0x18] sm:$0xf] }
  0x83   : > { %799 = vst [vmem:[#allocation2 + $0x24] sm:$0xf] %v798_v58  ;;  %v514_v11 = vrot.slane %v510_v56, 4  ;;  %v11932_v12 = vld [vmem:[%s17320_s2 + $0x108] sm:$0xff]  }
  0x84   : > { %v1620_v3 = vsel %vm12869_vm11, %v1615_v29, %v1619_v13  ;;  %v504_v13 = vor.u32 %v502_v61, %v501_v4  ;;  %v802_v29 = vsel %vm12800_vm7, %v506_v32, %v801_v62  ;;  %v337_v61 = vld [vmem:[%s12697_s17 + $0x60] sm:$0xff]  ;;  %1361 = vrot.lane.b32.xlu1 %v12722_v42, %s12260_s28  ;;  %v808_v62 = vld [vmem:[#allocation2 + $0x38] sm:$0x1]  ;;  %v513_v42 = vor.u32 %v511_v30, %v510_v56  ;;  %v822_v56 = vld [vmem:[#allocation2 + $0x50] sm:$0x1] }
  0x85   : > { %v10208_v0 = vcombine.low %v1620_v3, %v1630_v47  ;;  %803 = vst [vmem:[#allocation2 + $0x2c] sm:$0x1] %v802_v29  ;;  %v10724_v3 = vpack.c.bf16 %v336_v46, %v336_v46  ;;  %v10725_v4 = vpack.c.bf16 %v337_v61, %v337_v61  ;;  %v523_v47 = vrot.slane %v518_v57, 4  ;;  %v11936_v29 = vld [vmem:[%s17320_s2 + $0x110] sm:$0xff]   ;;  %v11939_v57 = vld [vmem:[%s17320_s2 + $0x158] sm:$0xff]  }
  0x86   : > { %1355 = vrot.lane.b32.xlu0 %v12682_v18, %s12260_s28  ;;  %v11927_v18 = vld [vmem:[%s17320_s2 + $0x100] sm:$0xff]   ;;  %v505_v6 = vsel %vm12489_vm2, %v497_v27, %v504_v13  ;;  %v525_v27 = vshrl.u32 %v10721_v48, 16  ;;  %v533_v13 = vshrl.u32 %v10722_v2, 16  ;;  %v522_v32 = vsel %vm12489_vm2, %v514_v11, %v521_v14 }
  0x87   : > { %4626 = vmatprep.mubr.bf16.mxu0 %v10208_v0  ;;  %800 = vst.msk [vmem:[#allocation2 + $0x28] sm:$0xf] %vm777_vm3, %v505_v6  ;;  %v528_v0 = vshll.u32 %v10721_v48, 16  ;;  %v809_v16 = vsel %vm12800_vm7, %v523_v47, %v808_v62  ;;  %807 = vst.msk [vmem:[#allocation2 + $0x34] sm:$0xf] %vm777_vm3, %v522_v32  ;;  %v550_v30 = vshrl.u32 %v10724_v3, 16 }
  0x88   : > { %4627 = vmatmul.mubr.bf16.vlgmr.msra.gmra.mrb[0].mxu0 %v10192_v37  ;;  %1365 = vrot.lane.b32.xlu1 %v1226_v49, %s12260_s28  ;;  %v805_v37 = vsel %vm12793_vm6, %v513_v42, %v804_v53  ;;  %810 = vst [vmem:[#allocation2 + $0x38] sm:$0x1] %v809_v16  ;;  %v535_v9 = vrot.slane %v533_v13, 7  ;;  %v818_v49 = vld [vmem:[#allocation2 + $0x48] sm:$0xf]  ;;  %v553_v39 = vshll.u32 %v10724_v3, 16 }
  0x89   : > { %11035 = vmatpush3.bf16.msra.mxu0 %v11927_v18  ;;  %v811_v18 = vld [vmem:[#allocation2 + $0x3c] sm:$0xf]  ;;  %806 = vst [vmem:[#allocation2 + $0x30] sm:$0xf] %v805_v37  ;;  %v562_v46 = vshll.u32 %v10725_v4, 16  ;;  %v338_v6 = vld [vmem:[%s12697_s17 + $0x68] sm:$0xff] }
  0x8a   : > { %1359 = vrot.lane.b32.xlu0 %v1209_v17, %s12260_s28  ;;  %v10723_v17 = vpack.c.bf16 %v335_v40, %v335_v40  ;;  %11036 = vmatprep.subr.bf16.mxu0 %v11931_v34  ;;  %v559_v40 = vshrl.u32 %v10725_v4, 16  ;;  %v538_v61 = vor.u32 %v536_v44, %v535_v9  ;;  %v540_v53 = vrot.slane %v535_v9, 4  ;;  %v339_v3 = vld [vmem:[%s12697_s17 + $0x70] sm:$0xff]  ;;  %v341_v13 = vld [vmem:[%s12697_s17 + $0x80] sm:$0xff]  ;;  %v11940_v44 = vld [vmem:[%s17320_s2 + $0x118] sm:$0xff]  }
  0x8b   : > { %v552_v2 = vrot.slane %v550_v30, 7  ;;  %v10726_v14 = vpack.c.bf16 %v338_v6, %v338_v6  ;;  %v10727_v16 = vpack.c.bf16 %v339_v3, %v339_v3  ;;  %v829_v9 = vld [vmem:[#allocation2 + $0x5c] sm:$0x1]  ;;  %v10729_v30 = vpack.c.bf16 %v341_v13, %v341_v13 }
  0x8c   : > { %v542_v58 = vshrl.u32 %v10723_v17, 16  ;;  %v545_v25 = vshll.u32 %v10723_v17, 16  ;;  %1369 = vrot.lane.b32.xlu1 %v12752_v26, %s12260_s28  ;;  %v561_v17 = vrot.slane %v559_v40, 7  ;;  %v816_v11 = vsel %vm12800_vm7, %v540_v53, %v815_v35  ;;  %v343_v35 = vld [vmem:[%s12697_s17 + $0x90] sm:$0xff] }
  0x8d   : > { %11037 = vmatpush3.bf16.msra.mxu0 %v11932_v12  ;;  %817 = vst [vmem:[#allocation2 + $0x44] sm:$0x1] %v816_v11  ;;  %v555_v47 = vor.u32 %v553_v39, %v552_v2  ;;  %v557_v12 = vrot.slane %v552_v2, 4  ;;  %v567_v37 = vshrl.u32 %v10726_v14, 16  ;;  %v570_v32 = vshll.u32 %v10726_v14, 16 }
  0x8e   : > { %1363 = vrot.lane.b32.xlu0 %v12745_v15, %s12260_s28  ;;  %v527_v15 = vrot.slane %v525_v27, 7  ;;  %v544_v33 = vrot.slane %v542_v58, 7  ;;  %11038 = vmatprep.subr.bf16.mxu0 %v11935_v55  ;;  %v564_v27 = vor.u32 %v562_v46, %v561_v17  ;;  %v12977_v55 = vsel %vm12489_vm2, %v1285_v45, %v12876_v50  ;;  %v344_v58 = vld [vmem:[%s12697_s17 + $0x98] sm:$0xff]  ;;  %v11943_v46 = vld [vmem:[%s17320_s2 + $0x160] sm:$0xff]  }
  0x8f   : > { %v823_v45 = vsel %vm12800_vm7, %v557_v12, %v822_v56  ;;  %v569_v54 = vrot.slane %v567_v37, 7  ;;  %v10731_v39 = vpack.c.bf16 %v343_v35, %v343_v35  ;;  %v12994_v40 = vpack.c.bf16 %v344_v58, %v344_v58  ;;  %v846_v37 = vld [vmem:[#allocation2 + $0x78] sm:$0xf]  ;;  %v850_v58 = vld [vmem:[#allocation2 + $0x80] sm:$0x1] }
  0x90   : > { %v530_v59 = vor.u32 %v528_v0, %v527_v15  ;;  %v531_v34 = vrot.slane %v527_v15, 4  ;;  %v547_v48 = vor.u32 %v545_v25, %v544_v33  ;;  %v548_v62 = vrot.slane %v544_v33, 4  ;;  %v340_v0 = vld [vmem:[%s12697_s17 + $0x78] sm:$0xff]  ;;  %1373 = vrot.lane.b32.xlu1 %v12754_v23, %s12260_s28  ;;  %824 = vst [vmem:[#allocation2 + $0x50] sm:$0x1] %v823_v45  ;;  %v347_v45 = vld [vmem:[%s12697_s17 + $0xb0] sm:$0xff] }
  0x91   : > { %11039 = vmatpush3.bf16.msra.mxu0 %v11936_v29  ;;  %v565_v15 = vrot.slane %v561_v17, 4  ;;  %v10728_v25 = vpack.c.bf16 %v340_v0, %v340_v0  ;;  %v832_v23 = vld [vmem:[#allocation2 + $0x60] sm:$0xf]  ;;  %v572_v6 = vor.u32 %v570_v32, %v569_v54  ;;  %v574_v29 = vrot.slane %v569_v54, 4  ;;  %v348_v54 = vld [vmem:[%s12697_s17 + $0xb8] sm:$0xff] }
  0x92   : > { %1367 = vrot.lane.b32.xlu0 %v12730_v31, %s12260_s28  ;;  %v812_v4 = vsel %vm12793_vm6, %v530_v59, %v811_v18  ;;  %v539_v42 = vsel %vm12489_vm2, %v531_v34, %v538_v61  ;;  %v825_v31 = vld [vmem:[#allocation2 + $0x54] sm:$0xf]  ;;  %v819_v26 = vsel %vm12793_vm6, %v547_v48, %v818_v49  ;;  %11040 = vmatprep.subr.bf16.mxu0 %v11939_v57  ;;  %v342_v18 = vld [vmem:[%s12697_s17 + $0x88] sm:$0xff]  ;;  %v579_v49 = vshll.u32 %v10727_v16, 16  ;;  %v11944_v61 = vld [vmem:[%s17320_s2 + $0x120] sm:$0xff]  }
  0x93   : > { %813 = vst [vmem:[#allocation2 + $0x3c] sm:$0xf] %v812_v4  ;;  %814 = vst.msk [vmem:[#allocation2 + $0x40] sm:$0xf] %vm777_vm3, %v539_v42  ;;  %v556_v51 = vsel %vm12489_vm2, %v548_v62, %v555_v47  ;;  %v826_v50 = vsel %vm12793_vm6, %v564_v27, %v825_v31  ;;  %v10730_v33 = vpack.c.bf16 %v342_v18, %v342_v18  ;;  %v584_v34 = vshrl.u32 %v10728_v25, 16 }
  0x94   : > { %820 = vst [vmem:[#allocation2 + $0x48] sm:$0xf] %v819_v26  ;;  %821 = vst.msk [vmem:[#allocation2 + $0x4c] sm:$0xf] %vm777_vm3, %v556_v51  ;;  %1377 = vrot.lane.b32.xlu1 %v1260_v21, %s12260_s28  ;;  %v587_v53 = vshll.u32 %v10728_v25, 16  ;;  %v593_v56 = vshrl.u32 %v10729_v30, 16  ;;  %v573_v62 = vsel %vm12489_vm2, %v565_v15, %v572_v6  ;;  %v830_v2 = vsel %vm12800_vm7, %v574_v29, %v829_v9 }
  0x95   : > { %827 = vst [vmem:[#allocation2 + $0x54] sm:$0xf] %v826_v50  ;;  %11041 = vmatpush3.bf16.msra.mxu0 %v11940_v44  ;;  %v596_v57 = vshll.u32 %v10729_v30, 16  ;;  %v601_v48 = vshrl.u32 %v10730_v33, 16  ;;  %828 = vst.msk [vmem:[#allocation2 + $0x58] sm:$0xf] %vm777_vm3, %v573_v62 }
  0x96   : > { %1371 = vrot.lane.b32.xlu0 %v1243_v7, %s12260_s28  ;;  %v576_v7 = vshrl.u32 %v10727_v16, 16  ;;  %11042 = vmatprep.subr.bf16.mxu0 %v11943_v46  ;;  %831 = vst [vmem:[#allocation2 + $0x5c] sm:$0x1] %v830_v2  ;;  %v836_v4 = vld [vmem:[#allocation2 + $0x68] sm:$0x1]  ;;  %v595_v8 = vrot.slane %v593_v56, 7 }
  0x97   : > { %v603_v21 = vrot.slane %v601_v48, 7  ;;  %v604_v42 = vshll.u32 %v10730_v33, 16  ;;  %v839_v31 = vld [vmem:[#allocation2 + $0x6c] sm:$0xf]  ;;  %v610_v14 = vshrl.u32 %v10731_v39, 16  ;;  %v613_v26 = vshll.u32 %v10731_v39, 16 }
  0x98   : > { %v578_v59 = vrot.slane %v576_v7, 7  ;;  %v618_v47 = vshrl.u32 %v12994_v40, 16  ;;  %1381 = vrot.lane.b32.xlu1 %v12827_v5, %s12260_s28  ;;  %v598_v0 = vor.u32 %v596_v57, %v595_v8  ;;  %v599_v13 = vrot.slane %v595_v8, 4  ;;  %v843_v44 = vld [vmem:[#allocation2 + $0x74] sm:$0x1]  ;;  %v345_v51 = vld [vmem:[%s12697_s17 + $0xa0] sm:$0xff] }
  0x99   : > { %11043 = vmatpush3.bf16.msra.mxu0 %v11944_v61  ;;  %v606_v32 = vor.u32 %v604_v42, %v603_v21  ;;  %v608_v16 = vrot.slane %v603_v21, 4  ;;  %v612_v18 = vrot.slane %v610_v14, 7  ;;  %v621_v9 = vshll.u32 %v12994_v40, 16  ;;  %v349_v7 = vld [vmem:[%s12697_s17 + $0xc0] sm:$0xff]  ;;  %v350_v57 = vld [vmem:[%s12697_s17 + $0xc8] sm:$0xff] }
  0x9a   : > { %1375 = vrot.lane.b32.xlu0 %v12772_v41, %s12260_s28  ;;  %v581_v17 = vor.u32 %v579_v49, %v578_v59  ;;  %v582_v3 = vrot.slane %v578_v59, 4  ;;  %v586_v41 = vrot.slane %v584_v34, 7  ;;  %v620_v35 = vrot.slane %v618_v47, 7  ;;  %v11947_v49 = vld [vmem:[%s17320_s2 + $0x168] sm:$0xff]   ;;  %v853_v48 = vld [vmem:[#allocation2 + $0x84] sm:$0xf] }
  0x9b   : > { %v840_v15 = vsel %vm12793_vm6, %v598_v0, %v839_v31  ;;  %v607_v25 = vsel %vm12489_vm2, %v599_v13, %v606_v32  ;;  %v615_v30 = vor.u32 %v613_v26, %v612_v18  ;;  %v616_v33 = vrot.slane %v612_v18, 4  ;;  %11044 = vmatprep.subr.bf16.mxu0 %v11947_v49  ;;  %v857_v8 = vld [vmem:[#allocation2 + $0x8c] sm:$0x1]  ;;  %v860_v0 = vld [vmem:[#allocation2 + $0x90] sm:$0xf] }
  0x9c   : > { %v833_v11 = vsel %vm12793_vm6, %v581_v17, %v832_v23  ;;  %v589_v12 = vor.u32 %v587_v53, %v586_v41  ;;  %v591_v27 = vrot.slane %v586_v41, 4  ;;  %841 = vst [vmem:[#allocation2 + $0x6c] sm:$0xf] %v840_v15  ;;  %v844_v23 = vsel %vm12800_vm7, %v608_v16, %v843_v44  ;;  %1385 = vrot.lane.b32.xlu1 %v12841_v20, %s12260_s28  ;;  %v351_v41 = vld [vmem:[%s12697_s17 + $0xd0] sm:$0xff]  ;;  %v864_v44 = vld [vmem:[#allocation2 + $0x98] sm:$0x1] }
  0x9d   : > { %834 = vst [vmem:[#allocation2 + $0x60] sm:$0xf] %v833_v11  ;;  %842 = vst.msk [vmem:[#allocation2 + $0x70] sm:$0xf] %vm777_vm3, %v607_v25  ;;  %v623_v39 = vor.u32 %v621_v9, %v620_v35  ;;  %v625_v40 = vrot.slane %v620_v35, 4  ;;  %v10733_v46 = vpack.c.bf16 %v345_v51, %v345_v51  ;;  %v847_v29 = vsel %vm12793_vm6, %v615_v30, %v846_v37  ;;  %v354_v49 = vld [vmem:[%s12697_s17 + $0xe8] sm:$0xff] }
  0x9e   : > { %1379 = vrot.lane.b32.xlu0 %v12775_v43, %s12260_s28  ;;  %v346_v43 = vld [vmem:[%s12697_s17 + $0xa8] sm:$0xff]  ;;  %v590_v5 = vsel %vm12489_vm2, %v582_v3, %v589_v12  ;;  %v837_v50 = vsel %vm12800_vm7, %v591_v27, %v836_v4  ;;  %845 = vst [vmem:[#allocation2 + $0x74] sm:$0x1] %v844_v23  ;;  %v10735_v59 = vpack.c.bf16 %v347_v45, %v347_v45  ;;  %848 = vst [vmem:[#allocation2 + $0x78] sm:$0xf] %v847_v29 }
  0x9f   : > { %835 = vst.msk [vmem:[#allocation2 + $0x64] sm:$0xf] %vm777_vm3, %v590_v5  ;;  %838 = vst [vmem:[#allocation2 + $0x68] sm:$0x1] %v837_v50  ;;  %v10734_v6 = vpack.c.bf16 %v346_v43, %v346_v43  ;;  %v10736_v34 = vpack.c.bf16 %v348_v54, %v348_v54  ;;  %v10737_v61 = vpack.c.bf16 %v349_v7, %v349_v7  ;;  %v627_v53 = vshrl.u32 %v10733_v46, 16  ;;  %v353_v7 = vld [vmem:[%s12697_s17 + $0xe0] sm:$0xff] }
  0xa0   : > { %v851_v20 = vsel %vm12800_vm7, %v625_v40, %v850_v58  ;;  %v630_v56 = vshll.u32 %v10733_v46, 16  ;;  %v644_v17 = vshrl.u32 %v10735_v59, 16  ;;  %v647_v3 = vshll.u32 %v10735_v59, 16  ;;  %11045 = vmatpush3.bf16.msra.mxu0 %v11948_v38  ;;  %v867_v35 = vld [vmem:[#allocation2 + $0x9c] sm:$0xf] }
  0xa1   : > { %852 = vst [vmem:[#allocation2 + $0x80] sm:$0x1] %v851_v20  ;;  %v635_v62 = vshrl.u32 %v10734_v6, 16  ;;  %v638_v2 = vshll.u32 %v10734_v6, 16  ;;  %v629_v4 = vrot.slane %v627_v53, 7  ;;  %v652_v21 = vshrl.u32 %v10736_v34, 16 }
  0xa2   : > { %1383 = vrot.lane.b32.xlu0 %v1277_v1, %s12260_s28  ;;  %v624_v1 = vsel %vm12489_vm2, %v616_v33, %v623_v39  ;;  %v655_v42 = vshll.u32 %v10736_v34, 16  ;;  %v661_v11 = vshrl.u32 %v10737_v61, 16  ;;  %v646_v14 = vrot.slane %v644_v17, 7  ;;  %v352_v58 = vld [vmem:[%s12697_s17 + $0xd8] sm:$0xff]  ;;  %v871_v46 = vld [vmem:[#allocation2 + $0xa4] sm:$0x1] }
  0xa3   : > { %849 = vst.msk [vmem:[#allocation2 + $0x7c] sm:$0xf] %vm777_vm3, %v624_v1  ;;  %v637_v31 = vrot.slane %v635_v62, 7  ;;  %v664_v26 = vshll.u32 %v10737_v61, 16  ;;  %v10738_v47 = vpack.c.bf16 %v350_v57, %v350_v57  ;;  %v632_v12 = vor.u32 %v630_v56, %v629_v4  ;;  %v874_v34 = vld [vmem:[#allocation2 + $0xa8] sm:$0xf] }
  0xa4   : > { %v633_v27 = vrot.slane %v629_v4, 4  ;;  %v654_v13 = vrot.slane %v652_v21, 7  ;;  %v10739_v37 = vpack.c.bf16 %v351_v41, %v351_v41  ;;  %v649_v16 = vor.u32 %v647_v3, %v646_v14  ;;  %v11951_v17 = vld [vmem:[%s17320_s2 + $0x170] sm:$0xff]   ;;  %v11952_v3 = vld [vmem:[%s17320_s2 + $0x1c0] sm:$0xff]  }
  0xa5   : > { %v640_v32 = vor.u32 %v638_v2, %v637_v31  ;;  %v650_v18 = vrot.slane %v646_v14, 4  ;;  %v854_v51 = vsel %vm12793_vm6, %v632_v12, %v853_v48  ;;  %v663_v5 = vrot.slane %v661_v11, 7  ;;  %v355_v21 = vld [vmem:[%s12697_s17 + $0xf0] sm:$0xff]  ;;  %11046 = vmatprep.subr.bf16.mxu0 %v11951_v17  ;;  %11146 = vmatprep.subr.bf16.mxu1 %v11952_v3  ;;  %v11967_v3 = vld [vmem:[%s17320_s2 + $0x138] sm:$0xff]  }
  0xa6   : > { %1387 = vrot.lane.b32.xlu0 %v12977_v55, %s12260_s28  ;;  %v642_v55 = vrot.slane %v637_v31, 4  ;;  %v657_v43 = vor.u32 %v655_v42, %v654_v13  ;;  %v659_v45 = vrot.slane %v654_v13, 4  ;;  %855 = vst [vmem:[#allocation2 + $0x84] sm:$0xf] %v854_v51  ;;  %v861_v9 = vsel %vm12793_vm6, %v649_v16, %v860_v0  ;;  %v881_v12 = vld [vmem:[#allocation2 + $0xb4] sm:$0xf] }
  0xa7   : > { %v641_v50 = vsel %vm12489_vm2, %v633_v27, %v640_v32  ;;  %v669_v54 = vshrl.u32 %v10738_v47, 16  ;;  %862 = vst [vmem:[#allocation2 + $0x90] sm:$0xf] %v861_v9  ;;  %v666_v30 = vor.u32 %v664_v26, %v663_v5  ;;  %v667_v33 = vrot.slane %v663_v5, 4  ;;  %v11953_v0 = vld [vmem:[%s17320_s2 + $0x130] sm:$0xff]  }
  0xa8   : > { %v858_v15 = vsel %vm12800_vm7, %v642_v55, %v857_v8  ;;  %856 = vst.msk [vmem:[#allocation2 + $0x88] sm:$0xf] %vm777_vm3, %v641_v50  ;;  %v658_v25 = vsel %vm12489_vm2, %v650_v18, %v657_v43  ;;  %v865_v23 = vsel %vm12800_vm7, %v659_v45, %v864_v44  ;;  %v672_v40 = vshll.u32 %v10738_v47, 16  ;;  %v878_v47 = vld [vmem:[#allocation2 + $0xb0] sm:$0x1]  ;;  %11047 = vmatpush3.bf16.msra.mxu0 %v11953_v0 }
  0xa9   : > { %859 = vst [vmem:[#allocation2 + $0x8c] sm:$0x1] %v858_v15  ;;  %863 = vst.msk [vmem:[#allocation2 + $0x94] sm:$0xf] %vm777_vm3, %v658_v25  ;;  %v671_v39 = vrot.slane %v669_v54, 7  ;;  %v678_v6 = vshrl.u32 %v10739_v37, 16  ;;  %v868_v59 = vsel %vm12793_vm6, %v666_v30, %v867_v35  ;;  %v10740_v61 = vpack.c.bf16 %v352_v58, %v352_v58 }
  0xaa   : > { %866 = vst [vmem:[#allocation2 + $0x98] sm:$0x1] %v865_v23  ;;  %v681_v29 = vshll.u32 %v10739_v37, 16  ;;  %v10741_v38 = vpack.c.bf16 %v353_v7, %v353_v7  ;;  %v10742_v1 = vpack.c.bf16 %v354_v49, %v354_v49  ;;  %869 = vst [vmem:[#allocation2 + $0x9c] sm:$0xf] %v868_v59  ;;  %v10743_v13 = vpack.c.bf16 %v355_v21, %v355_v21  ;;  %v1300_v59 = vpop.permute.xlu1 %1299 }
  0xab   : > { %v674_v20 = vor.u32 %v672_v40, %v671_v39  ;;  %v676_v53 = vrot.slane %v671_v39, 4  ;;  %v680_v56 = vrot.slane %v678_v6, 7  ;;  %v686_v57 = vshrl.u32 %v10740_v61, 16  ;;  %v885_v43 = vld [vmem:[#allocation2 + $0xbc] sm:$0x1] }
  0xac   : > { %v689_v48 = vshll.u32 %v10740_v61, 16  ;;  %v695_v62 = vshrl.u32 %v10741_v38, 16  ;;  %v698_v2 = vshll.u32 %v10741_v38, 16  ;;  %v703_v14 = vshrl.u32 %v10742_v1, 16  ;;  %v1441_v54 = vld [vmem:[#allocation2 + $0xc] sm:$0xf] }
  0xad   : > { %v675_v41 = vsel %vm12489_vm2, %v667_v33, %v674_v20  ;;  %v872_v4 = vsel %vm12800_vm7, %v676_v53, %v871_v46  ;;  %v683_v8 = vor.u32 %v681_v29, %v680_v56  ;;  %v684_v42 = vrot.slane %v680_v56, 4  ;;  %v1448_v30 = vld [vmem:[#allocation2 + $0x14] sm:$0x1]  ;;  %v888_v33 = vld [vmem:[#allocation2 + $0xc0] sm:$0xf]  ;;  %v356_v39 = vld [vmem:[%s12697_s17 + $0xf8] sm:$0xff]  ;;  %v1296_v29 = vpop.permute.xlu0 %1295 }
  0xae   : > { %870 = vst.msk [vmem:[#allocation2 + $0xa0] sm:$0xf] %vm777_vm3, %v675_v41  ;;  %873 = vst [vmem:[#allocation2 + $0xa4] sm:$0x1] %v872_v4  ;;  %v688_v11 = vrot.slane %v686_v57, 7  ;;  %v697_v31 = vrot.slane %v695_v62, 7  ;;  %v10744_v6 = vpack.c.bf16 %v356_v39, %v356_v39  ;;  %v1449_v61 = vsel %vm13110_vm5, %v1300_v59, %v1448_v30  ;;  %v1302_v56 = vpop.permute.xlu1 %1301 }
  0xaf   : > { %v875_v26 = vsel %vm12793_vm6, %v683_v8, %v874_v34  ;;  %v706_v27 = vshll.u32 %v10742_v1, 16  ;;  %v705_v16 = vrot.slane %v703_v14, 7  ;;  %v712_v18 = vshrl.u32 %v10743_v13, 16  ;;  %1450 = vst [vmem:[#allocation2 + $0x14] sm:$0x1] %v1449_v61  ;;  %v11955_v39 = vld [vmem:[%s17320_s2 + $0x1c8] sm:$0xff]  }
  0xb0   : > { %876 = vst [vmem:[#allocation2 + $0xa8] sm:$0xf] %v875_v26  ;;  %v691_v44 = vor.u32 %v689_v48, %v688_v11  ;;  %v693_v37 = vrot.slane %v688_v11, 4  ;;  %v700_v32 = vor.u32 %v698_v2, %v697_v31  ;;  %v701_v55 = vrot.slane %v697_v31, 4  ;;  %v1455_v62 = vld [vmem:[#allocation2 + $0x20] sm:$0x1] }
  0xb1   : > { %v708_v5 = vor.u32 %v706_v27, %v705_v16  ;;  %v710_v50 = vrot.slane %v705_v16, 4  ;;  %v714_v15 = vrot.slane %v712_v18, 7  ;;  %v715_v9 = vshll.u32 %v10743_v13, 16  ;;  %v11964_v2 = vld [vmem:[%s17320_s2 + $0x178] sm:$0xff]   ;;  %v1458_v11 = vld [vmem:[#allocation2 + $0x24] sm:$0xf] }
  0xb2   : > { %v692_v35 = vsel %vm12489_vm2, %v684_v42, %v691_v44  ;;  %v879_v58 = vsel %vm12800_vm7, %v693_v37, %v878_v47  ;;  %v882_v51 = vsel %vm12793_vm6, %v700_v32, %v881_v12  ;;  %v17382_v7 = vmov 0  ;;  %v1306_v4 = vpop.permute.xlu1 %1305  ;;  %11048 = vmatprep.subr.bf16.mxu0 %v11964_v2 }
  0xb3   : > { %877 = vst.msk [vmem:[#allocation2 + $0xac] sm:$0xf] %vm777_vm3, %v692_v35  ;;  %880 = vst [vmem:[#allocation2 + $0xb0] sm:$0x1] %v879_v58  ;;  %v17383_v7 = vsel %vm13110_vm5, 4294967295, %v17382_v7  ;;  %v709_v49 = vsel %vm12489_vm2, %v701_v55, %v708_v5  ;;  %v886_v25 = vsel %vm12800_vm7, %v710_v50, %v885_v43  ;;  %v717_v23 = vor.u32 %v715_v9, %v714_v15 }
  0xb4   : > { %883 = vst [vmem:[#allocation2 + $0xb4] sm:$0xf] %v882_v51  ;;  %17384 = vst [vmem:[#allocation10_spill] sm:$0xff] %v17383_v7  ;;  %v1294_v46 = vrot.slane %v12857_v60, 4  ;;  %v1442_v34 = vsel %vm13103_vm1, %v1296_v29, %v1441_v54  ;;  %v720_v38 = vshrl.u32 %v10744_v6, 16  ;;  %v723_v1 = vshll.u32 %v10744_v6, 16  ;;  %11049 = vmatpush3.bf16.msra.mxu0 %v11967_v3 }
  0xb5   : > { %884 = vst.msk [vmem:[#allocation2 + $0xb8] sm:$0xf] %vm777_vm3, %v709_v49  ;;  %887 = vst [vmem:[#allocation2 + $0xbc] sm:$0x1] %v886_v25  ;;  %v889_v40 = vsel %vm12793_vm6, %v717_v23, %v888_v33  ;;  %v718_v20 = vrot.slane %v714_v15, 4  ;;  %v1452_v57 = vsel %vm13103_vm1, %v1302_v56, %v1451_v63  ;;  %v1456_v8 = vsel %vm13110_vm5, %v1306_v4, %v1455_v62  ;;  %v11954_v49 = vld [vmem:[%s17320_s2 + $0x180] sm:$0xff]  }
  0xb6   : > { %890 = vst [vmem:[#allocation2 + $0xc0] sm:$0xf] %v889_v40  ;;  %1389 = vrot.lane.b32.xlu1 %v1294_v46, %s12260_s28  ;;  %1443 = vst [vmem:[#allocation2 + $0xc] sm:$0xf] %v1442_v34  ;;  %v13128_v53 = vrot.slane %v720_v38, 7  ;;  %v11958_v62 = vld [vmem:[%s17320_s2 + $0x1d0] sm:$0xff]  }
  0xb7   : > { %1453 = vst [vmem:[#allocation2 + $0x18] sm:$0xf] %v1452_v57  ;;  %1457 = vst [vmem:[#allocation2 + $0x20] sm:$0x1] %v1456_v8  ;;  %v13149_v47 = vld [vmem:[#allocation2 + $0x14] sm:$0x1] }
  0xb8   : > { %17385 = vst [vmem:[#allocation11_spill] sm:$0xff] %v13128_v53  ;;  %v725_v48 = vor.u32 %v723_v1, %v13128_v53  ;;  %v1462_v55 = vld [vmem:[#allocation2 + $0x2c] sm:$0x1]  ;;  %v1465_v15 = vld [vmem:[#allocation2 + $0x30] sm:$0xf]  ;;  %v1651_v54 = vshll.u32 %v13149_v47, 16 }
  0xb9   : > { %v1469_v57 = vld [vmem:[#allocation2 + $0x38] sm:$0x1]  ;;  %vm5940_vm6 = vcmask 1040384  }
  0xba   : > { %v726_v17 = vsel %vm12489_vm2, %v718_v20, %v725_v48  ;;  %v2070_v20 = vrot.slane %v13149_v47, 5  ;;  %v11956_v48 = vld [vmem:[%s17320_s2 + $0x188] sm:$0xff]   ;;  %vm15193_vm8 = vmand %vm5940_vm6, %vm453_vm0 }
  0xbb   : > { %891 = vst.msk [vmem:[#allocation2 + $0xc4] sm:$0xf] %vm777_vm3, %v726_v17  ;;  %vm5934_vm3 = vcmask 1043456  }
  0xbd   : > { %v2170_v21 = vld [vmem:[#allocation2 + $0xc] sm:$0xf] }
  0xbe   : > { %v13146_v42 = vld [vmem:[#allocation2 + $0xc] sm:$0xf]  ;;  %v2219_v31 = vshrl.u32 %v2170_v21, 16  ;;  %v2222_v14 = vshll.u32 %v2170_v21, 16  ;;  %v2172_v51 = vld [vmem:[#allocation2 + $0x18] sm:$0xf] }
  0xbf   : > { %v1632_v12 = vshrl.u32 %v13146_v42, 16  ;;  %v1635_v27 = vshll.u32 %v13146_v42, 16  ;;  %v13155_v16 = vld [vmem:[#allocation2 + $0xc] sm:$0xe]  ;;  %v2243_v9 = vshrl.u32 %v2172_v51, 16  ;;  %v2246_v23 = vshll.u32 %v2172_v51, 16 }
  0xc0   : > { %v1298_v60 = vpop.permute.xlu0 %1297  ;;  %v2221_v44 = vrot.slane %v2219_v31, 4  ;;  %v2224_v37 = vrot.slane %v2222_v14, 5  ;;  %v10145_v34 = vrot.slane %v13155_v16, 9  ;;  %v13216_v14 = vld [vmem:[#allocation2 + $0x20] sm:$0x1] }
  0xc1   : > { %1445 = vst.msk [vmem:[#allocation2 + $0x10] sm:$0xf] %vm1439_vm14, %v1298_v60  ;;  %v1310_v32 = vpop.permute.xlu1 %1309  ;;  %v1634_v30 = vrot.slane %v1632_v12, 4  ;;  %v1637_v33 = vrot.slane %v1635_v27, 5  ;;  %v13191_v60 = vld [vmem:[#allocation2 + $0x18] sm:$0xf] }
  0xc2   : > { %1461 = vst.msk [vmem:[#allocation2 + $0x28] sm:$0xf] %vm1439_vm14, %v1310_v32  ;;  %v2225_v5 = vor.u32 %v2224_v37, %v2221_v44  ;;  %v13197_v22 = vrot.slane %v2243_v9, 4  ;;  %v13206_v2 = vrot.slane %v2246_v23, 5  ;;  %v1656_v47 = vshrl.u32 %v13191_v60, 16  ;;  %v11961_v9 = vld [vmem:[%s17320_s2 + $0x1d8] sm:$0xff]  }
  0xc3   : > { %v1659_v12 = vshll.u32 %v13191_v60, 16 }
  0xc4   : > { %v1304_v41 = vpop.permute.xlu0 %1303  ;;  %v13174_v40 = vrot.slane %v2225_v5, 4 }
  0xc5   : > { %1454 = vst.msk [vmem:[#allocation2 + $0x1c] sm:$0xf] %vm1439_vm14, %v1304_v41  ;;  %v1314_v29 = vpop.permute.xlu1 %1313  ;;  %v1661_v16 = vrot.slane %v1659_v12, 5 }
  0xc6   : > { %v1466_v1 = vsel %vm13103_vm1, %v1314_v29, %v1465_v15  ;;  %v11960_v15 = vld [vmem:[%s17320_s2 + $0x190] sm:$0xff]  }
  0xc7   : > { %1467 = vst [vmem:[#allocation2 + $0x30] sm:$0xf] %v1466_v1  ;;  %v11978_v1 = vld [vmem:[%s17320_s2 + $0x200] sm:$0xff]  }
  0xc8   : > { %v1308_v0 = vpop.permute.xlu0 %1307  ;;  %v13153_v13 = vld [vmem:[#allocation2 + $0x10] sm:$0xf]  ;;  %11754 = vmatprep.subr.bf16.mxu0 %v11978_v1 }
  0xc9   : > { %v1459_v18 = vsel %vm13103_vm1, %v1308_v0, %v1458_v11  ;;  %v2228_v35 = vshll.u32 %v13153_v13, 16  ;;  %v2232_v58 = vshrl.u32 %v13153_v13, 16  ;;  %v13162_v43 = vld [vmem:[#allocation2 + $0x10] sm:$0xf]  ;;  %v10240_v50 = vcombine.low %v2170_v21, %v13153_v13  ;;  %v1318_v31 = vpop.permute.xlu1 %1317 }
  0xca   : > { %1460 = vst [vmem:[#allocation2 + $0x24] sm:$0xf] %v1459_v18  ;;  %v1641_v59 = vshll.u32 %v13162_v43, 16  ;;  %v1645_v3 = vshrl.u32 %v13162_v43, 16  ;;  %v2067_v41 = vrot.slane %v13162_v43, 5  ;;  %v1653_v11 = vrot.slane %v1651_v54, 5 }
  0xcb   : > { %v13169_v25 = vrot.slane %v2228_v35, 5  ;;  %v13176_v46 = vrot.slane %v2232_v58, 4  ;;  %4787 = vmatprep.mubr.bf16.mxu1 %v10240_v50  ;;  %v1470_v37 = vsel %vm13110_vm5, %v1318_v31, %v1469_v57  ;;  %v1472_v35 = vld [vmem:[#allocation2 + $0x3c] sm:$0xf]  ;;  %v1675_v50 = vshll.u32 %v13216_v14, 16 }
  0xcc   : > { %v1312_v6 = vpop.permute.xlu0 %1311  ;;  %4788 = vmatmul.mubr.bf16.vlgmr.msra.gmra.mrb[0].mxu1 %v10224_v24  ;;  %v13188_v63 = vld [vmem:[#allocation2 + $0x1c] sm:$0xf]  ;;  %v1638_v24 = vor.u32 %v1637_v33, %v1634_v30  ;;  %v13208_v17 = vrot.slane %v1641_v59, 5  ;;  %v1647_v0 = vrot.slane %v1645_v3, 4  ;;  %v2069_v44 = vrot.slane %v2067_v41, 4 }
  0xcd   : > { %v1463_v38 = vsel %vm13110_vm5, %v1312_v6, %v1462_v55  ;;  %v10241_v19 = vcombine.low %v2172_v51, %v13188_v63  ;;  %11147 = vmatpush3.bf16.msra.mxu1 %v11954_v49  ;;  %v13212_v4 = vld [vmem:[#allocation2 + $0x1c] sm:$0xf]  ;;  %v2235_v8 = vor.u32 %v13176_v46, %v13169_v25  ;;  %v2068_v32 = vsel %vm12879_vm13, %v10145_v34, %v2067_v41  ;;  %v1993_v46 = vld [vmem:[#allocation2 + $0x18] sm:$0xe] }
  0xce   : > { %1464 = vst [vmem:[#allocation2 + $0x2c] sm:$0x1] %v1463_v38  ;;  %11148 = vmatprep.subr.bf16.mxu1 %v11955_v39  ;;  %v1639_v27 = vrot.slane %v1638_v24, 4  ;;  %1471 = vst [vmem:[#allocation2 + $0x38] sm:$0x1] %v1470_v37  ;;  %v1658_v55 = vrot.slane %v1656_v47, 4  ;;  %v1648_v58 = vor.u32 %v1647_v0, %v13208_v17  ;;  %v2071_v51 = vsel %vm12879_vm13, %v2069_v44, %v2070_v20  ;;  %v1322_v39 = vpop.permute.xlu1 %1321 }
  0xcf   : > { %4795 = vmatprep.mubr.bf16.mxu1 %v10241_v19  ;;  %v1665_v18 = vshll.u32 %v13212_v4, 16  ;;  %v1669_v5 = vshrl.u32 %v13212_v4, 16  ;;  %v10225_v49 = vcombine.low %v2068_v32, %v2071_v51  ;;  %v13238_v6 = vrot.slane %v2235_v8, 4  ;;  %1475 = vst.msk [vmem:[#allocation2 + $0x40] sm:$0xf] %vm1439_vm14, %v1322_v39  ;;  %v11965_v37 = vld [vmem:[%s17320_s2 + $0x1e0] sm:$0xff]  }
  0xd0   : > { %v1316_v21 = vpop.permute.xlu0 %1315  ;;  %v1662_v23 = vor.u32 %v1661_v16, %v1658_v55  ;;  %v1649_v29 = vrot.slane %v1648_v58, 4  ;;  %v1644_v20 = vsel %vm12869_vm11, %v1639_v27, %v13208_v17  ;;  %v10193_v19 = vcombine.low %v13146_v42, %v13162_v43  ;;  %v13261_v17 = vld [vmem:[#allocation2 + $0x28] sm:$0xf]  ;;  %v11962_v42 = vld [vmem:[%s17320_s2 + $0x198] sm:$0xff]  }
  0xd1   : > { %1468 = vst.msk [vmem:[#allocation2 + $0x34] sm:$0xf] %vm1439_vm14, %v1316_v21  ;;  %11149 = vmatpush3.bf16.msra.mxu1 %v11956_v48  ;;  %v1667_v30 = vrot.slane %v1665_v18, 5  ;;  %v1671_v59 = vrot.slane %v1669_v5, 4  ;;  %v13242_v38 = vld [vmem:[#allocation2 + $0x24] sm:$0xf] }
  0xd2   : > { %11150 = vmatprep.subr.bf16.mxu1 %v11958_v62  ;;  %v1663_v24 = vrot.slane %v1662_v23, 4  ;;  %v1677_v57 = vrot.slane %v1675_v50, 5  ;;  %v13253_v48 = vld [vmem:[#allocation2 + $0x28] sm:$0xf]  ;;  %v1476_v62 = vld [vmem:[#allocation2 + $0x44] sm:$0x1]  ;;  %v1654_v3 = vsel %vm12869_vm11, %v1649_v29, %v1653_v11  ;;  %v1326_v44 = vpop.permute.xlu1 %1325 }
  0xd3   : > { %v1672_v41 = vor.u32 %v1671_v59, %v1667_v30  ;;  %v10242_v8 = vcombine.low %v13242_v38, %v13253_v48  ;;  %v10146_v21 = vrot.slane %v1993_v46, 9  ;;  %v13259_v31 = vld [vmem:[#allocation2 + $0x24] sm:$0xf]  ;;  %v10209_v43 = vcombine.low %v1644_v20, %v1654_v3 }
  0xd4   : > { %v1320_v33 = vpop.permute.xlu0 %1319  ;;  %4796 = vmatmul.mubr.bf16.gmra.mrb[4].mxu1 %v10225_v49  ;;  %v2267_v47 = vshrl.u32 %v13242_v38, 16  ;;  %v2270_v11 = vshll.u32 %v13242_v38, 16  ;;  %v2074_v12 = vrot.slane %v13212_v4, 5  ;;  %v1668_v32 = vsel %vm12869_vm11, %v1663_v24, %v1667_v30  ;;  %v1994_v29 = vld [vmem:[#allocation2 + $0x24] sm:$0xe] }
  0xd5   : > { %v1473_v34 = vsel %vm13103_vm1, %v1320_v33, %v1472_v35  ;;  %11151 = vmatpush3.bf16.msra.mxu1 %v11960_v15  ;;  %v13269_v0 = vld [vmem:[#allocation2 + $0x2c] sm:$0x1]  ;;  %v1673_v55 = vrot.slane %v1672_v41, 4  ;;  %4803 = vmatprep.mubr.bf16.mxu1 %v10242_v8  ;;  %v2077_v16 = vrot.slane %v13216_v14, 5  ;;  %v1479_v35 = vld [vmem:[#allocation2 + $0x48] sm:$0xf] }
  0xd6   : > { %1474 = vst [vmem:[#allocation2 + $0x3c] sm:$0xf] %v1473_v34  ;;  %11152 = vmatprep.subr.bf16.mxu1 %v11961_v9  ;;  %4634 = vmatprep.mubr.bf16.mxu0 %v10209_v43  ;;  %v2075_v58 = vsel %vm12879_vm13, %v10146_v21, %v2074_v12  ;;  %v2076_v51 = vrot.slane %v2074_v12, 4  ;;  %v1680_v5 = vshrl.u32 %v13259_v31, 16  ;;  %v1683_v50 = vshll.u32 %v13259_v31, 16  ;;  %v1330_v59 = vpop.permute.xlu1 %1329  ;;  %v11968_v38 = vld [vmem:[%s17320_s2 + $0x1a0] sm:$0xff]  }
  0xd7   : > { %4635 = vmatmul.mubr.bf16.gmra.mrb[4].mxu0 %v10193_v19  ;;  %v1678_v15 = vsel %vm12869_vm11, %v1673_v55, %v1677_v57  ;;  %v1689_v14 = vshll.u32 %v13261_v17, 16  ;;  %v1693_v9 = vshrl.u32 %v13261_v17, 16  ;;  %v1699_v49 = vshll.u32 %v13269_v0, 16  ;;  %v1483_v34 = vld [vmem:[#allocation2 + $0x50] sm:$0x1] }
  0xd8   : > { %v1324_v27 = vpop.permute.xlu0 %1323  ;;  %v10210_v23 = vcombine.low %v1668_v32, %v1678_v15  ;;  %v2078_v30 = vsel %vm12879_vm13, %v2076_v51, %v2077_v16  ;;  %v1682_v33 = vrot.slane %v1680_v5, 4  ;;  %v1685_v39 = vrot.slane %v1683_v50, 5  ;;  %v13295_v57 = vld [vmem:[#allocation2 + $0x30] sm:$0xf]  ;;  %v13316_v16 = vld [vmem:[#allocation2 + $0x34] sm:$0xf] }
  0xd9   : > { %v1477_v18 = vsel %vm13110_vm5, %v1324_v27, %v1476_v62  ;;  %11153 = vmatpush3.bf16.msra.mxu1 %v11962_v42  ;;  %v13293_v1 = vrot.slane %v2267_v47, 4  ;;  %v10226_v20 = vcombine.low %v2075_v58, %v2078_v30  ;;  %v1691_v19 = vrot.slane %v1689_v14, 5  ;;  %v11969_v62 = vld [vmem:[%s17320_s2 + $0x1e8] sm:$0xff]   ;;  %v13306_v42 = vld [vmem:[#allocation2 + $0x34] sm:$0xf] }
  0xda   : > { %1478 = vst [vmem:[#allocation2 + $0x44] sm:$0x1] %v1477_v18  ;;  %11154 = vmatprep.subr.bf16.mxu1 %v11965_v37  ;;  %v1695_v24 = vrot.slane %v1693_v9, 4  ;;  %4642 = vmatprep.mubr.bf16.mxu0 %v10210_v23  ;;  %v13301_v3 = vrot.slane %v2270_v11, 5  ;;  %v1686_v8 = vor.u32 %v1685_v39, %v1682_v33  ;;  %v1480_v21 = vsel %vm13103_vm1, %v1326_v44, %v1479_v35  ;;  %v13308_v43 = vld [vmem:[#allocation2 + $0x30] sm:$0xf]  ;;  %v1334_v35 = vpop.permute.xlu1 %1333 }
  0xdb   : > { %v1701_v12 = vrot.slane %v1699_v49, 5  ;;  %1481 = vst [vmem:[#allocation2 + $0x48] sm:$0xf] %v1480_v21  ;;  %v10243_v27 = vcombine.low %v13295_v57, %v13306_v42  ;;  %v10147_v37 = vrot.slane %v1994_v29, 9  ;;  %v10194_v11 = vcombine.low %v13191_v60, %v13212_v4  ;;  %v11970_v58 = vld [vmem:[%s17320_s2 + $0x1a8] sm:$0xff]   ;;  %v11972_v15 = vld [vmem:[%s17320_s2 + $0x1f0] sm:$0xff]  }
  0xdc   : > { %v1328_v46 = vpop.permute.xlu0 %1327  ;;  %4804 = vmatmul.mubr.bf16.gmra.mrb[8].mxu1 %v10226_v20  ;;  %v1696_v47 = vor.u32 %v1695_v24, %v1691_v19  ;;  %v1687_v32 = vrot.slane %v1686_v8, 4  ;;  %v2291_v55 = vshrl.u32 %v13295_v57, 16  ;;  %v2081_v44 = vrot.slane %v13261_v17, 5  ;;  %v13325_v50 = vld [vmem:[#allocation2 + $0x38] sm:$0x1] }
  0xdd   : > { %1482 = vst.msk [vmem:[#allocation2 + $0x4c] sm:$0xf] %vm1439_vm14, %v1328_v46  ;;  %11155 = vmatpush3.bf16.msra.mxu1 %v11968_v38  ;;  %v2294_v5 = vshll.u32 %v13295_v57, 16  ;;  %4811 = vmatprep.mubr.bf16.mxu1 %v10243_v27  ;;  %v2084_v60 = vrot.slane %v13269_v0, 5  ;;  %v1484_v4 = vsel %vm13110_vm5, %v1330_v59, %v1483_v34  ;;  %1489 = vst.msk [vmem:[#allocation2 + $0x58] sm:$0xf] %vm1439_vm14, %v1334_v35 }
  0xde   : > { %v1697_v51 = vrot.slane %v1696_v47, 4  ;;  %11156 = vmatprep.subr.bf16.mxu1 %v11969_v62  ;;  %v1692_v14 = vsel %vm12869_vm11, %v1687_v32, %v1691_v19  ;;  %v2082_v9 = vsel %vm12879_vm13, %v10147_v37, %v2081_v44  ;;  %v2083_v49 = vrot.slane %v2081_v44, 4  ;;  %1485 = vst [vmem:[#allocation2 + $0x50] sm:$0x1] %v1484_v4  ;;  %v1486_v46 = vld [vmem:[#allocation2 + $0x54] sm:$0xf]  ;;  %v13344_v24 = vpop.permute.xlu1 %1337 }
  0xdf   : > { %v1704_v0 = vshrl.u32 %v13308_v43, 16  ;;  %4643 = vmatmul.mubr.bf16.gmra.mrb[8].mxu0 %v10194_v11  ;;  %v1707_v30 = vshll.u32 %v13308_v43, 16  ;;  %v1713_v33 = vshll.u32 %v13316_v16, 16  ;;  %v1717_v39 = vshrl.u32 %v13316_v16, 16  ;;  %v1995_v20 = vld [vmem:[#allocation2 + $0x30] sm:$0xe] }
  0xe0   : > { %v1332_v18 = vpop.permute.xlu0 %1331  ;;  %v1702_v23 = vsel %vm12869_vm11, %v1697_v51, %v1701_v12  ;;  %v2085_v59 = vsel %vm12879_vm13, %v2083_v49, %v2084_v60  ;;  %v1723_v38 = vshll.u32 %v13325_v50, 16  ;;  %v11974_v57 = vld [vmem:[%s17320_s2 + $0x1b0] sm:$0xff]   ;;  %v13349_v12 = vld [vmem:[#allocation2 + $0x3c] sm:$0xf]  ;;  %v13354_v37 = vrot.slane %v2291_v55, 4 }
  0xe1   : > { %v10211_v29 = vcombine.low %v1692_v14, %v1702_v23  ;;  %v1706_v34 = vrot.slane %v1704_v0, 4  ;;  %11157 = vmatpush3.bf16.msra.mxu1 %v11970_v58  ;;  %v10227_v62 = vcombine.low %v2082_v9, %v2085_v59  ;;  %v1709_v8 = vrot.slane %v1707_v30, 5  ;;  %v11975_v27 = vld [vmem:[%s17320_s2 + $0x1f8] sm:$0xff]   ;;  %v13361_v35 = vld [vmem:[#allocation2 + $0x40] sm:$0xf] }
  0xe2   : > { %v1715_v21 = vrot.slane %v1713_v33, 5  ;;  %v1719_v47 = vrot.slane %v1717_v39, 4  ;;  %11158 = vmatprep.subr.bf16.mxu1 %v11972_v15  ;;  %v13356_v11 = vrot.slane %v2294_v5, 5  ;;  %v1487_v44 = vsel %vm13103_vm1, %v1332_v18, %v1486_v46  ;;  %v1490_v15 = vld [vmem:[#allocation2 + $0x5c] sm:$0x1]  ;;  %v13373_v23 = vpop.permute.xlu1 %1341 }
  0xe3   : > { %4650 = vmatprep.mubr.bf16.mxu0 %v10211_v29  ;;  %v1710_v58 = vor.u32 %v1709_v8, %v1706_v34  ;;  %v1725_v60 = vrot.slane %v1723_v38, 5  ;;  %1488 = vst [vmem:[#allocation2 + $0x54] sm:$0xf] %v1487_v44  ;;  %v10244_v4 = vcombine.low %v13349_v12, %v13361_v35  ;;  %v13365_v55 = vld [vmem:[#allocation2 + $0x3c] sm:$0xf]  ;;  %v10195_v5 = vcombine.low %v13259_v31, %v13261_v17 }
  0xe4   : > { %v1336_v19 = vpop.permute.xlu0 %1335  ;;  %4812 = vmatmul.mubr.bf16.gmra.mrb[12].mxu1 %v10227_v62  ;;  %v1720_v51 = vor.u32 %v1719_v47, %v1715_v21  ;;  %v2315_v14 = vshrl.u32 %v13349_v12, 16  ;;  %v10148_v9 = vrot.slane %v1995_v20, 9  ;;  %v2088_v18 = vrot.slane %v13316_v16, 5  ;;  %v13371_v49 = vld [vmem:[#allocation2 + $0x40] sm:$0xf]  ;;  %v11976_v30 = vld [vmem:[%s17320_s2 + $0x1b8] sm:$0xff]  }
  0xe5   : > { %11159 = vmatpush3.bf16.msra.mxu1 %v11974_v57  ;;  %v1711_v33 = vrot.slane %v1710_v58, 4  ;;  %v2318_v46 = vshll.u32 %v13349_v12, 16  ;;  %4819 = vmatprep.mubr.bf16.mxu1 %v10244_v4  ;;  %v2091_v31 = vrot.slane %v13325_v50, 5  ;;  %v1491_v59 = vsel %vm13110_vm5, %v1336_v19, %v1490_v15  ;;  %v13385_v34 = vld [vmem:[#allocation2 + $0x44] sm:$0x1] }
  0xe6   : > { %v1721_v39 = vrot.slane %v1720_v51, 4  ;;  %11160 = vmatprep.subr.bf16.mxu1 %v11975_v27  ;;  %v2089_v17 = vsel %vm12879_vm13, %v10148_v9, %v2088_v18  ;;  %v2090_v29 = vrot.slane %v2088_v18, 4  ;;  %v1728_v38 = vshrl.u32 %v13365_v55, 16  ;;  %1492 = vst [vmem:[#allocation2 + $0x5c] sm:$0x1] %v1491_v59 }
  0xe7   : > { %4651 = vmatmul.mubr.bf16.gmra.mrb[12].mxu0 %v10195_v5  ;;  %v1716_v20 = vsel %vm12869_vm11, %v1711_v33, %v1715_v21  ;;  %v1731_v57 = vshll.u32 %v13365_v55, 16  ;;  %v1737_v62 = vshll.u32 %v13371_v49, 16  ;;  %v1493_v8 = vld [vmem:[#allocation2 + $0x60] sm:$0xf]  ;;  %v1741_v27 = vshrl.u32 %v13371_v49, 16  ;;  %v1346_v21 = vpop.permute.xlu1 %1345 }
  0xe8   : > { %v1340_v0 = vpop.permute.xlu0 %1339  ;;  %v1726_v50 = vsel %vm12869_vm11, %v1721_v39, %v1725_v60  ;;  %v2092_v19 = vsel %vm12879_vm13, %v2090_v29, %v2091_v31  ;;  %v1730_v12 = vrot.slane %v1728_v38, 4  ;;  %v1996_v44 = vld [vmem:[#allocation2 + $0x3c] sm:$0xe]  ;;  %v1747_v15 = vshll.u32 %v13385_v34, 16  ;;  %1503 = vst.msk [vmem:[#allocation2 + $0x70] sm:$0xf] %vm1439_vm14, %v1346_v21 }
  0xe9   : > { %1496 = vst.msk [vmem:[#allocation2 + $0x64] sm:$0xf] %vm1439_vm14, %v1340_v0  ;;  %v10212_v47 = vcombine.low %v1716_v20, %v1726_v50  ;;  %11161 = vmatpush3.bf16.msra.mxu1 %v11976_v30  ;;  %v10228_v51 = vcombine.low %v2089_v17, %v2092_v19  ;;  %v1733_v60 = vrot.slane %v1731_v57, 5  ;;  %v1739_v4 = vrot.slane %v1737_v62, 5  ;;  %v13405_v0 = vld [vmem:[#allocation2 + $0x48] sm:$0xf] }
  0xea   : > { %v1743_v9 = vrot.slane %v1741_v27, 4  ;;  %v1494_v18 = vsel %vm13103_vm1, %v13344_v24, %v1493_v8  ;;  %v13407_v33 = vld [vmem:[#allocation2 + $0x4c] sm:$0xf]  ;;  %v13409_v30 = vrot.slane %v2315_v14, 4  ;;  %v13411_v39 = vrot.slane %v2318_v46, 5 }
  0xeb   : > { %4658 = vmatprep.mubr.bf16.mxu0 %v10212_v47  ;;  %v1734_v31 = vor.u32 %v1733_v60, %v1730_v12  ;;  %1495 = vst [vmem:[#allocation2 + $0x60] sm:$0xf] %v1494_v18  ;;  %v10245_v17 = vcombine.low %v13405_v0, %v13407_v33  ;;  %v1497_v29 = vld [vmem:[#allocation2 + $0x68] sm:$0x1]  ;;  %v10196_v24 = vcombine.low %v13308_v43, %v13316_v16  ;;  %v1749_v20 = vrot.slane %v1747_v15, 5  ;;  %v13423_v46 = vpop.permute.xlu1 %1349 }
  0xec   : > { %v13397_v58 = vpop.permute.xlu0 %1343  ;;  %4820 = vmatmul.mubr.bf16.gmra.mrb[16].mxu1 %v10228_v51  ;;  %v13415_v59 = vld [vmem:[#allocation2 + $0x48] sm:$0xf]  ;;  %v1744_v38 = vor.u32 %v1743_v9, %v1739_v4  ;;  %v10149_v50 = vrot.slane %v1996_v44, 9  ;;  %v13419_v57 = vld [vmem:[#allocation2 + $0x4c] sm:$0xf]  ;;  %v2339_v8 = vshrl.u32 %v13405_v0, 16  ;;  %v1498_v43 = vsel %vm13110_vm5, %v13373_v23, %v1497_v29 }
  0xed   : > { %v1735_v62 = vrot.slane %v1734_v31, 4  ;;  %4827 = vmatprep.mubr.bf16.mxu1 %v10245_v17  ;;  %v2095_v47 = vrot.slane %v13371_v49, 5  ;;  %v2098_v19 = vrot.slane %v13385_v34, 5  ;;  %v13431_v16 = vld [vmem:[#allocation2 + $0x50] sm:$0x1]  ;;  %v1752_v27 = vshrl.u32 %v13415_v59, 16 }
  0xee   : > { %v1745_v12 = vrot.slane %v1744_v38, 4  ;;  %v1755_v44 = vshll.u32 %v13415_v59, 16  ;;  %1499 = vst [vmem:[#allocation2 + $0x68] sm:$0x1] %v1498_v43  ;;  %v1761_v34 = vshll.u32 %v13419_v57, 16  ;;  %v1765_v31 = vshrl.u32 %v13419_v57, 16 }
  0xef   : > { %4659 = vmatmul.mubr.bf16.gmra.mrb[16].mxu0 %v10196_v24  ;;  %v1740_v21 = vsel %vm12869_vm11, %v1735_v62, %v1739_v4  ;;  %v2096_v51 = vsel %vm12879_vm13, %v10149_v50, %v2095_v47  ;;  %v2097_v60 = vrot.slane %v2095_v47, 4  ;;  %v1500_v15 = vld [vmem:[#allocation2 + $0x6c] sm:$0xf]  ;;  %v1754_v9 = vrot.slane %v1752_v27, 4  ;;  %v13443_v29 = vpop.permute.xlu1 %1353  ;;  %v1997_v62 = vld [vmem:[#allocation2 + $0x48] sm:$0xe] }
  0xf0   : > { %v13421_v14 = vpop.permute.xlu0 %1347  ;;  %v1750_v23 = vsel %vm12869_vm11, %v1745_v12, %v1749_v20  ;;  %v1757_v18 = vrot.slane %v1755_v44, 5  ;;  %v1763_v38 = vrot.slane %v1761_v34, 5  ;;  %v1771_v50 = vshll.u32 %v13431_v16, 16  ;;  %v13452_v27 = vld [vmem:[#allocation2 + $0x54] sm:$0xf] }
  0xf1   : > { %v10213_v24 = vcombine.low %v1740_v21, %v1750_v23  ;;  %v2099_v4 = vsel %vm12879_vm13, %v2097_v60, %v2098_v19  ;;  %v1767_v20 = vrot.slane %v1765_v31, 4  ;;  %v1501_v12 = vsel %vm13103_vm1, %v13397_v58, %v1500_v15  ;;  %v1504_v44 = vld [vmem:[#allocation2 + $0x74] sm:$0x1]  ;;  %v13458_v23 = vld [vmem:[#allocation2 + $0x58] sm:$0xf] }
  0xf2   : > { %v10229_v47 = vcombine.low %v2096_v51, %v2099_v4  ;;  %v1758_v43 = vor.u32 %v1757_v18, %v1754_v9  ;;  %v13454_v21 = vrot.slane %v2339_v8, 4  ;;  %v2342_v19 = vshll.u32 %v13405_v0, 16  ;;  %1502 = vst [vmem:[#allocation2 + $0x6c] sm:$0xf] %v1501_v12  ;;  %v13462_v18 = vld [vmem:[#allocation2 + $0x54] sm:$0xf] }
  0xf3   : > { %4666 = vmatprep.mubr.bf16.mxu0 %v10213_v24  ;;  %v1773_v34 = vrot.slane %v1771_v50, 5  ;;  %v1768_v9 = vor.u32 %v1767_v20, %v1763_v38  ;;  %v10246_v58 = vcombine.low %v13452_v27, %v13458_v23  ;;  %v10150_v15 = vrot.slane %v1997_v62, 9  ;;  %v13464_v31 = vld [vmem:[#allocation2 + $0x58] sm:$0xf]  ;;  %v1358_v0 = vpop.permute.xlu1 %1357  ;;  %v1998_v26 = vld [vmem:[#allocation2 + $0x54] sm:$0xe] }
  0xf4   : > { %v1352_v17 = vpop.permute.xlu0 %1351  ;;  %4828 = vmatmul.mubr.bf16.gmra.mrb[20].mxu1 %v10229_v47  ;;  %v1759_v51 = vrot.slane %v1758_v43, 4  ;;  %v2363_v24 = vshrl.u32 %v13452_v27, 16  ;;  %v2102_v4 = vrot.slane %v13419_v57, 5  ;;  %v2105_v50 = vrot.slane %v13431_v16, 5  ;;  %v13473_v47 = vld [vmem:[#allocation2 + $0x5c] sm:$0x1] }
  0xf5   : > { %1510 = vst.msk [vmem:[#allocation2 + $0x7c] sm:$0xf] %vm1439_vm14, %v1352_v17  ;;  %v10197_v17 = vcombine.low %v13365_v55, %v13371_v49  ;;  %1517 = vst.msk [vmem:[#allocation2 + $0x88] sm:$0xf] %vm1439_vm14, %v1358_v0  ;;  %v1769_v43 = vrot.slane %v1768_v9, 4  ;;  %v2366_v20 = vshll.u32 %v13452_v27, 16  ;;  %4835 = vmatprep.mubr.bf16.mxu1 %v10246_v58  ;;  %v1505_v55 = vsel %vm13110_vm5, %v13421_v14, %v1504_v44 }
  0xf6   : > { %v1764_v62 = vsel %vm12869_vm11, %v1759_v51, %v1763_v38  ;;  %v2103_v49 = vsel %vm12879_vm13, %v10150_v15, %v2102_v4  ;;  %v2104_v16 = vrot.slane %v2102_v4, 4  ;;  %1506 = vst [vmem:[#allocation2 + $0x74] sm:$0x1] %v1505_v55  ;;  %v1776_v12 = vshrl.u32 %v13462_v18, 16  ;;  %v1507_v14 = vld [vmem:[#allocation2 + $0x78] sm:$0xf] }
  0xf7   : > { %4667 = vmatmul.mubr.bf16.gmra.mrb[20].mxu0 %v10197_v17  ;;  %v1779_v0 = vshll.u32 %v13462_v18, 16  ;;  %v1774_v38 = vsel %vm12869_vm11, %v1769_v43, %v1773_v34  ;;  %v1785_v27 = vshll.u32 %v13464_v31, 16  ;;  %v1789_v51 = vshrl.u32 %v13464_v31, 16  ;;  %v13493_v58 = vpop.permute.xlu1 %1361  ;;  %v1511_v32 = vld [vmem:[#allocation2 + $0x80] sm:$0x1] }
  0xf8   : > { %v13466_v8 = vpop.permute.xlu0 %1355  ;;  %v1795_v9 = vshll.u32 %v13473_v47, 16  ;;  %v10214_v15 = vcombine.low %v1764_v62, %v1774_v38  ;;  %v2106_v17 = vsel %vm12879_vm13, %v2104_v16, %v2105_v50  ;;  %v1778_v4 = vrot.slane %v1776_v12, 4  ;;  %v13505_v50 = vld [vmem:[#allocation2 + $0x60] sm:$0xf]  ;;  %v13507_v16 = vld [vmem:[#allocation2 + $0x64] sm:$0xf] }
  0xf9   : > { %v1781_v55 = vrot.slane %v1779_v0, 5  ;;  %v13497_v60 = vrot.slane %v2342_v19, 5  ;;  %v10230_v34 = vcombine.low %v2103_v49, %v2106_v17  ;;  %v1787_v43 = vrot.slane %v1785_v27, 5  ;;  %17386 = vst [vmem:[#allocation12_spill] sm:$0xff] %v13507_v16  ;;  %v13511_v0 = vld [vmem:[#allocation2 + $0x60] sm:$0xf] }
  0xfa   : > { %v1791_v5 = vrot.slane %v1789_v51, 4  ;;  %4674 = vmatprep.mubr.bf16.mxu0 %v10214_v15  ;;  %v13499_v41 = vrot.slane %v2363_v24, 4  ;;  %v1508_v62 = vsel %vm13103_vm1, %v13423_v46, %v1507_v14  ;;  %v1797_v49 = vrot.slane %v1795_v9, 5  ;;  %v13513_v38 = vld [vmem:[#allocation2 + $0x64] sm:$0xf] }
  0xfb   : > { %v1782_v56 = vor.u32 %v1781_v55, %v1778_v4  ;;  %1509 = vst [vmem:[#allocation2 + $0x78] sm:$0xf] %v1508_v62  ;;  %v10247_v12 = vcombine.low %v13505_v50, %v13507_v16  ;;  %v10151_v24 = vrot.slane %v1998_v26, 9  ;;  %v13515_v51 = vpop.permute.xlu1 %1365  ;;  %v13517_v46 = vrot.slane %v2366_v20, 5  ;;  %v13522_v9 = vld [vmem:[#allocation2 + $0x68] sm:$0x1] }
  0xfc   : > { %v13491_v44 = vpop.permute.xlu0 %1359  ;;  %4836 = vmatmul.mubr.bf16.gmra.mrb[24].mxu1 %v10230_v34  ;;  %v1792_v19 = vor.u32 %v1791_v5, %v1787_v43  ;;  %v10198_v14 = vcombine.low %v13415_v59, %v13419_v57  ;;  %v2109_v5 = vrot.slane %v13464_v31, 5  ;;  %v2387_v17 = vshrl.u32 %v13505_v50, 16  ;;  %v2186_v54 = vld [vmem:[#allocation2 + $0x6c] sm:$0xf] }
  0xfd   : > { %v1783_v15 = vrot.slane %v1782_v56, 4  ;;  %4843 = vmatprep.mubr.bf16.mxu1 %v10247_v12  ;;  %v2112_v4 = vrot.slane %v13473_v47, 5  ;;  %v1512_v20 = vsel %vm13110_vm5, %v13443_v29, %v1511_v32  ;;  %v1800_v55 = vshrl.u32 %v13511_v0, 16  ;;  %v1514_v29 = vld [vmem:[#allocation2 + $0x84] sm:$0xf] }
  0xfe   : > { %v1793_v26 = vrot.slane %v1792_v19, 4  ;;  %v2110_v59 = vsel %vm12879_vm13, %v10151_v24, %v2109_v5  ;;  %v2111_v57 = vrot.slane %v2109_v5, 4  ;;  %1513 = vst [vmem:[#allocation2 + $0x80] sm:$0x1] %v1512_v20  ;;  %v1803_v47 = vshll.u32 %v13511_v0, 16 }
  0xff   : > { %4675 = vmatmul.mubr.bf16.gmra.mrb[24].mxu0 %v10198_v14  ;;  %v1788_v56 = vsel %vm12869_vm11, %v1783_v15, %v1787_v43  ;;  %v1809_v62 = vshll.u32 %v13513_v38, 16  ;;  %v1813_v32 = vshrl.u32 %v13513_v38, 16  ;;  %v1370_v43 = vpop.permute.xlu1 %1369  ;;  %v1819_v14 = vshll.u32 %v13522_v9, 16  ;;  %v1999_v15 = vld [vmem:[#allocation2 + $0x60] sm:$0xe] }
 0x100   : > { %v1364_v27 = vpop.permute.xlu0 %1363  ;;  %v1798_v34 = vsel %vm12869_vm11, %v1793_v26, %v1797_v49  ;;  %v2113_v24 = vsel %vm12879_vm13, %v2111_v57, %v2112_v4  ;;  %1531 = vst.msk [vmem:[#allocation2 + $0xa0] sm:$0xf] %vm1439_vm14, %v1370_v43  ;;  %v1805_v5 = vrot.slane %v1803_v47, 5  ;;  %v13546_v61 = vrot.slane %v2387_v17, 4  ;;  %v13553_v57 = vld [vmem:[#allocation2 + $0x70] sm:$0xf] }
 0x101   : > { %1524 = vst.msk [vmem:[#allocation2 + $0x94] sm:$0xf] %vm1439_vm14, %v1364_v27  ;;  %v10215_v12 = vcombine.low %v1788_v56, %v1798_v34  ;;  %v1802_v27 = vrot.slane %v1800_v55, 4  ;;  %v10231_v49 = vcombine.low %v2110_v59, %v2113_v24  ;;  %v1811_v26 = vrot.slane %v1809_v62, 5  ;;  %17387 = vst [vmem:[#allocation13_spill] sm:$0xff] %v13553_v57 }
 0x102   : > { %v1815_v20 = vrot.slane %v1813_v32, 4  ;;  %v2390_v28 = vshll.u32 %v13505_v50, 16  ;;  %v1515_v4 = vsel %vm13103_vm1, %v13466_v8, %v1514_v29  ;;  %v1821_v34 = vrot.slane %v1819_v14, 5  ;;  %v1518_v62 = vld [vmem:[#allocation2 + $0x8c] sm:$0x1] }
 0x103   : > { %4682 = vmatprep.mubr.bf16.mxu0 %v10215_v12  ;;  %v1806_v55 = vor.u32 %v1805_v5, %v1802_v27  ;;  %1516 = vst [vmem:[#allocation2 + $0x84] sm:$0xf] %v1515_v4  ;;  %v10248_v47 = vcombine.low %v2186_v54, %v13553_v57  ;;  %v13556_v17 = vld [vmem:[#allocation2 + $0x6c] sm:$0xf]  ;;  %v13560_v50 = vpop.permute.xlu1 %1373  ;;  %v10199_v43 = vcombine.low %v13462_v18, %v13464_v31  ;;  %v2411_v8 = vshrl.u32 %v2186_v54, 16 }
 0x104   : > { %v13540_v19 = vpop.permute.xlu0 %1367  ;;  %4844 = vmatmul.mubr.bf16.gmra.mrb[28].mxu1 %v10231_v49  ;;  %v1816_v59 = vor.u32 %v1815_v20, %v1811_v26  ;;  %v10152_v29 = vrot.slane %v1999_v15, 9  ;;  %v2116_v12 = vrot.slane %v13513_v38, 5  ;;  %v13565_v24 = vld [vmem:[#allocation2 + $0x70] sm:$0xf]  ;;  %v2414_v49 = vshll.u32 %v2186_v54, 16 }
 0x105   : > { %v1807_v27 = vrot.slane %v1806_v55, 4  ;;  %4851 = vmatprep.mubr.bf16.mxu1 %v10248_v47  ;;  %v2119_v5 = vrot.slane %v13522_v9, 5  ;;  %v1519_v18 = vsel %vm13110_vm5, %v13491_v44, %v1518_v62  ;;  %v13573_v31 = vld [vmem:[#allocation2 + $0x74] sm:$0x1]  ;;  %v1824_v15 = vshrl.u32 %v13556_v17, 16 }
 0x106   : > { %v1817_v14 = vrot.slane %v1816_v59, 4  ;;  %v2117_v20 = vsel %vm12879_vm13, %v10152_v29, %v2116_v12  ;;  %v2118_v4 = vrot.slane %v2116_v12, 4  ;;  %1520 = vst [vmem:[#allocation2 + $0x8c] sm:$0x1] %v1519_v18  ;;  %v1827_v9 = vshll.u32 %v13556_v17, 16 }
 0x107   : > { %4683 = vmatmul.mubr.bf16.gmra.mrb[28].mxu0 %v10199_v43  ;;  %v1812_v55 = vsel %vm12869_vm11, %v1807_v27, %v1811_v26  ;;  %v1833_v59 = vshll.u32 %v13565_v24, 16  ;;  %v1521_v47 = vld [vmem:[#allocation2 + $0x90] sm:$0xf]  ;;  %v13582_v29 = vpop.permute.xlu1 %1377  ;;  %v1826_v12 = vrot.slane %v1824_v15, 4  ;;  %v1837_v56 = vshrl.u32 %v13565_v24, 16 }
 0x108   : > { %v13558_v32 = vpop.permute.xlu0 %1371  ;;  %v1822_v54 = vsel %vm12869_vm11, %v1817_v14, %v1821_v34  ;;  %v2120_v62 = vsel %vm12879_vm13, %v2118_v4, %v2119_v5  ;;  %v13587_v26 = vld [vmem:[#allocation2 + $0x7c] sm:$0xf]  ;;  %v1829_v27 = vrot.slane %v1827_v9, 5  ;;  %v1843_v18 = vshll.u32 %v13573_v31, 16  ;;  %v2000_v52 = vld [vmem:[#allocation2 + $0x6c] sm:$0xe] }
 0x109   : > { %v10216_v44 = vcombine.low %v1812_v55, %v1822_v54  ;;  %17388 = vst [vmem:[#allocation14_spill] sm:$0xff] %v13587_v26  ;;  %v10232_v34 = vcombine.low %v2117_v20, %v2120_v62  ;;  %v1835_v14 = vrot.slane %v1833_v59, 5  ;;  %v13591_v53 = vrot.slane %v2390_v28, 5  ;;  %v13597_v4 = vld [vmem:[#allocation2 + $0x78] sm:$0xf] }
 0x10a   : > { %v1839_v54 = vrot.slane %v1837_v56, 4  ;;  %v1522_v5 = vsel %vm13103_vm1, %v13493_v58, %v1521_v47  ;;  %v13599_v15 = vrot.slane %v2411_v8, 4  ;;  %v13601_v20 = vrot.slane %v2414_v49, 5  ;;  %v1525_v59 = vld [vmem:[#allocation2 + $0x98] sm:$0x1] }
 0x10b   : > { %17389 = vst [vmem:[#allocation15_spill] sm:$0xff] %v13591_v53  ;;  %4690 = vmatprep.mubr.bf16.mxu0 %v10216_v44  ;;  %v1830_v9 = vor.u32 %v1829_v27, %v1826_v12  ;;  %1523 = vst [vmem:[#allocation2 + $0x90] sm:$0xf] %v1522_v5  ;;  %v10249_v28 = vcombine.low %v13597_v4, %v13587_v26  ;;  %v1382_v44 = vpop.permute.xlu1 %1381  ;;  %v10200_v58 = vcombine.low %v13511_v0, %v13513_v38  ;;  %v13611_v49 = vld [vmem:[#allocation2 + $0x7c] sm:$0xf] }
 0x10c   : > { %v1376_v43 = vpop.permute.xlu0 %1375  ;;  %17390 = vst [vmem:[#allocation16_spill] sm:$0xff] %v13599_v15  ;;  %17391 = vst [vmem:[#allocation17_spill] sm:$0xff] %v13601_v20  ;;  %4852 = vmatmul.mubr.bf16.gmra.mrb[32].mxu1 %v10232_v34  ;;  %v1840_v47 = vor.u32 %v1839_v54, %v1835_v14  ;;  %v1845_v8 = vrot.slane %v1843_v18, 5  ;;  %v10153_v62 = vrot.slane %v2000_v52, 9  ;;  %v2435_v34 = vshrl.u32 %v13597_v4, 16 }
 0x10d   : > { %1538 = vst.msk [vmem:[#allocation2 + $0xac] sm:$0xf] %vm1439_vm14, %v1376_v43  ;;  %v13605_v43 = vld [vmem:[#allocation2 + $0x78] sm:$0xf]  ;;  %1545 = vst.msk [vmem:[#allocation2 + $0xb8] sm:$0xf] %vm1439_vm14, %v1382_v44  ;;  %4859 = vmatprep.mubr.bf16.mxu1 %v10249_v28  ;;  %v1526_v0 = vsel %vm13110_vm5, %v13515_v51, %v1525_v59 }
 0x10e   : > { %v1831_v12 = vrot.slane %v1830_v9, 4  ;;  %v2123_v27 = vrot.slane %v13565_v24, 5  ;;  %v2126_v5 = vrot.slane %v13573_v31, 5  ;;  %v1841_v55 = vrot.slane %v1840_v47, 4  ;;  %v13620_v38 = vld [vmem:[#allocation2 + $0x80] sm:$0x1] }
 0x10f   : > { %4691 = vmatmul.mubr.bf16.gmra.mrb[32].mxu0 %v10200_v58  ;;  %v1848_v52 = vshrl.u32 %v13605_v43, 16  ;;  %v1851_v18 = vshll.u32 %v13605_v43, 16  ;;  %1527 = vst [vmem:[#allocation2 + $0x98] sm:$0x1] %v1526_v0  ;;  %v1857_v31 = vshll.u32 %v13611_v49, 16  ;;  %v1861_v57 = vshrl.u32 %v13611_v49, 16 }
 0x110   : > { %v13607_v56 = vpop.permute.xlu0 %1379  ;;  %v1836_v54 = vsel %vm12869_vm11, %v1831_v12, %v1835_v14  ;;  %v2124_v9 = vsel %vm12879_vm13, %v10153_v62, %v2123_v27  ;;  %v2125_v28 = vrot.slane %v2123_v27, 4  ;;  %v1528_v44 = vld [vmem:[#allocation2 + $0x9c] sm:$0xf]  ;;  %v1846_v51 = vsel %vm12869_vm11, %v1841_v55, %v1845_v8  ;;  %v2001_v27 = vld [vmem:[#allocation2 + $0x78] sm:$0xe] }
 0x111   : > { %v1850_v59 = vrot.slane %v1848_v52, 4  ;;  %v1853_v47 = vrot.slane %v1851_v18, 5  ;;  %v10217_v20 = vcombine.low %v1836_v54, %v1846_v51  ;;  %v1859_v12 = vrot.slane %v1857_v31, 5  ;;  %v13640_v55 = vld [vmem:[#allocation2 + $0x84] sm:$0xf] }
 0x112   : > { %v2127_v14 = vsel %vm12879_vm13, %v2125_v28, %v2126_v5  ;;  %v1867_v62 = vshll.u32 %v13620_v38, 16  ;;  %v1863_v16 = vrot.slane %v1861_v57, 4  ;;  %v1529_v53 = vsel %vm13103_vm1, %v13540_v19, %v1528_v44  ;;  %v1532_v8 = vld [vmem:[#allocation2 + $0xa4] sm:$0x1] }
 0x113   : > { %v10233_v0 = vcombine.low %v2124_v9, %v2127_v14  ;;  %v1854_v15 = vor.u32 %v1853_v47, %v1850_v59  ;;  %4698 = vmatprep.mubr.bf16.mxu0 %v10217_v20  ;;  %v2438_v52 = vshll.u32 %v13597_v4, 16  ;;  %v10201_v5 = vcombine.low %v13556_v17, %v13565_v24  ;;  %1530 = vst [vmem:[#allocation2 + $0x9c] sm:$0xf] %v1529_v53  ;;  %v13646_v9 = vld [vmem:[#allocation2 + $0x88] sm:$0xf] }
 0x114   : > { %v13629_v58 = vpop.permute.xlu0 %1383  ;;  %v1869_v54 = vrot.slane %v1867_v62, 5  ;;  %v1864_v31 = vor.u32 %v1863_v16, %v1859_v12  ;;  %v10250_v19 = vcombine.low %v13640_v55, %v13646_v9  ;;  %v10154_v44 = vrot.slane %v2001_v27, 9  ;;  %v13650_v20 = vld [vmem:[#allocation2 + $0x84] sm:$0xf]  ;;  %v13652_v4 = vld [vmem:[#allocation2 + $0x88] sm:$0xf] }
 0x115   : > { %4860 = vmatmul.mubr.bf16.gmra.mrb[36].mxu1 %v10233_v0  ;;  %v1855_v28 = vrot.slane %v1854_v15, 4  ;;  %v13655_v51 = vrot.slane %v2435_v34, 4  ;;  %v2459_v53 = vshrl.u32 %v13640_v55, 16  ;;  %v2130_v17 = vrot.slane %v13611_v49, 5  ;;  %v13660_v15 = vld [vmem:[#allocation2 + $0x8c] sm:$0x1] }
 0x116   : > { %v2133_v24 = vrot.slane %v13620_v38, 5  ;;  %v1865_v59 = vrot.slane %v1864_v31, 4  ;;  %v2462_v47 = vshll.u32 %v13640_v55, 16  ;;  %4867 = vmatprep.mubr.bf16.mxu1 %v10250_v19  ;;  %v1533_v34 = vsel %vm13110_vm5, %v13558_v32, %v1532_v8  ;;  %v2002_v19 = vld [vmem:[#allocation2 + $0x84] sm:$0xe] }
 0x117   : > { %17392 = vst [vmem:[#allocation18_spill] sm:$0xff] %v13655_v51  ;;  %4699 = vmatmul.mubr.bf16.gmra.mrb[36].mxu0 %v10201_v5  ;;  %v1860_v16 = vsel %vm12869_vm11, %v1855_v28, %v1859_v12  ;;  %v2131_v14 = vsel %vm12879_vm13, %v10154_v44, %v2130_v17  ;;  %v2132_v62 = vrot.slane %v2130_v17, 4  ;;  %1534 = vst [vmem:[#allocation2 + $0xa4] sm:$0x1] %v1533_v34  ;;  %v1872_v38 = vshrl.u32 %v13650_v20, 16 }
 0x118   : > { %v1388_v57 = vpop.permute.xlu0 %1387  ;;  %v1875_v27 = vshll.u32 %v13650_v20, 16  ;;  %v1870_v12 = vsel %vm12869_vm11, %v1865_v59, %v1869_v54  ;;  %v1881_v0 = vshll.u32 %v13652_v4, 16  ;;  %v1885_v55 = vshrl.u32 %v13652_v4, 16  ;;  %v1539_v54 = vld [vmem:[#allocation2 + $0xb0] sm:$0x1] }
 0x119   : > { %1552 = vst.msk [vmem:[#allocation2 + $0xc4] sm:$0xf] %vm1439_vm14, %v1388_v57  ;;  %v1891_v5 = vshll.u32 %v13660_v15, 16  ;;  %v1535_v57 = vld [vmem:[#allocation2 + $0xa8] sm:$0xf]  ;;  %v10218_v32 = vcombine.low %v1860_v16, %v1870_v12  ;;  %v2134_v8 = vsel %vm12879_vm13, %v2132_v62, %v2133_v24  ;;  %v1874_v28 = vrot.slane %v1872_v38, 4 }
 0x11a   : > { %v1877_v31 = vrot.slane %v1875_v27, 5  ;;  %v13679_v44 = vrot.slane %v2438_v52, 5  ;;  %v10234_v17 = vcombine.low %v2131_v14, %v2134_v8  ;;  %v1883_v34 = vrot.slane %v1881_v0, 5  ;;  %v13687_v16 = vld [vmem:[#allocation2 + $0x90] sm:$0xf] }
 0x11b   : > { %v1887_v18 = vrot.slane %v1885_v55, 4  ;;  %4706 = vmatprep.mubr.bf16.mxu0 %v10218_v32  ;;  %v10202_v26 = vcombine.low %v13605_v43, %v13611_v49  ;;  %v1536_v24 = vsel %vm13103_vm1, %v13560_v50, %v1535_v57  ;;  %v13689_v62 = vld [vmem:[#allocation2 + $0x94] sm:$0xf]  ;;  %v1893_v14 = vrot.slane %v1891_v5, 5  ;;  %v13693_v12 = vld [vmem:[#allocation2 + $0x90] sm:$0xf] }
 0x11c   : > { %v1878_v51 = vor.u32 %v1877_v31, %v1874_v28  ;;  %17393 = vst [vmem:[#allocation19_spill] sm:$0xff] %v13689_v62  ;;  %1537 = vst [vmem:[#allocation2 + $0xa8] sm:$0xf] %v1536_v24  ;;  %v10251_v38 = vcombine.low %v13687_v16, %v13689_v62  ;;  %v10155_v27 = vrot.slane %v2002_v19, 9  ;;  %v13695_v43 = vrot.slane %v2459_v53, 4 }
 0x11d   : > { %4868 = vmatmul.mubr.bf16.gmra.mrb[40].mxu1 %v10234_v17  ;;  %v1888_v52 = vor.u32 %v1887_v18, %v1883_v34  ;;  %v13697_v49 = vrot.slane %v2462_v47, 5  ;;  %v2137_v50 = vrot.slane %v13652_v4, 5  ;;  %v13700_v55 = vld [vmem:[#allocation2 + $0x94] sm:$0xf]  ;;  %v2140_v18 = vrot.slane %v13660_v15, 5 }
 0x11e   : > { %v1879_v0 = vrot.slane %v1878_v51, 4  ;;  %4875 = vmatprep.mubr.bf16.mxu1 %v10251_v38  ;;  %v1540_v5 = vsel %vm13110_vm5, %v13582_v29, %v1539_v54  ;;  %v1600_v32 = vld [vmem:[#allocation2 + $0x98] sm:$0x1]  ;;  %v1896_v8 = vshrl.u32 %v13693_v12, 16  ;;  %v1899_v15 = vshll.u32 %v13693_v12, 16 }
 0x11f   : > { %4707 = vmatmul.mubr.bf16.gmra.mrb[40].mxu0 %v10202_v26  ;;  %v1889_v57 = vrot.slane %v1888_v52, 4  ;;  %v2138_v51 = vsel %vm12879_vm13, %v10155_v27, %v2137_v50  ;;  %v2139_v47 = vrot.slane %v2137_v50, 4  ;;  %1541 = vst [vmem:[#allocation2 + $0xb0] sm:$0x1] %v1540_v5  ;;  %v1905_v28 = vshll.u32 %v13700_v55, 16 }
 0x120   : > { %v1884_v53 = vsel %vm12869_vm11, %v1879_v0, %v1883_v34  ;;  %v1909_v29 = vshrl.u32 %v13700_v55, 16  ;;  %v1542_v31 = vld [vmem:[#allocation2 + $0xb4] sm:$0xf]  ;;  %v1898_v34 = vrot.slane %v1896_v8, 4  ;;  %v1915_v54 = vshll.u32 %v1600_v32, 16 }
 0x121   : > { %v1894_v26 = vsel %vm12869_vm11, %v1889_v57, %v1893_v14  ;;  %v2141_v17 = vsel %vm12879_vm13, %v2139_v47, %v2140_v18  ;;  %v2003_v24 = vld [vmem:[#allocation2 + $0x90] sm:$0xe]  ;;  %v1901_v38 = vrot.slane %v1899_v15, 5  ;;  %v1907_v27 = vrot.slane %v1905_v28, 5  ;;  %v13718_v50 = vld [vmem:[#allocation2 + $0x9c] sm:$0xf] }
 0x122   : > { %v10219_v19 = vcombine.low %v1884_v53, %v1894_v26  ;;  %v10235_v52 = vcombine.low %v2138_v51, %v2141_v17  ;;  %v1911_v0 = vrot.slane %v1909_v29, 4  ;;  %v2483_v14 = vshrl.u32 %v13687_v16, 16  ;;  %v13727_v53 = vld [vmem:[#allocation2 + $0xa0] sm:$0xf]  ;;  %v1546_v15 = vld [vmem:[#allocation2 + $0xbc] sm:$0x1] }
 0x123   : > { %v2486_v57 = vshll.u32 %v13687_v16, 16  ;;  %v10203_v5 = vcombine.low %v13650_v20, %v13652_v4  ;;  %v1543_v18 = vsel %vm13103_vm1, %v13607_v56, %v1542_v31  ;;  %17394 = vst [vmem:[#allocation20_spill] sm:$0xff] %v13727_v53  ;;  %v1902_v51 = vor.u32 %v1901_v38, %v1898_v34  ;;  %v13731_v28 = vld [vmem:[#allocation2 + $0x9c] sm:$0xf]  ;;  %v13736_v29 = vld [vmem:[#allocation2 + $0xa0] sm:$0xf] }
 0x124   : > { %4714 = vmatprep.mubr.bf16.mxu0 %v10219_v19  ;;  %v1912_v47 = vor.u32 %v1911_v0, %v1907_v27  ;;  %v1917_v8 = vrot.slane %v1915_v54, 5  ;;  %1544 = vst [vmem:[#allocation2 + $0xb4] sm:$0xf] %v1543_v18  ;;  %v10252_v26 = vcombine.low %v13718_v50, %v13727_v53  ;;  %v2507_v20 = vshrl.u32 %v13718_v50, 16  ;;  %v13761_v59 = vld [vmem:[#allocation2 + $0xa8] sm:$0xf] }
 0x125   : > { %4876 = vmatmul.mubr.bf16.gmra.mrb[44].mxu1 %v10235_v52  ;;  %v10156_v4 = vrot.slane %v2003_v24, 9  ;;  %v2144_v56 = vrot.slane %v13700_v55, 5  ;;  %v1903_v31 = vrot.slane %v1902_v51, 4  ;;  %v2510_v17 = vshll.u32 %v13718_v50, 16  ;;  %v1601_v24 = vld [vmem:[#allocation2 + $0xa4] sm:$0x1] }
 0x126   : > { %v1913_v19 = vrot.slane %v1912_v47, 4  ;;  %4883 = vmatprep.mubr.bf16.mxu1 %v10252_v26  ;;  %v2147_v34 = vrot.slane %v1600_v32, 5  ;;  %v1547_v38 = vsel %vm13110_vm5, %v13629_v58, %v1546_v15  ;;  %v1920_v0 = vshrl.u32 %v13731_v28, 16  ;;  %v2004_v51 = vld [vmem:[#allocation2 + $0x9c] sm:$0xe] }
 0x127   : > { %4715 = vmatmul.mubr.bf16.gmra.mrb[44].mxu0 %v10203_v5  ;;  %v2145_v54 = vsel %vm12879_vm13, %v10156_v4, %v2144_v56  ;;  %v2146_v52 = vrot.slane %v2144_v56, 4  ;;  %v1908_v5 = vsel %vm12869_vm11, %v1903_v31, %v1907_v27  ;;  %1548 = vst [vmem:[#allocation2 + $0xbc] sm:$0x1] %v1547_v38  ;;  %v1923_v32 = vshll.u32 %v13731_v28, 16  ;;  %v13754_v4 = vld [vmem:[#allocation2 + $0xac] sm:$0xf] }
 0x128   : > { %v1918_v18 = vsel %vm12869_vm11, %v1913_v19, %v1917_v8  ;;  %v1929_v50 = vshll.u32 %v13736_v29, 16  ;;  %v1922_v58 = vrot.slane %v1920_v0, 4  ;;  %v1933_v15 = vshrl.u32 %v13736_v29, 16  ;;  %17395 = vst [vmem:[#allocation21_spill] sm:$0xff] %v13754_v4  ;;  %v1549_v56 = vld [vmem:[#allocation2 + $0xc0] sm:$0xf] }
 0x129   : > { %v10220_v47 = vcombine.low %v1908_v5, %v1918_v18  ;;  %v2148_v26 = vsel %vm12879_vm13, %v2146_v52, %v2147_v34  ;;  %v1925_v31 = vrot.slane %v1923_v32, 5  ;;  %v1939_v8 = vshll.u32 %v1601_v24, 16  ;;  %v1386_v34 = vpop.permute.xlu1 %1385 }
 0x12a   : > { %v10236_v27 = vcombine.low %v2145_v54, %v2148_v26  ;;  %v1931_v16 = vrot.slane %v1929_v50, 5  ;;  %v13756_v19 = vrot.slane %v2483_v14, 4  ;;  %v13758_v38 = vrot.slane %v2486_v57, 5  ;;  %v13767_v14 = vld [vmem:[#allocation2 + $0xa8] sm:$0xf] }
 0x12b   : > { %4722 = vmatprep.mubr.bf16.mxu0 %v10220_v47  ;;  %v1935_v18 = vrot.slane %v1933_v15, 4  ;;  %v10204_v52 = vcombine.low %v13693_v12, %v13700_v55  ;;  %v1926_v0 = vor.u32 %v1925_v31, %v1922_v58  ;;  %v10253_v54 = vcombine.low %v13761_v59, %v13754_v4  ;;  %v13772_v15 = vld [vmem:[#allocation2 + $0xac] sm:$0xf] }
 0x12c   : > { %17396 = vst [vmem:[#allocation22_spill] sm:$0xff] %v13758_v38  ;;  %v10157_v32 = vrot.slane %v2004_v51, 9  ;;  %v13769_v57 = vrot.slane %v2507_v20, 4  ;;  %v1941_v47 = vrot.slane %v1939_v8, 5  ;;  %v2151_v26 = vrot.slane %v13736_v29, 5 }
 0x12d   : > { %4884 = vmatmul.mubr.bf16.gmra.mrb[48].mxu1 %v10236_v27  ;;  %v1936_v50 = vor.u32 %v1935_v18, %v1931_v16  ;;  %v13774_v5 = vrot.slane %v2510_v17, 5  ;;  %v1927_v27 = vrot.slane %v1926_v0, 4  ;;  %v2154_v12 = vrot.slane %v1601_v24, 5  ;;  %v1602_v51 = vld [vmem:[#allocation2 + $0xb0] sm:$0x1] }
 0x12e   : > { %17397 = vst [vmem:[#allocation23_spill] sm:$0xff] %v13769_v57  ;;  %4891 = vmatprep.mubr.bf16.mxu1 %v10253_v54  ;;  %v1550_v55 = vsel %vm13103_vm1, %v1386_v34, %v1549_v56  ;;  %v2152_v20 = vsel %vm12879_vm13, %v10157_v32, %v2151_v26  ;;  %v2153_v31 = vrot.slane %v2151_v26, 4  ;;  %v1944_v8 = vshrl.u32 %v13767_v14, 16  ;;  %v13790_v54 = vld [vmem:[#allocation2 + $0xb4] sm:$0xf] }
 0x12f   : > { %17398 = vst [vmem:[#allocation24_spill] sm:$0xff] %v13774_v5  ;;  %4723 = vmatmul.mubr.bf16.gmra.mrb[48].mxu0 %v10204_v52  ;;  %v1937_v58 = vrot.slane %v1936_v50, 4  ;;  %1551 = vst [vmem:[#allocation2 + $0xc0] sm:$0xf] %v1550_v55  ;;  %v1932_v17 = vsel %vm12869_vm11, %v1927_v27, %v1931_v16  ;;  %v1947_v18 = vshll.u32 %v13767_v14, 16  ;;  %v1953_v52 = vshll.u32 %v13772_v15, 16 }
 0x130   : > { %v1957_v24 = vshrl.u32 %v13772_v15, 16  ;;  %v2155_v56 = vsel %vm12879_vm13, %v2153_v31, %v2154_v12  ;;  %v1946_v34 = vrot.slane %v1944_v8, 4  ;;  %v1963_v0 = vshll.u32 %v1602_v51, 16  ;;  %v13792_v32 = vld [vmem:[#allocation2 + $0xb8] sm:$0xf] }
 0x131   : > { %v1942_v45 = vsel %vm12869_vm11, %v1937_v58, %v1941_v47  ;;  %v2005_v50 = vld [vmem:[#allocation2 + $0xa8] sm:$0xe]  ;;  %v10237_v26 = vcombine.low %v2152_v20, %v2155_v56  ;;  %v1949_v27 = vrot.slane %v1947_v18, 5  ;;  %v1955_v55 = vrot.slane %v1953_v52, 5  ;;  %v13795_v5 = vld [vmem:[#allocation2 + $0xb4] sm:$0xf] }
 0x132   : > { %v10221_v16 = vcombine.low %v1932_v17, %v1942_v45  ;;  %v2531_v7 = vshrl.u32 %v13761_v59, 16  ;;  %v1959_v53 = vrot.slane %v1957_v24, 4  ;;  %v10205_v47 = vcombine.low %v13731_v28, %v13736_v29  ;;  %v13801_v8 = vld [vmem:[#allocation2 + $0xb8] sm:$0xf]  ;;  %v1603_v28 = vld [vmem:[#allocation2 + $0xbc] sm:$0x1] }
 0x133   : > { %v1950_v12 = vor.u32 %v1949_v27, %v1946_v34  ;;  %v10254_v58 = vcombine.low %v13790_v54, %v13792_v32  ;;  %v10158_v31 = vrot.slane %v2005_v50, 9  ;;  %v2534_v20 = vshll.u32 %v13761_v59, 16  ;;  %v13826_v38 = vld [vmem:[#allocation2 + $0x1c] sm:$0xf] }
 0x134   : > { %4730 = vmatprep.mubr.bf16.mxu0 %v10221_v16  ;;  %v1960_v17 = vor.u32 %v1959_v53, %v1955_v55  ;;  %v1965_v18 = vrot.slane %v1963_v0, 5  ;;  %v2158_v52 = vrot.slane %v13772_v15, 5  ;;  %v2161_v56 = vrot.slane %v1602_v51, 5 }
 0x135   : > { %4892 = vmatmul.mubr.bf16.gmra.mrb[52].mxu1 %v10237_v26  ;;  %v1951_v45 = vrot.slane %v1950_v12, 4  ;;  %v1968_v29 = vshrl.u32 %v13795_v5, 16  ;;  %v1971_v59 = vshll.u32 %v13795_v5, 16  ;;  %v1977_v26 = vshll.u32 %v13801_v8, 16 }
 0x136   : > { %4899 = vmatprep.mubr.bf16.mxu1 %v10254_v58  ;;  %v1961_v34 = vrot.slane %v1960_v17, 4  ;;  %v2159_v50 = vsel %vm12879_vm13, %v10158_v31, %v2158_v52  ;;  %v2160_v16 = vrot.slane %v2158_v52, 4  ;;  %v1981_v27 = vshrl.u32 %v13801_v8, 16  ;;  %v2200_v17 = vld [vmem:[#allocation2 + $0xc0] sm:$0xf] }
 0x137   : > { %4731 = vmatmul.mubr.bf16.gmra.mrb[52].mxu0 %v10205_v47  ;;  %v1956_v53 = vsel %vm12869_vm11, %v1951_v45, %v1955_v55  ;;  %v1970_v0 = vrot.slane %v1968_v29, 4  ;;  %v2201_v47 = vld [vmem:[#allocation2 + $0xc4] sm:$0xf]  ;;  %v1973_v58 = vrot.slane %v1971_v59, 5  ;;  %v1987_v31 = vshll.u32 %v1603_v28, 16 }
 0x138   : > { %v1966_v51 = vsel %vm12869_vm11, %v1961_v34, %v1965_v18  ;;  %v2162_v12 = vsel %vm12879_vm13, %v2160_v16, %v2161_v56  ;;  %v2006_v52 = vld [vmem:[#allocation2 + $0xb4] sm:$0xe]  ;;  %v1979_v57 = vrot.slane %v1977_v26, 5  ;;  %v1983_v55 = vrot.slane %v1981_v27, 4  ;;  %v13818_v45 = vld [vmem:[#allocation2 + $0x18] sm:$0xf] }
 0x139   : > { %v10222_v24 = vcombine.low %v1956_v53, %v1966_v51  ;;  %v10238_v4 = vcombine.low %v2159_v50, %v2162_v12  ;;  %v13820_v29 = vrot.slane %v2531_v7, 4  ;;  %v13822_v62 = vrot.slane %v2534_v20, 5  ;;  %v2811_v53 = vld [vmem:[#allocation2 + $0x20] sm:$0x1]  ;;  %v13844_v51 = vld [vmem:[#allocation2 + $0x24] sm:$0xf] }
 0x13a   : > { %v10206_v18 = vcombine.low %v13767_v14, %v13772_v15  ;;  %v1974_v34 = vor.u32 %v1973_v58, %v1970_v0  ;;  %v1984_v56 = vor.u32 %v1983_v55, %v1979_v57  ;;  %v1989_v16 = vrot.slane %v1987_v31, 5  ;;  %v2202_v31 = vld [vmem:[#allocation2 + $0x14] sm:$0x1] }
 0x13b   : > { %4738 = vmatprep.mubr.bf16.mxu0 %v10222_v24  ;;  %v10255_v59 = vcombine.low %v2200_v17, %v2201_v47  ;;  %v10159_v50 = vrot.slane %v2006_v52, 9  ;;  %v2555_v26 = vshrl.u32 %v13790_v54, 16  ;;  %v2165_v20 = vrot.slane %v13801_v8, 5  ;;  %v2602_v24 = vld [vmem:[#allocation2 + $0xc] sm:$0xe] }
 0x13c   : > { %v1975_v27 = vrot.slane %v1974_v34, 4  ;;  %v1985_v14 = vrot.slane %v1984_v56, 4  ;;  %v2168_v15 = vrot.slane %v1603_v28, 5  ;;  %v2831_v58 = vshll.u32 %v13818_v45, 16 }
 0x13d   : > { %4900 = vmatmul.mubr.bf16.gmra.mrb[56].mxu1 %v10238_v4  ;;  %v2828_v4 = vshrl.u32 %v13818_v45, 16  ;;  %v2166_v47 = vsel %vm12879_vm13, %v10159_v50, %v2165_v20  ;;  %v2167_v12 = vrot.slane %v2165_v20, 4  ;;  %v2837_v55 = vshll.u32 %v13826_v38, 16 }
 0x13e   : > { %4907 = vmatprep.mubr.bf16.mxu1 %v10255_v59  ;;  %v1980_v0 = vsel %vm12869_vm11, %v1975_v27, %v1979_v57  ;;  %v1990_v17 = vsel %vm12869_vm11, %v1985_v14, %v1989_v16  ;;  %v2841_v28 = vshrl.u32 %v13826_v38, 16  ;;  %v2833_v57 = vrot.slane %v2831_v58, 5  ;;  %v2812_v58 = vld [vmem:[#allocation2 + $0x2c] sm:$0x1] }
 0x13f   : > { %4739 = vmatmul.mubr.bf16.gmra.mrb[56].mxu0 %v10206_v18  ;;  %v2830_v52 = vrot.slane %v2828_v4, 4  ;;  %v10223_v18 = vcombine.low %v1980_v0, %v1990_v17  ;;  %v2169_v34 = vsel %vm12879_vm13, %v2167_v12, %v2168_v15  ;;  %v2847_v56 = vshll.u32 %v2811_v53, 16  ;;  %v13850_v17 = vld [vmem:[#allocation2 + $0x28] sm:$0xf] }
 0x140   : > { %v10239_v59 = vcombine.low %v2166_v47, %v2169_v34  ;;  %v2839_v50 = vrot.slane %v2837_v55, 5  ;;  %v2843_v27 = vrot.slane %v2841_v28, 4  ;;  %v2238_v20 = vshll.u32 %v2202_v31, 16 }
 0x141   : > { %4746 = vmatprep.mubr.bf16.mxu0 %v10223_v18  ;;  %v10207_v16 = vcombine.low %v13795_v5, %v13801_v8  ;;  %v2834_v14 = vor.u32 %v2833_v57, %v2830_v52  ;;  %v10160_v4 = vrot.slane %v2602_v24, 9  ;;  %v17399_v7 = vrot.slane %v13153_v13, 5  ;;  %v2203_v24 = vld [vmem:[#allocation2 + $0x20] sm:$0x1] }
 0x142   : > { %v2844_v15 = vor.u32 %v2843_v27, %v2839_v50  ;;  %v2849_v53 = vrot.slane %v2847_v56, 5  ;;  %v2240_v47 = vrot.slane %v2238_v20, 5  ;;  %v2671_v12 = vrot.slane %v2202_v31, 5 }
 0x143   : > { %v2670_v0 = vrot.slane %v17399_v7, 4  ;;  %v2835_v55 = vrot.slane %v2834_v14, 4  ;;  %v17400_v28 = vmov %v17399_v7  ;;  %v2852_v5 = vshrl.u32 %v13844_v51, 16  ;;  %v2603_v7 = vld [vmem:[#allocation2 + $0x18] sm:$0xe] }
 0x144   : > { %v2669_v18 = vsel %vm12879_vm13, %v10160_v4, %v17400_v28  ;;  %v2855_v8 = vshll.u32 %v13844_v51, 16  ;;  %v2845_v52 = vrot.slane %v2844_v15, 4  ;;  %v2241_v31 = vsel %vm12869_vm11, %v13238_v6, %v2240_v47 }
 0x145   : > { %4908 = vmatmul.mubr.bf16.gmra.mrb[60].mxu1 %v10239_v59  ;;  %v2672_v34 = vsel %vm12879_vm13, %v2670_v0, %v2671_v12  ;;  %v2861_v13 = vshll.u32 %v13850_v17, 16  ;;  %v2840_v57 = vsel %vm12869_vm11, %v2835_v55, %v2839_v50  ;;  %v17401_v59 = vsel %vm12869_vm11, %v13174_v40, %v13169_v25  ;;  %v13876_v12 = vld [vmem:[#allocation2 + $0x30] sm:$0xf]  ;;  %v12121_v40 = vld [vmem:[#allocation2 + $0x1c] sm:$0xf] }
 0x146   : > { %v10272_v56 = vcombine.low %v2669_v18, %v2672_v34  ;;  %v10256_v27 = vcombine.low %v17401_v59, %v2241_v31  ;;  %v2854_v20 = vrot.slane %v2852_v5, 4  ;;  %v2857_v14 = vrot.slane %v2855_v8, 5 }
 0x147   : > { %4747 = vmatmul.mubr.bf16.gmra.mrb[60].mxu0 %v10207_v16  ;;  %v2850_v16 = vsel %vm12869_vm11, %v2845_v52, %v2849_v53  ;;  %v2863_v4 = vrot.slane %v2861_v13, 5  ;;  %v2865_v6 = vshrl.u32 %v13850_v17, 16  ;;  %v10288_v50 = vcombine.low %v13818_v45, %v13826_v38  ;;  %v11981_v53 = vld [vmem:[%s17320_s2 + $0x208] sm:$0xff]  }
 0x148   : > { %v10304_v0 = vcombine.low %v2840_v57, %v2850_v16  ;;  %4948 = vmatprep.mubr.bf16.mxu0 %v10272_v56  ;;  %v2871_v15 = vshll.u32 %v2812_v58, 16  ;;  %v10161_v47 = vrot.slane %v2603_v7, 9  ;;  %v2858_v55 = vor.u32 %v2857_v14, %v2854_v20  ;;  %v13889_v20 = vld [vmem:[#allocation2 + $0x34] sm:$0xf]  ;;  %v2204_v14 = vld [vmem:[#allocation2 + $0x2c] sm:$0x1] }
 0x149   : > { %v2867_v25 = vrot.slane %v2865_v6, 4  ;;  %v2675_v28 = vrot.slane %v12121_v40, 5  ;;  %v2678_v18 = vrot.slane %v2203_v24, 5  ;;  %v10289_v8 = vcombine.low %v13844_v51, %v13850_v17  ;;  %v2813_v17 = vld [vmem:[#allocation2 + $0x38] sm:$0x1] }
 0x14a   : > { %5109 = vmatprep.mubr.bf16.mxu1 %v10304_v0  ;;  %v2873_v5 = vrot.slane %v2871_v15, 5  ;;  %v2249_v38 = vor.u32 %v13206_v2, %v13197_v22  ;;  %v2252_v45 = vshll.u32 %v12121_v40, 16  ;;  %v2859_v58 = vrot.slane %v2858_v55, 4 }
 0x14b   : > { %v2868_v7 = vor.u32 %v2867_v25, %v2863_v4  ;;  %v2676_v52 = vsel %vm12879_vm13, %v10161_v47, %v2675_v28  ;;  %v2677_v34 = vrot.slane %v2675_v28, 4  ;;  %v17402_v57 = vshrl.u32 %v13188_v63, 16  ;;  %v12122_v63 = vld [vmem:[%s17320_s2 + $0x200] sm:$0xff]   ;;  %v11984_v25 = vld [vmem:[%s17320_s2 + $0x210] sm:$0xff]  }
 0x14c   : > { %v2250_v31 = vrot.slane %v2249_v38, 4  ;;  %v2254_v13 = vrot.slane %v2252_v45, 5  ;;  %v2262_v59 = vshll.u32 %v2203_v24, 16  ;;  %v2864_v22 = vsel %vm12869_vm11, %v2859_v58, %v2863_v4  ;;  %v2604_v4 = vld [vmem:[#allocation2 + $0x24] sm:$0xe] }
 0x14d   : > { %5110 = vmatmul.mubr.bf16.vlgmr.msra.gmra.mrb[64].mxu1 %v10288_v50  ;;  %v2258_v56 = vrot.slane %v17402_v57, 4  ;;  %v2869_v2 = vrot.slane %v2868_v7, 4  ;;  %v2679_v51 = vsel %vm12879_vm13, %v2677_v34, %v2678_v18  ;;  %v2876_v16 = vshrl.u32 %v13876_v12, 16 }
 0x14e   : > { %v10273_v24 = vcombine.low %v2676_v52, %v2679_v51  ;;  %v2264_v0 = vrot.slane %v2262_v59, 5  ;;  %v2879_v47 = vshll.u32 %v13876_v12, 16  ;;  %v2885_v55 = vshll.u32 %v13889_v20, 16 }
 0x14f   : > { %4949 = vmatmul.mubr.bf16.vlgmr.msra.gmra.mrb[64].mxu0 %v10256_v27  ;;  %v2255_v27 = vsel %vm12869_vm11, %v2250_v31, %v2254_v13  ;;  %v2259_v6 = vor.u32 %v2258_v56, %v2254_v13  ;;  %v2874_v50 = vsel %vm12869_vm11, %v2869_v2, %v2873_v5  ;;  %v2878_v15 = vrot.slane %v2876_v16, 4  ;;  %v12123_v5 = vld [vmem:[#allocation2 + $0x28] sm:$0xf]  ;;  %v13911_v56 = vld [vmem:[#allocation2 + $0x3c] sm:$0xf] }
 0x150   : > { %11755 = vmatpush3.bf16.msra.mxu0 %v12122_v63  ;;  %v10305_v40 = vcombine.low %v2864_v22, %v2874_v50  ;;  %4956 = vmatprep.mubr.bf16.mxu0 %v10273_v24  ;;  %v2889_v18 = vshrl.u32 %v13889_v20, 16  ;;  %v2895_v38 = vshll.u32 %v2813_v17, 16  ;;  %v2881_v45 = vrot.slane %v2879_v47, 5  ;;  %v11987_v17 = vld [vmem:[%s17320_s2 + $0x218] sm:$0xff]   ;;  %v2605_v47 = vld [vmem:[#allocation2 + $0x30] sm:$0xe] }
 0x151   : > { %11756 = vmatprep.subr.bf16.mxu0 %v11981_v53  ;;  %v2260_v28 = vrot.slane %v2259_v6, 4  ;;  %v2887_v58 = vrot.slane %v2885_v55, 5  ;;  %v10162_v7 = vrot.slane %v2604_v4, 9  ;;  %v2682_v52 = vrot.slane %v12123_v5, 5 }
 0x152   : > { %5117 = vmatprep.mubr.bf16.mxu1 %v10305_v40  ;;  %v2891_v31 = vrot.slane %v2889_v18, 4  ;;  %v2897_v13 = vrot.slane %v2895_v38, 5  ;;  %v2685_v57 = vrot.slane %v2204_v14, 5  ;;  %v2882_v22 = vor.u32 %v2881_v45, %v2878_v15  ;;  %v2814_v15 = vld [vmem:[#allocation2 + $0x44] sm:$0x1] }
 0x153   : > { %v2265_v34 = vsel %vm12869_vm11, %v2260_v28, %v2264_v0  ;;  %v2683_v2 = vsel %vm12879_vm13, %v10162_v7, %v2682_v52  ;;  %v2684_v51 = vrot.slane %v2682_v52, 4  ;;  %v10290_v63 = vcombine.low %v13876_v12, %v13889_v20  ;;  %v13928_v28 = vld [vmem:[#allocation2 + $0x38] sm:$0x1] }
 0x154   : > { %11757 = vmatpush3.bf16.msra.mxu0 %v11981_v53  ;;  %v10257_v59 = vcombine.low %v2255_v27, %v2265_v34  ;;  %v2892_v16 = vor.u32 %v2891_v31, %v2887_v58  ;;  %v2273_v24 = vor.u32 %v13301_v3, %v13293_v1  ;;  %v2276_v53 = vshll.u32 %v12123_v5, 16 }
 0x155   : > { %5118 = vmatmul.mubr.bf16.gmra.mrb[68].mxu1 %v10289_v8  ;;  %11758 = vmatprep.subr.bf16.mxu0 %v11984_v25  ;;  %v13922_v8 = vld [vmem:[#allocation2 + $0x40] sm:$0xf]  ;;  %v2883_v27 = vrot.slane %v2882_v22, 4  ;;  %v2686_v6 = vsel %vm12879_vm13, %v2684_v51, %v2685_v57  ;;  %v17403_v0 = vshrl.u32 %v13253_v48, 16  ;;  %v2286_v50 = vshll.u32 %v2204_v14, 16  ;;  %v11993_v51 = vld [vmem:[%s17320_s2 + $0x228] sm:$0xff]  }
 0x156   : > { %v2893_v55 = vrot.slane %v2892_v16, 4  ;;  %v10274_v40 = vcombine.low %v2683_v2, %v2686_v6  ;;  %v2274_v12 = vrot.slane %v2273_v24, 4  ;;  %v2278_v20 = vrot.slane %v2276_v53, 5  ;;  %v11990_v48 = vld [vmem:[%s17320_s2 + $0x220] sm:$0xff]  }
 0x157   : > { %4957 = vmatmul.mubr.bf16.gmra.mrb[68].mxu0 %v10257_v59  ;;  %v2282_v4 = vrot.slane %v17403_v0, 4  ;;  %v2888_v1 = vsel %vm12869_vm11, %v2883_v27, %v2887_v58  ;;  %v2288_v3 = vrot.slane %v2286_v50, 5  ;;  %v2900_v18 = vshrl.u32 %v13911_v56, 16  ;;  %v12124_v27 = vld [vmem:[#allocation2 + $0x34] sm:$0xf] }
 0x158   : > { %11759 = vmatpush3.bf16.msra.mxu0 %v11984_v25  ;;  %v2903_v38 = vshll.u32 %v13911_v56, 16  ;;  %v2898_v14 = vsel %vm12869_vm11, %v2893_v55, %v2897_v13  ;;  %4964 = vmatprep.mubr.bf16.mxu0 %v10274_v40  ;;  %v2279_v25 = vsel %vm12869_vm11, %v2274_v12, %v2278_v20  ;;  %v2909_v58 = vshll.u32 %v13922_v8, 16  ;;  %v13961_v55 = vld [vmem:[#allocation2 + $0x48] sm:$0xf] }
 0x159   : > { %11760 = vmatprep.subr.bf16.mxu0 %v11987_v17  ;;  %v2283_v45 = vor.u32 %v2282_v4, %v2278_v20  ;;  %v10306_v5 = vcombine.low %v2888_v1, %v2898_v14  ;;  %v2902_v52 = vrot.slane %v2900_v18, 4  ;;  %v2913_v31 = vshrl.u32 %v13922_v8, 16  ;;  %v13965_v18 = vld [vmem:[#allocation2 + $0x4c] sm:$0xf] }
 0x15a   : > { %v2905_v34 = vrot.slane %v2903_v38, 5  ;;  %v2911_v22 = vrot.slane %v2909_v58, 5  ;;  %v2919_v2 = vshll.u32 %v2814_v15, 16  ;;  %v10163_v13 = vrot.slane %v2605_v47, 9  ;;  %v2206_v58 = vld [vmem:[#allocation2 + $0x44] sm:$0x1] }
 0x15b   : > { %v13942_v7 = vpop.f32.mrb[0].mxu0  ;;  %v2284_v59 = vrot.slane %v2283_v45, 4  ;;  %5125 = vmatprep.mubr.bf16.mxu1 %v10306_v5  ;;  %v2915_v53 = vrot.slane %v2913_v31, 4  ;;  %v2689_v6 = vrot.slane %v12124_v27, 5  ;;  %v2692_v0 = vrot.slane %v13928_v28, 5  ;;  %v11996_v5 = vld [vmem:[%s17320_s2 + $0x230] sm:$0xff]  }
 0x15c   : > { %v13945_v57 = vpop.f32.mrb[1].mxu0  ;;  %11761 = vmatpush3.bf16.msra.mxu0 %v11987_v17  ;;  %v2906_v24 = vor.u32 %v2905_v34, %v2902_v52  ;;  %v2921_v50 = vrot.slane %v2919_v2, 5  ;;  %v10291_v15 = vcombine.low %v13911_v56, %v13922_v8  ;;  %v2297_v47 = vor.u32 %v13356_v11, %v13354_v37  ;;  %v2815_v56 = vld [vmem:[#allocation2 + $0x50] sm:$0x1]  ;;  %v2606_v31 = vld [vmem:[#allocation2 + $0x3c] sm:$0xe] }
 0x15d   : > { %v13950_v16 = vpop.f32.mrb[2].mxu0  ;;  %11762 = vmatprep.subr.bf16.mxu0 %v11990_v48  ;;  %5126 = vmatmul.mubr.bf16.gmra.mrb[72].mxu1 %v10290_v63  ;;  %v2289_v17 = vsel %vm12869_vm11, %v2284_v59, %v2288_v3  ;;  %v2916_v20 = vor.u32 %v2915_v53, %v2911_v22  ;;  %v2690_v1 = vsel %vm12879_vm13, %v10163_v13, %v2689_v6  ;;  %v2691_v63 = vrot.slane %v2689_v6, 4  ;;  %v11999_v6 = vld [vmem:[%s17320_s2 + $0x238] sm:$0xff]  }
 0x15e   : > { %v13953_v4 = vpop.f32.mrb[3].mxu0  ;;  %v10258_v40 = vcombine.low %v2279_v25, %v2289_v17  ;;  %v2907_v12 = vrot.slane %v2906_v24, 4  ;;  %v2298_v38 = vrot.slane %v2297_v47, 4  ;;  %v2300_v3 = vshll.u32 %v12124_v27, 16 }
 0x15f   : > { %v17404_v14 = vshrl.u32 %v13306_v42, 16  ;;  %v2917_v11 = vrot.slane %v2916_v20, 4  ;;  %v2310_v8 = vshll.u32 %v13928_v28, 16  ;;  %v2924_v25 = vshrl.u32 %v13961_v55, 16  ;;  %v12125_v20 = vld [vmem:[#allocation2 + $0x40] sm:$0xf] }
 0x160   : > { %11763 = vmatpush3.bf16.msra.mxu0 %v11990_v48  ;;  %v2912_v37 = vsel %vm12869_vm11, %v2907_v12, %v2911_v22  ;;  %v2693_v42 = vsel %vm12879_vm13, %v2691_v63, %v2692_v0  ;;  %v2302_v52 = vrot.slane %v2300_v3, 5  ;;  %v2927_v48 = vshll.u32 %v13961_v55, 16 }
 0x161   : > { %v2306_v45 = vrot.slane %v17404_v14, 4  ;;  %4965 = vmatmul.mubr.bf16.gmra.mrb[72].mxu0 %v10258_v40  ;;  %11764 = vmatprep.subr.bf16.mxu0 %v11993_v51  ;;  %v2933_v34 = vshll.u32 %v13965_v18, 16  ;;  %v2922_v28 = vsel %vm12869_vm11, %v2917_v11, %v2921_v50  ;;  %v10275_v59 = vcombine.low %v2690_v1, %v2693_v42 }
 0x162   : > { %v2312_v22 = vrot.slane %v2310_v8, 5  ;;  %v2926_v2 = vrot.slane %v2924_v25, 4  ;;  %v10307_v13 = vcombine.low %v2912_v37, %v2922_v28  ;;  %v2303_v24 = vsel %vm12869_vm11, %v2298_v38, %v2302_v52  ;;  %v13988_v38 = vld [vmem:[#allocation2 + $0x54] sm:$0xf]  ;;  %v2607_v28 = vld [vmem:[#allocation2 + $0x48] sm:$0xe] }
 0x163   : > { %v2307_v53 = vor.u32 %v2306_v45, %v2302_v52  ;;  %v2929_v27 = vrot.slane %v2927_v48, 5  ;;  %4972 = vmatprep.mubr.bf16.mxu0 %v10275_v59  ;;  %v2935_v0 = vrot.slane %v2933_v34, 5  ;;  %v2937_v17 = vshrl.u32 %v13965_v18, 16 }
 0x164   : > { %11765 = vmatpush3.bf16.msra.mxu0 %v11993_v51  ;;  %v2943_v47 = vshll.u32 %v2815_v56, 16  ;;  %v10164_v50 = vrot.slane %v2606_v31, 9  ;;  %5133 = vmatprep.mubr.bf16.mxu1 %v10307_v13  ;;  %v2696_v1 = vrot.slane %v12125_v20, 5  ;;  %v2699_v63 = vrot.slane %v2206_v58, 5  ;;  %v13994_v56 = vld [vmem:[#allocation2 + $0x58] sm:$0xf] }
 0x165   : > { %11766 = vmatprep.subr.bf16.mxu0 %v11996_v5  ;;  %v2308_v40 = vrot.slane %v2307_v53, 4  ;;  %v2930_v12 = vor.u32 %v2929_v27, %v2926_v2  ;;  %5134 = vmatmul.mubr.bf16.gmra.mrb[76].mxu1 %v10291_v15  ;;  %v2939_v51 = vrot.slane %v2937_v17, 4  ;;  %v10292_v14 = vcombine.low %v13961_v55, %v13965_v18  ;;  %v2816_v31 = vld [vmem:[#allocation2 + $0x5c] sm:$0x1]  ;;  %v2207_v13 = vld [vmem:[#allocation2 + $0x50] sm:$0x1] }
 0x166   : > { %v2945_v3 = vrot.slane %v2943_v47, 5  ;;  %v2321_v45 = vor.u32 %v13411_v39, %v13409_v30  ;;  %v2697_v8 = vsel %vm12879_vm13, %v10164_v50, %v2696_v1  ;;  %v2698_v25 = vrot.slane %v2696_v1, 4 }
 0x167   : > { %v2313_v37 = vsel %vm12869_vm11, %v2308_v40, %v2312_v22  ;;  %v2931_v11 = vrot.slane %v2930_v12, 4  ;;  %v2940_v42 = vor.u32 %v2939_v51, %v2935_v0  ;;  %v2324_v48 = vshll.u32 %v12125_v20, 16 }
 0x168   : > { %11767 = vmatpush3.bf16.msra.mxu0 %v11996_v5  ;;  %v10259_v15 = vcombine.low %v2303_v24, %v2313_v37  ;;  %v2322_v52 = vrot.slane %v2321_v45, 4  ;;  %v2700_v30 = vsel %vm12879_vm13, %v2698_v25, %v2699_v63  ;;  %v17405_v39 = vshrl.u32 %v13361_v35, 16  ;;  %v12126_v45 = vld [vmem:[#allocation2 + $0x4c] sm:$0xf]  ;;  %v14016_v25 = vld [vmem:[#allocation2 + $0x60] sm:$0xf] }
 0x169   : > { %11768 = vmatprep.subr.bf16.mxu0 %v11999_v6  ;;  %v2936_v55 = vsel %vm12869_vm11, %v2931_v11, %v2935_v0  ;;  %v2334_v34 = vshll.u32 %v2206_v58, 16  ;;  %v2941_v59 = vrot.slane %v2940_v42, 4  ;;  %v10276_v5 = vcombine.low %v2697_v8, %v2700_v30  ;;  %v2817_v30 = vld [vmem:[#allocation2 + $0x68] sm:$0x1] }
 0x16a   : > { %v2330_v18 = vrot.slane %v17405_v39, 4  ;;  %4973 = vmatmul.mubr.bf16.gmra.mrb[76].mxu0 %v10259_v15  ;;  %v2326_v22 = vrot.slane %v2324_v48, 5  ;;  %v2948_v2 = vshrl.u32 %v13988_v38, 16  ;;  %v2951_v53 = vshll.u32 %v13988_v38, 16 }
 0x16b   : > { %v2336_v24 = vrot.slane %v2334_v34, 5  ;;  %v2957_v27 = vshll.u32 %v13994_v56, 16  ;;  %v2961_v0 = vshrl.u32 %v13994_v56, 16  ;;  %v2946_v35 = vsel %vm12869_vm11, %v2941_v59, %v2945_v3  ;;  %4980 = vmatprep.mubr.bf16.mxu0 %v10276_v5 }
 0x16c   : > { %11769 = vmatpush3.bf16.msra.mxu0 %v11999_v6  ;;  %v2327_v58 = vsel %vm12869_vm11, %v2322_v52, %v2326_v22  ;;  %v2331_v17 = vor.u32 %v2330_v18, %v2326_v22  ;;  %v2950_v47 = vrot.slane %v2948_v2, 4  ;;  %v10308_v50 = vcombine.low %v2936_v55, %v2946_v35  ;;  %v14022_v55 = vld [vmem:[#allocation2 + $0x64] sm:$0xf] }
 0x16d   : > { %v2953_v40 = vrot.slane %v2951_v53, 5  ;;  %v2959_v12 = vrot.slane %v2957_v27, 5  ;;  %v2963_v20 = vrot.slane %v2961_v0, 4  ;;  %v2967_v63 = vshll.u32 %v2816_v31, 16 }
 0x16e   : > { %v2332_v1 = vrot.slane %v2331_v17, 4  ;;  %v10165_v51 = vrot.slane %v2607_v28, 9  ;;  %v2703_v37 = vrot.slane %v12126_v45, 5  ;;  %5141 = vmatprep.mubr.bf16.mxu1 %v10308_v50  ;;  %v2706_v8 = vrot.slane %v2207_v13, 5  ;;  %v2208_v17 = vld [vmem:[#allocation2 + $0x5c] sm:$0x1] }
 0x16f   : > { %v2954_v6 = vor.u32 %v2953_v40, %v2950_v47  ;;  %v2964_v11 = vor.u32 %v2963_v20, %v2959_v12  ;;  %v10293_v3 = vcombine.low %v13988_v38, %v13994_v56  ;;  %5142 = vmatmul.mubr.bf16.gmra.mrb[80].mxu1 %v10292_v14  ;;  %v2969_v42 = vrot.slane %v2967_v63, 5  ;;  %v2608_v56 = vld [vmem:[#allocation2 + $0x54] sm:$0xe] }
 0x170   : > { %v2337_v15 = vsel %vm12869_vm11, %v2332_v1, %v2336_v24  ;;  %v2704_v52 = vsel %vm12879_vm13, %v10165_v51, %v2703_v37  ;;  %v2705_v48 = vrot.slane %v2703_v37, 4  ;;  %v2345_v38 = vor.u32 %v13497_v60, %v13454_v21 }
 0x171   : > { %v10260_v39 = vcombine.low %v2327_v58, %v2337_v15  ;;  %v2955_v18 = vrot.slane %v2954_v6, 4  ;;  %v2965_v34 = vrot.slane %v2964_v11, 4  ;;  %v2348_v31 = vshll.u32 %v12126_v45, 16  ;;  %v14040_v45 = vld [vmem:[#allocation2 + $0x6c] sm:$0xf] }
 0x172   : > { %v2707_v14 = vsel %vm12879_vm13, %v2705_v48, %v2706_v8  ;;  %v17406_v28 = vshrl.u32 %v13407_v33, 16  ;;  %v2358_v5 = vshll.u32 %v2207_v13, 16  ;;  %v2346_v53 = vrot.slane %v2345_v38, 4  ;;  %v12127_v6 = vld [vmem:[#allocation2 + $0x58] sm:$0xf] }
 0x173   : > { %4981 = vmatmul.mubr.bf16.gmra.mrb[80].mxu0 %v10260_v39  ;;  %v2960_v22 = vsel %vm12869_vm11, %v2955_v18, %v2959_v12  ;;  %v2970_v2 = vsel %vm12869_vm11, %v2965_v34, %v2969_v42  ;;  %v10277_v24 = vcombine.low %v2704_v52, %v2707_v14  ;;  %v2350_v21 = vrot.slane %v2348_v31, 5 }
 0x174   : > { %v2354_v59 = vrot.slane %v17406_v28, 4  ;;  %v10309_v27 = vcombine.low %v2960_v22, %v2970_v2  ;;  %v2360_v60 = vrot.slane %v2358_v5, 5  ;;  %v2972_v0 = vshrl.u32 %v14016_v25, 16  ;;  %v2818_v28 = vld [vmem:[#allocation2 + $0x74] sm:$0x1] }
 0x175   : > { %4988 = vmatprep.mubr.bf16.mxu0 %v10277_v24  ;;  %v2975_v35 = vshll.u32 %v14016_v25, 16  ;;  %v2981_v33 = vshll.u32 %v14022_v55, 16  ;;  %v2985_v13 = vshrl.u32 %v14022_v55, 16  ;;  %v2991_v58 = vshll.u32 %v2817_v30, 16 }
 0x176   : > { %5149 = vmatprep.mubr.bf16.mxu1 %v10309_v27  ;;  %v2351_v47 = vsel %vm12869_vm11, %v2346_v53, %v2350_v21  ;;  %v2355_v50 = vor.u32 %v2354_v59, %v2350_v21  ;;  %v2974_v40 = vrot.slane %v2972_v0, 4  ;;  %v10166_v12 = vrot.slane %v2608_v56, 9  ;;  %v14052_v56 = vld [vmem:[#allocation2 + $0x70] sm:$0xf]  ;;  %v2609_v53 = vld [vmem:[#allocation2 + $0x60] sm:$0xe] }
 0x177   : > { %v2977_v20 = vrot.slane %v2975_v35, 5  ;;  %v2983_v1 = vrot.slane %v2981_v33, 5  ;;  %v2987_v63 = vrot.slane %v2985_v13, 4  ;;  %v2993_v51 = vrot.slane %v2991_v58, 5  ;;  %5150 = vmatmul.mubr.bf16.gmra.mrb[84].mxu1 %v10293_v3  ;;  %v2209_v35 = vld [vmem:[#allocation2 + $0x68] sm:$0x1] }
 0x178   : > { %v2356_v37 = vrot.slane %v2355_v50, 4  ;;  %v2710_v11 = vrot.slane %v12127_v6, 5  ;;  %v2713_v8 = vrot.slane %v2208_v17, 5  ;;  %v10294_v15 = vcombine.low %v14016_v25, %v14022_v55 }
 0x179   : > { %v2978_v42 = vor.u32 %v2977_v20, %v2974_v40  ;;  %v2988_v52 = vor.u32 %v2987_v63, %v2983_v1  ;;  %v2369_v48 = vor.u32 %v13517_v46, %v13499_v41  ;;  %v2372_v30 = vshll.u32 %v12127_v6, 16  ;;  %v14066_v6 = vld [vmem:[#allocation2 + $0x78] sm:$0xf] }
 0x17a   : > { %v2361_v39 = vsel %vm12869_vm11, %v2356_v37, %v2360_v60  ;;  %v2711_v18 = vsel %vm12879_vm13, %v10166_v12, %v2710_v11  ;;  %v2712_v3 = vrot.slane %v2710_v11, 4  ;;  %v17407_v34 = vshrl.u32 %v13458_v23, 16  ;;  %v12128_v12 = vld [vmem:[#allocation2 + $0x64] sm:$0xf] }
 0x17b   : > { %v10261_v14 = vcombine.low %v2351_v47, %v2361_v39  ;;  %v2979_v25 = vrot.slane %v2978_v42, 4  ;;  %v2989_v55 = vrot.slane %v2988_v52, 4  ;;  %v2370_v31 = vrot.slane %v2369_v48, 4  ;;  %v14072_v48 = vld [vmem:[#allocation2 + $0x7c] sm:$0xf] }
 0x17c   : > { %v2378_v38 = vrot.slane %v17407_v34, 4  ;;  %v2714_v41 = vsel %vm12879_vm13, %v2712_v3, %v2713_v8  ;;  %v2374_v46 = vrot.slane %v2372_v30, 5  ;;  %v2382_v59 = vshll.u32 %v2208_v17, 16  ;;  %v17408_v34 = vld [vmem:[#allocation15_spill] sm:$0xff] }
 0x17d   : > { %v2996_v5 = vshrl.u32 %v14040_v45, 16  ;;  %4989 = vmatmul.mubr.bf16.gmra.mrb[84].mxu0 %v10261_v14  ;;  %v2984_v22 = vsel %vm12869_vm11, %v2979_v25, %v2983_v1  ;;  %v2994_v23 = vsel %vm12869_vm11, %v2989_v55, %v2993_v51  ;;  %v10278_v2 = vcombine.low %v2711_v18, %v2714_v41  ;;  %v17409_v25 = vld [vmem:[#allocation12_spill] sm:$0xff] }
 0x17e   : > { %v2999_v24 = vshll.u32 %v14040_v45, 16  ;;  %v10310_v27 = vcombine.low %v2984_v22, %v2994_v23  ;;  %v2375_v21 = vsel %vm12869_vm11, %v2370_v31, %v2374_v46  ;;  %v2379_v60 = vor.u32 %v2378_v38, %v2374_v46  ;;  %v2210_v22 = vld [vmem:[#allocation2 + $0x74] sm:$0x1] }
 0x17f   : > { %v2384_v0 = vrot.slane %v2382_v59, 5  ;;  %4996 = vmatprep.mubr.bf16.mxu0 %v10278_v2  ;;  %v2998_v33 = vrot.slane %v2996_v5, 4  ;;  %v3005_v58 = vshll.u32 %v14052_v56, 16  ;;  %v3009_v17 = vshrl.u32 %v14052_v56, 16 }
 0x180   : > { %v3001_v13 = vrot.slane %v2999_v24, 5  ;;  %5157 = vmatprep.mubr.bf16.mxu1 %v10310_v27  ;;  %v2380_v47 = vrot.slane %v2379_v60, 4  ;;  %v3015_v50 = vshll.u32 %v2818_v28, 16  ;;  %v10167_v40 = vrot.slane %v2609_v53, 9  ;;  %v2819_v28 = vld [vmem:[#allocation2 + $0x80] sm:$0x1] }
 0x181   : > { %v2717_v20 = vrot.slane %v12128_v12, 5  ;;  %5158 = vmatmul.mubr.bf16.gmra.mrb[88].mxu1 %v10294_v15  ;;  %v3007_v63 = vrot.slane %v3005_v58, 5  ;;  %v3011_v51 = vrot.slane %v3009_v17, 4  ;;  %v2720_v37 = vrot.slane %v2209_v35, 5 }
 0x182   : > { %v3002_v1 = vor.u32 %v3001_v13, %v2998_v33  ;;  %v2385_v11 = vsel %vm12869_vm11, %v2380_v47, %v2384_v0  ;;  %v3017_v8 = vrot.slane %v3015_v50, 5  ;;  %v10295_v15 = vcombine.low %v14040_v45, %v14052_v56 }
 0x183   : > { %v2718_v42 = vsel %vm12879_vm13, %v10167_v40, %v2717_v20  ;;  %v2719_v52 = vrot.slane %v2717_v20, 4  ;;  %v10262_v30 = vcombine.low %v2375_v21, %v2385_v11  ;;  %v3012_v18 = vor.u32 %v3011_v51, %v3007_v63 }
 0x184   : > { %v3003_v39 = vrot.slane %v3002_v1, 4  ;;  %v2393_v38 = vor.u32 %v17408_v34, %v13546_v61  ;;  %v2396_v14 = vshll.u32 %v12128_v12, 16  ;;  %v17410_v55 = vshrl.u32 %v17409_v25, 16  ;;  %v2610_v61 = vld [vmem:[#allocation2 + $0x6c] sm:$0xe] }
 0x185   : > { %v2721_v3 = vsel %vm12879_vm13, %v2719_v52, %v2720_v37  ;;  %4997 = vmatmul.mubr.bf16.gmra.mrb[88].mxu0 %v10262_v30  ;;  %v3013_v46 = vrot.slane %v3012_v18, 4  ;;  %v2406_v5 = vshll.u32 %v2209_v35, 16  ;;  %v3020_v23 = vshrl.u32 %v14066_v6, 16  ;;  %v12129_v12 = vld [vmem:[#allocation2 + $0x70] sm:$0xf]  ;;  %v17412_v18 = vld [vmem:[#allocation17_spill] sm:$0xff] }
 0x186   : > { %v2402_v31 = vrot.slane %v17410_v55, 4  ;;  %v3008_v41 = vsel %vm12869_vm11, %v3003_v39, %v3007_v63  ;;  %v10279_v59 = vcombine.low %v2718_v42, %v2721_v3  ;;  %v2394_v45 = vrot.slane %v2393_v38, 4  ;;  %v17411_v39 = vld [vmem:[#allocation16_spill] sm:$0xff]  ;;  %v14102_v34 = vld [vmem:[#allocation2 + $0x88] sm:$0xf] }
 0x187   : > { %v2398_v56 = vrot.slane %v2396_v14, 5  ;;  %v3023_v2 = vshll.u32 %v14066_v6, 16  ;;  %v3018_v24 = vsel %vm12869_vm11, %v3013_v46, %v3017_v8  ;;  %v2408_v53 = vrot.slane %v2406_v5, 5  ;;  %v14094_v8 = vld [vmem:[#allocation2 + $0x84] sm:$0xf] }
 0x188   : > { %5004 = vmatprep.mubr.bf16.mxu0 %v10279_v59  ;;  %v3029_v27 = vshll.u32 %v14072_v48, 16  ;;  %v3033_v21 = vshrl.u32 %v14072_v48, 16  ;;  %v10311_v60 = vcombine.low %v3008_v41, %v3018_v24  ;;  %v3022_v33 = vrot.slane %v3020_v23, 4  ;;  %v2820_v55 = vld [vmem:[#allocation2 + $0x8c] sm:$0x1] }
 0x189   : > { %v2399_v0 = vsel %vm12869_vm11, %v2394_v45, %v2398_v56  ;;  %v2403_v35 = vor.u32 %v2402_v31, %v2398_v56  ;;  %v3025_v13 = vrot.slane %v3023_v2, 5  ;;  %v3039_v47 = vshll.u32 %v2819_v28, 16  ;;  %v17413_v31 = vld [vmem:[#allocation13_spill] sm:$0xff]  ;;  %v2611_v59 = vld [vmem:[#allocation2 + $0x78] sm:$0xe] }
 0x18a   : > { %v3031_v58 = vrot.slane %v3029_v27, 5  ;;  %v3035_v17 = vrot.slane %v3033_v21, 4  ;;  %5165 = vmatprep.mubr.bf16.mxu1 %v10311_v60  ;;  %v10168_v40 = vrot.slane %v2610_v61, 9  ;;  %v2724_v20 = vrot.slane %v12129_v12, 5  ;;  %v2211_v2 = vld [vmem:[#allocation2 + $0x80] sm:$0x1] }
 0x18b   : > { %v2404_v50 = vrot.slane %v2403_v35, 4  ;;  %v2727_v1 = vrot.slane %v2210_v22, 5  ;;  %5166 = vmatmul.mubr.bf16.gmra.mrb[92].mxu1 %v10295_v15  ;;  %v3026_v63 = vor.u32 %v3025_v13, %v3022_v33  ;;  %v3041_v37 = vrot.slane %v3039_v47, 5 }
 0x18c   : > { %v3036_v51 = vor.u32 %v3035_v17, %v3031_v58  ;;  %v10296_v11 = vcombine.low %v14066_v6, %v14072_v48  ;;  %v2725_v52 = vsel %vm12879_vm13, %v10168_v40, %v2724_v20  ;;  %v2726_v30 = vrot.slane %v2724_v20, 4  ;;  %v12130_v40 = vld [vmem:[#allocation2 + $0x7c] sm:$0xf] }
 0x18d   : > { %v2409_v42 = vsel %vm12869_vm11, %v2404_v50, %v2408_v53  ;;  %v2417_v3 = vor.u32 %v17412_v18, %v17411_v39  ;;  %v3027_v38 = vrot.slane %v3026_v63, 4  ;;  %v2420_v25 = vshll.u32 %v12129_v12, 16  ;;  %v14126_v39 = vld [vmem:[#allocation2 + $0x94] sm:$0xf] }
 0x18e   : > { %v10263_v15 = vcombine.low %v2399_v0, %v2409_v42  ;;  %v3037_v14 = vrot.slane %v3036_v51, 4  ;;  %v2728_v6 = vsel %vm12879_vm13, %v2726_v30, %v2727_v1  ;;  %v17414_v28 = vshrl.u32 %v17413_v31, 16 }
 0x18f   : > { %v2418_v48 = vrot.slane %v2417_v3, 4  ;;  %v2430_v46 = vshll.u32 %v2210_v22, 16  ;;  %v3032_v5 = vsel %vm12869_vm11, %v3027_v38, %v3031_v58  ;;  %v10280_v56 = vcombine.low %v2725_v52, %v2728_v6 }
 0x190   : > { %v2426_v41 = vrot.slane %v17414_v28, 4  ;;  %5005 = vmatmul.mubr.bf16.gmra.mrb[92].mxu0 %v10263_v15  ;;  %v3042_v45 = vsel %vm12869_vm11, %v3037_v14, %v3041_v37  ;;  %v2422_v23 = vrot.slane %v2420_v25, 5  ;;  %v3044_v53 = vshrl.u32 %v14094_v8, 16  ;;  %v14120_v37 = vld [vmem:[#allocation2 + $0x90] sm:$0xf]  ;;  %v17415_v15 = vld [vmem:[#allocation18_spill] sm:$0xff] }
 0x191   : > { %v10312_v61 = vcombine.low %v3032_v5, %v3042_v45  ;;  %v2432_v24 = vrot.slane %v2430_v46, 5  ;;  %v3047_v27 = vshll.u32 %v14094_v8, 16  ;;  %5012 = vmatprep.mubr.bf16.mxu0 %v10280_v56  ;;  %v3053_v60 = vshll.u32 %v14102_v34, 16  ;;  %v2821_v25 = vld [vmem:[#allocation2 + $0x98] sm:$0x1] }
 0x192   : > { %v2423_v22 = vsel %vm12869_vm11, %v2418_v48, %v2422_v23  ;;  %v2427_v21 = vor.u32 %v2426_v41, %v2422_v23  ;;  %v3057_v0 = vshrl.u32 %v14102_v34, 16  ;;  %v3046_v35 = vrot.slane %v3044_v53, 4  ;;  %v2612_v28 = vld [vmem:[#allocation2 + $0x84] sm:$0xe]  ;;  %v2212_v45 = vld [vmem:[#allocation2 + $0x8c] sm:$0x1] }
 0x193   : > { %5173 = vmatprep.mubr.bf16.mxu1 %v10312_v61  ;;  %v3049_v33 = vrot.slane %v3047_v27, 5  ;;  %v3063_v13 = vshll.u32 %v2820_v55, 16  ;;  %v10169_v58 = vrot.slane %v2611_v59, 9  ;;  %v3055_v47 = vrot.slane %v3053_v60, 5  ;;  %v17416_v55 = vld [vmem:[#allocation14_spill] sm:$0xff] }
 0x194   : > { %5174 = vmatmul.mubr.bf16.gmra.mrb[96].mxu1 %v10296_v11  ;;  %v2428_v17 = vrot.slane %v2427_v21, 4  ;;  %v3059_v50 = vrot.slane %v3057_v0, 4  ;;  %v2731_v12 = vrot.slane %v12130_v40, 5  ;;  %v2734_v63 = vrot.slane %v2211_v2, 5 }
 0x195   : > { %v3050_v20 = vor.u32 %v3049_v33, %v3046_v35  ;;  %v3065_v1 = vrot.slane %v3063_v13, 5  ;;  %v10297_v51 = vcombine.low %v14094_v8, %v14102_v34  ;;  %v2441_v38 = vor.u32 %v13679_v44, %v17415_v15 }
 0x196   : > { %v2433_v42 = vsel %vm12869_vm11, %v2428_v17, %v2432_v24  ;;  %v3060_v52 = vor.u32 %v3059_v50, %v3055_v47  ;;  %v2732_v11 = vsel %vm12879_vm13, %v10169_v58, %v2731_v12  ;;  %v2733_v30 = vrot.slane %v2731_v12, 4  ;;  %v12131_v17 = vld [vmem:[#allocation2 + $0x88] sm:$0xf] }
 0x197   : > { %v10264_v18 = vcombine.low %v2423_v22, %v2433_v42  ;;  %v3051_v3 = vrot.slane %v3050_v20, 4  ;;  %v2444_v14 = vshll.u32 %v12130_v40, 16  ;;  %v17417_v6 = vshrl.u32 %v17416_v55, 16 }
 0x198   : > { %v3061_v8 = vrot.slane %v3060_v52, 4  ;;  %v2735_v34 = vsel %vm12879_vm13, %v2733_v30, %v2734_v63  ;;  %v2454_v31 = vshll.u32 %v2211_v2, 16  ;;  %v2442_v59 = vrot.slane %v2441_v38, 4  ;;  %v14148_v63 = vld [vmem:[#allocation2 + $0x9c] sm:$0xf] }
 0x199   : > { %v2450_v48 = vrot.slane %v17417_v6, 4  ;;  %5013 = vmatmul.mubr.bf16.gmra.mrb[96].mxu0 %v10264_v18  ;;  %v3056_v41 = vsel %vm12869_vm11, %v3051_v3, %v3055_v47  ;;  %v10281_v46 = vcombine.low %v2732_v11, %v2735_v34  ;;  %v2446_v5 = vrot.slane %v2444_v14, 5  ;;  %v14158_v3 = vld [vmem:[#allocation2 + $0xa0] sm:$0xf] }
 0x19a   : > { %v3066_v44 = vsel %vm12869_vm11, %v3061_v8, %v3065_v1  ;;  %v2456_v56 = vrot.slane %v2454_v31, 5  ;;  %v3068_v23 = vshrl.u32 %v14120_v37, 16  ;;  %v3071_v61 = vshll.u32 %v14120_v37, 16 }
 0x19b   : > { %v10313_v24 = vcombine.low %v3056_v41, %v3066_v44  ;;  %5020 = vmatprep.mubr.bf16.mxu0 %v10281_v46  ;;  %v2447_v2 = vsel %vm12869_vm11, %v2442_v59, %v2446_v5  ;;  %v2451_v53 = vor.u32 %v2450_v48, %v2446_v5  ;;  %v3077_v27 = vshll.u32 %v14126_v39, 16  ;;  %v2613_v46 = vld [vmem:[#allocation2 + $0x90] sm:$0xe]  ;;  %v14170_v44 = vld [vmem:[#allocation2 + $0x98] sm:$0x1] }
 0x19c   : > { %v3070_v22 = vrot.slane %v3068_v23, 4  ;;  %v3073_v21 = vrot.slane %v3071_v61, 5  ;;  %v3081_v60 = vshrl.u32 %v14126_v39, 16  ;;  %v3087_v0 = vshll.u32 %v2821_v25, 16 }
 0x19d   : > { %5181 = vmatprep.mubr.bf16.mxu1 %v10313_v24  ;;  %v2452_v33 = vrot.slane %v2451_v53, 4  ;;  %v3079_v13 = vrot.slane %v3077_v27, 5  ;;  %v10170_v58 = vrot.slane %v2612_v28, 9  ;;  %v2738_v47 = vrot.slane %v12131_v17, 5 }
 0x19e   : > { %5182 = vmatmul.mubr.bf16.gmra.mrb[100].mxu1 %v10297_v51  ;;  %v3074_v40 = vor.u32 %v3073_v21, %v3070_v22  ;;  %v3083_v12 = vrot.slane %v3081_v60, 4  ;;  %v3089_v20 = vrot.slane %v3087_v0, 5  ;;  %v2741_v1 = vrot.slane %v2212_v45, 5  ;;  %v2822_v51 = vld [vmem:[#allocation2 + $0xa4] sm:$0x1] }
 0x19f   : > { %v14144_v35 = vpop.f32.mrb[0].mxu1  ;;  %v2457_v52 = vsel %vm12869_vm11, %v2452_v33, %v2456_v56  ;;  %v2739_v11 = vsel %vm12879_vm13, %v10170_v58, %v2738_v47  ;;  %v2740_v30 = vrot.slane %v2738_v47, 4  ;;  %v10298_v18 = vcombine.low %v14120_v37, %v14126_v39  ;;  %v12132_v47 = vld [vmem:[#allocation2 + $0x94] sm:$0xf] }
 0x1a0   : > { %v14146_v50 = vpop.f32.mrb[1].mxu1  ;;  %v10265_v38 = vcombine.low %v2447_v2, %v2457_v52  ;;  %v3075_v14 = vrot.slane %v3074_v40, 4  ;;  %v3084_v25 = vor.u32 %v3083_v12, %v3079_v13  ;;  %v2465_v8 = vor.u32 %v13697_v49, %v13695_v43 }
 0x1a1   : > { %v14150_v42 = vpop.f32.mrb[2].mxu1  ;;  %v2742_v34 = vsel %vm12879_vm13, %v2740_v30, %v2741_v1  ;;  %v2468_v55 = vshll.u32 %v12131_v17, 16  ;;  %v17418_v6 = vshrl.u32 %v13646_v9, 16  ;;  %v2478_v31 = vshll.u32 %v2212_v45, 16 }
 0x1a2   : > { %v10942_v15 = vpop.f32.mrb[3].mxu1  ;;  %5021 = vmatmul.mubr.bf16.gmra.mrb[100].mxu0 %v10265_v38  ;;  %v3080_v37 = vsel %vm12869_vm11, %v3075_v14, %v3079_v13  ;;  %v3085_v39 = vrot.slane %v3084_v25, 4  ;;  %v10282_v28 = vcombine.low %v2739_v11, %v2742_v34  ;;  %v2466_v41 = vrot.slane %v2465_v8, 4  ;;  %v14203_v38 = vld [vmem:[#allocation2 + $0xa8] sm:$0xf] }
 0x1a3   : > { %v2474_v48 = vrot.slane %v17418_v6, 4  ;;  %v2470_v59 = vrot.slane %v2468_v55, 5  ;;  %v2480_v5 = vrot.slane %v2478_v31, 5  ;;  %v3092_v43 = vshrl.u32 %v14148_v63, 16  ;;  %v14205_v14 = vld [vmem:[#allocation2 + $0xac] sm:$0xf] }
 0x1a4   : > { %v3095_v49 = vshll.u32 %v14148_v63, 16  ;;  %v3090_v9 = vsel %vm12869_vm11, %v3085_v39, %v3089_v20  ;;  %5028 = vmatprep.mubr.bf16.mxu0 %v10282_v28  ;;  %v3101_v45 = vshll.u32 %v14158_v3, 16  ;;  %v3105_v56 = vshrl.u32 %v14158_v3, 16 }
 0x1a5   : > { %v3111_v23 = vshll.u32 %v2822_v51, 16  ;;  %v10314_v61 = vcombine.low %v3080_v37, %v3090_v9  ;;  %v2471_v24 = vsel %vm12869_vm11, %v2466_v41, %v2470_v59  ;;  %v2475_v2 = vor.u32 %v2474_v48, %v2470_v59  ;;  %v2614_v37 = vld [vmem:[#allocation2 + $0x9c] sm:$0xe]  ;;  %v17420_v59 = vld [vmem:[#allocation22_spill] sm:$0xff] }
 0x1a6   : > { %v3094_v53 = vrot.slane %v3092_v43, 4  ;;  %v3097_v22 = vrot.slane %v3095_v49, 5  ;;  %v3103_v21 = vrot.slane %v3101_v45, 5  ;;  %v3107_v60 = vrot.slane %v3105_v56, 4 }
 0x1a7   : > { %v14178_v27 = vpop.f32.mrb[4].mxu1  ;;  %v3113_v0 = vrot.slane %v3111_v23, 5  ;;  %5189 = vmatprep.mubr.bf16.mxu1 %v10314_v61  ;;  %v2476_v13 = vrot.slane %v2475_v2, 4  ;;  %v14184_v58 = vadd.f32 %v13945_v57, %v13942_v7  ;;  %v10171_v17 = vrot.slane %v2613_v46, 9 }
 0x1a8   : > { %v14180_v33 = vpop.f32.mrb[5].mxu1  ;;  %v2745_v40 = vrot.slane %v12132_v47, 5  ;;  %5190 = vmatmul.mubr.bf16.gmra.mrb[104].mxu1 %v10298_v18  ;;  %v3098_v20 = vor.u32 %v3097_v22, %v3094_v53  ;;  %v3108_v1 = vor.u32 %v3107_v60, %v3103_v21  ;;  %v2748_v52 = vrot.slane %v14170_v44, 5 }
 0x1a9   : > { %v14186_v12 = vpop.f32.mrb[6].mxu1  ;;  %v14191_v11 = vadd.f32 %v13953_v4, %v13950_v16  ;;  %v14197_v7 = vrot.slane %v2555_v26, 4  ;;  %v2481_v57 = vsel %vm12869_vm11, %v2476_v13, %v2480_v5  ;;  %v17419_v16 = vshll.u32 %v13790_v54, 16  ;;  %v2823_v26 = vld [vmem:[#allocation2 + $0xb0] sm:$0x1] }
 0x1aa   : > { %v14193_v30 = vpop.f32.mrb[7].mxu1  ;;  %v2746_v18 = vsel %vm12879_vm13, %v10171_v17, %v2745_v40  ;;  %v2747_v51 = vrot.slane %v2745_v40, 4  ;;  %v10266_v25 = vcombine.low %v2471_v24, %v2481_v57  ;;  %v3099_v8 = vrot.slane %v3098_v20, 4  ;;  %v10832_v55 = vpop.f32.mrb[4].mxu0 }
 0x1ab   : > { %v14209_v4 = vrot.slane %v17419_v16, 5  ;;  %v3109_v34 = vrot.slane %v3108_v1, 4  ;;  %v14215_v48 = vadd.f32 %v14146_v50, %v14144_v35  ;;  %v14218_v31 = vadd.f32 %v10942_v15, %v14150_v42  ;;  %v10833_v39 = vpop.f32.mrb[5].mxu0  ;;  %v17421_v15 = vld [vmem:[#allocation19_spill] sm:$0xff] }
 0x1ac   : > { %v2749_v6 = vsel %vm12879_vm13, %v2747_v51, %v2748_v52  ;;  %v10299_v54 = vcombine.low %v14148_v63, %v14158_v3  ;;  %5029 = vmatmul.mubr.bf16.gmra.mrb[104].mxu0 %v10266_v25  ;;  %v3104_v28 = vsel %vm12869_vm11, %v3099_v8, %v3103_v21  ;;  %v2489_v35 = vor.u32 %v17420_v59, %v13756_v19  ;;  %v10835_v50 = vpop.f32.mrb[6].mxu0  ;;  %v14231_v3 = vld [vmem:[#allocation2 + $0xa4] sm:$0x1]  ;;  %v892_v19 = vld [vmem:[#allocation2 + $0xc8] sm:$0x1] }
 0x1ad   : > { %v3114_v41 = vsel %vm12869_vm11, %v3109_v34, %v3113_v0  ;;  %v10283_v46 = vcombine.low %v2746_v18, %v2749_v6  ;;  %v2492_v42 = vshll.u32 %v12132_v47, 16  ;;  %v17422_v43 = vshrl.u32 %v17421_v15, 16  ;;  %v10836_v9 = vpop.f32.mrb[7].mxu0  ;;  %v12133_v51 = vld [vmem:[#allocation2 + $0xa0] sm:$0xf] }
 0x1ae   : > { %v10315_v5 = vcombine.low %v3104_v28, %v3114_v41  ;;  %v2502_v63 = vshll.u32 %v14170_v44, 16  ;;  %v2490_v45 = vrot.slane %v2489_v35, 4  ;;  %v3116_v56 = vshrl.u32 %v14203_v38, 16 }
 0x1af   : > { %v2498_v49 = vrot.slane %v17422_v43, 4  ;;  %5036 = vmatprep.mubr.bf16.mxu0 %v10283_v46  ;;  %v3119_v23 = vshll.u32 %v14203_v38, 16  ;;  %v3125_v61 = vshll.u32 %v14205_v14, 16  ;;  %v14236_v24 = vpop.f32.mrb[8].mxu1  ;;  %v2494_v2 = vrot.slane %v2492_v42, 5 }
 0x1b0   : > { %5197 = vmatprep.mubr.bf16.mxu1 %v10315_v5  ;;  %v2504_v53 = vrot.slane %v2502_v63, 5  ;;  %v3129_v22 = vshrl.u32 %v14205_v14, 16  ;;  %v3135_v44 = vshll.u32 %v2823_v26, 16  ;;  %v14239_v21 = vpop.f32.mrb[9].mxu1  ;;  %v3118_v60 = vrot.slane %v3116_v56, 4 }
 0x1b1   : > { %5198 = vmatmul.mubr.bf16.gmra.mrb[108].mxu1 %v10299_v54  ;;  %v3121_v0 = vrot.slane %v3119_v23, 5  ;;  %v3127_v13 = vrot.slane %v3125_v61, 5  ;;  %v10172_v17 = vrot.slane %v2614_v37, 9  ;;  %v14241_v47 = vpop.f32.mrb[10].mxu1  ;;  %v2495_v40 = vsel %vm12869_vm11, %v2490_v45, %v2494_v2  ;;  %v17423_v37 = vld [vmem:[#allocation11_spill] sm:$0xff] }
 0x1b2   : > { %v2499_v20 = vor.u32 %v2498_v49, %v2494_v2  ;;  %v3131_v1 = vrot.slane %v3129_v22, 4  ;;  %v3137_v52 = vrot.slane %v3135_v44, 5  ;;  %v14245_v57 = vpop.f32.mrb[11].mxu1  ;;  %v2752_v16 = vrot.slane %v12133_v51, 5  ;;  %v14252_v34 = vpop.f32.mrb[8].mxu0  ;;  %v17428_v2 = vld [vmem:[#allocation23_spill] sm:$0xff] }
 0x1b3   : > { %v3122_v18 = vor.u32 %v3121_v0, %v3118_v60  ;;  %v2755_v25 = vrot.slane %v14231_v3, 5  ;;  %v14250_v8 = vadd.f32 %v14180_v33, %v14178_v27  ;;  %v14254_v54 = vadd.f32 %v10833_v39, %v10832_v55  ;;  %v14260_v59 = vpop.f32.mrb[9].mxu0  ;;  %v14268_v33 = vld [vmem:[#allocation2 + $0xb4] sm:$0xf]  ;;  %v14278_v63 = vld [vmem:[#allocation2 + $0xc0] sm:$0xf] }
 0x1b4   : > { %v2500_v26 = vrot.slane %v2499_v20, 4  ;;  %v3132_v6 = vor.u32 %v3131_v1, %v3127_v13  ;;  %v17424_v28 = vrot.slane %v17423_v37, 4  ;;  %v2753_v5 = vsel %vm12879_vm13, %v10172_v17, %v2752_v16  ;;  %v14270_v55 = vpop.f32.mrb[10].mxu0  ;;  %v14285_v23 = vld [vmem:[#allocation2 + $0xb8] sm:$0xf] }
 0x1b5   : > { %v3123_v35 = vrot.slane %v3122_v18, 4  ;;  %v2754_v42 = vrot.slane %v2752_v16, 4  ;;  %v14266_v27 = vadd.f32 %v14193_v30, %v14186_v12  ;;  %v14274_v43 = vadd.f32 %v10836_v9, %v10835_v50  ;;  %v14276_v49 = vpop.f32.mrb[11].mxu0  ;;  %17427 = vst [vmem:[#allocation12_spill] sm:$0xff] %v14285_v23  ;;  %v14295_v44 = vld [vmem:[#allocation2 + $0xbc] sm:$0x1] }
 0x1b6   : > { %v893_v46 = vsel %vm12800_vm7, %v17424_v28, %v892_v19  ;;  %v2505_v39 = vsel %vm12869_vm11, %v2500_v26, %v2504_v53  ;;  %v3133_v15 = vrot.slane %v3132_v6, 4  ;;  %v2579_v45 = vshrl.u32 %v14278_v63, 16  ;;  %v17429_v53 = vld [vmem:[#allocation24_spill] sm:$0xff]  ;;  %17430 = vst [vmem:[#allocation16_spill] sm:$0xff] %v14295_v44  ;;  %v2615_v18 = vld [vmem:[#allocation2 + $0xa8] sm:$0xe]  ;;  %vm15187_vm7 = vmand %vm5934_vm3, %vm778_vm4 }
 0x1b7   : > { %894 = vst [vmem:[#allocation2 + $0xc8] sm:$0x1] %v893_v46  ;;  %17426 = vst [vmem:[#allocation15_spill] sm:$0xff] %v14266_v27  ;;  %v10267_v56 = vcombine.low %v2495_v40, %v2505_v39  ;;  %v3128_v12 = vsel %vm12869_vm11, %v3123_v35, %v3127_v13  ;;  %v2756_v30 = vsel %vm12879_vm13, %v2754_v42, %v2755_v25  ;;  %v14287_v61 = vpop.f32.mrb[12].mxu1  ;;  %v2516_v13 = vshll.u32 %v12133_v51, 16  ;;  %v17431_v17 = vld [vmem:[#allocation20_spill] sm:$0xff] }
 0x1b8   : > { %v3138_v50 = vsel %vm12869_vm11, %v3133_v15, %v3137_v52  ;;  %v10284_v9 = vcombine.low %v2753_v5, %v2756_v30  ;;  %v10300_v19 = vcombine.low %v14203_v38, %v14205_v14  ;;  %v2513_v22 = vor.u32 %v17429_v53, %v17428_v2  ;;  %v14297_v60 = vpop.f32.mrb[13].mxu1  ;;  %v14302_v52 = vld [vmem:[#allocation2 + $0xb0] sm:$0x1]  ;;  %v1390_v38 = vpop.permute.xlu1 %1389 }
 0x1b9   : > { %5037 = vmatmul.mubr.bf16.gmra.mrb[108].mxu0 %v10267_v56  ;;  %v10316_v0 = vcombine.low %v3128_v12, %v3138_v50  ;;  %v17432_v40 = vshrl.u32 %v17431_v17, 16  ;;  %v2526_v1 = vshll.u32 %v14231_v3, 16  ;;  %v14304_v16 = vpop.f32.mrb[14].mxu1  ;;  %v3140_v25 = vshrl.u32 %v14268_v33, 16 }
 0x1ba   : > { %5044 = vmatprep.mubr.bf16.mxu0 %v10284_v9  ;;  %v2514_v14 = vrot.slane %v2513_v22, 4  ;;  %v3143_v26 = vshll.u32 %v14268_v33, 16  ;;  %v3149_v6 = vshll.u32 %v14285_v23, 16  ;;  %v14309_v51 = vpop.f32.mrb[15].mxu1  ;;  %v2518_v37 = vrot.slane %v2516_v13, 5  ;;  %v14313_v46 = vpop.f32.mrb[12].mxu0 }
 0x1bb   : > { %v2522_v20 = vrot.slane %v17432_v40, 4  ;;  %5205 = vmatprep.mubr.bf16.mxu1 %v10316_v0  ;;  %v2528_v28 = vrot.slane %v2526_v1, 5  ;;  %v3153_v3 = vshrl.u32 %v14285_v23, 16  ;;  %v3159_v41 = vshll.u32 %v14295_v44, 16  ;;  %v10845_v2 = vpop.f32.mrb[13].mxu0 }
 0x1bc   : > { %5206 = vmatmul.mubr.bf16.gmra.mrb[112].mxu1 %v10300_v19  ;;  %v3142_v5 = vrot.slane %v3140_v25, 4  ;;  %v3145_v42 = vrot.slane %v3143_v26, 5  ;;  %v3151_v39 = vrot.slane %v3149_v6, 5  ;;  %v10173_v15 = vrot.slane %v2615_v18, 9  ;;  %v12135_v0 = vld [vmem:[#allocation2 + $0xac] sm:$0xf] }
 0x1bd   : > { %v2519_v30 = vsel %vm12869_vm11, %v2514_v14, %v2518_v37  ;;  %v2523_v50 = vor.u32 %v2522_v20, %v2518_v37  ;;  %v3155_v9 = vrot.slane %v3153_v3, 4  ;;  %v3161_v22 = vrot.slane %v3159_v41, 5  ;;  %v10847_v17 = vpop.f32.mrb[14].mxu0 }
 0x1be   : > { %v1553_v35 = vld [vmem:[#allocation2 + $0xc8] sm:$0x1]  ;;  %v3146_v53 = vor.u32 %v3145_v42, %v3142_v5  ;;  %v2759_v13 = vrot.slane %v12135_v0, 5  ;;  %v2762_v19 = vrot.slane %v14302_v52, 5  ;;  %v14322_v18 = vadd.f32 %v14239_v21, %v14236_v24  ;;  %v10848_v20 = vpop.f32.mrb[15].mxu0 }
 0x1bf   : > { %v1554_v12 = vsel %vm13110_vm5, %v1390_v38, %v1553_v35  ;;  %v2524_v40 = vrot.slane %v2523_v50, 4  ;;  %v3156_v1 = vor.u32 %v3155_v9, %v3151_v39  ;;  %v14326_v38 = vadd.f32 %v14260_v59, %v14252_v34  ;;  %v14328_v14 = vpop.f32.mrb[16].mxu1  ;;  %v14347_v35 = vld [vmem:[#allocation2 + $0xc4] sm:$0xf] }
 0x1c0   : > { %1555 = vst [vmem:[#allocation2 + $0xc8] sm:$0x1] %v1554_v12  ;;  %17434 = vst [vmem:[#allocation17_spill] sm:$0xff] %v14322_v18  ;;  %v3147_v25 = vrot.slane %v3146_v53, 4  ;;  %v2760_v26 = vsel %vm12879_vm13, %v10173_v15, %v2759_v13  ;;  %v2761_v6 = vrot.slane %v2759_v13, 4  ;;  %v14334_v37 = vadd.f32 %v14245_v57, %v14241_v47  ;;  %v14336_v3 = vpop.f32.mrb[17].mxu1 }
 0x1c1   : > { %v2582_v24 = vshll.u32 %v14278_v63, 16  ;;  %v2529_v21 = vsel %vm12869_vm11, %v2524_v40, %v2528_v28  ;;  %v3157_v34 = vrot.slane %v3156_v1, 4  ;;  %v14343_v59 = vadd.f32 %v14276_v49, %v14270_v55  ;;  %v14345_v41 = vpop.f32.mrb[18].mxu1  ;;  %v14354_v15 = vld [vmem:[#allocation2 + $0xbc] sm:$0x1]  ;;  %v17436_v53 = vld [vmem:[#allocation21_spill] sm:$0xff] }
 0x1c2   : > { %17435 = vst [vmem:[#allocation13_spill] sm:$0xff] %v14334_v37  ;;  %v10268_v47 = vcombine.low %v2519_v30, %v2529_v21  ;;  %v3152_v57 = vsel %vm12869_vm11, %v3147_v25, %v3151_v39  ;;  %v2763_v42 = vsel %vm12879_vm13, %v2761_v6, %v2762_v19  ;;  %v2616_v28 = vld [vmem:[#allocation2 + $0xb4] sm:$0xe]  ;;  %v14356_v56 = vpop.f32.mrb[19].mxu1  ;;  %v10301_v12 = vcombine.low %v14268_v33, %v14285_v23  ;;  %v14364_v50 = vpop.f32.mrb[16].mxu0 }
 0x1c3   : > { %v3162_v55 = vsel %vm12869_vm11, %v3157_v34, %v3161_v22  ;;  %v10285_v49 = vcombine.low %v2760_v26, %v2763_v42  ;;  %v2537_v30 = vor.u32 %v13822_v62, %v13820_v29  ;;  %v2540_v9 = vshll.u32 %v12135_v0, 16  ;;  %v14369_v1 = vpop.f32.mrb[17].mxu0  ;;  %v12137_v26 = vld [vmem:[#allocation2 + $0xb8] sm:$0xf]  ;;  %v14372_v62 = vld [vmem:[#allocation2 + $0xc0] sm:$0xf] }
 0x1c4   : > { %5045 = vmatmul.mubr.bf16.gmra.mrb[112].mxu0 %v10268_v47  ;;  %v10317_v39 = vcombine.low %v3152_v57, %v3162_v55  ;;  %v17437_v13 = vshrl.u32 %v17436_v53, 16  ;;  %v2550_v40 = vshll.u32 %v14302_v52, 16  ;;  %v10174_v25 = vrot.slane %v2616_v28, 9  ;;  %v14385_v34 = vld [vmem:[#allocation2 + $0xc4] sm:$0xf]  ;;  %v14387_v47 = vpop.f32.mrb[18].mxu0 }
 0x1c5   : > { %5052 = vmatprep.mubr.bf16.mxu0 %v10285_v49  ;;  %v2538_v22 = vrot.slane %v2537_v30, 4  ;;  %v2766_v33 = vrot.slane %v12137_v26, 5  ;;  %v2769_v6 = vrot.slane %v14354_v15, 5  ;;  %v14376_v29 = vrot.slane %v2579_v45, 4  ;;  %v12001_v57 = vld [vmem:[%s17322_s4 + $0x40] sm:$0xff]  }
 0x1c6   : > { %v2546_v19 = vrot.slane %v17437_v13, 4  ;;  %5213 = vmatprep.mubr.bf16.mxu1 %v10317_v39  ;;  %v2542_v0 = vrot.slane %v2540_v9, 5  ;;  %v14380_v52 = vadd.f32 %v14297_v60, %v14287_v61  ;;  %v14383_v21 = vadd.f32 %v10845_v2, %v14313_v46  ;;  %v14400_v46 = vpop.f32.mrb[19].mxu0  ;;  %v12002_v2 = vld [vmem:[%s17322_s4] sm:$0xff]   ;;  %11282 = vmatprep.subr.bf16.mxu1 %v12001_v57 }
 0x1c7   : > { %5214 = vmatmul.mubr.bf16.gmra.mrb[116].mxu1 %v10301_v12  ;;  %v2767_v63 = vsel %vm12879_vm13, %v10174_v25, %v2766_v33  ;;  %v2768_v45 = vrot.slane %v2766_v33, 4  ;;  %v14396_v61 = vadd.f32 %v14309_v51, %v14304_v16  ;;  %v14398_v60 = vadd.f32 %v10848_v20, %v10847_v17  ;;  %v14407_v49 = vld [vmem:[#allocation2 + $0xc8] sm:$0x1]  ;;  %v14410_v30 = vpop.f32.mrb[20].mxu1 }
 0x1c8   : > { %17438 = vst [vmem:[#allocation18_spill] sm:$0xff] %v14380_v52  ;;  %v14405_v42 = vrot.slane %v2582_v24, 5  ;;  %v2547_v28 = vor.u32 %v2546_v19, %v2542_v0  ;;  %v2552_v55 = vrot.slane %v2550_v40, 5  ;;  %v3164_v12 = vshrl.u32 %v14372_v62, 16  ;;  %v14418_v24 = vpop.f32.mrb[21].mxu1  ;;  %11283 = vmatpush3.bf16.msra.mxu1 %v12002_v2 }
 0x1c9   : > { %17439 = vst [vmem:[#allocation14_spill] sm:$0xff] %v14396_v61  ;;  %v2543_v16 = vsel %vm12869_vm11, %v2538_v22, %v2542_v0  ;;  %v2770_v51 = vsel %vm12879_vm13, %v2768_v45, %v2769_v6  ;;  %v3167_v17 = vshll.u32 %v14372_v62, 16  ;;  %v3173_v20 = vshll.u32 %v14385_v34, 16  ;;  %v2617_v19 = vld [vmem:[#allocation2 + $0xc0] sm:$0xe]  ;;  %v14421_v40 = vpop.f32.mrb[22].mxu1 }
 0x1ca   : > { %v2548_v39 = vrot.slane %v2547_v28, 4  ;;  %v10286_v9 = vcombine.low %v2767_v63, %v2770_v51  ;;  %v3166_v53 = vrot.slane %v3164_v12, 4  ;;  %v3177_v13 = vshrl.u32 %v14385_v34, 16  ;;  %v14426_v0 = vpop.f32.mrb[20].mxu0  ;;  %v14428_v57 = vpop.f32.mrb[23].mxu1 }
 0x1cb   : > { %v3169_v25 = vrot.slane %v3167_v17, 5  ;;  %v3175_v22 = vrot.slane %v3173_v20, 5  ;;  %v3183_v33 = vshll.u32 %v14407_v49, 16  ;;  %v10302_v6 = vcombine.low %v14372_v62, %v14385_v34  ;;  %v14434_v12 = vld [vmem:[#allocation2 + $0xc8] sm:$0x1]  ;;  %v14436_v51 = vpop.f32.mrb[21].mxu0 }
 0x1cc   : > { %v2553_v63 = vsel %vm12869_vm11, %v2548_v39, %v2552_v55  ;;  %v3179_v45 = vrot.slane %v3177_v13, 4  ;;  %v2561_v2 = vor.u32 %v14209_v4, %v14197_v7  ;;  %v2564_v28 = vshll.u32 %v12137_v26, 16  ;;  %v14440_v23 = vpop.f32.mrb[22].mxu0 }
 0x1cd   : > { %v10269_v17 = vcombine.low %v2543_v16, %v2553_v63  ;;  %v3170_v20 = vor.u32 %v3169_v25, %v3166_v53  ;;  %v3185_v5 = vrot.slane %v3183_v33, 5  ;;  %v17440_v62 = vshrl.u32 %v13792_v32, 16  ;;  %v14443_v13 = vpop.f32.mrb[23].mxu0 }
 0x1ce   : > { %v3180_v61 = vor.u32 %v3179_v45, %v3175_v22  ;;  %v2562_v52 = vrot.slane %v2561_v2, 4  ;;  %v2566_v55 = vrot.slane %v2564_v28, 5  ;;  %v2574_v39 = vshll.u32 %v14354_v15, 16 }
 0x1cf   : > { %v2570_v44 = vrot.slane %v17440_v62, 4  ;;  %5053 = vmatmul.mubr.bf16.gmra.mrb[116].mxu0 %v10269_v17  ;;  %v3171_v7 = vrot.slane %v3170_v20, 4  ;;  %v10175_v4 = vrot.slane %v2617_v19, 9  ;;  %v2773_v26 = vrot.slane %v14347_v35, 5  ;;  %v14449_v63 = vpop.f32.mrb[24].mxu1 }
 0x1d0   : > { %v2776_v16 = vrot.slane %v14434_v12, 5  ;;  %5060 = vmatprep.mubr.bf16.mxu0 %v10286_v9  ;;  %v3181_v53 = vrot.slane %v3180_v61, 4  ;;  %v2567_v32 = vsel %vm12869_vm11, %v2562_v52, %v2566_v55  ;;  %v2576_v33 = vrot.slane %v2574_v39, 5  ;;  %v14459_v9 = vpop.f32.mrb[25].mxu1  ;;  %v14481_v20 = vld [vmem:[#allocation2 + $0xcc] sm:$0xf] }
 0x1d1   : > { %v2571_v25 = vor.u32 %v2570_v44, %v2566_v55  ;;  %v3176_v15 = vsel %vm12869_vm11, %v3171_v7, %v3175_v22  ;;  %v2774_v45 = vsel %vm12879_vm13, %v10175_v4, %v2773_v26  ;;  %v2775_v19 = vrot.slane %v2773_v26, 4  ;;  %v14471_v28 = vpop.f32.mrb[26].mxu1  ;;  %v14490_v55 = vld [vmem:[#allocation2 + $0xd0] sm:$0xf]  ;;  %v14492_v39 = vld [vmem:[#allocation2 + $0xd4] sm:$0x1] }
 0x1d2   : > { %v14457_v2 = vadd.f32 %v14336_v3, %v14328_v14  ;;  %v3186_v52 = vsel %vm12869_vm11, %v3181_v53, %v3185_v5  ;;  %v14465_v61 = vadd.f32 %v14369_v1, %v14364_v50  ;;  %v14469_v22 = vadd.f32 %v14356_v56, %v14345_v41  ;;  %v14483_v50 = vpop.f32.mrb[24].mxu0  ;;  %v14485_v1 = vpop.f32.mrb[27].mxu1  ;;  %17443 = vst [vmem:[#allocation11_spill] sm:$0xff] %v14490_v55  ;;  %v3211_v4 = vld [vmem:[#allocation2 + $0x18] sm:$0xe] }
 0x1d3   : > { %v2572_v44 = vrot.slane %v2571_v25, 4  ;;  %v10318_v17 = vcombine.low %v3176_v15, %v3186_v52  ;;  %v2777_v14 = vsel %vm12879_vm13, %v2775_v19, %v2776_v16  ;;  %v14477_v3 = vadd.f32 %v14400_v46, %v14387_v47  ;;  %17444 = vst [vmem:[#allocation8_spill] sm:$0xff] %v14492_v39  ;;  %v14494_v47 = vpop.f32.mrb[25].mxu0 }
 0x1d4   : > { %17441 = vst [vmem:[#allocation22_spill] sm:$0xff] %v14457_v2  ;;  %17442 = vst [vmem:[#allocation19_spill] sm:$0xff] %v14469_v22  ;;  %v2585_v5 = vor.u32 %v14405_v42, %v14376_v29  ;;  %v10287_v56 = vcombine.low %v2774_v45, %v2777_v14  ;;  %v2588_v62 = vshll.u32 %v14347_v35, 16  ;;  %v17445_v42 = vshrl.u32 %v14347_v35, 16  ;;  %v14498_v26 = vpop.f32.mrb[26].mxu0 }
 0x1d5   : > { %v2577_v41 = vsel %vm12869_vm11, %v2572_v44, %v2576_v33  ;;  %5221 = vmatprep.mubr.bf16.mxu1 %v10318_v17  ;;  %v2598_v53 = vshll.u32 %v14434_v12, 16  ;;  %v3188_v25 = vshrl.u32 %v14481_v20, 16  ;;  %v3191_v33 = vshll.u32 %v14481_v20, 16  ;;  %v14503_v15 = vpop.f32.mrb[27].mxu0  ;;  %v14505_v45 = vld [vmem:[#allocation2 + $0x2c] sm:$0x1] }
 0x1d6   : > { %v10270_v29 = vcombine.low %v2567_v32, %v2577_v41  ;;  %v2586_v46 = vrot.slane %v2585_v5, 4  ;;  %v2594_v7 = vrot.slane %v17445_v42, 4  ;;  %5222 = vmatmul.mubr.bf16.gmra.mrb[120].mxu1 %v10302_v6  ;;  %v2590_v16 = vrot.slane %v2588_v62, 5  ;;  %v12003_v5 = vld [vmem:[%s17322_s4 + $0x48] sm:$0xff]  }
 0x1d7   : > { %v3197_v35 = vshll.u32 %v14490_v55, 16  ;;  %v3201_v19 = vshrl.u32 %v14490_v55, 16  ;;  %v3207_v6 = vshll.u32 %v14492_v39, 16  ;;  %v2600_v12 = vrot.slane %v2598_v53, 5  ;;  %v14511_v14 = vpop.f32.mrb[28].mxu1  ;;  %v12004_v41 = vld [vmem:[%s17322_s4 + $0x8] sm:$0xff]   ;;  %11284 = vmatprep.subr.bf16.mxu1 %v12003_v5 }
 0x1d8   : > { %5061 = vmatmul.mubr.bf16.gmra.mrb[120].mxu0 %v10270_v29  ;;  %v2595_v52 = vor.u32 %v2594_v7, %v2590_v16  ;;  %v3190_v44 = vrot.slane %v3188_v25, 4  ;;  %v10176_v17 = vrot.slane %v3211_v4, 9  ;;  %v2591_v62 = vsel %vm12869_vm11, %v2586_v46, %v2590_v16  ;;  %v14521_v7 = vpop.f32.mrb[29].mxu1  ;;  %v12139_v25 = vld [vmem:[#allocation2 + $0x1c] sm:$0xf]  ;;  %11285 = vmatpush3.bf16.msra.mxu1 %v12004_v41 }
 0x1d9   : > { %5068 = vmatprep.mubr.bf16.mxu0 %v10287_v56  ;;  %v3193_v29 = vrot.slane %v3191_v33, 5  ;;  %v3199_v42 = vrot.slane %v3197_v35, 5  ;;  %v3203_v56 = vrot.slane %v3201_v19, 4  ;;  %v3209_v4 = vrot.slane %v3207_v6, 5  ;;  %v12140_v39 = vld [vmem:[#allocation2 + $0x20] sm:$0x1] }
 0x1da   : > { %v2596_v53 = vrot.slane %v2595_v52, 4  ;;  %v3277_v32 = vrot.slane %v12139_v25, 5  ;;  %v3280_v22 = vrot.slane %v12140_v39, 5  ;;  %v14523_v2 = vpop.f32.mrb[30].mxu1  ;;  %v14527_v27 = vadd.f32 %v14418_v24, %v14410_v30  ;;  %v3212_v16 = vld [vmem:[#allocation2 + $0x24] sm:$0xe] }
 0x1db   : > { %v3194_v37 = vor.u32 %v3193_v29, %v3190_v44  ;;  %v3204_v18 = vor.u32 %v3203_v56, %v3199_v42  ;;  %v14531_v46 = vadd.f32 %v14436_v51, %v14426_v0  ;;  %v14533_v33 = vpop.f32.mrb[28].mxu0  ;;  %v14535_v35 = vpop.f32.mrb[31].mxu1  ;;  %v14543_v30 = vadd.f32 %v14428_v57, %v14421_v40  ;;  %v3213_v24 = vld [vmem:[#allocation2 + $0x30] sm:$0xe]  ;;  %v12141_v29 = vld [vmem:[#allocation2 + $0x28] sm:$0xf] }
 0x1dc   : > { %v2601_v39 = vsel %vm12869_vm11, %v2596_v53, %v2600_v12  ;;  %v3278_v19 = vsel %vm12879_vm13, %v10176_v17, %v3277_v32  ;;  %v3279_v6 = vrot.slane %v3277_v32, 4  ;;  %v10869_v0 = vpop.f32.mrb[29].mxu0  ;;  %v10303_v5 = vcombine.low %v14481_v20, %v14490_v55 }
 0x1dd   : > { %v10271_v51 = vcombine.low %v2591_v62, %v2601_v39  ;;  %v3195_v52 = vrot.slane %v3194_v37, 4  ;;  %v3205_v44 = vrot.slane %v3204_v18, 4  ;;  %v10871_v41 = vpop.f32.mrb[30].mxu0  ;;  %v14551_v17 = vadd.f32 %v14443_v13, %v14440_v23  ;;  %v12142_v13 = vld [vmem:[#allocation2 + $0x34] sm:$0xf] }
 0x1de   : > { %v3281_v12 = vsel %vm12879_vm13, %v3279_v6, %v3280_v22  ;;  %v10177_v32 = vrot.slane %v3212_v16, 9  ;;  %v3284_v40 = vrot.slane %v12141_v29, 5  ;;  %v10872_v57 = vpop.f32.mrb[31].mxu0  ;;  %v10178_v62 = vrot.slane %v3213_v24, 9  ;;  %v12143_v16 = vld [vmem:[#allocation2 + $0x38] sm:$0x1] }
 0x1df   : > { %v3200_v37 = vsel %vm12869_vm11, %v3195_v52, %v3199_v42  ;;  %v3210_v18 = vsel %vm12869_vm11, %v3205_v44, %v3209_v4  ;;  %v10320_v20 = vcombine.low %v3278_v19, %v3281_v12  ;;  %v10986_v23 = vpop.f32.mrb[32].mxu1  ;;  %v3291_v25 = vrot.slane %v12142_v13, 5  ;;  %v3214_v4 = vld [vmem:[#allocation2 + $0x3c] sm:$0xe]  ;;  %v3215_v44 = vld [vmem:[#allocation2 + $0x48] sm:$0xe] }
 0x1e0   : > { %5069 = vmatmul.mubr.bf16.gmra.mrb[124].mxu0 %v10271_v51  ;;  %v10319_v56 = vcombine.low %v3200_v37, %v3210_v18  ;;  %v3285_v22 = vsel %vm12879_vm13, %v10177_v32, %v3284_v40  ;;  %v3286_v53 = vrot.slane %v3284_v40, 4  ;;  %v3294_v39 = vrot.slane %v12143_v16, 5  ;;  %v10987_v19 = vpop.f32.mrb[33].mxu1  ;;  %v12144_v40 = vld [vmem:[#allocation2 + $0x40] sm:$0xf] }
 0x1e1   : > { %11770 = vmatprep.mubr.bf16.mxu0 %v10320_v20  ;;  %v14561_v6 = vadd.f32 %v14459_v9, %v14449_v63  ;;  %v14565_v42 = vadd.f32 %v14494_v47, %v14483_v50  ;;  %v17446_v24 = vrot.slane %v14505_v45, 5  ;;  %v14573_v52 = vadd.f32 %v14485_v1, %v14471_v28  ;;  %v10989_v9 = vpop.f32.mrb[34].mxu1  ;;  %v12145_v1 = vld [vmem:[#allocation2 + $0x44] sm:$0x1] }
 0x1e2   : > { %5229 = vmatprep.mubr.bf16.mxu1 %v10319_v56  ;;  %v14577_v63 = vadd.f32 %v14503_v15, %v14498_v26  ;;  %v3292_v50 = vsel %vm12879_vm13, %v10178_v62, %v3291_v25  ;;  %v3293_v47 = vrot.slane %v3291_v25, 4  ;;  %v10874_v12 = vpop.f32.mrb[32].mxu0  ;;  %v10990_v45 = vpop.f32.mrb[35].mxu1  ;;  %v10179_v29 = vrot.slane %v3214_v4, 9  ;;  %v12146_v15 = vld [vmem:[#allocation2 + $0x4c] sm:$0xf] }
 0x1e3   : > { %v3288_v51 = vsel %vm12879_vm13, %v3286_v53, %v17446_v24  ;;  %5230 = vmatmul.mubr.bf16.gmra.mrb[124].mxu1 %v10303_v5  ;;  %v3298_v37 = vrot.slane %v12144_v40, 5  ;;  %v10875_v18 = vpop.f32.mrb[33].mxu0  ;;  %v3301_v26 = vrot.slane %v12145_v1, 5  ;;  %v3305_v20 = vrot.slane %v12146_v15, 5  ;;  %v14590_v56 = vld [vmem:[%s17321_s3] ss:$0 sm:$0xff] }
 0x1e4   : > { %v10321_v32 = vcombine.low %v3285_v22, %v3288_v51  ;;  %v3295_v28 = vsel %vm12879_vm13, %v3293_v47, %v3294_v39  ;;  %v14585_v5 = vadd.f32 %v14521_v7, %v14511_v14  ;;  %v10877_v62 = vpop.f32.mrb[34].mxu0  ;;  %v10180_v13 = vrot.slane %v3215_v44, 9  ;;  %v12147_v4 = vld [vmem:[#allocation2 + $0x50] sm:$0x1]  ;;  %v12148_v47 = vld [vmem:[#allocation2 + $0x58] sm:$0xf] }
 0x1e5   : > { %v10322_v22 = vcombine.low %v3292_v50, %v3295_v28  ;;  %v3300_v53 = vrot.slane %v3298_v37, 4  ;;  %v14593_v25 = vadd.f32 %v10869_v0, %v14533_v33  ;;  %v10878_v16 = vpop.f32.mrb[35].mxu0  ;;  %v3307_v39 = vrot.slane %v3305_v20, 4  ;;  %v3216_v50 = vld [vmem:[#allocation2 + $0x54] sm:$0xe] }
 0x1e6   : > { %v3308_v24 = vrot.slane %v12147_v4, 5  ;;  %v14597_v14 = vadd.f32 %v14535_v35, %v14523_v2  ;;  %v14599_v7 = vadd.f32 %v10872_v57, %v10871_v41  ;;  %v14603_v51 = vadd.f32 %v14184_v58, %v14590_v56  ;;  %v12005_v58 = vld [vmem:[%s17322_s4 + $0x50] sm:$0xff]   ;;  %v12149_v40 = vld [vmem:[#allocation2 + $0x64] sm:$0xf] }
 0x1e7   : > { %v3312_v33 = vrot.slane %v12148_v47, 5  ;;  %v14607_v44 = vadd.f32 %v14191_v11, %v14590_v56  ;;  %v3302_v2 = vsel %vm12879_vm13, %v3300_v53, %v3301_v26  ;;  %v3306_v35 = vsel %vm12879_vm13, %v10180_v13, %v3305_v20  ;;  %v12006_v57 = vld [vmem:[%s17322_s4 + $0x10] sm:$0xff]   ;;  %11286 = vmatprep.subr.bf16.mxu1 %v12005_v58 }
 0x1e8   : > { %11771 = vmatmul.mubr.bf16.vlgmr.msra.gmra.mrb[128].mxu0 %v10321_v32  ;;  %v10992_v0 = vpop.f32.mrb[36].mxu1  ;;  %v3299_v32 = vsel %vm12879_vm13, %v10179_v29, %v3298_v37  ;;  %v3309_v11 = vsel %vm12879_vm13, %v3307_v39, %v3308_v24  ;;  %v3319_v29 = vrot.slane %v12149_v40, 5  ;;  %v14623_v37 = vadd.f32 %v10987_v19, %v10986_v23  ;;  %11287 = vmatpush3.bf16.msra.mxu1 %v12006_v57  ;;  %v12152_v40 = vld [vmem:[#allocation2 + $0x70] sm:$0xf] }
 0x1e9   : > { %11774 = vmatprep.mubr.bf16.mxu0 %v10322_v22  ;;  %v10993_v41 = vpop.f32.mrb[37].mxu1  ;;  %v14625_v28 = vadd.f32 %v10875_v18, %v10874_v12  ;;  %v14629_v15 = vadd.f32 %v14254_v54, %v14590_v56  ;;  %v10181_v20 = vrot.slane %v3216_v50, 9  ;;  %v3217_v22 = vld [vmem:[#allocation2 + $0x60] sm:$0xe]  ;;  %v14631_v53 = vadd.f32 %v10990_v45, %v10989_v9  ;;  %v12150_v18 = vld [vmem:[#allocation2 + $0x5c] sm:$0x1] }
 0x1ea   : > { %17447 = vst [vmem:[#allocation23_spill] sm:$0xff] %v14623_v37  ;;  %v10880_v1 = vpop.f32.mrb[36].mxu0  ;;  %v10995_v26 = vpop.f32.mrb[38].mxu1  ;;  %v14633_v13 = vadd.f32 %v10878_v16, %v10877_v62  ;;  %v14637_v23 = vadd.f32 %v14274_v43, %v14590_v56  ;;  %v10323_v19 = vcombine.low %v3299_v32, %v3302_v2  ;;  %v3314_v12 = vrot.slane %v3312_v33, 4  ;;  %v12151_v32 = vld [vmem:[#allocation2 + $0x68] sm:$0x1] }
 0x1eb   : > { %17448 = vst [vmem:[#allocation24_spill] sm:$0xff] %v14631_v53  ;;  %v10881_v4 = vpop.f32.mrb[37].mxu0  ;;  %v10996_v39 = vpop.f32.mrb[39].mxu1  ;;  %v3315_v24 = vrot.slane %v12150_v18, 5  ;;  %v14641_v54 = vadd.f32 %v14326_v38, %v14590_v56  ;;  %v14645_v9 = vadd.f32 %v14343_v59, %v14590_v56  ;;  %v14649_v45 = vadd.f32 %v14383_v21, %v14590_v56  ;;  %v3220_v18 = vld [vmem:[#allocation2 + $0x84] sm:$0xe] }
 0x1ec   : > { %v10883_v47 = vpop.f32.mrb[38].mxu0  ;;  %v10324_v43 = vcombine.low %v3306_v35, %v3309_v11  ;;  %v10182_v16 = vrot.slane %v3217_v22, 9  ;;  %v3321_v50 = vrot.slane %v3319_v29, 4  ;;  %v3322_v2 = vrot.slane %v12151_v32, 5  ;;  %v3218_v11 = vld [vmem:[#allocation2 + $0x6c] sm:$0xe] }
 0x1ed   : > { %v10884_v62 = vpop.f32.mrb[39].mxu0  ;;  %v14651_v58 = vadd.f32 %v10993_v41, %v10992_v0  ;;  %v14655_v38 = vadd.f32 %v14398_v60, %v14590_v56  ;;  %v14659_v59 = vadd.f32 %v14465_v61, %v14590_v56  ;;  %v3313_v21 = vsel %vm12879_vm13, %v10181_v20, %v3312_v33  ;;  %v3219_v41 = vld [vmem:[#allocation2 + $0x78] sm:$0xe]  ;;  %v12153_v20 = vld [vmem:[#allocation2 + $0x7c] sm:$0xf] }
 0x1ee   : > { %v10882_v35 = vadd.f32 %v10881_v4, %v10880_v1  ;;  %v3316_v57 = vsel %vm12879_vm13, %v3314_v12, %v3315_v24  ;;  %v3326_v0 = vrot.slane %v12152_v40, 5  ;;  %v14665_v22 = vadd.f32 %v10996_v39, %v10995_v26  ;;  %v12155_v32 = vld [vmem:[#allocation2 + $0x74] sm:$0x1] }
 0x1ef   : > { %17449 = vst [vmem:[#allocation20_spill] sm:$0xff] %v14651_v58  ;;  %v14667_v60 = vadd.f32 %v10884_v62, %v10883_v47  ;;  %v14671_v61 = vadd.f32 %v14477_v3, %v14590_v56  ;;  %v14675_v33 = vadd.f32 %v14531_v46, %v14590_v56  ;;  %v14679_v1 = vadd.f32 %v14551_v17, %v14590_v56  ;;  %v12154_v46 = vld [vmem:[#allocation2 + $0x88] sm:$0xf] }
 0x1f0   : > { %11775 = vmatmul.mubr.bf16.gmra.mrb[132].mxu0 %v10323_v19  ;;  %17450 = vst [vmem:[#allocation10_spill] sm:$0xff] %v14665_v22  ;;  %v10998_v19 = vpop.f32.mrb[40].mxu1  ;;  %v3333_v4 = vrot.slane %v12153_v20, 5  ;;  %v14683_v26 = vadd.f32 %v14565_v42, %v14590_v56  ;;  %v3320_v39 = vsel %vm12879_vm13, %v10182_v16, %v3319_v29  ;;  %v3323_v3 = vsel %vm12879_vm13, %v3321_v50, %v3322_v2  ;;  %v12156_v22 = vld [vmem:[#allocation2 + $0x80] sm:$0x1] }
 0x1f1   : > { %11778 = vmatprep.mubr.bf16.mxu0 %v10324_v43  ;;  %v10999_v12 = vpop.f32.mrb[41].mxu1  ;;  %v3340_v24 = vrot.slane %v12154_v46, 5  ;;  %v10325_v17 = vcombine.low %v3313_v21, %v3316_v57  ;;  %v10183_v62 = vrot.slane %v3218_v11, 9  ;;  %v3329_v40 = vrot.slane %v12155_v32, 5 }
 0x1f2   : > { %v10886_v47 = vpop.f32.mrb[40].mxu0  ;;  %v11001_v43 = vpop.f32.mrb[42].mxu1  ;;  %v10184_v20 = vrot.slane %v3219_v41, 9  ;;  %v3328_v42 = vrot.slane %v3326_v0, 4  ;;  %v3336_v58 = vrot.slane %v12156_v22, 5  ;;  %v14689_v53 = vadd.f32 %v10999_v12, %v10998_v19 }
 0x1f3   : > { %v10887_v36 = vpop.f32.mrb[41].mxu0  ;;  %v11002_v55 = vpop.f32.mrb[43].mxu1  ;;  %v10326_v50 = vcombine.low %v3320_v39, %v3323_v3  ;;  %v3335_v2 = vrot.slane %v3333_v4, 4  ;;  %v10185_v46 = vrot.slane %v3220_v18, 9  ;;  %v14697_v57 = vadd.f32 %v14577_v63, %v14590_v56  ;;  %v12157_v41 = vld [vmem:[#allocation2 + $0x8c] sm:$0x1] }
 0x1f4   : > { %v14691_v29 = vadd.f32 %v10887_v36, %v10886_v47  ;;  %v10889_v16 = vpop.f32.mrb[42].mxu0  ;;  %v14693_v37 = vadd.f32 %v11002_v55, %v11001_v43  ;;  %v3342_v11 = vrot.slane %v3340_v24, 4  ;;  %v3343_v32 = vrot.slane %v12157_v41, 5  ;;  %v3221_v22 = vld [vmem:[#allocation2 + $0x90] sm:$0xe] }
 0x1f5   : > { %v10890_v21 = vpop.f32.mrb[43].mxu0  ;;  %v12158_v19 = vld [vmem:[#allocation2 + $0x94] sm:$0xf]  ;;  %v14701_v36 = vadd.f32 %v14593_v25, %v14590_v56  ;;  %v14705_v55 = vadd.f32 %v14599_v7, %v14590_v56  ;;  %v14709_v63 = vadd.f32 %v14625_v28, %v14590_v56  ;;  %v14715_v3 = vadd.f32 %v14633_v13, %v14590_v56  ;;  %v3225_v43 = vld [vmem:[#allocation2 + $0xc0] sm:$0xe] }
 0x1f6   : > { %17451 = vst [vmem:[#allocation21_spill] sm:$0xff] %v14693_v37  ;;  %v3347_v12 = vrot.slane %v12158_v19, 5  ;;  %v14711_v39 = vadd.f32 %v10890_v21, %v10889_v16  ;;  %v3327_v18 = vsel %vm12879_vm13, %v10183_v62, %v3326_v0  ;;  %v3330_v25 = vsel %vm12879_vm13, %v3328_v42, %v3329_v40  ;;  %v14736_v42 = vld [vmem:[#allocation2 + $0x9c] sm:$0xe]  ;;  %v14740_v21 = vld [vmem:[#allocation2 + $0xa0] sm:$0xf] }
 0x1f7   : > { %v3334_v7 = vsel %vm12879_vm13, %v10184_v20, %v3333_v4  ;;  %v3337_v28 = vsel %vm12879_vm13, %v3335_v2, %v3336_v58  ;;  %v14730_v13 = vsel %vm12879_vm13, %v10185_v46, %v3340_v24  ;;  %v10186_v16 = vrot.slane %v3221_v22, 9  ;;  %v12159_v4 = vld [vmem:[#allocation2 + $0x98] sm:$0x1] }
 0x1f8   : > { %11779 = vmatmul.mubr.bf16.gmra.mrb[136].mxu0 %v10325_v17  ;;  %v11004_v47 = vpop.f32.mrb[44].mxu1  ;;  %v14726_v17 = vadd.f32 %v10882_v35, %v14590_v56  ;;  %v14734_v62 = vsel %vm12879_vm13, %v3342_v11, %v3343_v32  ;;  %v3349_v40 = vrot.slane %v3347_v12, 4  ;;  %v3350_v20 = vrot.slane %v12159_v4, 5 }
 0x1f9   : > { %11782 = vmatprep.mubr.bf16.mxu0 %v10326_v50  ;;  %v11005_v0 = vpop.f32.mrb[45].mxu1  ;;  %v10327_v2 = vcombine.low %v3327_v18, %v3330_v25  ;;  %v17342_v24 = vrot.slane %v14740_v21, 5  ;;  %v10190_v22 = vrot.slane %v3225_v43, 9  ;;  %v3375_v11 = vrot.slane %v14385_v34, 5  ;;  %v12007_v18 = vld [vmem:[%s17322_s4 + $0x58] sm:$0xff]  }
 0x1fa   : > { %v10892_v50 = vpop.f32.mrb[44].mxu0  ;;  %v14738_v58 = vadd.f32 %v11005_v0, %v11004_v47  ;;  %v11007_v35 = vpop.f32.mrb[46].mxu1  ;;  %v14746_v32 = vadd.f32 %v14667_v60, %v14590_v56  ;;  %v3378_v47 = vrot.slane %v14407_v49, 5  ;;  %v12008_v25 = vld [vmem:[%s17322_s4 + $0x18] sm:$0xff]   ;;  %v10328_v43 = vcombine.low %v3334_v7, %v3337_v28  ;;  %11288 = vmatprep.subr.bf16.mxu1 %v12007_v18  ;;  %v12163_v18 = vld [vmem:[#allocation2 + $0xb0] sm:$0x1] }
 0x1fb   : > { %v10893_v46 = vpop.f32.mrb[45].mxu0  ;;  %v11008_v41 = vpop.f32.mrb[47].mxu1  ;;  %v10329_v34 = vcombine.low %v14730_v13, %v14734_v62  ;;  %v3348_v60 = vsel %vm12879_vm13, %v10186_v16, %v3347_v12  ;;  %v14770_v7 = vsel %vm12879_vm13, %v10190_v22, %v3375_v11  ;;  %v3377_v28 = vrot.slane %v3375_v11, 4  ;;  %v12161_v16 = vld [vmem:[#allocation2 + $0xa4] sm:$0x1]  ;;  %11289 = vmatpush3.bf16.msra.mxu1 %v12008_v25 }
 0x1fc   : > { %v10894_v19 = vadd.f32 %v10893_v46, %v10892_v50  ;;  %v10895_v4 = vpop.f32.mrb[46].mxu0  ;;  %v14748_v37 = vadd.f32 %v11008_v41, %v11007_v35  ;;  %v14762_v50 = vld [vmem:[#allocation2 + $0xa8] sm:$0xe]  ;;  %v3351_v35 = vsel %vm12879_vm13, %v3349_v40, %v3350_v20  ;;  %v4709_v12 = vadd.f32 %v14691_v29, %v14590_v56 }
 0x1fd   : > { %v10896_v49 = vpop.f32.mrb[47].mxu0  ;;  %v3356_v13 = vrot.slane %v17342_v24, 4  ;;  %v3357_v62 = vrot.slane %v12161_v16, 5  ;;  %v14778_v40 = vadd.f32 %v14215_v48, %v14603_v51  ;;  %v10188_v20 = vrot.slane %v14762_v50, 9 }
 0x1fe   : > { %v14766_v46 = vadd.f32 %v10896_v49, %v10895_v4  ;;  %v14783_v22 = vsel %vm12879_vm13, %v3377_v28, %v3378_v47  ;;  %v14787_v29 = vadd.f32 %v14218_v31, %v14607_v44  ;;  %v10330_v4 = vcombine.low %v3348_v60, %v3351_v35  ;;  %v17452_v28 = vld [vmem:[#allocation15_spill] sm:$0xff]  ;;  %v17453_v31 = vld [vmem:[#allocation17_spill] sm:$0xff] }
 0x1ff   : > { %v14793_v25 = vadd.f32 %v14250_v8, %v14629_v15  ;;  %v14799_v16 = vadd.f32 %v17452_v28, %v14637_v23  ;;  %v14803_v44 = vadd.f32 %v17453_v31, %v14641_v54  ;;  %v17454_v60 = vld [vmem:[#allocation13_spill] sm:$0xff]  ;;  %v4712_v8 = vadd.f32 %v14711_v39, %v14590_v56  ;;  %v17456_v23 = vld [vmem:[#allocation14_spill] sm:$0xff]  ;;  %v17458_v39 = vld [vmem:[#allocation19_spill] sm:$0xff] }
 0x200   : > { %11783 = vmatmul.mubr.bf16.gmra.mrb[140].mxu0 %v10327_v2  ;;  %v12162_v2 = vld [vmem:[#allocation2 + $0xac] sm:$0xf]  ;;  %v11010_v11 = vpop.f32.mrb[48].mxu1  ;;  %v14807_v35 = vadd.f32 %v17454_v60, %v14645_v9  ;;  %v14827_v0 = vadd.f32 %v17458_v39, %v14671_v61  ;;  %v4717_v61 = vadd.f32 %v10894_v19, %v14590_v56 }
 0x201   : > { %11786 = vmatprep.mubr.bf16.mxu0 %v10328_v43  ;;  %v3361_v41 = vrot.slane %v12162_v2, 5  ;;  %v3364_v43 = vrot.slane %v12163_v18, 5  ;;  %v11011_v51 = vpop.f32.mrb[49].mxu1  ;;  %v17457_v54 = vld [vmem:[#allocation22_spill] sm:$0xff] }
 0x202   : > { %v10898_v50 = vpop.f32.mrb[48].mxu0  ;;  %v14795_v49 = vadd.f32 %v11011_v51, %v11010_v11  ;;  %v11013_v47 = vpop.f32.mrb[50].mxu1  ;;  %v17455_v11 = vld [vmem:[#allocation18_spill] sm:$0xff]  ;;  %v14817_v51 = vadd.f32 %v17456_v23, %v14655_v38  ;;  %v14821_v28 = vadd.f32 %v17457_v54, %v14659_v59  ;;  %v14835_v38 = vadd.f32 %v14543_v30, %v14679_v1 }
 0x203   : > { %v10899_v15 = vpop.f32.mrb[49].mxu0  ;;  %v11014_v2 = vpop.f32.mrb[51].mxu1  ;;  %v14813_v18 = vadd.f32 %v17455_v11, %v14649_v45  ;;  %v3363_v31 = vrot.slane %v3361_v41, 4  ;;  %v14831_v45 = vadd.f32 %v14527_v27, %v14675_v33  ;;  %v14839_v59 = vadd.f32 %v14561_v6, %v14683_v26  ;;  %v17459_v6 = vld [vmem:[#allocation23_spill] sm:$0xff]  ;;  %v17461_v26 = vld [vmem:[#allocation20_spill] sm:$0xff] }
 0x204   : > { %v10900_v9 = vadd.f32 %v10899_v15, %v10898_v50  ;;  %v10901_v60 = vpop.f32.mrb[50].mxu0  ;;  %v14823_v48 = vadd.f32 %v11014_v2, %v11013_v47  ;;  %v14843_v50 = vadd.f32 %v14573_v52, %v14697_v57  ;;  %v14850_v27 = vadd.f32 %v14585_v5, %v14701_v36  ;;  %v17460_v52 = vld [vmem:[#allocation24_spill] sm:$0xff]  ;;  %v17462_v5 = vld [vmem:[#allocation10_spill] sm:$0xff] }
 0x205   : > { %v10902_v24 = vpop.f32.mrb[51].mxu0  ;;  %v14854_v30 = vadd.f32 %v14597_v14, %v14705_v55  ;;  %v14858_v33 = vadd.f32 %v17459_v6, %v14709_v63  ;;  %v14862_v1 = vadd.f32 %v17460_v52, %v14715_v3  ;;  %v14866_v57 = vadd.f32 %v17461_v26, %v14726_v17  ;;  %v17463_v55 = vld [vmem:[#allocation21_spill] sm:$0xff]  ;;  %v17467_v6 = vld [vmem:[#allocation16_spill] sm:$0xff] }
 0x206   : > { %v14846_v47 = vadd.f32 %v10902_v24, %v10901_v60  ;;  %v14870_v36 = vadd.f32 %v17462_v5, %v14746_v32  ;;  %v14873_v14 = vadd.f32 %v14689_v53, %v4709_v12  ;;  %v14876_v19 = vadd.f32 %v17463_v55, %v4712_v8  ;;  %v3224_v8 = vld [vmem:[#allocation2 + $0xb4] sm:$0xe] }
 0x207   : > { %v17464_v63 = vrot.slane %v14740_v21, 5  ;;  %v17465_v3 = vrot.slane %v14736_v42, 9  ;;  %v3358_v17 = vsel %vm12879_vm13, %v3356_v13, %v3357_v62  ;;  %v3362_v53 = vsel %vm12879_vm13, %v10188_v20, %v3361_v41 }
 0x208   : > { %11787 = vmatmul.mubr.bf16.gmra.mrb[144].mxu0 %v10329_v34  ;;  %v11016_v24 = vpop.f32.mrb[52].mxu1  ;;  %v3365_v12 = vsel %vm12879_vm13, %v3363_v31, %v3364_v43  ;;  %v4720_v11 = vadd.f32 %v14766_v46, %v14590_v56  ;;  %v14896_v13 = vadd.f32 %v14738_v58, %v4717_v61  ;;  %v10189_v43 = vrot.slane %v3224_v8, 9  ;;  %v17468_v46 = vld [vmem:[#allocation11_spill] sm:$0xff]  ;;  %v3226_v58 = vld [vmem:[#allocation2 + $0xcc] sm:$0xe] }
 0x209   : > { %11790 = vmatprep.mubr.bf16.mxu0 %v10330_v4  ;;  %v3355_v34 = vsel %vm12879_vm13, %v17465_v3, %v17464_v63  ;;  %v17466_v4 = vld [vmem:[#allocation12_spill] sm:$0xff]  ;;  %v11017_v15 = vpop.f32.mrb[53].mxu1  ;;  %v10332_v41 = vcombine.low %v3362_v53, %v3365_v12  ;;  %v3371_v52 = vrot.slane %v17467_v6, 5  ;;  %v10191_v8 = vrot.slane %v3226_v58, 9 }
 0x20a   : > { %v3368_v32 = vrot.slane %v17466_v4, 5  ;;  %v10904_v2 = vpop.f32.mrb[52].mxu0  ;;  %v14891_v21 = vadd.f32 %v11017_v15, %v11016_v24  ;;  %v11019_v42 = vpop.f32.mrb[54].mxu1  ;;  %v10331_v62 = vcombine.low %v3355_v34, %v3358_v17  ;;  %v3382_v24 = vrot.slane %v17468_v46, 5  ;;  %v12009_v17 = vld [vmem:[%s17322_s4 + $0x60] sm:$0xff]  }
 0x20b   : > { %v10905_v23 = vpop.f32.mrb[53].mxu0  ;;  %v11020_v54 = vpop.f32.mrb[55].mxu1  ;;  %v14903_v55 = vadd.f32 %v14748_v37, %v4720_v11  ;;  %v12010_v4 = vld [vmem:[%s17322_s4 + $0x20] sm:$0xff]   ;;  %v4725_v37 = vadd.f32 %v10900_v9, %v14590_v56  ;;  %11290 = vmatprep.subr.bf16.mxu1 %v12009_v17  ;;  %v4728_v9 = vadd.f32 %v14846_v47, %v14590_v56 }
 0x20c   : > { %v10906_v60 = vadd.f32 %v10905_v23, %v10904_v2  ;;  %v10907_v39 = vpop.f32.mrb[54].mxu0  ;;  %v14898_v20 = vadd.f32 %v11020_v54, %v11019_v42  ;;  %v3370_v31 = vrot.slane %v3368_v32, 4  ;;  %v3369_v63 = vsel %vm12879_vm13, %v10189_v43, %v3368_v32  ;;  %v17469_v2 = vld [vmem:[#allocation8_spill] sm:$0xff]  ;;  %11291 = vmatpush3.bf16.msra.mxu1 %v12010_v4 }
 0x20d   : > { %v10908_v26 = vpop.f32.mrb[55].mxu0  ;;  %v3384_v32 = vrot.slane %v3382_v24, 4  ;;  %v3385_v42 = vrot.slane %v17469_v2, 5  ;;  %v14922_v6 = vadd.f32 %v14795_v49, %v4725_v37  ;;  %v14932_v17 = vadd.f32 %v14823_v48, %v4728_v9 }
 0x20e   : > { %v10909_v5 = vadd.f32 %v10908_v26, %v10907_v39  ;;  %v3372_v3 = vsel %vm12879_vm13, %v3370_v31, %v3371_v52  ;;  %v17470_v52 = vcombine.low %v14770_v7, %v14783_v22  ;;  %v3383_v26 = vsel %vm12879_vm13, %v10191_v8, %v3382_v24 }
 0x20f   : > { %v10333_v54 = vcombine.low %v3369_v63, %v3372_v3  ;;  %v3386_v46 = vsel %vm12879_vm13, %v3384_v32, %v3385_v42 }
 0x210   : > { %11791 = vmatmul.mubr.bf16.gmra.mrb[148].mxu0 %v10331_v62  ;;  %v11022_v61 = vpop.f32.mrb[56].mxu1  ;;  %v10335_v63 = vcombine.low %v3383_v26, %v3386_v46  ;;  %v4736_v32 = vadd.f32 %v10909_v5, %v14590_v56 }
 0x211   : > { %11794 = vmatprep.mubr.bf16.mxu0 %v10332_v41  ;;  %v11023_v34 = vpop.f32.mrb[57].mxu1 }
 0x212   : > { %v10910_v15 = vpop.f32.mrb[56].mxu0  ;;  %v14916_v53 = vadd.f32 %v11023_v34, %v11022_v61  ;;  %v11025_v12 = vpop.f32.mrb[58].mxu1  ;;  %v14944_v26 = vadd.f32 %v14898_v20, %v4736_v32 }
 0x213   : > { %v10911_v11 = vpop.f32.mrb[57].mxu0  ;;  %v11026_v23 = vpop.f32.mrb[59].mxu1 }
 0x214   : > { %v10912_v62 = vadd.f32 %v10911_v11, %v10910_v15  ;;  %v10913_v39 = vpop.f32.mrb[58].mxu0  ;;  %v11027_v41 = vadd.f32 %v11026_v23, %v11025_v12  ;;  %v4733_v15 = vadd.f32 %v10906_v60, %v14590_v56 }
 0x215   : > { %v10914_v43 = vpop.f32.mrb[59].mxu0 }
 0x216   : > { %v10915_v31 = vadd.f32 %v10914_v43, %v10913_v39  ;;  %v14937_v42 = vadd.f32 %v14891_v21, %v4733_v15  ;;  %v4741_v5 = vadd.f32 %v10912_v62, %v14590_v56 }
 0x218   : > { %11795 = vmatmul.mubr.bf16.gmra.mrb[152].mxu0 %v10333_v54  ;;  %v11028_v58 = vpop.f32.mrb[60].mxu1  ;;  %v4744_v20 = vadd.f32 %v10915_v31, %v14590_v56 }
 0x219   : > { %11798 = vmatprep.mubr.bf16.mxu0 %v17470_v52  ;;  %v11029_v61 = vpop.f32.mrb[61].mxu1 }
 0x21a   : > { %v10916_v3 = vpop.f32.mrb[60].mxu0  ;;  %v11030_v34 = vadd.f32 %v11029_v61, %v11028_v58  ;;  %v11031_v47 = vpop.f32.mrb[62].mxu1  ;;  %v12011_v58 = vld [vmem:[%s17322_s4 + $0x68] sm:$0xff]  }
 0x21b   : > { %v10917_v49 = vpop.f32.mrb[61].mxu0  ;;  %v11032_v4 = vpop.f32.mrb[63].mxu1  ;;  %11292 = vmatprep.subr.bf16.mxu1 %v12011_v58 }
 0x21c   : > { %v10918_v37 = vadd.f32 %v10917_v49, %v10916_v3  ;;  %v10919_v7 = vpop.f32.mrb[62].mxu0  ;;  %v11033_v22 = vadd.f32 %v11032_v4, %v11031_v47  ;;  %v12012_v3 = vld [vmem:[%s17322_s4 + $0x28] sm:$0xff]   ;;  %v14961_v4 = vadd.f32 %v14916_v53, %v4741_v5 }
 0x21d   : > { %v10920_v24 = vpop.f32.mrb[63].mxu0  ;;  %11293 = vmatpush3.bf16.msra.mxu1 %v12012_v3 }
 0x21e   : > { %v10921_v12 = vadd.f32 %v10920_v24, %v10919_v7  ;;  %v4749_v32 = vadd.f32 %v10918_v37, %v14590_v56 }
 0x220   : > { %11799 = vmatmul.mubr.bf16.gmra.mrb[156].mxu0 %v10335_v63  ;;  %v11162_v8 = vpop.f32.mrb[64].mxu1  ;;  %v14969_v53 = vadd.f32 %v11030_v34, %v4749_v32  ;;  %v12013_v34 = vld [vmem:[%s17322_s4 + $0x70] sm:$0xff]  }
 0x221   : > { %v11163_v2 = vpop.f32.mrb[65].mxu1  ;;  %11294 = vmatprep.subr.bf16.mxu1 %v12013_v34 }
 0x222   : > { %v11050_v11 = vpop.f32.mrb[64].mxu0  ;;  %v14939_v48 = vadd.f32 %v11163_v2, %v11162_v8  ;;  %v11165_v23 = vpop.f32.mrb[66].mxu1 }
 0x223   : > { %v11051_v54 = vpop.f32.mrb[65].mxu0  ;;  %v11166_v39 = vpop.f32.mrb[67].mxu1 }
 0x224   : > { %v11052_v43 = vadd.f32 %v11051_v54, %v11050_v11  ;;  %v11053_v9 = vpop.f32.mrb[66].mxu0  ;;  %v14941_v52 = vadd.f32 %v11166_v39, %v11165_v23  ;;  %v14964_v11 = vadd.f32 %v11027_v41, %v4744_v20  ;;  %v4752_v39 = vadd.f32 %v10921_v12, %v14590_v56  ;;  %v12014_v12 = vld [vmem:[%s17322_s4 + $0xc0] sm:$0xff]  }
 0x225   : > { %v11054_v60 = vpop.f32.mrb[67].mxu0  ;;  %11394 = vmatprep.subr.bf16.mxu0 %v12014_v12 }
 0x226   : > { %v14948_v46 = vadd.f32 %v11052_v43, %v14778_v40  ;;  %v11055_v21 = vadd.f32 %v11054_v60, %v11053_v9  ;;  %v14975_v41 = vadd.f32 %v11033_v22, %v4752_v39 }
 0x228   : > { %v14954_v61 = vadd.f32 %v11055_v21, %v14787_v29  ;;  %v11168_v63 = vpop.f32.mrb[68].mxu1 }
 0x229   : > { %v11169_v47 = vpop.f32.mrb[69].mxu1 }
 0x22a   : > { %v11056_v62 = vpop.f32.mrb[68].mxu0  ;;  %v11170_v40 = vadd.f32 %v11169_v47, %v11168_v63  ;;  %v11171_v49 = vpop.f32.mrb[70].mxu1  ;;  %v12015_v47 = vld [vmem:[%s17322_s4 + $0x30] sm:$0xff]  }
 0x22b   : > { %v11057_v7 = vpop.f32.mrb[69].mxu0  ;;  %v11172_v15 = vpop.f32.mrb[71].mxu1  ;;  %11295 = vmatpush3.bf16.msra.mxu1 %v12015_v47  ;;  %v15001_v47 = vadd.f32 %v14939_v48, %v14948_v46  ;;  %v12018_v48 = vld [vmem:[%s17322_s4 + $0x88] sm:$0xff]   ;;  %v12019_v46 = vld [vmem:[%s17322_s4 + $0xd0] sm:$0xff]  }
 0x22c   : > { %v11058_v29 = vadd.f32 %v11057_v7, %v11056_v62  ;;  %v11059_v24 = vpop.f32.mrb[70].mxu0  ;;  %v11173_v8 = vadd.f32 %v11172_v15, %v11171_v49 }
 0x22d   : > { %v11060_v2 = vpop.f32.mrb[71].mxu0 }
 0x22e   : > { %v4959_v31 = vadd.f32 %v11058_v29, %v14793_v25  ;;  %v11061_v23 = vadd.f32 %v11060_v2, %v11059_v24 }
 0x230   : > { %v4962_v54 = vadd.f32 %v11061_v23, %v14799_v16  ;;  %v11174_v43 = vpop.f32.mrb[72].mxu1  ;;  %v14987_v22 = vadd.f32 %v11170_v40, %v4959_v31 }
 0x231   : > { %v11175_v9 = vpop.f32.mrb[73].mxu1 }
 0x232   : > { %v14971_v60 = vadd.f32 %v11175_v9, %v11174_v43  ;;  %v11177_v5 = vpop.f32.mrb[74].mxu1 }
 0x233   : > { %v11178_v58 = vpop.f32.mrb[75].mxu1 }
 0x234   : > { %v11062_v21 = vpop.f32.mrb[72].mxu0  ;;  %v14973_v63 = vadd.f32 %v11178_v58, %v11177_v5 }
 0x235   : > { %v11063_v37 = vpop.f32.mrb[73].mxu0 }
 0x236   : > { %v11064_v25 = vadd.f32 %v11063_v37, %v11062_v21  ;;  %v11065_v3 = vpop.f32.mrb[74].mxu0 }
 0x237   : > { %v11066_v20 = vpop.f32.mrb[75].mxu0 }
 0x238   : > { %v4967_v16 = vadd.f32 %v11064_v25, %v14803_v44  ;;  %v11067_v56 = vadd.f32 %v11066_v20, %v11065_v3  ;;  %v11180_v49 = vpop.f32.mrb[76].mxu1  ;;  %v12016_v44 = vld [vmem:[%s17322_s4 + $0x80] sm:$0xff]  }
 0x239   : > { %v11181_v7 = vpop.f32.mrb[77].mxu1  ;;  %11395 = vmatpush3.bf16.msra.mxu0 %v12016_v44 }
 0x23a   : > { %v14990_v62 = vadd.f32 %v11067_v56, %v14807_v35  ;;  %v11182_v15 = vadd.f32 %v11181_v7, %v11180_v49  ;;  %v11183_v29 = vpop.f32.mrb[78].mxu1  ;;  %v12017_v7 = vld [vmem:[%s17322_s4 + $0xc8] sm:$0xff]  }
 0x23b   : > { %v11184_v24 = vpop.f32.mrb[79].mxu1  ;;  %11396 = vmatprep.subr.bf16.mxu0 %v12017_v7 }
 0x23c   : > { %v11185_v2 = vadd.f32 %v11184_v24, %v11183_v29  ;;  %v15011_v29 = vadd.f32 %v14941_v52, %v14954_v61  ;;  %v12020_v52 = vld [vmem:[%s17322_s4 + $0x90] sm:$0xff]  }
 0x23d   : > { %v11068_v32 = vpop.f32.mrb[76].mxu0  ;;  %11397 = vmatpush3.bf16.msra.mxu0 %v12018_v48 }
 0x23e   : > { %v11069_v40 = vpop.f32.mrb[77].mxu0  ;;  %11398 = vmatprep.subr.bf16.mxu0 %v12019_v46  ;;  %v12023_v46 = vld [vmem:[%s17322_s4 + $0x78] sm:$0xff]  }
 0x23f   : > { %v11070_v31 = vadd.f32 %v11069_v40, %v11068_v32  ;;  %v11071_v23 = vpop.f32.mrb[78].mxu0  ;;  %11296 = vmatprep.subr.bf16.mxu1 %v12023_v46 }
 0x240   : > { %v11072_v35 = vpop.f32.mrb[79].mxu0 }
 0x241   : > { %v4975_v39 = vadd.f32 %v11070_v31, %v14813_v18  ;;  %v11073_v43 = vadd.f32 %v11072_v35, %v11071_v23  ;;  %v15003_v18 = vadd.f32 %v11173_v8, %v4962_v54  ;;  %v15026_v35 = vadd.f32 %v14971_v60, %v4967_v16  ;;  %11399 = vmatpush3.bf16.msra.mxu0 %v12020_v52 }
 0x242   : > { %v11186_v5 = vpop.f32.mrb[80].mxu1 }
 0x243   : > { %v4978_v9 = vadd.f32 %v11073_v43, %v14817_v51  ;;  %v11187_v21 = vpop.f32.mrb[81].mxu1  ;;  %v15019_v8 = vadd.f32 %v11182_v15, %v4975_v39 }
 0x244   : > { %v11188_v58 = vadd.f32 %v11187_v21, %v11186_v5  ;;  %v11189_v37 = vpop.f32.mrb[82].mxu1 }
 0x245   : > { %v11190_v3 = vpop.f32.mrb[83].mxu1  ;;  %v15028_v39 = vadd.f32 %v11185_v2, %v4978_v9  ;;  %v12021_v2 = vld [vmem:[%s17322_s4 + $0xd8] sm:$0xff]  }
 0x246   : > { %v11074_v25 = vpop.f32.mrb[80].mxu0  ;;  %v14997_v56 = vadd.f32 %v11190_v3, %v11189_v37  ;;  %11400 = vmatprep.subr.bf16.mxu0 %v12021_v2 }
 0x247   : > { %v11075_v20 = vpop.f32.mrb[81].mxu0 }
 0x248   : > { %v11076_v34 = vadd.f32 %v11075_v20, %v11074_v25  ;;  %v11077_v12 = vpop.f32.mrb[82].mxu0 }
 0x249   : > { %v11078_v49 = vpop.f32.mrb[83].mxu0 }
 0x24a   : > { %v4983_v51 = vadd.f32 %v11076_v34, %v14821_v28  ;;  %v11079_v44 = vadd.f32 %v11078_v49, %v11077_v12  ;;  %v11192_v24 = vpop.f32.mrb[84].mxu1 }
 0x24b   : > { %v11193_v54 = vpop.f32.mrb[85].mxu1 }
 0x24c   : > { %v4986_v28 = vadd.f32 %v11079_v44, %v14827_v0  ;;  %v11194_v32 = vadd.f32 %v11193_v54, %v11192_v24  ;;  %v11195_v40 = vpop.f32.mrb[86].mxu1  ;;  %v12024_v54 = vld [vmem:[%s17322_s4 + $0xe0] sm:$0xff]  }
 0x24d   : > { %v11196_v61 = vpop.f32.mrb[87].mxu1 }
 0x24e   : > { %v11197_v31 = vadd.f32 %v11196_v61, %v11195_v40  ;;  %v15050_v40 = vadd.f32 %v11188_v58, %v4983_v51  ;;  %v12026_v61 = vld [vmem:[%s17322_s4 + $0xa0] sm:$0xff]  }
 0x250   : > { %v11080_v23 = vpop.f32.mrb[84].mxu0 }
 0x251   : > { %v11081_v15 = vpop.f32.mrb[85].mxu0 }
 0x252   : > { %v11082_v0 = vadd.f32 %v11081_v15, %v11080_v23  ;;  %v11083_v43 = vpop.f32.mrb[86].mxu0 }
 0x253   : > { %v11084_v5 = vpop.f32.mrb[87].mxu0 }
 0x254   : > { %v4991_v21 = vadd.f32 %v11082_v0, %v14831_v45  ;;  %v11085_v37 = vadd.f32 %v11084_v5, %v11083_v43  ;;  %v11198_v25 = vpop.f32.mrb[88].mxu1  ;;  %v15037_v45 = vadd.f32 %v14973_v63, %v14990_v62  ;;  %v12027_v0 = vld [vmem:[%s17322_s4 + $0xe8] sm:$0xff]   ;;  %v15066_v43 = vadd.f32 %v14997_v56, %v4986_v28  ;;  %v12030_v56 = vld [vmem:[%s17322_s4 + $0xb0] sm:$0xff]  }
 0x255   : > { %v11199_v3 = vpop.f32.mrb[89].mxu1 }
 0x256   : > { %v4994_v20 = vadd.f32 %v11085_v37, %v14835_v38  ;;  %v11200_v34 = vadd.f32 %v11199_v3, %v11198_v25  ;;  %v11201_v12 = vpop.f32.mrb[90].mxu1  ;;  %v15039_v9 = vadd.f32 %v11194_v32, %v4991_v21  ;;  %v12022_v38 = vld [vmem:[%s17322_s4 + $0x98] sm:$0xff]   ;;  %v12029_v37 = vld [vmem:[%s17322_s4 + $0xf0] sm:$0xff]  }
 0x257   : > { %v11202_v49 = vpop.f32.mrb[91].mxu1  ;;  %v12025_v32 = vld [vmem:[%s17322_s4 + $0x38] sm:$0xff]   ;;  %11401 = vmatpush3.bf16.msra.mxu0 %v12022_v38 }
 0x258   : > { %v11086_v44 = vpop.f32.mrb[88].mxu0  ;;  %v11203_v60 = vadd.f32 %v11202_v49, %v11201_v12  ;;  %v15052_v52 = vadd.f32 %v11197_v31, %v4994_v20  ;;  %11402 = vmatprep.subr.bf16.mxu0 %v12024_v54  ;;  %11297 = vmatpush3.bf16.msra.mxu1 %v12025_v32 }
 0x259   : > { %v11087_v16 = vpop.f32.mrb[89].mxu0 }
 0x25a   : > { %v11088_v7 = vadd.f32 %v11087_v16, %v11086_v44  ;;  %v11089_v24 = vpop.f32.mrb[90].mxu0 }
 0x25b   : > { %v11090_v48 = vpop.f32.mrb[91].mxu0  ;;  %11403 = vmatpush3.bf16.msra.mxu0 %v12026_v61 }
 0x25c   : > { %v4999_v63 = vadd.f32 %v11088_v7, %v14839_v59  ;;  %v11091_v62 = vadd.f32 %v11090_v48, %v11089_v24  ;;  %11404 = vmatprep.subr.bf16.mxu0 %v12027_v0 }
 0x25e   : > { %v5002_v23 = vadd.f32 %v11091_v62, %v14843_v50  ;;  %v11204_v58 = vpop.f32.mrb[92].mxu1  ;;  %v12028_v50 = vld [vmem:[%s17322_s4 + $0xa8] sm:$0xff]   ;;  %v15078_v16 = vadd.f32 %v11200_v34, %v4999_v63  ;;  %v12031_v34 = vld [vmem:[%s17322_s4 + $0xf8] sm:$0xff]  }
 0x25f   : > { %v11205_v51 = vpop.f32.mrb[93].mxu1  ;;  %11405 = vmatpush3.bf16.msra.mxu0 %v12028_v50 }
 0x260   : > { %v11206_v31 = vadd.f32 %v11205_v51, %v11204_v58  ;;  %v11207_v59 = vpop.f32.mrb[94].mxu1  ;;  %11406 = vmatprep.subr.bf16.mxu0 %v12029_v37  ;;  %v15092_v63 = vadd.f32 %v11203_v60, %v5002_v23  ;;  %v6050_v58 = vld [vmem:[#allocation3] sm:$0xf]  ;;  %v12035_v23 = vld [vmem:[%s17322_s4 + $0x140] sm:$0xff]  }
 0x261   : > { %v11208_v15 = vpop.f32.mrb[95].mxu1  ;;  %v12032_v51 = vld [vmem:[%s17322_s4 + $0xb8] sm:$0xff]   ;;  %v6099_v0 = vshrl.u32 %v6050_v58, 16  ;;  %v6102_v50 = vshll.u32 %v6050_v58, 16  ;;  %11506 = vmatprep.subr.bf16.mxu1 %v12035_v23 }
 0x262   : > { %v11209_v21 = vadd.f32 %v11208_v15, %v11207_v59  ;;  %17471 = vst [vmem:[#allocation15_spill] sm:$0xff] %v15092_v63  ;;  %v6051_v59 = vld [vmem:[#allocation3 + $0x4] sm:$0xf]  ;;  %v6082_v15 = vld [vmem:[#allocation3 + $0x8] sm:$0x1] }
 0x263   : > { %v11092_v5 = vpop.f32.mrb[92].mxu0  ;;  %11407 = vmatpush3.bf16.msra.mxu0 %v12030_v56  ;;  %v6108_v37 = vshll.u32 %v6051_v59, 16  ;;  %v6482_v60 = vld [vmem:[#allocation3] sm:$0xe] }
 0x264   : > { %v11093_v25 = vpop.f32.mrb[93].mxu0  ;;  %11408 = vmatprep.subr.bf16.mxu0 %v12031_v34  ;;  %v6548_v34 = vrot.slane %v6051_v59, 5 }
 0x265   : > { %v11094_v3 = vadd.f32 %v11093_v25, %v11092_v5  ;;  %v11095_v20 = vpop.f32.mrb[94].mxu0 }
 0x266   : > { %v11096_v12 = vpop.f32.mrb[95].mxu0 }
 0x267   : > { %v5007_v28 = vadd.f32 %v11094_v3, %v14850_v27  ;;  %v11097_v49 = vadd.f32 %v11096_v12, %v11095_v20  ;;  %v11210_v44 = vpop.f32.mrb[96].mxu1  ;;  %11409 = vmatpush3.bf16.msra.mxu0 %v12032_v51  ;;  %v6101_v3 = vrot.slane %v6099_v0, 4  ;;  %v6112_v20 = vshrl.u32 %v6051_v59, 16 }
 0x268   : > { %v11211_v7 = vpop.f32.mrb[97].mxu1  ;;  %v6118_v12 = vshll.u32 %v6082_v15, 16 }
 0x269   : > { %v5010_v24 = vadd.f32 %v11097_v49, %v14854_v30  ;;  %v15081_v2 = vadd.f32 %v11211_v7, %v11210_v44  ;;  %v11213_v48 = vpop.f32.mrb[98].mxu1  ;;  %v15083_v38 = vadd.f32 %v11206_v31, %v5007_v28  ;;  %v6104_v49 = vrot.slane %v6102_v50, 5 }
 0x26a   : > { %v11214_v46 = vpop.f32.mrb[99].mxu1  ;;  %v6110_v44 = vrot.slane %v6108_v37, 5 }
 0x26b   : > { %v15085_v54 = vadd.f32 %v11214_v46, %v11213_v48  ;;  %v15087_v62 = vadd.f32 %v11209_v21, %v5010_v24  ;;  %v6114_v24 = vrot.slane %v6112_v20, 4  ;;  %v10441_v48 = vrot.slane %v6482_v60, 9 }
 0x26c   : > { %v11098_v27 = vpop.f32.mrb[96].mxu0 }
 0x26d   : > { %v11099_v32 = vpop.f32.mrb[97].mxu0  ;;  %v6115_v51 = vor.u32 %v6114_v24, %v6110_v44 }
 0x26e   : > { %v11100_v30 = vadd.f32 %v11099_v32, %v11098_v27  ;;  %v11101_v61 = vpop.f32.mrb[98].mxu0  ;;  %v6105_v27 = vor.u32 %v6104_v49, %v6101_v3  ;;  %v6551_v32 = vrot.slane %v6082_v15, 5  ;;  %v10489_v15 = vcombine.low %v6050_v58, %v6051_v59 }
 0x26f   : > { %v11102_v31 = vpop.f32.mrb[99].mxu0  ;;  %v6116_v23 = vrot.slane %v6115_v51, 4 }
 0x270   : > { %v5015_v5 = vadd.f32 %v11100_v30, %v14858_v33  ;;  %v11103_v21 = vadd.f32 %v11102_v31, %v11101_v61  ;;  %v6120_v31 = vrot.slane %v6118_v12, 5  ;;  %v6106_v63 = vrot.slane %v6105_v27, 4 }
 0x271   : > { %v11216_v25 = vpop.f32.mrb[100].mxu1 }
 0x272   : > { %v5018_v56 = vadd.f32 %v11103_v21, %v14862_v1  ;;  %v11217_v28 = vpop.f32.mrb[101].mxu1  ;;  %v15104_v1 = vsel %vm12879_vm13, %v10441_v48, %v6548_v34  ;;  %v6550_v21 = vrot.slane %v6548_v34, 4  ;;  %v6111_v3 = vsel %vm12869_vm11, %v6106_v63, %v6110_v44  ;;  %v12037_v48 = vld [vmem:[%s17322_s4 + $0x100] sm:$0xff]  }
 0x273   : > { %v11218_v33 = vadd.f32 %v11217_v28, %v11216_v25  ;;  %v11219_v7 = vpop.f32.mrb[102].mxu1  ;;  %v6121_v49 = vsel %vm12869_vm11, %v6116_v23, %v6120_v31  ;;  %v15121_v63 = vadd.f32 %v15081_v2, %v5015_v5 }
 0x274   : > { %v11220_v46 = vpop.f32.mrb[103].mxu1  ;;  %v15110_v20 = vsel %vm12879_vm13, %v6550_v21, %v6551_v32  ;;  %v10505_v24 = vcombine.low %v6111_v3, %v6121_v49 }
 0x275   : > { %v11104_v30 = vpop.f32.mrb[100].mxu0  ;;  %v11221_v61 = vadd.f32 %v11220_v46, %v11219_v7  ;;  %v10521_v7 = vcombine.low %v15104_v1, %v15110_v20  ;;  %v15127_v46 = vadd.f32 %v15085_v54, %v5018_v56 }
 0x276   : > { %v11105_v0 = vpop.f32.mrb[101].mxu0  ;;  %9114 = vmatprep.mubr.bf16.mxu1 %v10505_v24 }
 0x277   : > { %v11106_v50 = vadd.f32 %v11105_v0, %v11104_v30  ;;  %v11107_v37 = vpop.f32.mrb[102].mxu0  ;;  %9115 = vmatmul.mubr.bf16.vlgmr.msra.gmra.mrb[128].mxu1 %v10489_v15 }
 0x278   : > { %v11108_v25 = vpop.f32.mrb[103].mxu0  ;;  %11507 = vmatpush3.bf16.msra.mxu1 %v12037_v48 }
 0x279   : > { %v5023_v12 = vadd.f32 %v11106_v50, %v14866_v57  ;;  %v11109_v28 = vadd.f32 %v11108_v25, %v11107_v37 }
 0x27b   : > { %v5026_v58 = vadd.f32 %v11109_v28, %v14870_v36  ;;  %v11222_v59 = vpop.f32.mrb[104].mxu1  ;;  %v15124_v44 = vadd.f32 %v11218_v33, %v5023_v12 }
 0x27c   : > { %v11223_v57 = vpop.f32.mrb[105].mxu1 }
 0x27d   : > { %v11224_v27 = vadd.f32 %v11223_v57, %v11222_v59  ;;  %v11225_v32 = vpop.f32.mrb[106].mxu1  ;;  %v15129_v34 = vadd.f32 %v11221_v61, %v5026_v58 }
 0x27e   : > { %v11226_v30 = vpop.f32.mrb[107].mxu1 }
 0x27f   : > { %v11110_v51 = vpop.f32.mrb[104].mxu0  ;;  %v11227_v2 = vadd.f32 %v11226_v30, %v11225_v32 }
 0x280   : > { %v11111_v5 = vpop.f32.mrb[105].mxu0 }
 0x281   : > { %v11112_v31 = vadd.f32 %v11111_v5, %v11110_v51  ;;  %v11113_v36 = vpop.f32.mrb[106].mxu0 }
 0x282   : > { %v11114_v0 = vpop.f32.mrb[107].mxu0 }
 0x283   : > { %v5031_v33 = vadd.f32 %v11112_v31, %v14873_v14  ;;  %v11115_v21 = vadd.f32 %v11114_v0, %v11113_v36 }
 0x284   : > { %v11228_v50 = vpop.f32.mrb[108].mxu1 }
 0x285   : > { %v11229_v37 = vpop.f32.mrb[109].mxu1  ;;  %v5034_v54 = vadd.f32 %v11115_v21, %v14876_v19  ;;  %v15133_v49 = vadd.f32 %v11224_v27, %v5031_v33  ;;  %v12040_v27 = vld [vmem:[%s17322_s4 + $0x148] sm:$0xff]  }
 0x286   : > { %v11230_v56 = vadd.f32 %v11229_v37, %v11228_v50  ;;  %v11231_v23 = vpop.f32.mrb[110].mxu1  ;;  %11508 = vmatprep.subr.bf16.mxu1 %v12040_v27 }
 0x287   : > { %v11232_v25 = vpop.f32.mrb[111].mxu1  ;;  %v15139_v5 = vadd.f32 %v11227_v2, %v5034_v54 }
 0x288   : > { %v11233_v61 = vadd.f32 %v11232_v25, %v11231_v23 }
 0x28c   : > { %v11116_v3 = vpop.f32.mrb[108].mxu0 }
 0x28d   : > { %v11117_v15 = vpop.f32.mrb[109].mxu0 }
 0x28e   : > { %v11118_v12 = vadd.f32 %v11117_v15, %v11116_v3  ;;  %v11119_v28 = vpop.f32.mrb[110].mxu0 }
 0x28f   : > { %v11120_v24 = vpop.f32.mrb[111].mxu0  ;;  %v11234_v48 = vpop.f32.mrb[112].mxu1 }
 0x290   : > { %v5039_v58 = vadd.f32 %v11118_v12, %v14896_v13  ;;  %v11121_v14 = vadd.f32 %v11120_v24, %v11119_v28  ;;  %v11235_v59 = vpop.f32.mrb[113].mxu1  ;;  %v12043_v13 = vld [vmem:[%s17322_s4 + $0x108] sm:$0xff]  }
 0x291   : > { %v11236_v57 = vadd.f32 %v11235_v59, %v11234_v48  ;;  %v11237_v32 = vpop.f32.mrb[114].mxu1  ;;  %11509 = vmatpush3.bf16.msra.mxu1 %v12043_v13 }
 0x292   : > { %v5042_v19 = vadd.f32 %v11121_v14, %v14903_v55  ;;  %v11238_v30 = vpop.f32.mrb[115].mxu1  ;;  %v15137_v51 = vadd.f32 %v11230_v56, %v5039_v58 }
 0x293   : > { %v11239_v31 = vadd.f32 %v11238_v30, %v11237_v32 }
 0x294   : > { %v15144_v36 = vadd.f32 %v11233_v61, %v5042_v19 }
 0x297   : > { %v11122_v0 = vpop.f32.mrb[112].mxu0 }
 0x298   : > { %v11123_v55 = vpop.f32.mrb[113].mxu0 }
 0x299   : > { %v11124_v33 = vadd.f32 %v11123_v55, %v11122_v0  ;;  %v11125_v21 = vpop.f32.mrb[114].mxu0 }
 0x29a   : > { %v11126_v50 = vpop.f32.mrb[115].mxu0  ;;  %v11240_v2 = vpop.f32.mrb[116].mxu1 }
 0x29b   : > { %v5047_v37 = vadd.f32 %v11124_v33, %v14922_v6  ;;  %v11127_v54 = vadd.f32 %v11126_v50, %v11125_v21  ;;  %v11241_v56 = vpop.f32.mrb[117].mxu1 }
 0x29c   : > { %v11242_v23 = vadd.f32 %v11241_v56, %v11240_v2  ;;  %v11243_v25 = vpop.f32.mrb[118].mxu1 }
 0x29d   : > { %v5050_v61 = vadd.f32 %v11127_v54, %v14932_v17  ;;  %v11244_v3 = vpop.f32.mrb[119].mxu1  ;;  %v15151_v12 = vadd.f32 %v11236_v57, %v5047_v37 }
 0x29e   : > { %v11245_v15 = vadd.f32 %v11244_v3, %v11243_v25 }
 0x29f   : > { %v15153_v14 = vadd.f32 %v11239_v31, %v5050_v61 }
 0x2a2   : > { %v11128_v28 = vpop.f32.mrb[116].mxu0 }
 0x2a3   : > { %v11129_v24 = vpop.f32.mrb[117].mxu0 }
 0x2a4   : > { %v11130_v48 = vadd.f32 %v11129_v24, %v11128_v28  ;;  %v11131_v58 = vpop.f32.mrb[118].mxu0 }
 0x2a5   : > { %v11132_v59 = vpop.f32.mrb[119].mxu0 }
 0x2a6   : > { %v5055_v32 = vadd.f32 %v11130_v48, %v14937_v42  ;;  %v11133_v6 = vadd.f32 %v11132_v59, %v11131_v58 }
 0x2a8   : > { %v5058_v19 = vadd.f32 %v11133_v6, %v14944_v26  ;;  %v15157_v30 = vadd.f32 %v11242_v23, %v5055_v32 }
 0x2a9   : > { %v11246_v27 = vpop.f32.mrb[120].mxu1 }
 0x2aa   : > { %v11247_v13 = vpop.f32.mrb[121].mxu1  ;;  %v15159_v0 = vadd.f32 %v11245_v15, %v5058_v19 }
 0x2ab   : > { %v11134_v17 = vpop.f32.mrb[120].mxu0  ;;  %v11248_v57 = vadd.f32 %v11247_v13, %v11246_v27  ;;  %v11249_v33 = vpop.f32.mrb[122].mxu1  ;;  %v12049_v27 = vld [vmem:[%s17322_s4 + $0x110] sm:$0xff]  }
 0x2ac   : > { %v11135_v55 = vpop.f32.mrb[121].mxu0  ;;  %v11250_v31 = vpop.f32.mrb[123].mxu1 }
 0x2ad   : > { %v11136_v21 = vadd.f32 %v11135_v55, %v11134_v17  ;;  %v11137_v50 = vpop.f32.mrb[122].mxu0  ;;  %v11251_v2 = vadd.f32 %v11250_v31, %v11249_v33 }
 0x2ae   : > { %v11138_v37 = vpop.f32.mrb[123].mxu0 }
 0x2af   : > { %v5063_v42 = vadd.f32 %v11136_v21, %v14961_v4  ;;  %v11139_v54 = vadd.f32 %v11138_v37, %v11137_v50  ;;  %v12046_v4 = vld [vmem:[%s17322_s4 + $0x150] sm:$0xff]  }
 0x2b0   : > { %11510 = vmatprep.subr.bf16.mxu1 %v12046_v4  ;;  %v5945_v4 = vld [vmem:[#allocation3 + $0x18] sm:$0xf] }
 0x2b1   : > { %v5066_v26 = vadd.f32 %v11139_v54, %v14964_v11  ;;  %v15163_v25 = vadd.f32 %v11248_v57, %v5063_v42  ;;  %11511 = vmatpush3.bf16.msra.mxu1 %v12049_v27 }
 0x2b3   : > { %v11140_v56 = vpop.f32.mrb[124].mxu0  ;;  %v15166_v58 = vadd.f32 %v11251_v2, %v5066_v26 }
 0x2b4   : > { %v11141_v23 = vpop.f32.mrb[125].mxu0 }
 0x2b5   : > { %v11142_v61 = vadd.f32 %v11141_v23, %v11140_v56  ;;  %v11143_v3 = vpop.f32.mrb[126].mxu0 }
 0x2b6   : > { %v11144_v15 = vpop.f32.mrb[127].mxu0  ;;  %v11252_v24 = vpop.f32.mrb[124].mxu1 }
 0x2b7   : > { %v5071_v28 = vadd.f32 %v11142_v61, %v14969_v53  ;;  %v11145_v48 = vadd.f32 %v11144_v15, %v11143_v3  ;;  %v11253_v59 = vpop.f32.mrb[125].mxu1 }
 0x2b8   : > { %v11254_v32 = vadd.f32 %v11253_v59, %v11252_v24  ;;  %v11255_v6 = vpop.f32.mrb[126].mxu1 }
 0x2b9   : > { %v5074_v11 = vadd.f32 %v11145_v48, %v14975_v41  ;;  %v11256_v19 = vpop.f32.mrb[127].mxu1 }
 0x2ba   : > { %v11257_v53 = vadd.f32 %v11256_v19, %v11255_v6  ;;  %v15175_v13 = vadd.f32 %v11254_v32, %v5071_v28 }
 0x2bb   : > { %v11772_v17 = vpop.f32.mrb[128].mxu0 }
 0x2bc   : > { %v5281_v57 = vadd.f32 %v11772_v17, %v14987_v22  ;;  %v5272_v55 = vpop.f32.mrb[129].mxu0  ;;  %v15179_v41 = vadd.f32 %v11257_v53, %v5074_v11 }
 0x2bd   : > { %v5273_v33 = vadd.f32 %v5272_v55, %v15001_v47  ;;  %v11773_v21 = vpop.f32.mrb[130].mxu0 }
 0x2be   : > { %v5401_v50 = vmul.f32 0.1, %v5281_v57  ;;  %v5284_v31 = vadd.f32 %v11773_v21, %v15003_v18  ;;  %v5275_v2 = vpop.f32.mrb[131].mxu0 }
 0x2bf   : > { %v5399_v37 = vmul.f32 0.1, %v5273_v33  ;;  %v5276_v42 = vadd.f32 %v5275_v2, %v15011_v29 }
 0x2c0   : > { %v5433_v54 = vmax.f32 %v5281_v57, %v5401_v50  ;;  %v5402_v26 = vmul.f32 0.1, %v5284_v31 }
 0x2c1   : > { %v5431_v56 = vmax.f32 %v5273_v33, %v5399_v37  ;;  %v5400_v23 = vmul.f32 0.1, %v5276_v42 }
 0x2c2   : > { %v10779_v61 = vpack.c.bf16 %v5433_v54, %v5433_v54  ;;  %v5434_v22 = vmax.f32 %v5284_v31, %v5402_v26 }
 0x2c3   : > { %v10777_v3 = vpack.c.bf16 %v5431_v56, %v5431_v56  ;;  %v5432_v47 = vmax.f32 %v5276_v42, %v5400_v23  ;;  %v11776_v15 = vpop.f32.mrb[132].mxu0  ;;  %v5936_v42 = vld [vmem:[#allocation3 + $0xc] sm:$0xf] }
 0x2c4   : > { %v5631_v28 = vshrl.u32 %v10779_v61, 16  ;;  %v5634_v24 = vshll.u32 %v10779_v61, 16  ;;  %v10780_v48 = vpack.c.bf16 %v5434_v22, %v5434_v22  ;;  %v5297_v18 = vadd.f32 %v11776_v15, %v15019_v8  ;;  %v5288_v59 = vpop.f32.mrb[133].mxu0  ;;  %v5949_v61 = vld [vmem:[#allocation3 + $0x20] sm:$0x1] }
 0x2c5   : > { %v5614_v11 = vshrl.u32 %v10777_v3, 16  ;;  %v5617_v29 = vshll.u32 %v10777_v3, 16  ;;  %v10778_v32 = vpack.c.bf16 %v5432_v47, %v5432_v47  ;;  %v5289_v6 = vadd.f32 %v5288_v59, %v15026_v35  ;;  %v11777_v19 = vpop.f32.mrb[134].mxu0 }
 0x2c6   : > { %v5633_v27 = vrot.slane %v5631_v28, 7  ;;  %v5639_v53 = vshrl.u32 %v10780_v48, 16  ;;  %v5642_v17 = vshll.u32 %v10780_v48, 16  ;;  %v5405_v57 = vmul.f32 0.1, %v5297_v18  ;;  %v5291_v55 = vpop.f32.mrb[135].mxu0 }
 0x2c7   : > { %v5616_v8 = vrot.slane %v5614_v11, 7  ;;  %v5622_v21 = vshrl.u32 %v10778_v32, 16  ;;  %v5625_v50 = vshll.u32 %v10778_v32, 16  ;;  %v5403_v31 = vmul.f32 0.1, %v5289_v6 }
 0x2c8   : > { %v5636_v2 = vor.u32 %v5634_v24, %v5633_v27  ;;  %v5637_v37 = vrot.slane %v5633_v27, 4  ;;  %v5641_v35 = vrot.slane %v5639_v53, 7  ;;  %v5437_v54 = vmax.f32 %v5297_v18, %v5405_v57  ;;  %v5942_v24 = vld [vmem:[#allocation3 + $0x14] sm:$0x1]  ;;  %v12052_v27 = vld [vmem:[%s17322_s4 + $0x158] sm:$0xff]  }
 0x2c9   : > { %v5619_v26 = vor.u32 %v5617_v29, %v5616_v8  ;;  %v5620_v56 = vrot.slane %v5616_v8, 4  ;;  %v5624_v22 = vrot.slane %v5622_v21, 7  ;;  %v5435_v3 = vmax.f32 %v5289_v6, %v5403_v31  ;;  %11512 = vmatprep.subr.bf16.mxu1 %v12052_v27 }
 0x2ca   : > { %v5946_v47 = vsel %vm15187_vm7, %v5636_v2, %v5945_v4  ;;  %v5644_v15 = vor.u32 %v5642_v17, %v5641_v35  ;;  %v5646_v28 = vrot.slane %v5641_v35, 4  ;;  %v10783_v48 = vpack.c.bf16 %v5437_v54, %v5437_v54 }
 0x2cb   : > { %5947 = vst [vmem:[#allocation3 + $0x18] sm:$0xf] %v5946_v47  ;;  %v5937_v18 = vsel %vm15187_vm7, %v5619_v26, %v5936_v42  ;;  %v5627_v59 = vor.u32 %v5625_v50, %v5624_v22  ;;  %v5629_v11 = vrot.slane %v5624_v22, 4  ;;  %v10781_v29 = vpack.c.bf16 %v5435_v3, %v5435_v3  ;;  %v11780_v32 = vpop.f32.mrb[136].mxu0  ;;  %v5959_v22 = vld [vmem:[#allocation3 + $0x30] sm:$0xf] }
 0x2cc   : > { %5938 = vst [vmem:[#allocation3 + $0xc] sm:$0xf] %v5937_v18  ;;  %v5645_v4 = vsel %vm12489_vm2, %v5637_v37, %v5644_v15  ;;  %v5950_v53 = vsel %vm15193_vm8, %v5646_v28, %v5949_v61  ;;  %v5665_v17 = vshrl.u32 %v10783_v48, 16  ;;  %v5668_v57 = vshll.u32 %v10783_v48, 16  ;;  %v5304_v8 = vpop.f32.mrb[137].mxu0  ;;  %v12055_v37 = vld [vmem:[%s17322_s4 + $0x118] sm:$0xff]  }
 0x2cd   : > { %5948 = vst [vmem:[#allocation3 + $0x1c] sm:$0xf] %v5645_v4  ;;  %5951 = vst [vmem:[#allocation3 + $0x20] sm:$0x1] %v5950_v53  ;;  %v5628_v21 = vsel %vm12489_vm2, %v5620_v56, %v5627_v59  ;;  %v5943_v50 = vsel %vm15193_vm8, %v5629_v11, %v5942_v24  ;;  %v5648_v31 = vshrl.u32 %v10781_v29, 16  ;;  %v5651_v2 = vshll.u32 %v10781_v29, 16  ;;  %11513 = vmatpush3.bf16.msra.mxu1 %v12055_v37 }
 0x2ce   : > { %v11781_v42 = vpop.f32.mrb[138].mxu0  ;;  %5939 = vst [vmem:[#allocation3 + $0x10] sm:$0xf] %v5628_v21  ;;  %5944 = vst [vmem:[#allocation3 + $0x14] sm:$0x1] %v5943_v50  ;;  %v15215_v35 = vrot.slane %v5665_v17, 7  ;;  %v5300_v54 = vadd.f32 %v11777_v19, %v15028_v39  ;;  %v5292_v26 = vadd.f32 %v5291_v55, %v15037_v45  ;;  %v5313_v56 = vadd.f32 %v11780_v32, %v15039_v9 }
 0x2cf   : > { %v5307_v61 = vpop.f32.mrb[139].mxu0  ;;  %v15220_v3 = vrot.slane %v5648_v31, 7  ;;  %v5952_v47 = vld [vmem:[#allocation3 + $0x24] sm:$0xf]  ;;  %v5305_v15 = vadd.f32 %v5304_v8, %v15050_v40  ;;  %v5316_v28 = vadd.f32 %v11781_v42, %v15052_v52 }
 0x2d0   : > { %v5308_v24 = vadd.f32 %v5307_v61, %v15066_v43  ;;  %v5670_v48 = vor.u32 %v5668_v57, %v15215_v35  ;;  %v5671_v39 = vrot.slane %v15215_v35, 4  ;;  %v5406_v19 = vmul.f32 0.1, %v5300_v54 }
 0x2d1   : > { %v5404_v45 = vmul.f32 0.1, %v5292_v26  ;;  %v5653_v9 = vor.u32 %v5651_v2, %v15220_v3  ;;  %v5654_v55 = vrot.slane %v15220_v3, 4  ;;  %v5409_v18 = vmul.f32 0.1, %v5313_v56 }
 0x2d2   : > { %v5407_v59 = vmul.f32 0.1, %v5305_v15  ;;  %v5960_v40 = vsel %vm15187_vm7, %v5670_v48, %v5959_v22  ;;  %v5438_v11 = vmax.f32 %v5300_v54, %v5406_v19  ;;  %v5410_v29 = vmul.f32 0.1, %v5316_v28 }
 0x2d3   : > { %v5436_v52 = vmax.f32 %v5292_v26, %v5404_v45  ;;  %5961 = vst [vmem:[#allocation3 + $0x30] sm:$0xf] %v5960_v40  ;;  %v5953_v43 = vsel %vm15187_vm7, %v5653_v9, %v5952_v47  ;;  %v5441_v32 = vmax.f32 %v5313_v56, %v5409_v18  ;;  %v5408_v4 = vmul.f32 0.1, %v5308_v24  ;;  %v11784_v53 = vpop.f32.mrb[140].mxu0 }
 0x2d4   : > { %v5439_v27 = vmax.f32 %v5305_v15, %v5407_v59  ;;  %5954 = vst [vmem:[#allocation3 + $0x24] sm:$0xf] %v5953_v43  ;;  %v10784_v17 = vpack.c.bf16 %v5438_v11, %v5438_v11  ;;  %v5442_v8 = vmax.f32 %v5316_v28, %v5410_v29  ;;  %v5329_v21 = vadd.f32 %v11784_v53, %v15083_v38  ;;  %v5320_v50 = vpop.f32.mrb[141].mxu0  ;;  %v5963_v28 = vld [vmem:[#allocation3 + $0x38] sm:$0x1] }
 0x2d5   : > { %v10782_v57 = vpack.c.bf16 %v5436_v52, %v5436_v52  ;;  %v10787_v31 = vpack.c.bf16 %v5441_v32, %v5441_v32  ;;  %v5440_v42 = vmax.f32 %v5308_v24, %v5408_v4  ;;  %v5321_v37 = vadd.f32 %v5320_v50, %v15078_v16  ;;  %v11785_v35 = vpop.f32.mrb[142].mxu0  ;;  %v5956_v38 = vld [vmem:[#allocation3 + $0x2c] sm:$0x1]  ;;  %v5973_v32 = vld [vmem:[#allocation3 + $0x48] sm:$0xf] }
 0x2d6   : > { %v10785_v2 = vpack.c.bf16 %v5439_v27, %v5439_v27  ;;  %v5673_v54 = vshrl.u32 %v10784_v17, 16  ;;  %v5676_v26 = vshll.u32 %v10784_v17, 16  ;;  %v5323_v22 = vpop.f32.mrb[143].mxu0  ;;  %v10788_v9 = vpack.c.bf16 %v5442_v8, %v5442_v8  ;;  %v5966_v27 = vld [vmem:[#allocation3 + $0x3c] sm:$0xf]  ;;  %v12058_v8 = vld [vmem:[%s17322_s4 + $0x1c0] sm:$0xff]  }
 0x2d7   : > { %v5656_v61 = vshrl.u32 %v10782_v57, 16  ;;  %v5659_v56 = vshll.u32 %v10782_v57, 16  ;;  %v5699_v3 = vshrl.u32 %v10787_v31, 16  ;;  %v5702_v47 = vshll.u32 %v10787_v31, 16  ;;  %11618 = vmatprep.subr.bf16.mxu0 %v12058_v8  ;;  %v15334_v20 = vld [vmem:[#allocation3 + $0x10] sm:$0xf] }
 0x2d8   : > { %v5682_v15 = vshrl.u32 %v10785_v2, 16  ;;  %v5685_v48 = vshll.u32 %v10785_v2, 16  ;;  %v5675_v19 = vrot.slane %v5673_v54, 7  ;;  %v10786_v18 = vpack.c.bf16 %v5440_v42, %v5440_v42 }
 0x2d9   : > { %v5658_v45 = vrot.slane %v5656_v61, 7  ;;  %v5701_v59 = vrot.slane %v5699_v3, 7  ;;  %v5413_v16 = vmul.f32 0.1, %v5329_v21  ;;  %v5411_v40 = vmul.f32 0.1, %v5321_v37 }
 0x2da   : > { %v15235_v24 = vrot.slane %v5682_v15, 7  ;;  %v5678_v11 = vor.u32 %v5676_v26, %v5675_v19  ;;  %v5680_v52 = vrot.slane %v5675_v19, 4  ;;  %v15258_v3 = vld [vmem:[#allocation3 + $0xc] sm:$0xf]  ;;  %v5710_v15 = vshll.u32 %v10788_v9, 16 }
 0x2db   : > { %v5661_v29 = vor.u32 %v5659_v56, %v5658_v45  ;;  %v5663_v43 = vrot.slane %v5658_v45, 4  ;;  %v5704_v4 = vor.u32 %v5702_v47, %v5701_v59  ;;  %v5705_v53 = vrot.slane %v5701_v59, 4  ;;  %v15238_v57 = vpop.f32.mrb[144].mxu0  ;;  %v12060_v47 = vld [vmem:[%s17322_s4 + $0x160] sm:$0xff]  }
 0x2dc   : > { %v5687_v17 = vor.u32 %v5685_v48, %v15235_v24  ;;  %v5679_v50 = vsel %vm12489_vm2, %v5671_v39, %v5678_v11  ;;  %v5964_v31 = vsel %vm15193_vm8, %v5680_v52, %v5963_v28  ;;  %v15251_v54 = vpop.f32.mrb[145].mxu0  ;;  %v5688_v39 = vrot.slane %v15235_v24, 4  ;;  %v17478_v52 = vld [vmem:[#allocation15_spill] sm:$0xff]  ;;  %11514 = vmatprep.subr.bf16.mxu1 %v12060_v47  ;;  %v5987_v47 = vld [vmem:[#allocation3 + $0x60] sm:$0xf] }
 0x2dd   : > { %v5662_v2 = vsel %vm12489_vm2, %v5654_v55, %v5661_v29  ;;  %v5957_v42 = vsel %vm15193_vm8, %v5663_v43, %v5956_v38  ;;  %5962 = vst [vmem:[#allocation3 + $0x34] sm:$0xf] %v5679_v50  ;;  %5965 = vst [vmem:[#allocation3 + $0x38] sm:$0x1] %v5964_v31  ;;  %v5974_v26 = vsel %vm15187_vm7, %v5704_v4, %v5973_v32  ;;  %v5707_v56 = vshrl.u32 %v10788_v9, 16  ;;  %v15260_v55 = vpop.f32.mrb[146].mxu0 }
 0x2de   : > { %5955 = vst [vmem:[#allocation3 + $0x28] sm:$0xf] %v5662_v2  ;;  %5958 = vst [vmem:[#allocation3 + $0x2c] sm:$0x1] %v5957_v42  ;;  %v5967_v61 = vsel %vm15187_vm7, %v5687_v17, %v5966_v27  ;;  %v5690_v48 = vshrl.u32 %v10786_v18, 16  ;;  %v5445_v19 = vmax.f32 %v5329_v21, %v5413_v16  ;;  %v5443_v28 = vmax.f32 %v5321_v37, %v5411_v40  ;;  %v15265_v45 = vpop.f32.mrb[147].mxu0 }
 0x2df   : > { %5975 = vst [vmem:[#allocation3 + $0x48] sm:$0xf] %v5974_v26  ;;  %5968 = vst [vmem:[#allocation3 + $0x3c] sm:$0xf] %v5967_v61  ;;  %v12063_v38 = vld [vmem:[%s17322_s4 + $0x120] sm:$0xff]   ;;  %v5709_v59 = vrot.slane %v5707_v56, 7  ;;  %v5332_v11 = vadd.f32 %v11785_v35, %v15087_v62  ;;  %v5324_v29 = vadd.f32 %v5323_v22, %v17478_v52  ;;  %v5337_v1 = vadd.f32 %v15251_v54, %v15121_v63 }
 0x2e0   : > { %v5693_v24 = vshll.u32 %v10786_v18, 16  ;;  %v5977_v43 = vld [vmem:[#allocation3 + $0x50] sm:$0x1]  ;;  %v5692_v32 = vrot.slane %v5690_v48, 7  ;;  %v5970_v27 = vld [vmem:[#allocation3 + $0x44] sm:$0x1]  ;;  %v10791_v9 = vpack.c.bf16 %v5445_v19, %v5445_v19  ;;  %v10789_v4 = vpack.c.bf16 %v5443_v28, %v5443_v28  ;;  %11515 = vmatpush3.bf16.msra.mxu1 %v12063_v38 }
 0x2e1   : > { %v6707_v21 = vshrl.u32 %v15258_v3, 16  ;;  %v5712_v37 = vor.u32 %v5710_v15, %v5709_v59  ;;  %v5714_v16 = vrot.slane %v5709_v59, 4  ;;  %v5414_v40 = vmul.f32 0.1, %v5332_v11  ;;  %v5980_v28 = vld [vmem:[#allocation3 + $0x54] sm:$0xf] }
 0x2e2   : > { %v5412_v17 = vmul.f32 0.1, %v5324_v29  ;;  %v5695_v8 = vor.u32 %v5693_v24, %v5692_v32  ;;  %v5697_v50 = vrot.slane %v5692_v32, 4  ;;  %v5733_v18 = vshrl.u32 %v10791_v9, 16  ;;  %v12067_v54 = vld [vmem:[%s17322_s4 + $0x188] sm:$0xff]  }
 0x2e3   : > { %v6710_v62 = vshll.u32 %v15258_v3, 16  ;;  %v5713_v35 = vsel %vm12489_vm2, %v5705_v53, %v5712_v37  ;;  %v5978_v22 = vsel %vm15193_vm8, %v5714_v16, %v5977_v43  ;;  %v5736_v31 = vshll.u32 %v10791_v9, 16  ;;  %v15278_v42 = vpop.f32.mrb[148].mxu0  ;;  %v15288_v43 = vld [vmem:[#allocation3 + $0x10] sm:$0xf] }
 0x2e4   : > { %v5716_v2 = vshrl.u32 %v10789_v4, 16  ;;  %5976 = vst [vmem:[#allocation3 + $0x4c] sm:$0xf] %v5713_v35  ;;  %5979 = vst [vmem:[#allocation3 + $0x50] sm:$0x1] %v5978_v22  ;;  %v5696_v26 = vsel %vm12489_vm2, %v5688_v39, %v5695_v8  ;;  %v5971_v61 = vsel %vm15193_vm8, %v5697_v50, %v5970_v27  ;;  %v5735_v56 = vrot.slane %v5733_v18, 7 }
 0x2e5   : > { %v5446_v15 = vmax.f32 %v5332_v11, %v5414_v40  ;;  %v15284_v48 = vpop.f32.mrb[149].mxu0  ;;  %5969 = vst [vmem:[#allocation3 + $0x40] sm:$0xf] %v5696_v26  ;;  %5972 = vst [vmem:[#allocation3 + $0x44] sm:$0x1] %v5971_v61  ;;  %v5719_v19 = vshll.u32 %v10789_v4, 16  ;;  %v5444_v38 = vmax.f32 %v5324_v29, %v5412_v17  ;;  %v5348_v63 = vadd.f32 %v15260_v55, %v15129_v34 }
 0x2e6   : > { %v5718_v53 = vrot.slane %v5716_v2, 7  ;;  %v15286_v59 = vpop.f32.mrb[150].mxu0  ;;  %v5738_v24 = vor.u32 %v5736_v31, %v5735_v56  ;;  %v6709_v39 = vrot.slane %v6707_v21, 4  ;;  %v6712_v32 = vrot.slane %v6710_v62, 5  ;;  %v15297_v17 = vld [vmem:[#allocation3 + $0x1c] sm:$0xf] }
 0x2e7   : > { %v10792_v52 = vpack.c.bf16 %v5446_v15, %v5446_v15  ;;  %v15290_v27 = vpop.f32.mrb[151].mxu0  ;;  %v10790_v11 = vpack.c.bf16 %v5444_v38, %v5444_v38  ;;  %v6716_v40 = vshll.u32 %v15288_v43, 16  ;;  %v5991_v50 = vld [vmem:[#allocation3 + $0x68] sm:$0x1]  ;;  %v10537_v62 = vcombine.low %v15258_v3, %v15288_v43  ;;  %v15301_v35 = vld [vmem:[#allocation3 + $0x18] sm:$0xf] }
 0x2e8   : > { %v5721_v9 = vor.u32 %v5719_v19, %v5718_v53  ;;  %v5988_v37 = vsel %vm15187_vm7, %v5738_v24, %v5987_v47  ;;  %v6713_v18 = vor.u32 %v6712_v32, %v6709_v39  ;;  %v5739_v22 = vrot.slane %v5735_v56, 4  ;;  %v12059_v61 = vld [vmem:[%s17322_s4 + $0x180] sm:$0xff]   ;;  %v12066_v56 = vld [vmem:[%s17322_s4 + $0x1c8] sm:$0xff]  }
 0x2e9   : > { %v5741_v16 = vshrl.u32 %v10792_v52, 16  ;;  %5989 = vst [vmem:[#allocation3 + $0x60] sm:$0xf] %v5988_v37  ;;  %v5724_v4 = vshrl.u32 %v10790_v11, 16  ;;  %v5744_v8 = vshll.u32 %v10792_v52, 16  ;;  %v5727_v2 = vshll.u32 %v10790_v11, 16  ;;  %9275 = vmatprep.mubr.bf16.mxu0 %v10537_v62 }
 0x2ea   : > { %v5981_v29 = vsel %vm15187_vm7, %v5721_v9, %v5980_v28  ;;  %v5722_v47 = vrot.slane %v5718_v53, 4  ;;  %v5984_v28 = vld [vmem:[#allocation3 + $0x5c] sm:$0x1]  ;;  %v10538_v38 = vcombine.low %v15301_v35, %v15297_v17  ;;  %v15315_v39 = vrot.slane %v6716_v40, 5  ;;  %9276 = vmatmul.mubr.bf16.vlgmr.msra.gmra.mrb[160].mxu0 %v10521_v7  ;;  %v15322_v32 = vld [vmem:[#allocation3 + $0xc] sm:$0xf] }
 0x2eb   : > { %5982 = vst [vmem:[#allocation3 + $0x54] sm:$0xf] %v5981_v29  ;;  %v5743_v21 = vrot.slane %v5741_v16, 7  ;;  %v5726_v31 = vrot.slane %v5724_v4, 7  ;;  %v15303_v26 = vpop.f32.mrb[152].mxu0  ;;  %v5345_v53 = vadd.f32 %v15238_v57, %v15124_v44  ;;  %v15330_v16 = vrot.slane %v6713_v18, 4  ;;  %11619 = vmatpush3.bf16.msra.mxu0 %v12059_v61 }
 0x2ec   : > { %v15310_v3 = vpop.f32.mrb[153].mxu0  ;;  %9283 = vmatprep.mubr.bf16.mxu0 %v10538_v38  ;;  %v12068_v44 = vld [vmem:[%s17322_s4 + $0x168] sm:$0xff]   ;;  %11620 = vmatprep.subr.bf16.mxu0 %v12066_v56  ;;  %v5418_v62 = vmul.f32 0.1, %v5348_v63  ;;  %v6126_v34 = vshll.u32 %v15322_v32, 16  ;;  %v6132_v55 = vshll.u32 %v15334_v20, 16 }
 0x2ed   : > { %v5746_v15 = vor.u32 %v5744_v8, %v5743_v21  ;;  %v5748_v19 = vrot.slane %v5743_v21, 4  ;;  %v5729_v24 = vor.u32 %v5727_v2, %v5726_v31  ;;  %v5731_v52 = vrot.slane %v5726_v31, 4  ;;  %v15324_v9 = vpop.f32.mrb[154].mxu0  ;;  %17479 = vst [vmem:[#allocation17_spill] sm:$0xff] %v15330_v16  ;;  %11516 = vmatprep.subr.bf16.mxu1 %v12068_v44  ;;  %v15356_v2 = vld [vmem:[#allocation3 + $0x14] sm:$0x1] }
 0x2ee   : > { %v15336_v7 = vpop.f32.mrb[155].mxu0  ;;  %v5417_v4 = vmul.f32 0.1, %v5345_v53  ;;  %v5415_v21 = vmul.f32 0.1, %v5337_v1  ;;  %v5340_v8 = vadd.f32 %v15265_v45, %v15127_v46  ;;  %v6128_v46 = vrot.slane %v6126_v34, 5 }
 0x2ef   : > { %v5747_v11 = vsel %vm12489_vm2, %v5739_v22, %v5746_v15  ;;  %v5992_v37 = vsel %vm15193_vm8, %v5748_v19, %v5991_v50  ;;  %v5730_v57 = vsel %vm12489_vm2, %v5722_v47, %v5729_v24  ;;  %v5985_v29 = vsel %vm15193_vm8, %v5731_v52, %v5984_v28  ;;  %11621 = vmatpush3.bf16.msra.mxu0 %v12067_v54  ;;  %v12071_v38 = vld [vmem:[%s17322_s4 + $0x128] sm:$0xff]   ;;  %v5994_v56 = vld [vmem:[#allocation3 + $0x6c] sm:$0xf]  ;;  %v6005_v16 = vld [vmem:[#allocation3 + $0x80] sm:$0x1] }
 0x2f0   : > { %5990 = vst [vmem:[#allocation3 + $0x64] sm:$0xf] %v5747_v11  ;;  %5993 = vst [vmem:[#allocation3 + $0x68] sm:$0x1] %v5992_v37  ;;  %v6123_v50 = vshrl.u32 %v15322_v32, 16  ;;  %v5449_v18 = vmax.f32 %v5345_v53, %v5417_v4  ;;  %v5447_v22 = vmax.f32 %v5337_v1, %v5415_v21  ;;  %v6136_v47 = vshrl.u32 %v15334_v20, 16  ;;  %11517 = vmatpush3.bf16.msra.mxu1 %v12071_v38 }
 0x2f1   : > { %5983 = vst [vmem:[#allocation3 + $0x58] sm:$0xf] %v5730_v57  ;;  %5986 = vst [vmem:[#allocation3 + $0x5c] sm:$0x1] %v5985_v29  ;;  %v5416_v31 = vmul.f32 0.1, %v5340_v8  ;;  %v5450_v19 = vmax.f32 %v5348_v63, %v5418_v62 }
 0x2f2   : > { %v6125_v61 = vrot.slane %v6123_v50, 4  ;;  %v10795_v15 = vpack.c.bf16 %v5449_v18, %v5449_v18  ;;  %v6134_v45 = vrot.slane %v6132_v55, 5  ;;  %v10793_v24 = vpack.c.bf16 %v5447_v22, %v5447_v22  ;;  %v6001_v55 = vld [vmem:[#allocation3 + $0x78] sm:$0xf] }
 0x2f3   : > { %v15359_v28 = vpop.f32.mrb[156].mxu0  ;;  %v5448_v52 = vmax.f32 %v5340_v8, %v5416_v31  ;;  %v6138_v53 = vrot.slane %v6136_v47, 4  ;;  %v10796_v1 = vpack.c.bf16 %v5450_v19, %v5450_v19  ;;  %v6142_v57 = vshll.u32 %v15356_v2, 16 }
 0x2f4   : > { %v15365_v11 = vpop.f32.mrb[157].mxu0  ;;  %v5767_v37 = vshrl.u32 %v10795_v15, 16  ;;  %v6129_v44 = vor.u32 %v6128_v46, %v6125_v61  ;;  %v5770_v4 = vshll.u32 %v10795_v15, 16  ;;  %v5750_v63 = vshrl.u32 %v10793_v24, 16 }
 0x2f5   : > { %v15368_v29 = vpop.f32.mrb[158].mxu0  ;;  %v10794_v54 = vpack.c.bf16 %v5448_v52, %v5448_v52  ;;  %v6139_v21 = vor.u32 %v6138_v53, %v6134_v45  ;;  %v5753_v62 = vshll.u32 %v10793_v24, 16  ;;  %v5775_v8 = vshrl.u32 %v10796_v1, 16  ;;  %v12074_v24 = vld [vmem:[%s17322_s4 + $0x1d0] sm:$0xff]  }
 0x2f6   : > { %v15370_v50 = vpop.f32.mrb[159].mxu0  ;;  %v5769_v18 = vrot.slane %v5767_v37, 7  ;;  %v6130_v34 = vrot.slane %v6129_v44, 4  ;;  %v5752_v22 = vrot.slane %v5750_v63, 7  ;;  %v5778_v31 = vshll.u32 %v10796_v1, 16  ;;  %11622 = vmatprep.subr.bf16.mxu0 %v12074_v24 }
 0x2f7   : > { %v5758_v47 = vshrl.u32 %v10794_v54, 16  ;;  %v6140_v61 = vrot.slane %v6139_v21, 4  ;;  %v5777_v40 = vrot.slane %v5775_v8, 7  ;;  %v5761_v38 = vshll.u32 %v10794_v54, 16  ;;  %v5998_v21 = vld [vmem:[#allocation3 + $0x74] sm:$0x1] }
 0x2f8   : > { %v5772_v19 = vor.u32 %v5770_v4, %v5769_v18  ;;  %v5773_v46 = vrot.slane %v5769_v18, 4  ;;  %v5755_v15 = vor.u32 %v5753_v62, %v5752_v22  ;;  %v6135_v53 = vsel %vm12869_vm11, %v6130_v34, %v6134_v45  ;;  %v12075_v8 = vld [vmem:[%s17322_s4 + $0x190] sm:$0xff]  }
 0x2f9   : > { %v5760_v52 = vrot.slane %v5758_v47, 7  ;;  %v6144_v37 = vrot.slane %v6142_v57, 5  ;;  %v5756_v44 = vrot.slane %v5752_v22, 4  ;;  %v5780_v4 = vor.u32 %v5778_v31, %v5777_v40  ;;  %v6483_v57 = vld [vmem:[#allocation3 + $0xc] sm:$0xe]  ;;  %v12079_v47 = vld [vmem:[%s17322_s4 + $0x130] sm:$0xff]   ;;  %11623 = vmatpush3.bf16.msra.mxu0 %v12075_v8 }
 0x2fa   : > { %v6002_v1 = vsel %vm15187_vm7, %v5772_v19, %v6001_v55  ;;  %v5782_v63 = vrot.slane %v5777_v40, 4  ;;  %v5995_v54 = vsel %vm15187_vm7, %v5755_v15, %v5994_v56  ;;  %v12076_v40 = vld [vmem:[%s17322_s4 + $0x170] sm:$0xff]   ;;  %v6555_v22 = vrot.slane %v15334_v20, 5 }
 0x2fb   : > { %6003 = vst [vmem:[#allocation3 + $0x78] sm:$0xf] %v6002_v1  ;;  %v5763_v18 = vor.u32 %v5761_v38, %v5760_v52  ;;  %v5765_v62 = vrot.slane %v5760_v52, 4  ;;  %v6145_v45 = vsel %vm12869_vm11, %v6140_v61, %v6144_v37  ;;  %5996 = vst [vmem:[#allocation3 + $0x6c] sm:$0xf] %v5995_v54  ;;  %v5781_v34 = vsel %vm12489_vm2, %v5773_v46, %v5780_v4 }
 0x2fc   : > { %v6006_v56 = vsel %vm15193_vm8, %v5782_v63, %v6005_v16  ;;  %v10506_v55 = vcombine.low %v6135_v53, %v6145_v45  ;;  %v15394_v31 = vld [vmem:[#allocation3 + $0x18] sm:$0xf]  ;;  %v6734_v61 = vshll.u32 %v15301_v35, 16  ;;  %6004 = vst [vmem:[#allocation3 + $0x7c] sm:$0xf] %v5781_v34  ;;  %v10490_v16 = vcombine.low %v15322_v32, %v15334_v20  ;;  %11518 = vmatprep.subr.bf16.mxu1 %v12076_v40 }
 0x2fd   : > { %6007 = vst [vmem:[#allocation3 + $0x80] sm:$0x1] %v6006_v56  ;;  %v5764_v19 = vsel %vm12489_vm2, %v5756_v44, %v5763_v18  ;;  %v5999_v46 = vsel %vm15193_vm8, %v5765_v62, %v5998_v21  ;;  %v15406_v38 = vld [vmem:[#allocation3 + $0x28] sm:$0xf]  ;;  %v15408_v15 = vld [vmem:[#allocation3 + $0x1c] sm:$0xf]  ;;  %11519 = vmatpush3.bf16.msra.mxu1 %v12079_v47  ;;  %v5361_v21 = vadd.f32 %v15278_v42, %v15137_v51 }
 0x2fe   : > { %5997 = vst [vmem:[#allocation3 + $0x70] sm:$0xf] %v5764_v19  ;;  %6000 = vst [vmem:[#allocation3 + $0x74] sm:$0x1] %v5999_v46  ;;  %9122 = vmatprep.mubr.bf16.mxu1 %v10506_v55  ;;  %v10442_v53 = vrot.slane %v6483_v57, 9  ;;  %v6557_v37 = vrot.slane %v6555_v22, 4  ;;  %v5353_v34 = vadd.f32 %v15284_v48, %v15133_v49  ;;  %v5356_v47 = vadd.f32 %v15290_v27, %v15139_v5 }
 0x2ff   : > { %v6558_v24 = vrot.slane %v15356_v2, 5  ;;  %v15412_v1 = vld [vmem:[#allocation3 + $0x20] sm:$0x1]  ;;  %v17480_v32 = vshrl.u32 %v15288_v43, 16  ;;  %v17481_v44 = vshrl.u32 %v15301_v35, 16  ;;  %9123 = vmatmul.mubr.bf16.gmra.mrb[132].mxu1 %v10490_v16  ;;  %v6147_v54 = vshrl.u32 %v15394_v31, 16 }
 0x300   : > { %v15422_v63 = vld [vmem:[#allocation3 + $0x24] sm:$0xf]  ;;  %v6556_v2 = vsel %vm12879_vm13, %v10442_v53, %v6555_v22  ;;  %v6150_v35 = vshll.u32 %v15394_v31, 16  ;;  %v5421_v45 = vmul.f32 0.1, %v5361_v21  ;;  %v6156_v8 = vshll.u32 %v15408_v15, 16 }
 0x301   : > { %v15416_v20 = vrot.slane %v17480_v32, 4  ;;  %v15420_v4 = vrot.slane %v17481_v44, 4  ;;  %v6559_v43 = vsel %vm12879_vm13, %v6557_v37, %v6558_v24  ;;  %v10539_v18 = vcombine.low %v15422_v63, %v15406_v38  ;;  %v6484_v32 = vld [vmem:[#allocation3 + $0x18] sm:$0xe] }
 0x302   : > { %v10522_v62 = vcombine.low %v6556_v2, %v6559_v43  ;;  %v6149_v57 = vrot.slane %v6147_v54, 4  ;;  %v6152_v40 = vrot.slane %v6150_v35, 5  ;;  %v6160_v51 = vshrl.u32 %v15408_v15, 16 }
 0x303   : > { %v6166_v42 = vshll.u32 %v15412_v1, 16  ;;  %v5453_v56 = vmax.f32 %v5361_v21, %v5421_v45  ;;  %v6158_v55 = vrot.slane %v6156_v8, 5  ;;  %v5364_v22 = vadd.f32 %v15286_v59, %v15144_v36  ;;  %v6015_v45 = vld [vmem:[#allocation3 + $0x90] sm:$0xf] }
 0x304   : > { %9284 = vmatmul.mubr.bf16.gmra.mrb[164].mxu0 %v10522_v62  ;;  %v15443_v19 = vrot.slane %v6734_v61, 5  ;;  %v6153_v46 = vor.u32 %v6152_v40, %v6149_v57  ;;  %v6162_v16 = vrot.slane %v6160_v51, 4  ;;  %v5419_v53 = vmul.f32 0.1, %v5353_v34 }
 0x305   : > { %9291 = vmatprep.mubr.bf16.mxu0 %v10539_v18  ;;  %v6723_v37 = vor.u32 %v15416_v20, %v15315_v39  ;;  %v10799_v24 = vpack.c.bf16 %v5453_v56, %v5453_v56  ;;  %v5422_v49 = vmul.f32 0.1, %v5364_v22  ;;  %v5420_v48 = vmul.f32 0.1, %v5356_v47  ;;  %v12082_v20 = vld [vmem:[%s17322_s4 + $0x1d8] sm:$0xff]  }
 0x306   : > { %v6154_v44 = vrot.slane %v6153_v46, 4  ;;  %v6163_v21 = vor.u32 %v6162_v16, %v6158_v55  ;;  %v5451_v54 = vmax.f32 %v5353_v34, %v5419_v53  ;;  %v6562_v36 = vrot.slane %v15408_v15, 5  ;;  %11624 = vmatprep.subr.bf16.mxu0 %v12082_v20 }
 0x307   : > { %v5801_v59 = vshrl.u32 %v10799_v24, 16  ;;  %v6168_v5 = vrot.slane %v6166_v42, 5  ;;  %v5454_v27 = vmax.f32 %v5364_v22, %v5422_v49  ;;  %v5452_v61 = vmax.f32 %v5356_v47, %v5420_v48  ;;  %v12083_v22 = vld [vmem:[%s17322_s4 + $0x198] sm:$0xff]  }
 0x308   : > { %v5804_v2 = vshll.u32 %v10799_v24, 16  ;;  %v6164_v43 = vrot.slane %v6163_v21, 4  ;;  %v10797_v18 = vpack.c.bf16 %v5451_v54, %v5451_v54  ;;  %v10443_v35 = vrot.slane %v6484_v32, 9  ;;  %v12084_v47 = vld [vmem:[%s17322_s4 + $0x178] sm:$0xff]   ;;  %11625 = vmatpush3.bf16.msra.mxu0 %v12083_v22 }
 0x309   : > { %v5803_v62 = vrot.slane %v5801_v59, 7  ;;  %v10800_v57 = vpack.c.bf16 %v5454_v27, %v5454_v27  ;;  %v10798_v8 = vpack.c.bf16 %v5452_v61, %v5452_v61  ;;  %v6564_v40 = vrot.slane %v6562_v36, 4  ;;  %11520 = vmatprep.subr.bf16.mxu1 %v12084_v47  ;;  %v12088_v21 = vld [vmem:[%s17322_s4 + $0x138] sm:$0xff]   ;;  %v12089_v61 = vld [vmem:[%s17322_s4 + $0x1a0] sm:$0xff]  }
 0x30a   : > { %v6159_v51 = vsel %vm12869_vm11, %v6154_v44, %v6158_v55  ;;  %v6169_v42 = vsel %vm12869_vm11, %v6164_v43, %v6168_v5  ;;  %v5784_v34 = vshrl.u32 %v10797_v18, 16  ;;  %v6563_v56 = vsel %vm12879_vm13, %v10443_v35, %v6562_v36  ;;  %v12085_v55 = vld [vmem:[%s17322_s4 + $0x1e0] sm:$0xff]   ;;  %v6008_v36 = vld [vmem:[#allocation3 + $0x84] sm:$0xf]  ;;  %v6019_v5 = vld [vmem:[#allocation3 + $0x98] sm:$0x1]  ;;  %11521 = vmatpush3.bf16.msra.mxu1 %v12088_v21 }
 0x30b   : > { %v5806_v46 = vor.u32 %v5804_v2, %v5803_v62  ;;  %v10507_v16 = vcombine.low %v6159_v51, %v6169_v42  ;;  %v5809_v53 = vshrl.u32 %v10800_v57, 16  ;;  %v6565_v24 = vrot.slane %v15412_v1, 5  ;;  %11626 = vmatprep.subr.bf16.mxu0 %v12085_v55  ;;  %v6012_v35 = vld [vmem:[#allocation3 + $0x8c] sm:$0x1]  ;;  %v12092_v21 = vld [vmem:[%s17322_s4 + $0x1f0] sm:$0xff]  }
 0x30c   : > { %v5786_v49 = vrot.slane %v5784_v34, 7  ;;  %v5787_v48 = vshll.u32 %v10797_v18, 16  ;;  %v5812_v32 = vshll.u32 %v10800_v57, 16  ;;  %v5792_v44 = vshrl.u32 %v10798_v8, 16  ;;  %11627 = vmatpush3.bf16.msra.mxu0 %v12089_v61 }
 0x30d   : > { %v6016_v54 = vsel %vm15187_vm7, %v5806_v46, %v6015_v45  ;;  %9130 = vmatprep.mubr.bf16.mxu1 %v10507_v16  ;;  %v5811_v59 = vrot.slane %v5809_v53, 7  ;;  %v6566_v1 = vsel %vm12879_vm13, %v6564_v40, %v6565_v24  ;;  %v10491_v27 = vcombine.low %v15394_v31, %v15408_v15  ;;  %v15479_v45 = vld [vmem:[#allocation3 + $0x24] sm:$0xf]  ;;  %v15483_v31 = vld [vmem:[#allocation3 + $0x30] sm:$0xf] }
 0x30e   : > { %6017 = vst [vmem:[#allocation3 + $0x90] sm:$0xf] %v6016_v54  ;;  %v5789_v2 = vor.u32 %v5787_v48, %v5786_v49  ;;  %v5794_v43 = vrot.slane %v5792_v44, 7  ;;  %v5795_v18 = vshll.u32 %v10798_v8, 16  ;;  %v10523_v20 = vcombine.low %v6563_v56, %v6566_v1  ;;  %v15485_v15 = vld [vmem:[#allocation3 + $0x34] sm:$0xf] }
 0x30f   : > { %v15481_v57 = vrot.slane %v6723_v37, 4  ;;  %v5807_v40 = vrot.slane %v5803_v62, 4  ;;  %v5814_v51 = vor.u32 %v5812_v32, %v5811_v59  ;;  %v5816_v42 = vrot.slane %v5811_v59, 4  ;;  %9131 = vmatmul.mubr.bf16.gmra.mrb[136].mxu1 %v10491_v27  ;;  %v15489_v56 = vld [vmem:[#allocation3 + $0x28] sm:$0xf]  ;;  %v12090_v37 = vld [vmem:[%s17322_s4 + $0x1e8] sm:$0xff]  }
 0x310   : > { %v5790_v34 = vrot.slane %v5786_v49, 4  ;;  %v6009_v22 = vsel %vm15187_vm7, %v5789_v2, %v6008_v36  ;;  %v5797_v8 = vor.u32 %v5795_v18, %v5794_v43  ;;  %v5799_v47 = vrot.slane %v5794_v43, 4  ;;  %9292 = vmatmul.mubr.bf16.gmra.mrb[168].mxu0 %v10523_v20  ;;  %v15500_v53 = vld [vmem:[#allocation3 + $0x2c] sm:$0x1]  ;;  %v12091_v24 = vld [vmem:[%s17322_s4 + $0x1a8] sm:$0xff]   ;;  %11628 = vmatprep.subr.bf16.mxu0 %v12090_v37 }
 0x311   : > { %v6755_v62 = vshrl.u32 %v15422_v63, 16  ;;  %v6758_v55 = vshll.u32 %v15422_v63, 16  ;;  %6010 = vst [vmem:[#allocation3 + $0x84] sm:$0xf] %v6009_v22  ;;  %v5815_v46 = vsel %vm12489_vm2, %v5807_v40, %v5814_v51  ;;  %v6020_v16 = vsel %vm15193_vm8, %v5816_v42, %v6019_v5  ;;  %11629 = vmatpush3.bf16.msra.mxu0 %v12091_v24  ;;  %v6485_v22 = vld [vmem:[#allocation3 + $0x24] sm:$0xe] }
 0x312   : > { %6018 = vst [vmem:[#allocation3 + $0x94] sm:$0xf] %v5815_v46  ;;  %6021 = vst [vmem:[#allocation3 + $0x98] sm:$0x1] %v6020_v16  ;;  %v5798_v49 = vsel %vm12489_vm2, %v5790_v34, %v5797_v8  ;;  %v6013_v48 = vsel %vm15193_vm8, %v5799_v47, %v6012_v35  ;;  %v10540_v32 = vcombine.low %v15483_v31, %v15485_v15  ;;  %v6171_v54 = vshrl.u32 %v15479_v45, 16  ;;  %v12094_v35 = vld [vmem:[%s17322_s4 + $0x1b0] sm:$0xff]  }
 0x313   : > { %v5377_v44 = vadd.f32 %v15303_v26, %v15157_v30  ;;  %6011 = vst [vmem:[#allocation3 + $0x88] sm:$0xf] %v5798_v49  ;;  %6014 = vst [vmem:[#allocation3 + $0x8c] sm:$0x1] %v6013_v48  ;;  %v6174_v36 = vshll.u32 %v15479_v45, 16  ;;  %v6180_v59 = vshll.u32 %v15489_v56, 16  ;;  %v5369_v30 = vadd.f32 %v15310_v3, %v15151_v12  ;;  %11630 = vmatprep.subr.bf16.mxu0 %v12092_v21 }
 0x314   : > { %v6184_v5 = vshrl.u32 %v15489_v56, 16  ;;  %9299 = vmatprep.mubr.bf16.mxu0 %v10540_v32  ;;  %v6190_v27 = vshll.u32 %v15500_v53, 16  ;;  %v5380_v26 = vadd.f32 %v15324_v9, %v15159_v0  ;;  %v6173_v61 = vrot.slane %v6171_v54, 4  ;;  %v12095_v12 = vld [vmem:[%s17322_s4 + $0x1f8] sm:$0xff]   ;;  %v12098_v16 = vld [vmem:[%s17322_s4 + $0x200] sm:$0xff]  }
 0x315   : > { %v5425_v1 = vmul.f32 0.1, %v5377_v44  ;;  %v6176_v2 = vrot.slane %v6174_v36, 5  ;;  %v6182_v43 = vrot.slane %v6180_v59, 5  ;;  %v5423_v51 = vmul.f32 0.1, %v5369_v30  ;;  %11631 = vmatpush3.bf16.msra.mxu0 %v12094_v35  ;;  %11802 = vmatprep.subr.bf16.mxu1 %v12098_v16 }
 0x316   : > { %v6186_v18 = vrot.slane %v6184_v5, 4  ;;  %v5426_v42 = vmul.f32 0.1, %v5380_v26  ;;  %v15532_v0 = vrot.slane %v6755_v62, 4  ;;  %v5372_v34 = vadd.f32 %v15336_v7, %v15153_v14  ;;  %v12096_v32 = vld [vmem:[%s17322_s4 + $0x1b8] sm:$0xff]   ;;  %11632 = vmatprep.subr.bf16.mxu0 %v12095_v12 }
 0x317   : > { %v5457_v40 = vmax.f32 %v5377_v44, %v5425_v1  ;;  %v6177_v3 = vor.u32 %v6176_v2, %v6173_v61  ;;  %v6192_v47 = vrot.slane %v6190_v27, 5  ;;  %v5455_v37 = vmax.f32 %v5369_v30, %v5423_v51  ;;  %v6029_v61 = vld [vmem:[#allocation3 + $0xa8] sm:$0xf]  ;;  %v6022_v12 = vld [vmem:[#allocation3 + $0x9c] sm:$0xf] }
 0x318   : > { %v6187_v9 = vor.u32 %v6186_v18, %v6182_v43  ;;  %v5458_v46 = vmax.f32 %v5380_v26, %v5426_v42  ;;  %v5424_v48 = vmul.f32 0.1, %v5372_v34  ;;  %v6569_v62 = vrot.slane %v15489_v56, 5  ;;  %v6033_v16 = vld [vmem:[#allocation3 + $0xb0] sm:$0x1] }
 0x319   : > { %v10803_v8 = vpack.c.bf16 %v5457_v40, %v5457_v40  ;;  %v6178_v24 = vrot.slane %v6177_v3, 4  ;;  %v10801_v7 = vpack.c.bf16 %v5455_v37, %v5455_v37  ;;  %v10444_v21 = vrot.slane %v6485_v22, 9  ;;  %11633 = vmatpush3.bf16.msra.mxu0 %v12096_v32  ;;  %v15560_v32 = vld [vmem:[#allocation3 + $0x3c] sm:$0xf] }
 0x31a   : > { %v6188_v49 = vrot.slane %v6187_v9, 4  ;;  %v10804_v44 = vpack.c.bf16 %v5458_v46, %v5458_v46  ;;  %v5456_v59 = vmax.f32 %v5372_v34, %v5424_v48  ;;  %v6572_v5 = vrot.slane %v15500_v53, 5 }
 0x31b   : > { %v5835_v14 = vshrl.u32 %v10803_v8, 16  ;;  %v6183_v54 = vsel %vm12869_vm11, %v6178_v24, %v6182_v43  ;;  %v5838_v27 = vshll.u32 %v10803_v8, 16  ;;  %v5818_v26 = vshrl.u32 %v10801_v7, 16  ;;  %v15554_v8 = vld [vmem:[#allocation3 + $0x40] sm:$0xf] }
 0x31c   : > { %v6193_v36 = vsel %vm12869_vm11, %v6188_v49, %v6192_v47  ;;  %v5843_v2 = vshrl.u32 %v10804_v44, 16  ;;  %v10802_v18 = vpack.c.bf16 %v5456_v59, %v5456_v59  ;;  %v6570_v35 = vsel %vm12879_vm13, %v10444_v21, %v6569_v62  ;;  %v15558_v49 = vld [vmem:[#allocation3 + $0x30] sm:$0xf]  ;;  %v6026_v21 = vld [vmem:[#allocation3 + $0xa4] sm:$0x1] }
 0x31d   : > { %v5837_v1 = vrot.slane %v5835_v14, 7  ;;  %v10508_v30 = vcombine.low %v6183_v54, %v6193_v36  ;;  %v6571_v40 = vrot.slane %v6569_v62, 4  ;;  %v5820_v43 = vrot.slane %v5818_v26, 7  ;;  %v15570_v36 = vld [vmem:[#allocation3 + $0x34] sm:$0xf] }
 0x31e   : > { %v5821_v42 = vshll.u32 %v10801_v7, 16  ;;  %v10492_v53 = vcombine.low %v15479_v45, %v15489_v56  ;;  %v5845_v3 = vrot.slane %v5843_v2, 7  ;;  %v5846_v9 = vshll.u32 %v10804_v44, 16 }
 0x31f   : > { %v5840_v51 = vor.u32 %v5838_v27, %v5837_v1  ;;  %9138 = vmatprep.mubr.bf16.mxu1 %v10508_v30  ;;  %v5826_v34 = vshrl.u32 %v10802_v18, 16  ;;  %v6573_v22 = vsel %vm12879_vm13, %v6571_v40, %v6572_v5  ;;  %v5841_v47 = vrot.slane %v5837_v1, 4  ;;  %v15576_v1 = vld [vmem:[#allocation3 + $0x38] sm:$0x1] }
 0x320   : > { %v5823_v46 = vor.u32 %v5821_v42, %v5820_v43  ;;  %v10524_v24 = vcombine.low %v6570_v35, %v6573_v22  ;;  %9139 = vmatmul.mubr.bf16.gmra.mrb[140].mxu1 %v10492_v53  ;;  %v5848_v45 = vor.u32 %v5846_v9, %v5845_v3  ;;  %v5850_v56 = vrot.slane %v5845_v3, 4 }
 0x321   : > { %v6030_v37 = vsel %vm15187_vm7, %v5840_v51, %v6029_v61  ;;  %v5828_v48 = vrot.slane %v5826_v34, 7  ;;  %v5829_v62 = vshll.u32 %v10802_v18, 16  ;;  %v15564_v14 = vrot.slane %v6758_v55, 5 }
 0x322   : > { %6031 = vst [vmem:[#allocation3 + $0xa8] sm:$0xf] %v6030_v37  ;;  %v5824_v7 = vrot.slane %v5820_v43, 4  ;;  %v6023_v44 = vsel %vm15187_vm7, %v5823_v46, %v6022_v12  ;;  %9300 = vmatmul.mubr.bf16.gmra.mrb[172].mxu0 %v10524_v24  ;;  %v10541_v54 = vcombine.low %v15560_v32, %v15554_v8  ;;  %v5849_v59 = vsel %vm12489_vm2, %v5841_v47, %v5848_v45  ;;  %v6486_v37 = vld [vmem:[#allocation3 + $0x30] sm:$0xe] }
 0x323   : > { %6024 = vst [vmem:[#allocation3 + $0x9c] sm:$0xf] %v6023_v44  ;;  %v6034_v63 = vsel %vm15193_vm8, %v5850_v56, %v6033_v16  ;;  %v5831_v55 = vor.u32 %v5829_v62, %v5828_v48  ;;  %v5833_v5 = vrot.slane %v5828_v48, 4  ;;  %v6779_v27 = vshrl.u32 %v15483_v31, 16  ;;  %6032 = vst [vmem:[#allocation3 + $0xac] sm:$0xf] %v5849_v59 }
 0x324   : > { %v6782_v30 = vshll.u32 %v15483_v31, 16  ;;  %6035 = vst [vmem:[#allocation3 + $0xb0] sm:$0x1] %v6034_v63  ;;  %9307 = vmatprep.mubr.bf16.mxu0 %v10541_v54  ;;  %v5393_v26 = vadd.f32 %v15359_v28, %v15175_v13  ;;  %v6195_v61 = vshrl.u32 %v15558_v49, 16  ;;  %v6198_v35 = vshll.u32 %v15558_v49, 16 }
 0x325   : > { %v5832_v2 = vsel %vm12489_vm2, %v5824_v7, %v5831_v55  ;;  %v6027_v18 = vsel %vm15193_vm8, %v5833_v5, %v6026_v21  ;;  %v6204_v40 = vshll.u32 %v15570_v36, 16  ;;  %v6208_v42 = vshrl.u32 %v15570_v36, 16 }
 0x326   : > { %6025 = vst [vmem:[#allocation3 + $0xa0] sm:$0xf] %v5832_v2  ;;  %6028 = vst [vmem:[#allocation3 + $0xa4] sm:$0x1] %v6027_v18  ;;  %v5429_v51 = vmul.f32 0.1, %v5393_v26  ;;  %v5385_v53 = vadd.f32 %v15365_v11, %v15163_v25  ;;  %v5396_v3 = vadd.f32 %v15368_v29, %v15179_v41  ;;  %v5388_v47 = vadd.f32 %v15370_v50, %v15166_v58 }
 0x327   : > { %v6197_v43 = vrot.slane %v6195_v61, 4  ;;  %v6214_v13 = vshll.u32 %v15576_v1, 16  ;;  %v6200_v28 = vrot.slane %v6198_v35, 5  ;;  %v6206_v12 = vrot.slane %v6204_v40, 5  ;;  %v6043_v18 = vld [vmem:[#allocation3 + $0xc0] sm:$0xf] }
 0x328   : > { %v5461_v34 = vmax.f32 %v5393_v26, %v5429_v51  ;;  %v6210_v22 = vrot.slane %v6208_v42, 4  ;;  %v5427_v24 = vmul.f32 0.1, %v5385_v53  ;;  %v5430_v45 = vmul.f32 0.1, %v5396_v3 }
 0x329   : > { %v6201_v46 = vor.u32 %v6200_v28, %v6197_v43  ;;  %v6216_v16 = vrot.slane %v6214_v13, 5  ;;  %v5428_v62 = vmul.f32 0.1, %v5388_v47  ;;  %v6576_v25 = vrot.slane %v15570_v36, 5 }
 0x32a   : > { %v10807_v56 = vpack.c.bf16 %v5461_v34, %v5461_v34  ;;  %v6211_v48 = vor.u32 %v6210_v22, %v6206_v12  ;;  %v5459_v7 = vmax.f32 %v5385_v53, %v5427_v24  ;;  %v5462_v41 = vmax.f32 %v5396_v3, %v5430_v45  ;;  %v6036_v53 = vld [vmem:[#allocation3 + $0xb4] sm:$0xf] }
 0x32b   : > { %v6202_v11 = vrot.slane %v6201_v46, 4  ;;  %v10445_v29 = vrot.slane %v6486_v37, 9  ;;  %v5460_v54 = vmax.f32 %v5388_v47, %v5428_v62  ;;  %v6579_v59 = vrot.slane %v15576_v1, 5  ;;  %v6047_v37 = vld [vmem:[#allocation3 + $0xc8] sm:$0x1] }
 0x32c   : > { %v5869_v44 = vshrl.u32 %v10807_v56, 16  ;;  %v6212_v21 = vrot.slane %v6211_v48, 4  ;;  %v5872_v58 = vshll.u32 %v10807_v56, 16  ;;  %v10805_v63 = vpack.c.bf16 %v5459_v7, %v5459_v7  ;;  %v15614_v7 = vld [vmem:[#allocation3 + $0x3c] sm:$0xf] }
 0x32d   : > { %v6207_v50 = vsel %vm12869_vm11, %v6202_v11, %v6206_v12  ;;  %v10808_v55 = vpack.c.bf16 %v5462_v41, %v5462_v41  ;;  %v10806_v61 = vpack.c.bf16 %v5460_v54, %v5460_v54  ;;  %v6578_v2 = vrot.slane %v6576_v25, 4  ;;  %v15612_v11 = vld [vmem:[#allocation3 + $0x4c] sm:$0xf]  ;;  %v15617_v54 = vld [vmem:[#allocation3 + $0x40] sm:$0xf] }
 0x32e   : > { %v5871_v5 = vrot.slane %v5869_v44, 7  ;;  %v6217_v26 = vsel %vm12869_vm11, %v6212_v21, %v6216_v16  ;;  %v5852_v40 = vshrl.u32 %v10805_v63, 16  ;;  %v6577_v43 = vsel %vm12879_vm13, %v10445_v29, %v6576_v25  ;;  %v6040_v16 = vld [vmem:[#allocation3 + $0xbc] sm:$0x1] }
 0x32f   : > { %v10509_v35 = vcombine.low %v6207_v50, %v6217_v26  ;;  %v5877_v51 = vshrl.u32 %v10808_v55, 16  ;;  %v5855_v42 = vshll.u32 %v10805_v63, 16  ;;  %v5880_v13 = vshll.u32 %v10808_v55, 16  ;;  %v6668_v55 = vld [vmem:[#allocation3 + $0x48] sm:$0xf] }
 0x330   : > { %v5874_v1 = vor.u32 %v5872_v58, %v5871_v5  ;;  %v5860_v28 = vshrl.u32 %v10806_v61, 16  ;;  %v5854_v12 = vrot.slane %v5852_v40, 7  ;;  %v5863_v34 = vshll.u32 %v10806_v61, 16  ;;  %v6487_v61 = vld [vmem:[#allocation3 + $0x3c] sm:$0xe] }
 0x331   : > { %9146 = vmatprep.mubr.bf16.mxu1 %v10509_v35  ;;  %v5879_v3 = vrot.slane %v5877_v51, 7  ;;  %v6580_v22 = vsel %vm12879_vm13, %v6578_v2, %v6579_v59  ;;  %v10493_v45 = vcombine.low %v15558_v49, %v15570_v36  ;;  %v5875_v56 = vrot.slane %v5871_v5, 4  ;;  %v6087_v5 = vld [vmem:[#allocation3 + $0x44] sm:$0x1] }
 0x332   : > { %v6044_v47 = vsel %vm15187_vm7, %v5874_v1, %v6043_v18  ;;  %v5862_v46 = vrot.slane %v5860_v28, 7  ;;  %v10525_v24 = vcombine.low %v6577_v43, %v6580_v22  ;;  %v5857_v48 = vor.u32 %v5855_v42, %v5854_v12  ;;  %v15647_v1 = vld [vmem:[#allocation3 + $0x48] sm:$0xf] }
 0x333   : > { %6045 = vst [vmem:[#allocation3 + $0xc0] sm:$0xf] %v6044_v47  ;;  %v5882_v62 = vor.u32 %v5880_v13, %v5879_v3  ;;  %v5884_v25 = vrot.slane %v5879_v3, 4  ;;  %v6803_v41 = vshrl.u32 %v15560_v32, 16  ;;  %v5858_v29 = vrot.slane %v5854_v12, 4  ;;  %9147 = vmatmul.mubr.bf16.gmra.mrb[144].mxu1 %v10493_v45 }
 0x334   : > { %v5865_v44 = vor.u32 %v5863_v34, %v5862_v46  ;;  %v5867_v21 = vrot.slane %v5862_v46, 4  ;;  %9308 = vmatmul.mubr.bf16.gmra.mrb[176].mxu0 %v10525_v24  ;;  %v15621_v49 = vrot.slane %v6779_v27, 4  ;;  %v6037_v36 = vsel %vm15187_vm7, %v5857_v48, %v6036_v53  ;;  %v15649_v53 = vld [vmem:[#allocation3 + $0x58] sm:$0xf]  ;;  %v6088_v48 = vld [vmem:[#allocation3 + $0x50] sm:$0x1] }
 0x335   : > { %v5883_v59 = vsel %vm12489_vm2, %v5875_v56, %v5882_v62  ;;  %v6048_v58 = vsel %vm15193_vm8, %v5884_v25, %v6047_v37  ;;  %v15631_v50 = vrot.slane %v6782_v30, 5  ;;  %v6806_v63 = vshll.u32 %v15560_v32, 16  ;;  %6038 = vst [vmem:[#allocation3 + $0xb4] sm:$0xf] %v6037_v36  ;;  %v15653_v37 = vld [vmem:[#allocation3 + $0x4c] sm:$0xf] }
 0x336   : > { %6046 = vst [vmem:[#allocation3 + $0xc4] sm:$0xf] %v5883_v59  ;;  %6049 = vst [vmem:[#allocation3 + $0xc8] sm:$0x1] %v6048_v58  ;;  %v5866_v27 = vsel %vm12489_vm2, %v5858_v29, %v5865_v44  ;;  %v6041_v33 = vsel %vm15193_vm8, %v5867_v21, %v6040_v16  ;;  %v10542_v26 = vcombine.low %v6668_v55, %v15612_v11  ;;  %v6219_v31 = vshrl.u32 %v15614_v7, 16 }
 0x337   : > { %6039 = vst [vmem:[#allocation3 + $0xb8] sm:$0xf] %v5866_v27  ;;  %6042 = vst [vmem:[#allocation3 + $0xbc] sm:$0x1] %v6041_v33  ;;  %v6222_v30 = vshll.u32 %v15614_v7, 16  ;;  %v6228_v32 = vshll.u32 %v15617_v54, 16 }
 0x338   : > { %v15642_v2 = vrot.slane %v6803_v41, 4  ;;  %v6232_v23 = vshrl.u32 %v15617_v54, 16  ;;  %v6583_v18 = vrot.slane %v15617_v54, 5  ;;  %9315 = vmatprep.mubr.bf16.mxu0 %v10542_v26  ;;  %v6221_v35 = vrot.slane %v6219_v31, 4  ;;  %v15660_v56 = vld [vmem:[#allocation3 + $0x54] sm:$0xf] }
 0x339   : > { %v6224_v40 = vrot.slane %v6222_v30, 5  ;;  %v6230_v51 = vrot.slane %v6228_v32, 5  ;;  %v6238_v43 = vshll.u32 %v6087_v5, 16  ;;  %v10446_v13 = vrot.slane %v6487_v61, 9  ;;  %v6488_v30 = vld [vmem:[#allocation3 + $0x48] sm:$0xe] }
 0x33a   : > { %v6234_v42 = vrot.slane %v6232_v23, 4  ;;  %v6585_v28 = vrot.slane %v6583_v18, 4  ;;  %v6586_v12 = vrot.slane %v6087_v5, 5  ;;  %v15651_v3 = vrot.slane %v6806_v63, 5 }
 0x33b   : > { %v6827_v34 = vshrl.u32 %v6668_v55, 16  ;;  %v6830_v22 = vshll.u32 %v6668_v55, 16  ;;  %v6225_v47 = vor.u32 %v6224_v40, %v6221_v35  ;;  %v6584_v24 = vsel %vm12879_vm13, %v10446_v13, %v6583_v18  ;;  %v15677_v35 = vld [vmem:[#allocation3 + $0x60] sm:$0xf]  ;;  %v15683_v13 = vld [vmem:[#allocation3 + $0x64] sm:$0xf] }
 0x33c   : > { %v6235_v16 = vor.u32 %v6234_v42, %v6230_v51  ;;  %v6587_v45 = vsel %vm12879_vm13, %v6585_v28, %v6586_v12  ;;  %v6240_v25 = vrot.slane %v6238_v43, 5  ;;  %v10543_v29 = vcombine.low %v15660_v56, %v15649_v53  ;;  %v15685_v28 = vld [vmem:[#allocation3 + $0x54] sm:$0xf] }
 0x33d   : > { %v6226_v62 = vrot.slane %v6225_v47, 4  ;;  %v10526_v41 = vcombine.low %v6584_v24, %v6587_v45  ;;  %v6243_v21 = vshrl.u32 %v15647_v1, 16  ;;  %v6246_v36 = vshll.u32 %v15647_v1, 16  ;;  %v15805_v24 = vld [vmem:[#allocation3 + $0x88] sm:$0xf] }
 0x33e   : > { %v6236_v44 = vrot.slane %v6235_v16, 4  ;;  %v6252_v59 = vshll.u32 %v15653_v37, 16  ;;  %v15667_v58 = vrot.slane %v6827_v34, 4  ;;  %v6256_v27 = vshrl.u32 %v15653_v37, 16  ;;  %v15687_v16 = vld [vmem:[#allocation3 + $0x58] sm:$0xf] }
 0x33f   : > { %v6231_v63 = vsel %vm12869_vm11, %v6226_v62, %v6230_v51  ;;  %9316 = vmatmul.mubr.bf16.gmra.mrb[180].mxu0 %v10526_v41  ;;  %v6262_v33 = vshll.u32 %v6088_v48, 16  ;;  %v6245_v5 = vrot.slane %v6243_v21, 4  ;;  %v6248_v26 = vrot.slane %v6246_v36, 5  ;;  %v6089_v41 = vld [vmem:[#allocation3 + $0x5c] sm:$0x1] }
 0x340   : > { %v6241_v55 = vsel %vm12869_vm11, %v6236_v44, %v6240_v25  ;;  %9323 = vmatprep.mubr.bf16.mxu0 %v10543_v29  ;;  %v6254_v31 = vrot.slane %v6252_v59, 5  ;;  %v15674_v32 = vrot.slane %v6830_v22, 5  ;;  %v6258_v23 = vrot.slane %v6256_v27, 4 }
 0x341   : > { %v10510_v61 = vcombine.low %v6231_v63, %v6241_v55  ;;  %v6590_v18 = vrot.slane %v15653_v37, 5  ;;  %v10494_v40 = vcombine.low %v15614_v7, %v15617_v54  ;;  %v6851_v51 = vshrl.u32 %v15660_v56, 16  ;;  %v6489_v55 = vld [vmem:[#allocation3 + $0x54] sm:$0xe] }
 0x342   : > { %v6854_v43 = vshll.u32 %v15660_v56, 16  ;;  %v6249_v42 = vor.u32 %v6248_v26, %v6245_v5  ;;  %v6259_v12 = vor.u32 %v6258_v23, %v6254_v31  ;;  %v10447_v34 = vrot.slane %v6488_v30, 9 }
 0x343   : > { %9154 = vmatprep.mubr.bf16.mxu1 %v10510_v61  ;;  %v6592_v22 = vrot.slane %v6590_v18, 4  ;;  %v6593_v47 = vrot.slane %v6088_v48, 5  ;;  %v6264_v54 = vrot.slane %v6262_v33, 5  ;;  %v6875_v45 = vshrl.u32 %v15677_v35, 16 }
 0x344   : > { %9155 = vmatmul.mubr.bf16.gmra.mrb[148].mxu1 %v10494_v40  ;;  %v6250_v7 = vrot.slane %v6249_v42, 4  ;;  %v6260_v56 = vrot.slane %v6259_v12, 4  ;;  %v6591_v62 = vsel %vm12879_vm13, %v10447_v34, %v6590_v18  ;;  %v6267_v29 = vshrl.u32 %v15685_v28, 16 }
 0x345   : > { %v6594_v25 = vsel %vm12879_vm13, %v6592_v22, %v6593_v47  ;;  %v10544_v44 = vcombine.low %v15677_v35, %v15683_v13  ;;  %v6270_v21 = vshll.u32 %v15685_v28, 16  ;;  %v6276_v36 = vshll.u32 %v15687_v16, 16  ;;  %v15713_v47 = vld [vmem:[#allocation3 + $0x60] sm:$0xf] }
 0x346   : > { %v10527_v48 = vcombine.low %v6591_v62, %v6594_v25  ;;  %v6255_v59 = vsel %vm12869_vm11, %v6250_v7, %v6254_v31  ;;  %v6265_v63 = vsel %vm12869_vm11, %v6260_v56, %v6264_v54  ;;  %v6269_v27 = vrot.slane %v6267_v29, 4  ;;  %v15715_v7 = vld [vmem:[#allocation3 + $0x64] sm:$0xf]  ;;  %v15719_v62 = vld [vmem:[#allocation3 + $0x70] sm:$0xf] }
 0x347   : > { %v6280_v33 = vshrl.u32 %v15687_v16, 16  ;;  %v10511_v5 = vcombine.low %v6255_v59, %v6265_v63  ;;  %v6272_v26 = vrot.slane %v6270_v21, 5  ;;  %v6278_v30 = vrot.slane %v6276_v36, 5 }
 0x348   : > { %9324 = vmatmul.mubr.bf16.gmra.mrb[184].mxu0 %v10527_v48  ;;  %v6286_v61 = vshll.u32 %v6089_v41, 16  ;;  %v15705_v23 = vrot.slane %v6851_v51, 4  ;;  %v15707_v18 = vrot.slane %v6854_v43, 5  ;;  %v6597_v31 = vrot.slane %v15687_v16, 5 }
 0x349   : > { %9331 = vmatprep.mubr.bf16.mxu0 %v10544_v44  ;;  %v6282_v40 = vrot.slane %v6280_v33, 4  ;;  %9162 = vmatprep.mubr.bf16.mxu1 %v10511_v5  ;;  %v10495_v42 = vcombine.low %v15647_v1, %v15653_v37  ;;  %v6878_v12 = vshll.u32 %v15677_v35, 16  ;;  %v6273_v34 = vor.u32 %v6272_v26, %v6269_v27  ;;  %v6090_v35 = vld [vmem:[#allocation3 + $0x68] sm:$0x1] }
 0x34a   : > { %v10448_v22 = vrot.slane %v6489_v55, 9  ;;  %v15717_v51 = vrot.slane %v6875_v45, 4  ;;  %v6599_v54 = vrot.slane %v6597_v31, 4  ;;  %v6600_v56 = vrot.slane %v6089_v41, 5  ;;  %v6674_v45 = vld [vmem:[#allocation3 + $0x6c] sm:$0xf] }
 0x34b   : > { %v6283_v43 = vor.u32 %v6282_v40, %v6278_v30  ;;  %v6274_v29 = vrot.slane %v6273_v34, 4  ;;  %v6288_v1 = vrot.slane %v6286_v61, 5  ;;  %v6291_v21 = vshrl.u32 %v15713_v47, 16  ;;  %v6490_v61 = vld [vmem:[#allocation3 + $0x60] sm:$0xe] }
 0x34c   : > { %9163 = vmatmul.mubr.bf16.gmra.mrb[152].mxu1 %v10495_v42  ;;  %v6598_v37 = vsel %vm12879_vm13, %v10448_v22, %v6597_v31  ;;  %v6601_v44 = vsel %vm12879_vm13, %v6599_v54, %v6600_v56  ;;  %v6294_v41 = vshll.u32 %v15713_v47, 16  ;;  %v10545_v59 = vcombine.low %v6674_v45, %v15719_v62  ;;  %v15740_v56 = vld [vmem:[#allocation3 + $0x78] sm:$0xf] }
 0x34d   : > { %v6284_v48 = vrot.slane %v6283_v43, 4  ;;  %v10528_v36 = vcombine.low %v6598_v37, %v6601_v44  ;;  %v6300_v63 = vshll.u32 %v15715_v7, 16  ;;  %v6304_v27 = vshrl.u32 %v15715_v7, 16 }
 0x34e   : > { %v6279_v33 = vsel %vm12869_vm11, %v6274_v29, %v6278_v30  ;;  %v6293_v5 = vrot.slane %v6291_v21, 4  ;;  %v6296_v26 = vrot.slane %v6294_v41, 5  ;;  %v6310_v34 = vshll.u32 %v6090_v35, 16  ;;  %v15742_v29 = vld [vmem:[#allocation3 + $0x7c] sm:$0xf] }
 0x34f   : > { %v6289_v55 = vsel %vm12869_vm11, %v6284_v48, %v6288_v1  ;;  %v6302_v31 = vrot.slane %v6300_v63, 5  ;;  %v6306_v42 = vrot.slane %v6304_v27, 4  ;;  %v15735_v22 = vrot.slane %v6878_v12, 5  ;;  %v15744_v21 = vld [vmem:[#allocation3 + $0x6c] sm:$0xf] }
 0x350   : > { %v10512_v40 = vcombine.low %v6279_v33, %v6289_v55  ;;  %9332 = vmatmul.mubr.bf16.gmra.mrb[188].mxu0 %v10528_v36  ;;  %v10496_v43 = vcombine.low %v15685_v28, %v15687_v16  ;;  %v6297_v54 = vor.u32 %v6296_v26, %v6293_v5  ;;  %v6604_v30 = vrot.slane %v15715_v7, 5  ;;  %v15747_v16 = vld [vmem:[#allocation3 + $0x70] sm:$0xf]  ;;  %v6091_v33 = vld [vmem:[#allocation3 + $0x74] sm:$0x1] }
 0x351   : > { %9339 = vmatprep.mubr.bf16.mxu0 %v10545_v59  ;;  %v6899_v1 = vshrl.u32 %v6674_v45, 16  ;;  %v6902_v37 = vshll.u32 %v6674_v45, 16  ;;  %v6307_v48 = vor.u32 %v6306_v42, %v6302_v31  ;;  %v10449_v44 = vrot.slane %v6490_v61, 9 }
 0x352   : > { %9170 = vmatprep.mubr.bf16.mxu1 %v10512_v40  ;;  %v6298_v41 = vrot.slane %v6297_v54, 4  ;;  %v6606_v36 = vrot.slane %v6604_v30, 4  ;;  %v6607_v28 = vrot.slane %v6090_v35, 5  ;;  %v6312_v63 = vrot.slane %v6310_v34, 5 }
 0x353   : > { %v6308_v59 = vrot.slane %v6307_v48, 4  ;;  %v6605_v27 = vsel %vm12879_vm13, %v10449_v44, %v6604_v30  ;;  %v10546_v45 = vcombine.low %v15740_v56, %v15742_v29  ;;  %v6315_v35 = vshrl.u32 %v15744_v21, 16 }
 0x354   : > { %9171 = vmatmul.mubr.bf16.gmra.mrb[156].mxu1 %v10496_v43  ;;  %v6303_v55 = vsel %vm12869_vm11, %v6298_v41, %v6302_v31  ;;  %v6608_v5 = vsel %vm12879_vm13, %v6606_v36, %v6607_v28  ;;  %v6318_v26 = vshll.u32 %v15744_v21, 16  ;;  %v6324_v42 = vshll.u32 %v15747_v16, 16  ;;  %v6491_v31 = vld [vmem:[#allocation3 + $0x6c] sm:$0xe] }
 0x355   : > { %v6313_v61 = vsel %vm12869_vm11, %v6308_v59, %v6312_v63  ;;  %v10529_v40 = vcombine.low %v6605_v27, %v6608_v5  ;;  %v6328_v34 = vshrl.u32 %v15747_v16, 16  ;;  %v6317_v54 = vrot.slane %v6315_v35, 4 }
 0x356   : > { %v10513_v43 = vcombine.low %v6303_v55, %v6313_v61  ;;  %v6320_v30 = vrot.slane %v6318_v26, 5  ;;  %v6334_v48 = vshll.u32 %v6091_v33, 16  ;;  %v15763_v44 = vrot.slane %v6899_v1, 4  ;;  %v15771_v55 = vld [vmem:[#allocation3 + $0x78] sm:$0xf] }
 0x357   : > { %v6326_v41 = vrot.slane %v6324_v42, 5  ;;  %v6330_v36 = vrot.slane %v6328_v34, 4  ;;  %v6611_v28 = vrot.slane %v15747_v16, 5  ;;  %v15766_v12 = vrot.slane %v6902_v37, 5  ;;  %v15775_v34 = vld [vmem:[#allocation3 + $0x7c] sm:$0xf] }
 0x358   : > { %9340 = vmatmul.mubr.bf16.gmra.mrb[192].mxu0 %v10529_v40  ;;  %9178 = vmatprep.mubr.bf16.mxu1 %v10513_v43  ;;  %v10497_v59 = vcombine.low %v15713_v47, %v15715_v7  ;;  %v6923_v63 = vshrl.u32 %v15740_v56, 16  ;;  %v6321_v27 = vor.u32 %v6320_v30, %v6317_v54  ;;  %v10450_v1 = vrot.slane %v6491_v31, 9  ;;  %v15781_v43 = vld [vmem:[#allocation3 + $0x88] sm:$0xf]  ;;  %v6092_v54 = vld [vmem:[#allocation3 + $0x80] sm:$0x1] }
 0x359   : > { %9347 = vmatprep.mubr.bf16.mxu0 %v10546_v45  ;;  %v6331_v5 = vor.u32 %v6330_v36, %v6326_v41  ;;  %v6613_v35 = vrot.slane %v6611_v28, 4  ;;  %v6614_v26 = vrot.slane %v6091_v33, 5  ;;  %v6926_v61 = vshll.u32 %v15740_v56, 16  ;;  %17482 = vst [vmem:[#allocation13_spill] sm:$0xff] %v15781_v43  ;;  %v6492_v40 = vld [vmem:[#allocation3 + $0x78] sm:$0xe] }
 0x35a   : > { %v6322_v37 = vrot.slane %v6321_v27, 4  ;;  %v6336_v42 = vrot.slane %v6334_v48, 5  ;;  %v6612_v7 = vsel %vm12879_vm13, %v10450_v1, %v6611_v28  ;;  %v6339_v33 = vshrl.u32 %v15771_v55, 16  ;;  %v6678_v28 = vld [vmem:[#allocation3 + $0x84] sm:$0xf] }
 0x35b   : > { %v6332_v47 = vrot.slane %v6331_v5, 4  ;;  %v6615_v45 = vsel %vm12879_vm13, %v6613_v35, %v6614_v26  ;;  %v15784_v56 = vrot.slane %v6923_v63, 4  ;;  %v6342_v31 = vshll.u32 %v15771_v55, 16 }
 0x35c   : > { %9179 = vmatmul.mubr.bf16.gmra.mrb[160].mxu1 %v10497_v59  ;;  %v6327_v30 = vsel %vm12869_vm11, %v6322_v37, %v6326_v41  ;;  %v10530_v48 = vcombine.low %v6612_v7, %v6615_v45  ;;  %v6341_v59 = vrot.slane %v6339_v33, 4  ;;  %v6348_v27 = vshll.u32 %v15775_v34, 16 }
 0x35d   : > { %v6337_v36 = vsel %vm12869_vm11, %v6332_v47, %v6336_v42  ;;  %v6352_v5 = vshrl.u32 %v15775_v34, 16  ;;  %v10547_v35 = vcombine.low %v6678_v28, %v15781_v43  ;;  %v6344_v63 = vrot.slane %v6342_v31, 5  ;;  %v15797_v42 = vld [vmem:[#allocation3 + $0x90] sm:$0xf]  ;;  %v15801_v31 = vld [vmem:[#allocation3 + $0x94] sm:$0xf] }
 0x35e   : > { %v10514_v1 = vcombine.low %v6327_v30, %v6337_v36  ;;  %v6358_v26 = vshll.u32 %v6092_v54, 16  ;;  %v15794_v25 = vrot.slane %v6926_v61, 5  ;;  %v6350_v41 = vrot.slane %v6348_v27, 5  ;;  %17483 = vst [vmem:[#allocation18_spill] sm:$0xff] %v15801_v31  ;;  %v15803_v36 = vld [vmem:[#allocation3 + $0x84] sm:$0xf] }
 0x35f   : > { %v6354_v37 = vrot.slane %v6352_v5, 4  ;;  %v6618_v7 = vrot.slane %v15775_v34, 5  ;;  %v10498_v47 = vcombine.low %v15744_v21, %v15747_v16  ;;  %v6947_v45 = vshrl.u32 %v6678_v28, 16 }
 0x360   : > { %9348 = vmatmul.mubr.bf16.gmra.mrb[196].mxu0 %v10530_v48  ;;  %9186 = vmatprep.mubr.bf16.mxu1 %v10514_v1  ;;  %v6950_v33 = vshll.u32 %v6678_v28, 16  ;;  %v6345_v30 = vor.u32 %v6344_v63, %v6341_v59  ;;  %v10451_v48 = vrot.slane %v6492_v40, 9  ;;  %v6621_v5 = vrot.slane %v6092_v54, 5 }
 0x361   : > { %9355 = vmatprep.mubr.bf16.mxu0 %v10547_v35  ;;  %v6355_v61 = vor.u32 %v6354_v37, %v6350_v41  ;;  %v6620_v27 = vrot.slane %v6618_v7, 4  ;;  %v6360_v6 = vrot.slane %v6358_v26, 5  ;;  %v6971_v21 = vshrl.u32 %v15797_v42, 16  ;;  %v6093_v35 = vld [vmem:[#allocation3 + $0x8c] sm:$0x1] }
 0x362   : > { %v6346_v1 = vrot.slane %v6345_v30, 4  ;;  %v6619_v28 = vsel %vm12879_vm13, %v10451_v48, %v6618_v7  ;;  %v6363_v40 = vshrl.u32 %v15803_v36, 16  ;;  %v10548_v63 = vcombine.low %v15797_v42, %v15801_v31  ;;  %v6493_v48 = vld [vmem:[#allocation3 + $0x84] sm:$0xe] }
 0x363   : > { %v6356_v16 = vrot.slane %v6355_v61, 4  ;;  %v6622_v59 = vsel %vm12879_vm13, %v6620_v27, %v6621_v5  ;;  %v6366_v26 = vshll.u32 %v15803_v36, 16  ;;  %v6372_v37 = vshll.u32 %v15805_v24, 16 }
 0x364   : > { %9187 = vmatmul.mubr.bf16.gmra.mrb[164].mxu1 %v10498_v47  ;;  %v6351_v54 = vsel %vm12869_vm11, %v6346_v1, %v6350_v41  ;;  %v10531_v7 = vcombine.low %v6619_v28, %v6622_v59  ;;  %v6365_v30 = vrot.slane %v6363_v40, 4  ;;  %v6376_v61 = vshrl.u32 %v15805_v24, 16  ;;  %v15831_v40 = vld [vmem:[#allocation3 + $0x90] sm:$0xf] }
 0x365   : > { %v6361_v47 = vsel %vm12869_vm11, %v6356_v16, %v6360_v6  ;;  %v6368_v5 = vrot.slane %v6366_v26, 5  ;;  %v6374_v46 = vrot.slane %v6372_v37, 5  ;;  %v6382_v9 = vshll.u32 %v6093_v35, 16 }
 0x366   : > { %v10515_v27 = vcombine.low %v6351_v54, %v6361_v47  ;;  %v15823_v41 = vrot.slane %v6947_v45, 4  ;;  %v15825_v1 = vrot.slane %v6950_v33, 5  ;;  %v6378_v20 = vrot.slane %v6376_v61, 4  ;;  %v15833_v54 = vld [vmem:[#allocation3 + $0x94] sm:$0xf] }
 0x367   : > { %v6625_v52 = vrot.slane %v15805_v24, 5  ;;  %v10499_v6 = vcombine.low %v15771_v55, %v15775_v34  ;;  %v6974_v16 = vshll.u32 %v15797_v42, 16  ;;  %v6369_v28 = vor.u32 %v6368_v5, %v6365_v30  ;;  %v15837_v47 = vld [vmem:[#allocation3 + $0xa0] sm:$0xf]  ;;  %v6094_v42 = vld [vmem:[#allocation3 + $0x98] sm:$0x1] }
 0x368   : > { %17484 = vst [vmem:[#allocation14_spill] sm:$0xff] %v15823_v41  ;;  %17485 = vst [vmem:[#allocation22_spill] sm:$0xff] %v15825_v1  ;;  %9356 = vmatmul.mubr.bf16.gmra.mrb[200].mxu0 %v10531_v7  ;;  %9194 = vmatprep.mubr.bf16.mxu1 %v10515_v27  ;;  %v10452_v59 = vrot.slane %v6493_v48, 9  ;;  %v15835_v45 = vrot.slane %v6971_v21, 4  ;;  %v6379_v33 = vor.u32 %v6378_v20, %v6374_v46  ;;  %v6628_v37 = vrot.slane %v6093_v35, 5 }
 0x369   : > { %9363 = vmatprep.mubr.bf16.mxu0 %v10548_v63  ;;  %v6627_v26 = vrot.slane %v6625_v52, 4  ;;  %17487 = vst [vmem:[#allocation23_spill] sm:$0xff] %v15837_v47  ;;  %v6370_v61 = vrot.slane %v6369_v28, 4  ;;  %v6384_v55 = vrot.slane %v6382_v9, 5  ;;  %v6682_v21 = vld [vmem:[#allocation3 + $0x9c] sm:$0xf] }
 0x36a   : > { %17486 = vst [vmem:[#allocation19_spill] sm:$0xff] %v15835_v45  ;;  %v6626_v34 = vsel %vm12879_vm13, %v10452_v59, %v6625_v52  ;;  %v6380_v63 = vrot.slane %v6379_v33, 4  ;;  %v6387_v20 = vshrl.u32 %v15831_v40, 16  ;;  %v6390_v35 = vshll.u32 %v15831_v40, 16  ;;  %v6494_v33 = vld [vmem:[#allocation3 + $0x90] sm:$0xe] }
 0x36b   : > { %v6629_v30 = vsel %vm12879_vm13, %v6627_v26, %v6628_v37  ;;  %v6375_v48 = vsel %vm12869_vm11, %v6370_v61, %v6374_v46  ;;  %v10549_v27 = vcombine.low %v6682_v21, %v15837_v47  ;;  %v6396_v9 = vshll.u32 %v15833_v54, 16  ;;  %v6684_v1 = vld [vmem:[#allocation3 + $0xa8] sm:$0xf]  ;;  %v15858_v41 = vld [vmem:[#allocation3 + $0xac] sm:$0xf] }
 0x36c   : > { %9195 = vmatmul.mubr.bf16.gmra.mrb[168].mxu1 %v10499_v6  ;;  %v6400_v52 = vshrl.u32 %v15833_v54, 16  ;;  %v6385_v5 = vsel %vm12869_vm11, %v6380_v63, %v6384_v55  ;;  %v10532_v6 = vcombine.low %v6626_v34, %v6629_v30  ;;  %v6389_v28 = vrot.slane %v6387_v20, 4  ;;  %17489 = vst [vmem:[#allocation20_spill] sm:$0xff] %v15858_v41  ;;  %v15860_v20 = vld [vmem:[#allocation3 + $0x9c] sm:$0xf] }
 0x36d   : > { %v6392_v59 = vrot.slane %v6390_v35, 5  ;;  %v10516_v26 = vcombine.low %v6375_v48, %v6385_v5  ;;  %v6398_v37 = vrot.slane %v6396_v9, 5  ;;  %v6406_v31 = vshll.u32 %v6094_v42, 16 }
 0x36e   : > { %v6402_v7 = vrot.slane %v6400_v52, 4  ;;  %v15853_v45 = vrot.slane %v6974_v16, 5  ;;  %v10500_v46 = vcombine.low %v15803_v36, %v15805_v24  ;;  %v6632_v43 = vrot.slane %v15833_v54, 5  ;;  %v15863_v24 = vld [vmem:[#allocation3 + $0xa0] sm:$0xf] }
 0x36f   : > { %v6393_v61 = vor.u32 %v6392_v59, %v6389_v28  ;;  %9202 = vmatprep.mubr.bf16.mxu1 %v10516_v26  ;;  %v6995_v55 = vshrl.u32 %v6682_v21, 16  ;;  %v6998_v34 = vshll.u32 %v6682_v21, 16  ;;  %v10453_v30 = vrot.slane %v6494_v33, 9  ;;  %v6495_v16 = vld [vmem:[#allocation3 + $0x9c] sm:$0xe] }
 0x370   : > { %17488 = vst [vmem:[#allocation24_spill] sm:$0xff] %v15853_v45  ;;  %9364 = vmatmul.mubr.bf16.gmra.mrb[204].mxu0 %v10532_v6  ;;  %v6403_v63 = vor.u32 %v6402_v7, %v6398_v37  ;;  %v6634_v48 = vrot.slane %v6632_v43, 4  ;;  %v6635_v9 = vrot.slane %v6094_v42, 5  ;;  %v6408_v52 = vrot.slane %v6406_v31, 5 }
 0x371   : > { %9371 = vmatprep.mubr.bf16.mxu0 %v10549_v27  ;;  %v6394_v35 = vrot.slane %v6393_v61, 4  ;;  %v6633_v5 = vsel %vm12879_vm13, %v10453_v30, %v6632_v43  ;;  %v7019_v6 = vshrl.u32 %v6684_v1, 16  ;;  %v10550_v21 = vcombine.low %v6684_v1, %v15858_v41  ;;  %v6095_v27 = vld [vmem:[#allocation3 + $0xa4] sm:$0x1] }
 0x372   : > { %v6404_v36 = vrot.slane %v6403_v63, 4  ;;  %v6636_v7 = vsel %vm12879_vm13, %v6634_v48, %v6635_v9  ;;  %v6411_v28 = vshrl.u32 %v15860_v20, 16  ;;  %v6414_v59 = vshll.u32 %v15860_v20, 16 }
 0x373   : > { %v6399_v42 = vsel %vm12869_vm11, %v6394_v35, %v6398_v37  ;;  %v6420_v43 = vshll.u32 %v15863_v24, 16  ;;  %v6424_v33 = vshrl.u32 %v15863_v24, 16  ;;  %v6430_v9 = vshll.u32 %v6095_v27, 16 }
 0x374   : > { %9203 = vmatmul.mubr.bf16.gmra.mrb[172].mxu1 %v10500_v46  ;;  %v6409_v31 = vsel %vm12869_vm11, %v6404_v36, %v6408_v52  ;;  %v10533_v46 = vcombine.low %v6633_v5, %v6636_v7  ;;  %v6413_v61 = vrot.slane %v6411_v28, 4  ;;  %v6416_v63 = vrot.slane %v6414_v59, 5  ;;  %v15883_v52 = vld [vmem:[#allocation3 + $0xa8] sm:$0xf] }
 0x375   : > { %v10517_v26 = vcombine.low %v6399_v42, %v6409_v31  ;;  %v6422_v30 = vrot.slane %v6420_v43, 5  ;;  %v6426_v48 = vrot.slane %v6424_v33, 4  ;;  %v6639_v47 = vrot.slane %v15863_v24, 5  ;;  %v15890_v43 = vld [vmem:[#allocation3 + $0xac] sm:$0xf] }
 0x376   : > { %v15879_v45 = vrot.slane %v6995_v55, 4  ;;  %v15881_v37 = vrot.slane %v6998_v34, 5  ;;  %v7022_v35 = vshll.u32 %v6684_v1, 16  ;;  %v6417_v36 = vor.u32 %v6416_v63, %v6413_v61  ;;  %v6496_v63 = vld [vmem:[#allocation3 + $0xa8] sm:$0xe] }
 0x377   : > { %9210 = vmatprep.mubr.bf16.mxu1 %v10517_v26  ;;  %v10501_v5 = vcombine.low %v15831_v40, %v15833_v54  ;;  %v6427_v7 = vor.u32 %v6426_v48, %v6422_v30  ;;  %v6641_v28 = vrot.slane %v6639_v47, 4  ;;  %v6642_v59 = vrot.slane %v6095_v27, 5  ;;  %v15895_v54 = vpop.f32.mrb[128].mxu1  ;;  %v6687_v27 = vld [vmem:[#allocation3 + $0xb8] sm:$0xf] }
 0x378   : > { %17490 = vst [vmem:[#allocation10_spill] sm:$0xff] %v15879_v45  ;;  %17491 = vst [vmem:[#allocation21_spill] sm:$0xff] %v15881_v37  ;;  %9372 = vmatmul.mubr.bf16.gmra.mrb[208].mxu0 %v10533_v46  ;;  %v15887_v42 = vrot.slane %v7019_v6, 4  ;;  %v6418_v31 = vrot.slane %v6417_v36, 4  ;;  %v10454_v34 = vrot.slane %v6495_v16, 9  ;;  %v6432_v1 = vrot.slane %v6430_v9, 5 }
 0x379   : > { %9379 = vmatprep.mubr.bf16.mxu0 %v10550_v21  ;;  %v6428_v33 = vrot.slane %v6427_v7, 4  ;;  %v6643_v26 = vsel %vm12879_vm13, %v6641_v28, %v6642_v59  ;;  %v6096_v46 = vld [vmem:[#allocation3 + $0xb0] sm:$0x1]  ;;  %v6435_v40 = vshrl.u32 %v15883_v52, 16  ;;  %17493 = vst [vmem:[#allocation16_spill] sm:$0xff] %v15895_v54  ;;  %v15897_v21 = vrot.slane %v7022_v35, 5 }
 0x37a   : > { %17492 = vst [vmem:[#allocation12_spill] sm:$0xff] %v15887_v42  ;;  %v6423_v6 = vsel %vm12869_vm11, %v6418_v31, %v6422_v30  ;;  %v6640_v16 = vsel %vm12879_vm13, %v10454_v34, %v6639_v47  ;;  %v6438_v61 = vshll.u32 %v15883_v52, 16  ;;  %v15906_v9 = vld [vmem:[#allocation3 + $0xb4] sm:$0xf]  ;;  %v6448_v35 = vshrl.u32 %v15890_v43, 16 }
 0x37b   : > { %17494 = vst [vmem:[#allocation11_spill] sm:$0xff] %v15897_v21  ;;  %v6433_v48 = vsel %vm12869_vm11, %v6428_v33, %v6432_v1  ;;  %17495 = vst [vmem:[#allocation8_spill] sm:$0xff] %v15906_v9  ;;  %v6437_v36 = vrot.slane %v6435_v40, 4  ;;  %v10534_v28 = vcombine.low %v6640_v16, %v6643_v26  ;;  %v6454_v59 = vshll.u32 %v6096_v46, 16  ;;  %v6688_v21 = vld [vmem:[#allocation3 + $0xc0] sm:$0xf] }
 0x37c   : > { %9211 = vmatmul.mubr.bf16.gmra.mrb[176].mxu1 %v10501_v5  ;;  %v6444_v5 = vshll.u32 %v15890_v43, 16  ;;  %v10518_v7 = vcombine.low %v6423_v6, %v6433_v48  ;;  %v6440_v30 = vrot.slane %v6438_v61, 5  ;;  %v10551_v47 = vcombine.low %v15906_v9, %v6687_v27  ;;  %v6689_v6 = vld [vmem:[#allocation3 + $0xc4] sm:$0xf]  ;;  %v15915_v26 = vld [vmem:[#allocation3 + $0xb4] sm:$0xf] }
 0x37d   : > { %v6450_v34 = vrot.slane %v6448_v35, 4  ;;  %v6646_v55 = vrot.slane %v15890_v43, 5  ;;  %v10502_v33 = vcombine.low %v15860_v20, %v15863_v24  ;;  %v10455_v41 = vrot.slane %v6496_v63, 9  ;;  %v6097_v63 = vld [vmem:[#allocation3 + $0xbc] sm:$0x1] }
 0x37e   : > { %v6446_v31 = vrot.slane %v6444_v5, 5  ;;  %9218 = vmatprep.mubr.bf16.mxu1 %v10518_v7  ;;  %v6441_v40 = vor.u32 %v6440_v30, %v6437_v36  ;;  %v6649_v48 = vrot.slane %v6096_v46, 5  ;;  %v15918_v5 = vld [vmem:[#allocation3 + $0xb8] sm:$0xf]  ;;  %v6456_v7 = vrot.slane %v6454_v59, 5  ;;  %v15924_v36 = vpop.f32.mrb[129].mxu1 }
 0x37f   : > { %v6648_v61 = vrot.slane %v6646_v55, 4  ;;  %v6647_v20 = vsel %vm12879_vm13, %v10455_v41, %v6646_v55  ;;  %v10503_v24 = vcombine.low %v15883_v52, %v15890_v43  ;;  %17496 = vst [vmem:[#allocation9_spill] sm:$0xff] %v15924_v36  ;;  %v6459_v46 = vshrl.u32 %v15915_v26, 16  ;;  %v15933_v55 = vpop.f32.mrb[130].mxu1  ;;  %v12164_v54 = vld [vmem:[#allocation3 + $0x10] sm:$0xf] }
 0x380   : > { %9380 = vmatmul.mubr.bf16.gmra.mrb[212].mxu0 %v10534_v28  ;;  %v6451_v27 = vor.u32 %v6450_v34, %v6446_v31  ;;  %v6442_v35 = vrot.slane %v6441_v40, 4  ;;  %v6497_v34 = vld [vmem:[#allocation3 + $0xb4] sm:$0xe]  ;;  %v6462_v41 = vshll.u32 %v15915_v26, 16  ;;  %v6468_v52 = vshll.u32 %v15918_v5, 16  ;;  %17497 = vst [vmem:[#allocation7_spill] sm:$0xff] %v15933_v55 }
 0x381   : > { %9387 = vmatprep.mubr.bf16.mxu0 %v10551_v47  ;;  %v6650_v30 = vsel %vm12879_vm13, %v6648_v61, %v6649_v48  ;;  %v10552_v47 = vcombine.low %v6688_v21, %v6689_v6  ;;  %v6472_v21 = vshrl.u32 %v15918_v5, 16  ;;  %v6478_v6 = vshll.u32 %v6097_v63, 16  ;;  %v15938_v61 = vld [vmem:[#allocation3 + $0x18] sm:$0xf] }
 0x382   : > { %v6452_v28 = vrot.slane %v6451_v27, 4  ;;  %v6447_v59 = vsel %vm12869_vm11, %v6442_v35, %v6446_v31  ;;  %v10535_v40 = vcombine.low %v6647_v20, %v6650_v30  ;;  %v6461_v27 = vrot.slane %v6459_v46, 4  ;;  %v15942_v30 = vld [vmem:[#allocation3 + $0x1c] sm:$0xf]  ;;  %v7299_v46 = vld [vmem:[#allocation3 + $0x20] sm:$0x1] }
 0x383   : > { %v6464_v31 = vrot.slane %v6462_v41, 5  ;;  %v6470_v35 = vrot.slane %v6468_v52, 5  ;;  %v10456_v20 = vrot.slane %v6497_v34, 9  ;;  %v6474_v16 = vrot.slane %v6472_v21, 4 }
 0x384   : > { %9219 = vmatmul.mubr.bf16.gmra.mrb[180].mxu1 %v10502_v33  ;;  %v6457_v43 = vsel %vm12869_vm11, %v6452_v28, %v6456_v7  ;;  %v15940_v33 = vpop.f32.mrb[131].mxu1  ;;  %v6480_v1 = vrot.slane %v6478_v6, 5  ;;  %v6653_v42 = vrot.slane %v15918_v5, 5  ;;  %v6656_v37 = vrot.slane %v6097_v63, 5  ;;  %v6690_v63 = vld [vmem:[#allocation3 + $0x14] sm:$0x1] }
 0x385   : > { %17498 = vst [vmem:[#allocation15_spill] sm:$0xff] %v15940_v33  ;;  %v10519_v48 = vcombine.low %v6447_v59, %v6457_v43  ;;  %v6465_v7 = vor.u32 %v6464_v31, %v6461_v27  ;;  %v10504_v28 = vcombine.low %v15915_v26, %v15918_v5  ;;  %v7316_v45 = vshrl.u32 %v15938_v61, 16  ;;  %v7090_v26 = vld [vmem:[#allocation3 + $0xc] sm:$0xe] }
 0x386   : > { %v7319_v59 = vshll.u32 %v15938_v61, 16  ;;  %v6475_v34 = vor.u32 %v6474_v16, %v6470_v35  ;;  %v6654_v41 = vsel %vm12879_vm13, %v10456_v20, %v6653_v42  ;;  %v6655_v52 = vrot.slane %v6653_v42, 4 }
 0x387   : > { %9226 = vmatprep.mubr.bf16.mxu1 %v10519_v48  ;;  %v7325_v43 = vshll.u32 %v15942_v30, 16  ;;  %v6466_v21 = vrot.slane %v6465_v7, 4  ;;  %v7329_v6 = vshrl.u32 %v15942_v30, 16  ;;  %v10457_v33 = vrot.slane %v7090_v26, 9 }
 0x388   : > { %9388 = vmatmul.mubr.bf16.gmra.mrb[216].mxu0 %v10535_v40  ;;  %v7318_v40 = vrot.slane %v7316_v45, 4  ;;  %v7321_v27 = vrot.slane %v7319_v59, 5  ;;  %v6476_v5 = vrot.slane %v6475_v34, 4  ;;  %v6657_v48 = vsel %vm12879_vm13, %v6655_v52, %v6656_v37  ;;  %v15959_v52 = vld [vmem:[#allocation3 + $0x24] sm:$0xf] }
 0x389   : > { %9395 = vmatprep.mubr.bf16.mxu0 %v10552_v47  ;;  %v7327_v31 = vrot.slane %v7325_v43, 5  ;;  %v7335_v47 = vshll.u32 %v7299_v46, 16  ;;  %v6471_v16 = vsel %vm12869_vm11, %v6466_v21, %v6470_v35  ;;  %v10536_v42 = vcombine.low %v6654_v41, %v6657_v48  ;;  %v17499_v43 = vld [vmem:[#allocation17_spill] sm:$0xff] }
 0x38a   : > { %v7322_v20 = vor.u32 %v7321_v27, %v7318_v40  ;;  %v7331_v9 = vrot.slane %v7329_v6, 4  ;;  %v6481_v45 = vsel %vm12869_vm11, %v6476_v5, %v6480_v1  ;;  %v6726_v59 = vshll.u32 %v6690_v63, 16  ;;  %v7300_v27 = vld [vmem:[#allocation3 + $0x2c] sm:$0x1]  ;;  %v7091_v5 = vld [vmem:[#allocation3 + $0x18] sm:$0xe] }
 0x38b   : > { %v7337_v7 = vrot.slane %v7335_v47, 5  ;;  %v10520_v55 = vcombine.low %v6471_v16, %v6481_v45  ;;  %v7156_v37 = vrot.slane %v12164_v54, 5  ;;  %v7159_v35 = vrot.slane %v6690_v63, 5  ;;  %v6691_v16 = vld [vmem:[#allocation3 + $0x20] sm:$0x1] }
 0x38c   : > { %9227 = vmatmul.mubr.bf16.gmra.mrb[184].mxu1 %v10503_v24  ;;  %v7323_v34 = vrot.slane %v7322_v20, 4  ;;  %v7332_v36 = vor.u32 %v7331_v9, %v7327_v31  ;;  %v15961_v24 = vld [vmem:[#allocation3 + $0x28] sm:$0xf]  ;;  %v6728_v46 = vrot.slane %v6726_v59, 5  ;;  %v10585_v41 = vcombine.low %v15938_v61, %v15942_v30 }
 0x38d   : > { %v6719_v1 = vsel %vm12869_vm11, %v17499_v43, %v15315_v39  ;;  %9234 = vmatprep.mubr.bf16.mxu1 %v10520_v55  ;;  %v7157_v21 = vsel %vm12879_vm13, %v10457_v33, %v7156_v37  ;;  %v7158_v40 = vrot.slane %v7156_v37, 4  ;;  %v7340_v30 = vshrl.u32 %v15959_v52, 16  ;;  %v7700_v55 = vld [vmem:[#allocation3 + $0x24] sm:$0xe] }
 0x38e   : > { %v7328_v9 = vsel %vm12869_vm11, %v7323_v34, %v7327_v31  ;;  %v7333_v54 = vrot.slane %v7332_v36, 4  ;;  %v6729_v61 = vsel %vm12869_vm11, %v15481_v57, %v6728_v46  ;;  %v7343_v63 = vshll.u32 %v15959_v52, 16 }
 0x38f   : > { %v7349_v39 = vshll.u32 %v15961_v24, 16  ;;  %v7160_v36 = vsel %vm12879_vm13, %v7158_v40, %v7159_v35  ;;  %v10553_v33 = vcombine.low %v6719_v1, %v6729_v61  ;;  %v7353_v26 = vshrl.u32 %v15961_v24, 16  ;;  %v12165_v1 = vld [vmem:[#allocation3 + $0x1c] sm:$0xf] }
 0x390   : > { %9396 = vmatmul.mubr.bf16.gmra.mrb[220].mxu0 %v10536_v42  ;;  %v7338_v6 = vsel %vm12869_vm11, %v7333_v54, %v7337_v7  ;;  %v10569_v31 = vcombine.low %v7157_v21, %v7160_v36  ;;  %v7342_v57 = vrot.slane %v7340_v30, 4  ;;  %v7345_v47 = vrot.slane %v7343_v63, 5 }
 0x391   : > { %v10601_v48 = vcombine.low %v7328_v9, %v7338_v6  ;;  %v7351_v42 = vrot.slane %v7349_v39, 5  ;;  %v7355_v20 = vrot.slane %v7353_v26, 4  ;;  %v7359_v45 = vshll.u32 %v7300_v27, 16 }
 0x392   : > { %v10474_v59 = vrot.slane %v7700_v55, 9  ;;  %v7346_v7 = vor.u32 %v7345_v47, %v7342_v57  ;;  %v7772_v34 = vrot.slane %v15961_v24, 5  ;;  %v7775_v37 = vrot.slane %v7300_v27, 5 }
 0x393   : > { %9597 = vmatprep.mubr.bf16.mxu0 %v10601_v48  ;;  %v10458_v46 = vrot.slane %v7091_v5, 9  ;;  %v7356_v35 = vor.u32 %v7355_v20, %v7351_v42  ;;  %v7361_v43 = vrot.slane %v7359_v45, 5  ;;  %v7163_v9 = vrot.slane %v12165_v1, 5 }
 0x394   : > { %9235 = vmatmul.mubr.bf16.gmra.mrb[188].mxu1 %v10504_v28  ;;  %v7166_v54 = vrot.slane %v6691_v16, 5  ;;  %v7347_v21 = vrot.slane %v7346_v7, 4  ;;  %v15987_v28 = vsel %vm12879_vm13, %v10474_v59, %v7772_v34  ;;  %v7774_v40 = vrot.slane %v7772_v34, 4 }
 0x395   : > { %9436 = vmatprep.mubr.bf16.mxu1 %v10569_v31  ;;  %v10586_v61 = vcombine.low %v15959_v52, %v15961_v24  ;;  %v7357_v30 = vrot.slane %v7356_v35, 4  ;;  %v7164_v27 = vsel %vm12879_vm13, %v10458_v46, %v7163_v9  ;;  %v7165_v63 = vrot.slane %v7163_v9, 4  ;;  %v16003_v24 = vld [vmem:[#allocation3 + $0x30] sm:$0xf]  ;;  %v7301_v31 = vld [vmem:[#allocation3 + $0x38] sm:$0x1] }
 0x396   : > { %v6737_v39 = vor.u32 %v15443_v19, %v15420_v4  ;;  %v7352_v55 = vsel %vm12869_vm11, %v7347_v21, %v7351_v42  ;;  %v15999_v6 = vsel %vm12879_vm13, %v7774_v40, %v7775_v37  ;;  %v6740_v36 = vshll.u32 %v12165_v1, 16  ;;  %v7092_v37 = vld [vmem:[#allocation3 + $0x24] sm:$0xe]  ;;  %v12166_v46 = vld [vmem:[%s17322_s4 + $0x200] sm:$0xff]  }
 0x397   : > { %v17500_v26 = vshrl.u32 %v15297_v17, 16  ;;  %v7362_v5 = vsel %vm12869_vm11, %v7357_v30, %v7361_v43  ;;  %v7167_v19 = vsel %vm12879_vm13, %v7165_v63, %v7166_v54  ;;  %v12101_v17 = vld [vmem:[%s17322_s4 + $0x208] sm:$0xff]   ;;  %v6750_v20 = vshll.u32 %v6691_v16, 16  ;;  %v6692_v1 = vld [vmem:[#allocation3 + $0x2c] sm:$0x1]  ;;  %v12104_v30 = vld [vmem:[%s17322_s4 + $0x210] sm:$0xff]  }
 0x398   : > { %9598 = vmatmul.mubr.bf16.vlgmr.msra.gmra.mrb[224].mxu0 %v10585_v41  ;;  %v16005_v41 = vld [vmem:[#allocation3 + $0x34] sm:$0xf]  ;;  %v6738_v48 = vrot.slane %v6737_v39, 4  ;;  %v10602_v57 = vcombine.low %v7352_v55, %v7362_v5  ;;  %v10570_v47 = vcombine.low %v7164_v27, %v7167_v19  ;;  %v6742_v42 = vrot.slane %v6740_v36, 5  ;;  %v12167_v55 = vld [vmem:[#allocation3 + $0x28] sm:$0xf] }
 0x399   : > { %v6746_v52 = vrot.slane %v17500_v26, 4  ;;  %v7364_v45 = vshrl.u32 %v16003_v24, 16  ;;  %v7367_v59 = vshll.u32 %v16003_v24, 16  ;;  %v7373_v7 = vshll.u32 %v16005_v41, 16 }
 0x39a   : > { %v7377_v34 = vshrl.u32 %v16005_v41, 16  ;;  %9605 = vmatprep.mubr.bf16.mxu0 %v10602_v57  ;;  %v6743_v35 = vsel %vm12869_vm11, %v6738_v48, %v6742_v42  ;;  %v7383_v43 = vshll.u32 %v7301_v31, 16  ;;  %v10459_v39 = vrot.slane %v7092_v37, 9 }
 0x39b   : > { %v6747_v16 = vor.u32 %v6746_v52, %v6742_v42  ;;  %v7366_v9 = vrot.slane %v7364_v45, 4  ;;  %v7369_v54 = vrot.slane %v7367_v59, 5  ;;  %v7375_v21 = vrot.slane %v7373_v7, 5  ;;  %v16036_v59 = vld [vmem:[#allocation3 + $0x3c] sm:$0xf] }
 0x39c   : > { %9437 = vmatmul.mubr.bf16.vlgmr.msra.gmra.mrb[192].mxu1 %v10553_v33  ;;  %v6752_v33 = vrot.slane %v6750_v20, 5  ;;  %v7379_v40 = vrot.slane %v7377_v34, 4  ;;  %v7385_v63 = vrot.slane %v7383_v43, 5  ;;  %v7170_v36 = vrot.slane %v12167_v55, 5  ;;  %v7702_v43 = vld [vmem:[#allocation3 + $0x3c] sm:$0xe] }
 0x39d   : > { %11803 = vmatpush3.bf16.msra.mxu1 %v12166_v46  ;;  %9444 = vmatprep.mubr.bf16.mxu1 %v10570_v47  ;;  %v6748_v27 = vrot.slane %v6747_v16, 4  ;;  %v7370_v26 = vor.u32 %v7369_v54, %v7366_v9  ;;  %v7173_v5 = vrot.slane %v6692_v1, 5  ;;  %v10587_v19 = vcombine.low %v16003_v24, %v16005_v41  ;;  %v12107_v24 = vld [vmem:[%s17322_s4 + $0x218] sm:$0xff]  }
 0x39e   : > { %11804 = vmatprep.subr.bf16.mxu1 %v12101_v17  ;;  %v7380_v52 = vor.u32 %v7379_v40, %v7375_v21  ;;  %v7171_v31 = vsel %vm12879_vm13, %v10459_v39, %v7170_v36  ;;  %v7172_v57 = vrot.slane %v7170_v36, 4  ;;  %v6761_v47 = vor.u32 %v15564_v14, %v15532_v0  ;;  %v16045_v14 = vld [vmem:[#allocation3 + $0x40] sm:$0xf]  ;;  %v7093_v39 = vld [vmem:[#allocation3 + $0x30] sm:$0xe] }
 0x39f   : > { %v6753_v48 = vsel %vm12869_vm11, %v6748_v27, %v6752_v33  ;;  %v7371_v20 = vrot.slane %v7370_v26, 4  ;;  %v6764_v45 = vshll.u32 %v12167_v55, 16  ;;  %v17501_v34 = vshrl.u32 %v15406_v38, 16  ;;  %v7302_v33 = vld [vmem:[#allocation3 + $0x44] sm:$0x1]  ;;  %v12110_v55 = vld [vmem:[%s17322_s4 + $0x220] sm:$0xff]  }
 0x3a0   : > { %9606 = vmatmul.mubr.bf16.gmra.mrb[228].mxu0 %v10586_v61  ;;  %v10554_v42 = vcombine.low %v6743_v35, %v6753_v48  ;;  %v7381_v61 = vrot.slane %v7380_v52, 4  ;;  %v7174_v41 = vsel %vm12879_vm13, %v7172_v57, %v7173_v5  ;;  %v6762_v7 = vrot.slane %v6761_v47, 4  ;;  %v6693_v47 = vld [vmem:[#allocation3 + $0x38] sm:$0x1] }
 0x3a1   : > { %11805 = vmatpush3.bf16.msra.mxu1 %v12101_v17  ;;  %v6770_v37 = vrot.slane %v17501_v34, 4  ;;  %v6774_v0 = vshll.u32 %v6692_v1, 16  ;;  %v7376_v17 = vsel %vm12869_vm11, %v7371_v20, %v7375_v21  ;;  %v10571_v35 = vcombine.low %v7171_v31, %v7174_v41 }
 0x3a2   : > { %11806 = vmatprep.subr.bf16.mxu1 %v12104_v30  ;;  %v7386_v46 = vsel %vm12869_vm11, %v7381_v61, %v7385_v63  ;;  %v6766_v16 = vrot.slane %v6764_v45, 5  ;;  %v7388_v40 = vshrl.u32 %v16036_v59, 16  ;;  %v7391_v38 = vshll.u32 %v16036_v59, 16 }
 0x3a3   : > { %v10603_v9 = vcombine.low %v7376_v17, %v7386_v46  ;;  %v6776_v54 = vrot.slane %v6774_v0, 5  ;;  %v7397_v21 = vshll.u32 %v16045_v14, 16  ;;  %v7401_v63 = vshrl.u32 %v16045_v14, 16  ;;  %v12168_v17 = vld [vmem:[#allocation3 + $0x34] sm:$0xf] }
 0x3a4   : > { %9445 = vmatmul.mubr.bf16.gmra.mrb[196].mxu1 %v10554_v42  ;;  %v6767_v1 = vsel %vm12869_vm11, %v6762_v7, %v6766_v16  ;;  %v6771_v27 = vor.u32 %v6770_v37, %v6766_v16  ;;  %v7390_v36 = vrot.slane %v7388_v40, 4  ;;  %v7393_v26 = vrot.slane %v7391_v38, 5  ;;  %v12113_v16 = vld [vmem:[%s17322_s4 + $0x228] sm:$0xff]  }
 0x3a5   : > { %11807 = vmatpush3.bf16.msra.mxu1 %v12104_v30  ;;  %9452 = vmatprep.mubr.bf16.mxu1 %v10571_v35  ;;  %v7407_v52 = vshll.u32 %v7302_v33, 16  ;;  %v10476_v30 = vrot.slane %v7702_v43, 9  ;;  %v7399_v48 = vrot.slane %v7397_v21, 5  ;;  %v7403_v31 = vrot.slane %v7401_v63, 4  ;;  %v16086_v21 = vld [vmem:[#allocation3 + $0x4c] sm:$0xf] }
 0x3a6   : > { %11808 = vmatprep.subr.bf16.mxu1 %v12107_v24  ;;  %9613 = vmatprep.mubr.bf16.mxu0 %v10603_v9  ;;  %v6772_v5 = vrot.slane %v6771_v27, 4  ;;  %v7786_v57 = vrot.slane %v16045_v14, 5  ;;  %v7394_v42 = vor.u32 %v7393_v26, %v7390_v36  ;;  %v7789_v61 = vrot.slane %v7302_v33, 5 }
 0x3a7   : > { %v7409_v20 = vrot.slane %v7407_v52, 5  ;;  %v10460_v45 = vrot.slane %v7093_v39, 9  ;;  %v7404_v7 = vor.u32 %v7403_v31, %v7399_v48  ;;  %v7177_v46 = vrot.slane %v12168_v17, 5  ;;  %v7303_v39 = vld [vmem:[#allocation3 + $0x50] sm:$0x1] }
 0x3a8   : > { %9614 = vmatmul.mubr.bf16.gmra.mrb[232].mxu0 %v10587_v19  ;;  %v6777_v41 = vsel %vm12869_vm11, %v6772_v5, %v6776_v54  ;;  %v16065_v34 = vsel %vm12879_vm13, %v10476_v30, %v7786_v57  ;;  %v7788_v19 = vrot.slane %v7786_v57, 4  ;;  %v7395_v0 = vrot.slane %v7394_v42, 4  ;;  %v16078_v54 = vld [vmem:[#allocation3 + $0x48] sm:$0xf]  ;;  %v7094_v42 = vld [vmem:[#allocation3 + $0x3c] sm:$0xe] }
 0x3a9   : > { %11809 = vmatpush3.bf16.msra.mxu1 %v12107_v24  ;;  %17502 = vst [vmem:[#allocation17_spill] sm:$0xff] %v16065_v34  ;;  %v10555_v37 = vcombine.low %v6767_v1, %v6777_v41  ;;  %v7180_v35 = vrot.slane %v6693_v47, 5  ;;  %v7405_v24 = vrot.slane %v7404_v7, 4  ;;  %v10588_v43 = vcombine.low %v16036_v59, %v16045_v14 }
 0x3aa   : > { %11810 = vmatprep.subr.bf16.mxu1 %v12110_v55  ;;  %v16072_v33 = vsel %vm12879_vm13, %v7788_v19, %v7789_v61  ;;  %v6785_v9 = vor.u32 %v15631_v50, %v15621_v49  ;;  %v7400_v40 = vsel %vm12869_vm11, %v7395_v0, %v7399_v48  ;;  %v7178_v1 = vsel %vm12879_vm13, %v10460_v45, %v7177_v46  ;;  %v6694_v45 = vld [vmem:[#allocation3 + $0x44] sm:$0x1] }
 0x3ab   : > { %17503 = vst [vmem:[#allocation25_spill] sm:$0xff] %v16072_v33  ;;  %v7179_v27 = vrot.slane %v7177_v46, 4  ;;  %v7410_v59 = vsel %vm12869_vm11, %v7405_v24, %v7409_v20  ;;  %v6788_v49 = vshll.u32 %v12168_v17, 16  ;;  %v17504_v50 = vshrl.u32 %v15485_v15, 16  ;;  %v12116_v15 = vld [vmem:[%s17322_s4 + $0x230] sm:$0xff]  }
 0x3ac   : > { %9453 = vmatmul.mubr.bf16.gmra.mrb[200].mxu1 %v10555_v37  ;;  %v6786_v14 = vrot.slane %v6785_v9, 4  ;;  %v10604_v36 = vcombine.low %v7400_v40, %v7410_v59  ;;  %v6798_v52 = vshll.u32 %v6693_v47, 16  ;;  %v7412_v30 = vshrl.u32 %v16078_v54, 16 }
 0x3ad   : > { %v6794_v63 = vrot.slane %v17504_v50, 4  ;;  %11811 = vmatpush3.bf16.msra.mxu1 %v12110_v55  ;;  %v7181_v26 = vsel %vm12879_vm13, %v7179_v27, %v7180_v35  ;;  %v6790_v48 = vrot.slane %v6788_v49, 5  ;;  %v7415_v31 = vshll.u32 %v16078_v54, 16  ;;  %v12169_v35 = vld [vmem:[#allocation3 + $0x40] sm:$0xf] }
 0x3ae   : > { %11812 = vmatprep.subr.bf16.mxu1 %v12113_v16  ;;  %v10572_v5 = vcombine.low %v7178_v1, %v7181_v26  ;;  %v7421_v57 = vshll.u32 %v16086_v21, 16  ;;  %9621 = vmatprep.mubr.bf16.mxu0 %v10604_v36  ;;  %v6800_v55 = vrot.slane %v6798_v52, 5  ;;  %v7414_v20 = vrot.slane %v7412_v30, 4  ;;  %v16118_v26 = vld [vmem:[#allocation3 + $0x58] sm:$0xf] }
 0x3af   : > { %v7425_v61 = vshrl.u32 %v16086_v21, 16  ;;  %v7431_v47 = vshll.u32 %v7303_v39, 16  ;;  %v6791_v41 = vsel %vm12869_vm11, %v6786_v14, %v6790_v48  ;;  %v6795_v7 = vor.u32 %v6794_v63, %v6790_v48 }
 0x3b0   : > { %9460 = vmatprep.mubr.bf16.mxu1 %v10572_v5  ;;  %9622 = vmatmul.mubr.bf16.gmra.mrb[236].mxu0 %v10588_v43  ;;  %v7417_v19 = vrot.slane %v7415_v31, 5  ;;  %v7423_v37 = vrot.slane %v7421_v57, 5  ;;  %v10461_v46 = vrot.slane %v7094_v42, 9  ;;  %v7184_v24 = vrot.slane %v12169_v35, 5  ;;  %v12119_v43 = vld [vmem:[%s17322_s4 + $0x238] sm:$0xff]  }
 0x3b1   : > { %v7427_v0 = vrot.slane %v7425_v61, 4  ;;  %v7433_v17 = vrot.slane %v7431_v47, 5  ;;  %11813 = vmatpush3.bf16.msra.mxu1 %v12113_v16  ;;  %v6796_v9 = vrot.slane %v6795_v7, 4  ;;  %v7187_v1 = vrot.slane %v6694_v45, 5  ;;  %v16112_v16 = vld [vmem:[#allocation3 + $0x54] sm:$0xf] }
 0x3b2   : > { %v7418_v40 = vor.u32 %v7417_v19, %v7414_v20  ;;  %v10589_v27 = vcombine.low %v16078_v54, %v16086_v21  ;;  %11814 = vmatprep.subr.bf16.mxu1 %v12116_v15  ;;  %v7185_v14 = vsel %vm12879_vm13, %v10461_v46, %v7184_v24  ;;  %v7186_v49 = vrot.slane %v7184_v24, 4  ;;  %v7304_v42 = vld [vmem:[#allocation3 + $0x5c] sm:$0x1]  ;;  %v7704_v47 = vld [vmem:[#allocation3 + $0x54] sm:$0xe] }
 0x3b3   : > { %v7428_v59 = vor.u32 %v7427_v0, %v7423_v37  ;;  %v6809_v50 = vor.u32 %v15651_v3, %v15642_v2  ;;  %v6801_v63 = vsel %vm12869_vm11, %v6796_v9, %v6800_v55  ;;  %v6812_v54 = vshll.u32 %v12169_v35, 16  ;;  %v7095_v19 = vld [vmem:[#allocation3 + $0x48] sm:$0xe] }
 0x3b4   : > { %v7419_v39 = vrot.slane %v7418_v40, 4  ;;  %v17505_v21 = vshrl.u32 %v15554_v8, 16  ;;  %v10556_v52 = vcombine.low %v6791_v41, %v6801_v63  ;;  %v7188_v5 = vsel %vm12879_vm13, %v7186_v49, %v7187_v1  ;;  %v6695_v49 = vld [vmem:[#allocation3 + $0x50] sm:$0x1] }
 0x3b5   : > { %v7429_v30 = vrot.slane %v7428_v59, 4  ;;  %v6810_v48 = vrot.slane %v6809_v50, 4  ;;  %11815 = vmatpush3.bf16.msra.mxu1 %v12116_v15  ;;  %v10573_v3 = vcombine.low %v7185_v14, %v7188_v5  ;;  %v6814_v31 = vrot.slane %v6812_v54, 5 }
 0x3b6   : > { %v6818_v36 = vrot.slane %v17505_v21, 4  ;;  %v7424_v2 = vsel %vm12869_vm11, %v7419_v39, %v7423_v37  ;;  %v6822_v57 = vshll.u32 %v6694_v45, 16  ;;  %11816 = vmatprep.subr.bf16.mxu1 %v12119_v43  ;;  %9461 = vmatmul.mubr.bf16.gmra.mrb[204].mxu1 %v10556_v52  ;;  %v7436_v55 = vshrl.u32 %v16112_v16, 16 }
 0x3b7   : > { %v7434_v8 = vsel %vm12869_vm11, %v7429_v30, %v7433_v17  ;;  %v7439_v20 = vshll.u32 %v16112_v16, 16  ;;  %v7445_v61 = vshll.u32 %v16118_v26, 16  ;;  %9468 = vmatprep.mubr.bf16.mxu1 %v10573_v3  ;;  %v6815_v41 = vsel %vm12869_vm11, %v6810_v48, %v6814_v31  ;;  %v12170_v30 = vld [vmem:[#allocation3 + $0x4c] sm:$0xf] }
 0x3b8   : > { %v10605_v15 = vcombine.low %v7424_v2, %v7434_v8  ;;  %v6819_v7 = vor.u32 %v6818_v36, %v6814_v31  ;;  %v6824_v45 = vrot.slane %v6822_v57, 5  ;;  %v7438_v37 = vrot.slane %v7436_v55, 4  ;;  %v16149_v57 = vld [vmem:[#allocation3 + $0x60] sm:$0xf] }
 0x3b9   : > { %v7441_v0 = vrot.slane %v7439_v20, 5  ;;  %v7447_v46 = vrot.slane %v7445_v61, 5  ;;  %v7449_v17 = vshrl.u32 %v16118_v26, 16  ;;  %11817 = vmatpush3.bf16.msra.mxu1 %v12119_v43  ;;  %v7455_v24 = vshll.u32 %v7304_v42, 16  ;;  %v17519_v20 = vld [vmem:[#allocation13_spill] sm:$0xff] }
 0x3ba   : > { %9629 = vmatprep.mubr.bf16.mxu0 %v10605_v15  ;;  %v6820_v35 = vrot.slane %v6819_v7, 4  ;;  %v10478_v9 = vrot.slane %v7704_v47, 9  ;;  %v7800_v40 = vrot.slane %v16118_v26, 5  ;;  %v7803_v14 = vrot.slane %v7304_v42, 5  ;;  %v16159_v47 = vld [vmem:[#allocation3 + $0x64] sm:$0xf] }
 0x3bb   : > { %9630 = vmatmul.mubr.bf16.gmra.mrb[240].mxu0 %v10589_v27  ;;  %v7442_v1 = vor.u32 %v7441_v0, %v7438_v37  ;;  %v7451_v59 = vrot.slane %v7449_v17, 4  ;;  %v10462_v50 = vrot.slane %v7095_v19, 9  ;;  %v7457_v39 = vrot.slane %v7455_v24, 5  ;;  %v7305_v24 = vld [vmem:[#allocation3 + $0x68] sm:$0x1] }
 0x3bc   : > { %v6825_v63 = vsel %vm12869_vm11, %v6820_v35, %v6824_v45  ;;  %v16137_v54 = vsel %vm12879_vm13, %v10478_v9, %v7800_v40  ;;  %v7802_v43 = vrot.slane %v7800_v40, 4  ;;  %v7191_v5 = vrot.slane %v12170_v30, 5 }
 0x3bd   : > { %17506 = vst [vmem:[#allocation26_spill] sm:$0xff] %v16137_v54  ;;  %v10557_v21 = vcombine.low %v6815_v41, %v6825_v63  ;;  %v7443_v36 = vrot.slane %v7442_v1, 4  ;;  %v7452_v52 = vor.u32 %v7451_v59, %v7447_v46  ;;  %v16139_v27 = vpop.f32.mrb[160].mxu0  ;;  %v7194_v2 = vrot.slane %v6695_v49, 5 }
 0x3be   : > { %v16143_v48 = vsel %vm12879_vm13, %v7802_v43, %v7803_v14  ;;  %v10590_v3 = vcombine.low %v16112_v16, %v16118_v26  ;;  %v6833_v31 = vor.u32 %v15674_v32, %v15667_v58  ;;  %v16151_v42 = vpop.f32.mrb[161].mxu0  ;;  %v7192_v61 = vsel %vm12879_vm13, %v10462_v50, %v7191_v5  ;;  %v6696_v50 = vld [vmem:[#allocation3 + $0x5c] sm:$0x1] }
 0x3bf   : > { %17507 = vst [vmem:[#allocation27_spill] sm:$0xff] %v16143_v48  ;;  %9469 = vmatmul.mubr.bf16.gmra.mrb[208].mxu1 %v10557_v21  ;;  %v7448_v8 = vsel %vm12869_vm11, %v7443_v36, %v7447_v46  ;;  %v7453_v55 = vrot.slane %v7452_v52, 4  ;;  %v16161_v16 = vpop.f32.mrb[162].mxu0  ;;  %v7193_v58 = vrot.slane %v7191_v5, 4  ;;  %v6836_v26 = vshll.u32 %v12170_v30, 16 }
 0x3c0   : > { %v6834_v32 = vrot.slane %v6833_v31, 4  ;;  %v17508_v15 = vshrl.u32 %v15612_v11, 16  ;;  %v16165_v7 = vpop.f32.mrb[163].mxu0  ;;  %v6846_v19 = vshll.u32 %v6695_v49, 16  ;;  %v7460_v37 = vshrl.u32 %v16149_v57, 16 }
 0x3c1   : > { %v7458_v45 = vsel %vm12869_vm11, %v7453_v55, %v7457_v39  ;;  %v7463_v0 = vshll.u32 %v16149_v57, 16  ;;  %v7195_v17 = vsel %vm12879_vm13, %v7193_v58, %v7194_v2  ;;  %v6838_v35 = vrot.slane %v6836_v26, 5  ;;  %v7096_v11 = vld [vmem:[#allocation3 + $0x54] sm:$0xe]  ;;  %v12171_v30 = vld [vmem:[#allocation3 + $0x58] sm:$0xf] }
 0x3c2   : > { %v6842_v41 = vrot.slane %v17508_v15, 4  ;;  %v10606_v46 = vcombine.low %v7448_v8, %v7458_v45  ;;  %v7469_v9 = vshll.u32 %v16159_v47, 16  ;;  %v10574_v40 = vcombine.low %v7192_v61, %v7195_v17  ;;  %v6701_v48 = vld [vmem:[#allocation3 + $0x98] sm:$0x1] }
 0x3c3   : > { %v6848_v1 = vrot.slane %v6846_v19, 5  ;;  %v7462_v59 = vrot.slane %v7460_v37, 4  ;;  %v7465_v14 = vrot.slane %v7463_v0, 5  ;;  %v6839_v49 = vsel %vm12869_vm11, %v6834_v32, %v6838_v35  ;;  %v16185_v19 = vld [vmem:[#allocation3 + $0x6c] sm:$0xf] }
 0x3c4   : > { %9637 = vmatprep.mubr.bf16.mxu0 %v10606_v46  ;;  %v6843_v63 = vor.u32 %v6842_v41, %v6838_v35  ;;  %v7471_v39 = vrot.slane %v7469_v9, 5  ;;  %v7473_v43 = vshrl.u32 %v16159_v47, 16  ;;  %9476 = vmatprep.mubr.bf16.mxu1 %v10574_v40  ;;  %v7479_v36 = vshll.u32 %v7305_v24, 16  ;;  %v16187_v37 = vld [vmem:[#allocation3 + $0x70] sm:$0xf] }
 0x3c5   : > { %9638 = vmatmul.mubr.bf16.gmra.mrb[244].mxu0 %v10590_v3  ;;  %v7466_v21 = vor.u32 %v7465_v14, %v7462_v59  ;;  %v10463_v52 = vrot.slane %v7096_v11, 9  ;;  %v7198_v5 = vrot.slane %v12171_v30, 5  ;;  %v7201_v8 = vrot.slane %v6696_v50, 5 }
 0x3c6   : > { %v6844_v2 = vrot.slane %v6843_v63, 4  ;;  %v7475_v31 = vrot.slane %v7473_v43, 4  ;;  %v10591_v55 = vcombine.low %v16149_v57, %v16159_v47  ;;  %v7481_v58 = vrot.slane %v7479_v36, 5 }
 0x3c7   : > { %v7467_v61 = vrot.slane %v7466_v21, 4  ;;  %v7199_v32 = vsel %vm12879_vm13, %v10463_v52, %v7198_v5  ;;  %v7200_v26 = vrot.slane %v7198_v5, 4  ;;  %v6857_v41 = vor.u32 %v15707_v18, %v15705_v23  ;;  %v7306_v18 = vld [vmem:[#allocation3 + $0x74] sm:$0x1]  ;;  %v7097_v52 = vld [vmem:[#allocation3 + $0x60] sm:$0xe] }
 0x3c8   : > { %v6849_v3 = vsel %vm12869_vm11, %v6844_v2, %v6848_v1  ;;  %v7476_v15 = vor.u32 %v7475_v31, %v7471_v39  ;;  %v6860_v45 = vshll.u32 %v12171_v30, 16  ;;  %v17509_v46 = vshrl.u32 %v15649_v53, 16 }
 0x3c9   : > { %v10558_v0 = vcombine.low %v6839_v49, %v6849_v3  ;;  %v7472_v57 = vsel %vm12869_vm11, %v7467_v61, %v7471_v39  ;;  %v7202_v47 = vsel %vm12879_vm13, %v7200_v26, %v7201_v8  ;;  %v6858_v9 = vrot.slane %v6857_v41, 4  ;;  %v7706_v39 = vld [vmem:[#allocation3 + $0x6c] sm:$0xe]  ;;  %v6697_v26 = vld [vmem:[#allocation3 + $0x68] sm:$0x1] }
 0x3ca   : > { %v6866_v17 = vrot.slane %v17509_v46, 4  ;;  %v7477_v35 = vrot.slane %v7476_v15, 4  ;;  %v10575_v24 = vcombine.low %v7199_v32, %v7202_v47  ;;  %v6862_v11 = vrot.slane %v6860_v45, 5 }
 0x3cb   : > { %9477 = vmatmul.mubr.bf16.gmra.mrb[212].mxu1 %v10558_v0  ;;  %v6870_v23 = vshll.u32 %v6696_v50, 16  ;;  %v7484_v40 = vshrl.u32 %v16185_v19, 16  ;;  %v7487_v1 = vshll.u32 %v16185_v19, 16  ;;  %v7493_v59 = vshll.u32 %v16187_v37, 16 }
 0x3cc   : > { %v7482_v14 = vsel %vm12869_vm11, %v7477_v35, %v7481_v58  ;;  %9484 = vmatprep.mubr.bf16.mxu1 %v10575_v24  ;;  %v6863_v53 = vsel %vm12869_vm11, %v6858_v9, %v6862_v11  ;;  %v6867_v49 = vor.u32 %v6866_v17, %v6862_v11  ;;  %v7497_v63 = vshrl.u32 %v16187_v37, 16  ;;  %v12172_v9 = vld [vmem:[#allocation3 + $0x64] sm:$0xf] }
 0x3cd   : > { %v10607_v43 = vcombine.low %v7472_v57, %v7482_v14  ;;  %v6872_v50 = vrot.slane %v6870_v23, 5  ;;  %v7486_v21 = vrot.slane %v7484_v40, 4  ;;  %v7489_v36 = vrot.slane %v7487_v1, 5 }
 0x3ce   : > { %v6868_v30 = vrot.slane %v6867_v49, 4  ;;  %v7495_v5 = vrot.slane %v7493_v59, 5  ;;  %v7499_v2 = vrot.slane %v7497_v63, 4  ;;  %v7503_v31 = vshll.u32 %v7306_v18, 16 }
 0x3cf   : > { %9645 = vmatprep.mubr.bf16.mxu0 %v10607_v43  ;;  %v7490_v8 = vor.u32 %v7489_v36, %v7486_v21  ;;  %v10480_v61 = vrot.slane %v7706_v39, 9  ;;  %v7814_v58 = vrot.slane %v16187_v37, 5  ;;  %v7817_v32 = vrot.slane %v7306_v18, 5  ;;  %v16236_v43 = vld [vmem:[#allocation3 + $0x7c] sm:$0xf] }
 0x3d0   : > { %9646 = vmatmul.mubr.bf16.gmra.mrb[248].mxu0 %v10591_v55  ;;  %v6873_v3 = vsel %vm12869_vm11, %v6868_v30, %v6872_v50  ;;  %v7500_v15 = vor.u32 %v7499_v2, %v7495_v5  ;;  %v7505_v41 = vrot.slane %v7503_v31, 5  ;;  %v10464_v45 = vrot.slane %v7097_v52, 9  ;;  %v7307_v31 = vld [vmem:[#allocation3 + $0x80] sm:$0x1] }
 0x3d1   : > { %v10559_v57 = vcombine.low %v6863_v53, %v6873_v3  ;;  %v7491_v47 = vrot.slane %v7490_v8, 4  ;;  %v16210_v46 = vsel %vm12879_vm13, %v10480_v61, %v7814_v58  ;;  %v7816_v17 = vrot.slane %v7814_v58, 4  ;;  %v16226_v53 = vld [vmem:[#allocation3 + $0x78] sm:$0xf] }
 0x3d2   : > { %v16206_v0 = vpop.f32.mrb[132].mxu1  ;;  %17510 = vst [vmem:[#allocation28_spill] sm:$0xff] %v16210_v46  ;;  %v7501_v24 = vrot.slane %v7500_v15, 4  ;;  %v7205_v55 = vrot.slane %v12172_v9, 5  ;;  %v7208_v11 = vrot.slane %v6697_v26, 5  ;;  %v10592_v23 = vcombine.low %v16185_v19, %v16187_v37 }
 0x3d3   : > { %v16212_v35 = vpop.f32.mrb[133].mxu1  ;;  %9485 = vmatmul.mubr.bf16.gmra.mrb[216].mxu1 %v10559_v57  ;;  %v7496_v40 = vsel %vm12869_vm11, %v7491_v47, %v7495_v5  ;;  %v16222_v1 = vsel %vm12879_vm13, %v7816_v17, %v7817_v32  ;;  %v6881_v59 = vor.u32 %v15735_v22, %v15717_v51  ;;  %v6884_v14 = vshll.u32 %v12172_v9, 16 }
 0x3d4   : > { %v16216_v18 = vpop.f32.mrb[134].mxu1  ;;  %17511 = vst [vmem:[#allocation29_spill] sm:$0xff] %v16222_v1  ;;  %v7506_v19 = vsel %vm12869_vm11, %v7501_v24, %v7505_v41  ;;  %v7206_v63 = vsel %vm12879_vm13, %v10464_v45, %v7205_v55  ;;  %v7207_v39 = vrot.slane %v7205_v55, 4  ;;  %v17512_v36 = vshrl.u32 %v15683_v13, 16  ;;  %v7098_v41 = vld [vmem:[#allocation3 + $0x6c] sm:$0xe] }
 0x3d5   : > { %v16228_v49 = vpop.f32.mrb[135].mxu1  ;;  %v10608_v51 = vcombine.low %v7496_v40, %v7506_v19  ;;  %v6882_v22 = vrot.slane %v6881_v59, 4  ;;  %v6886_v21 = vrot.slane %v6884_v14, 5  ;;  %v6894_v2 = vshll.u32 %v6697_v26, 16  ;;  %v6698_v24 = vld [vmem:[#allocation3 + $0x74] sm:$0x1] }
 0x3d6   : > { %v6890_v52 = vrot.slane %v17512_v36, 4  ;;  %v7209_v5 = vsel %vm12879_vm13, %v7207_v39, %v7208_v11  ;;  %v7508_v8 = vshrl.u32 %v16226_v53, 16  ;;  %v7511_v61 = vshll.u32 %v16226_v53, 16  ;;  %v16262_v36 = vld [vmem:[#allocation3 + $0x84] sm:$0xf] }
 0x3d7   : > { %v16238_v50 = vpop.f32.mrb[164].mxu0  ;;  %9653 = vmatprep.mubr.bf16.mxu0 %v10608_v51  ;;  %v10576_v32 = vcombine.low %v7206_v63, %v7209_v5  ;;  %v6887_v3 = vsel %vm12869_vm11, %v6882_v22, %v6886_v21  ;;  %v7517_v15 = vshll.u32 %v16236_v43, 16  ;;  %v6896_v26 = vrot.slane %v6894_v2, 5  ;;  %v12173_v63 = vld [vmem:[#allocation3 + $0x70] sm:$0xf] }
 0x3d8   : > { %v16242_v30 = vpop.f32.mrb[165].mxu0  ;;  %v6891_v13 = vor.u32 %v6890_v52, %v6886_v21  ;;  %9654 = vmatmul.mubr.bf16.gmra.mrb[252].mxu0 %v10592_v23  ;;  %v7510_v57 = vrot.slane %v7508_v8, 4  ;;  %v7513_v47 = vrot.slane %v7511_v61, 5  ;;  %v7521_v17 = vshrl.u32 %v16236_v43, 16 }
 0x3d9   : > { %v16248_v58 = vpop.f32.mrb[166].mxu0  ;;  %9492 = vmatprep.mubr.bf16.mxu1 %v10576_v32  ;;  %v7519_v55 = vrot.slane %v7517_v15, 5  ;;  %v7527_v11 = vshll.u32 %v7307_v31, 16  ;;  %v10593_v40 = vcombine.low %v16226_v53, %v16236_v43  ;;  %v10465_v19 = vrot.slane %v7098_v41, 9  ;;  %v16266_v43 = vld [vmem:[#allocation3 + $0x88] sm:$0xf] }
 0x3da   : > { %v16253_v45 = vpop.f32.mrb[167].mxu0  ;;  %v6892_v9 = vrot.slane %v6891_v13, 4  ;;  %v7514_v59 = vor.u32 %v7513_v47, %v7510_v57  ;;  %v7523_v14 = vrot.slane %v7521_v17, 4  ;;  %v7212_v39 = vrot.slane %v12173_v63, 5 }
 0x3db   : > { %v7529_v51 = vrot.slane %v7527_v11, 5  ;;  %v7215_v22 = vrot.slane %v6698_v24, 5  ;;  %v6905_v21 = vor.u32 %v15766_v12, %v15763_v44  ;;  %v6908_v61 = vshll.u32 %v12173_v63, 16 }
 0x3dc   : > { %v6897_v23 = vsel %vm12869_vm11, %v6892_v9, %v6896_v26  ;;  %v7515_v5 = vrot.slane %v7514_v59, 4  ;;  %v7524_v2 = vor.u32 %v7523_v14, %v7519_v55  ;;  %v7213_v53 = vsel %vm12879_vm13, %v10465_v19, %v7212_v39  ;;  %v7708_v9 = vld [vmem:[#allocation3 + $0x84] sm:$0xe]  ;;  %v7099_v14 = vld [vmem:[#allocation3 + $0x78] sm:$0xe] }
 0x3dd   : > { %v10560_v52 = vcombine.low %v6887_v3, %v6897_v23  ;;  %v7214_v31 = vrot.slane %v7212_v39, 4  ;;  %v6906_v8 = vrot.slane %v6905_v21, 4  ;;  %v17513_v32 = vshrl.u32 %v15719_v62, 16  ;;  %v7308_v3 = vld [vmem:[#allocation3 + $0x8c] sm:$0x1] }
 0x3de   : > { %v7520_v12 = vsel %vm12869_vm11, %v7515_v5, %v7519_v55  ;;  %v7525_v44 = vrot.slane %v7524_v2, 4  ;;  %v6918_v15 = vshll.u32 %v6698_v24, 16  ;;  %v7532_v41 = vshrl.u32 %v16262_v36, 16 }
 0x3df   : > { %v6914_v13 = vrot.slane %v17513_v32, 4  ;;  %9493 = vmatmul.mubr.bf16.gmra.mrb[220].mxu1 %v10560_v52  ;;  %v7216_v26 = vsel %vm12879_vm13, %v7214_v31, %v7215_v22  ;;  %v6910_v57 = vrot.slane %v6908_v61, 5  ;;  %v7535_v47 = vshll.u32 %v16262_v36, 16  ;;  %v6699_v22 = vld [vmem:[#allocation3 + $0x80] sm:$0x1] }
 0x3e0   : > { %v7541_v17 = vshll.u32 %v16266_v43, 16  ;;  %v7530_v62 = vsel %vm12869_vm11, %v7525_v44, %v7529_v51  ;;  %v10577_v11 = vcombine.low %v7213_v53, %v7216_v26  ;;  %v6920_v59 = vrot.slane %v6918_v15, 5 }
 0x3e1   : > { %v7534_v55 = vrot.slane %v7532_v41, 4  ;;  %v10609_v19 = vcombine.low %v7520_v12, %v7530_v62  ;;  %v6911_v63 = vsel %vm12869_vm11, %v6906_v8, %v6910_v57  ;;  %v6915_v39 = vor.u32 %v6914_v13, %v6910_v57 }
 0x3e2   : > { %v16279_v24 = vpop.f32.mrb[136].mxu1  ;;  %v7537_v23 = vrot.slane %v7535_v47, 5  ;;  %9500 = vmatprep.mubr.bf16.mxu1 %v10577_v11  ;;  %v7543_v5 = vrot.slane %v7541_v17, 5  ;;  %v7545_v51 = vshrl.u32 %v16266_v43, 16  ;;  %v7551_v2 = vshll.u32 %v7308_v3, 16 }
 0x3e3   : > { %v16283_v21 = vpop.f32.mrb[168].mxu0  ;;  %v16285_v52 = vpop.f32.mrb[137].mxu1  ;;  %v10482_v53 = vrot.slane %v7708_v9, 9  ;;  %9661 = vmatprep.mubr.bf16.mxu0 %v10609_v19  ;;  %v6916_v32 = vrot.slane %v6915_v39, 4  ;;  %v7828_v13 = vrot.slane %v16266_v43, 5  ;;  %v7831_v12 = vrot.slane %v7308_v3, 5 }
 0x3e4   : > { %v16288_v31 = vpop.f32.mrb[169].mxu0  ;;  %v16290_v61 = vpop.f32.mrb[138].mxu1  ;;  %v7538_v8 = vor.u32 %v7537_v23, %v7534_v55  ;;  %9662 = vmatmul.mubr.bf16.gmra.mrb[0].mxu0 %v10593_v40  ;;  %v7547_v41 = vrot.slane %v7545_v51, 4  ;;  %v7553_v26 = vrot.slane %v7551_v2, 5  ;;  %v10594_v57 = vcombine.low %v16262_v36, %v16266_v43  ;;  %v12174_v40 = vld [vmem:[#allocation3 + $0x7c] sm:$0xf] }
 0x3e5   : > { %v16293_v44 = vpop.f32.mrb[170].mxu0  ;;  %v16295_v15 = vpop.f32.mrb[139].mxu1  ;;  %v10466_v47 = vrot.slane %v7099_v14, 9  ;;  %v6921_v9 = vsel %vm12869_vm11, %v6916_v32, %v6920_v59  ;;  %v16305_v3 = vsel %vm12879_vm13, %v10482_v53, %v7828_v13  ;;  %v7830_v11 = vrot.slane %v7828_v13, 4  ;;  %v16315_v51 = vld [vmem:[#allocation3 + $0x90] sm:$0xf] }
 0x3e6   : > { %v16299_v17 = vpop.f32.mrb[171].mxu0  ;;  %v7539_v62 = vrot.slane %v7538_v8, 4  ;;  %17514 = vst [vmem:[#allocation30_spill] sm:$0xff] %v16305_v3  ;;  %v10561_v55 = vcombine.low %v6911_v63, %v6921_v9  ;;  %v7548_v19 = vor.u32 %v7547_v41, %v7543_v5  ;;  %v7219_v39 = vrot.slane %v12174_v40, 5  ;;  %v16323_v9 = vld [vmem:[#allocation3 + $0x94] sm:$0xf] }
 0x3e7   : > { %v7222_v23 = vrot.slane %v6699_v22, 5  ;;  %v16311_v43 = vsel %vm12879_vm13, %v7830_v11, %v7831_v12  ;;  %v6929_v59 = vor.u32 %v15794_v25, %v15784_v56  ;;  %v6932_v14 = vshll.u32 %v12174_v40, 16 }
 0x3e8   : > { %v7544_v36 = vsel %vm12869_vm11, %v7539_v62, %v7543_v5  ;;  %17515 = vst [vmem:[#allocation31_spill] sm:$0xff] %v16311_v43  ;;  %9501 = vmatmul.mubr.bf16.gmra.mrb[224].mxu1 %v10561_v55  ;;  %v7549_v2 = vrot.slane %v7548_v19, 4  ;;  %v7220_v53 = vsel %vm12879_vm13, %v10466_v47, %v7219_v39  ;;  %v7221_v32 = vrot.slane %v7219_v39, 4  ;;  %v7309_v62 = vld [vmem:[#allocation3 + $0x98] sm:$0x1] }
 0x3e9   : > { %v6930_v5 = vrot.slane %v6929_v59, 4  ;;  %v6934_v8 = vrot.slane %v6932_v14, 5  ;;  %v17516_v13 = vshrl.u32 %v15742_v29, 16  ;;  %v6942_v41 = vshll.u32 %v6699_v22, 16  ;;  %v7100_v22 = vld [vmem:[#allocation3 + $0x84] sm:$0xe] }
 0x3ea   : > { %v7554_v25 = vsel %vm12869_vm11, %v7549_v2, %v7553_v26  ;;  %v7223_v56 = vsel %vm12879_vm13, %v7221_v32, %v7222_v23  ;;  %v7556_v11 = vshrl.u32 %v16315_v51, 16  ;;  %v7559_v47 = vshll.u32 %v16315_v51, 16  ;;  %v6700_v2 = vld [vmem:[#allocation3 + $0x8c] sm:$0x1] }
 0x3eb   : > { %v6938_v12 = vrot.slane %v17516_v13, 4  ;;  %v10610_v55 = vcombine.low %v7544_v36, %v7554_v25  ;;  %v10578_v19 = vcombine.low %v7220_v53, %v7223_v56  ;;  %v6935_v29 = vsel %vm12869_vm11, %v6930_v5, %v6934_v8 }
 0x3ec   : > { %v6944_v39 = vrot.slane %v6942_v41, 5  ;;  %v7558_v59 = vrot.slane %v7556_v11, 4  ;;  %v7561_v14 = vrot.slane %v7559_v47, 5  ;;  %v7565_v26 = vshll.u32 %v16323_v9, 16 }
 0x3ed   : > { %v6939_v40 = vor.u32 %v6938_v12, %v6934_v8  ;;  %9669 = vmatprep.mubr.bf16.mxu0 %v10610_v55  ;;  %9508 = vmatprep.mubr.bf16.mxu1 %v10578_v19  ;;  %v7569_v32 = vshrl.u32 %v16323_v9, 16  ;;  %v7575_v13 = vshll.u32 %v7309_v62, 16  ;;  %v10467_v8 = vrot.slane %v7100_v22, 9  ;;  %v12175_v12 = vld [vmem:[#allocation3 + $0x88] sm:$0xf]  ;;  %v17517_v22 = vld [vmem:[#allocation14_spill] sm:$0xff] }
 0x3ee   : > { %9670 = vmatmul.mubr.bf16.gmra.mrb[4].mxu0 %v10594_v57  ;;  %v7562_v53 = vor.u32 %v7561_v14, %v7558_v59  ;;  %v7567_v5 = vrot.slane %v7565_v26, 5  ;;  %v7226_v41 = vrot.slane %v12175_v12, 5  ;;  %v7229_v47 = vrot.slane %v6700_v2, 5  ;;  %v16339_v55 = vld [vmem:[#allocation3 + $0x9c] sm:$0xf]  ;;  %v17518_v14 = vld [vmem:[#allocation22_spill] sm:$0xff] }
 0x3ef   : > { %v6940_v23 = vrot.slane %v6939_v40, 4  ;;  %v7571_v56 = vrot.slane %v7569_v32, 4  ;;  %v7577_v11 = vrot.slane %v7575_v13, 5  ;;  %v16343_v57 = vld [vmem:[#allocation3 + $0xa0] sm:$0xf]  ;;  %v6953_v26 = vor.u32 %v17518_v14, %v17517_v22 }
 0x3f0   : > { %v7563_v40 = vrot.slane %v7562_v53, 4  ;;  %v7227_v62 = vsel %vm12879_vm13, %v10467_v8, %v7226_v41  ;;  %v7228_v63 = vrot.slane %v7226_v41, 4  ;;  %v6956_v37 = vshll.u32 %v12175_v12, 16  ;;  %v7310_v32 = vld [vmem:[#allocation3 + $0xa4] sm:$0x1] }
 0x3f1   : > { %v6945_v25 = vsel %vm12869_vm11, %v6940_v23, %v6944_v39  ;;  %v7572_v59 = vor.u32 %v7571_v56, %v7567_v5  ;;  %v17520_v39 = vshrl.u32 %v17519_v20, 16  ;;  %v6966_v8 = vshll.u32 %v6700_v2, 16 }
 0x3f2   : > { %v10562_v19 = vcombine.low %v6935_v29, %v6945_v25  ;;  %v7568_v29 = vsel %vm12869_vm11, %v7563_v40, %v7567_v5  ;;  %v7230_v53 = vsel %vm12879_vm13, %v7228_v63, %v7229_v47  ;;  %v7580_v41 = vshrl.u32 %v16339_v55, 16  ;;  %v7710_v25 = vld [vmem:[#allocation3 + $0x9c] sm:$0xe] }
 0x3f3   : > { %v6962_v23 = vrot.slane %v17520_v39, 4  ;;  %v16349_v13 = vpop.f32.mrb[140].mxu1  ;;  %v7573_v12 = vrot.slane %v7572_v59, 4  ;;  %v10579_v22 = vcombine.low %v7227_v62, %v7230_v53  ;;  %v6954_v20 = vrot.slane %v6953_v26, 4 }
 0x3f4   : > { %9509 = vmatmul.mubr.bf16.gmra.mrb[228].mxu1 %v10562_v19  ;;  %v16356_v56 = vpop.f32.mrb[141].mxu1  ;;  %v6958_v14 = vrot.slane %v6956_v37, 5  ;;  %v6968_v19 = vrot.slane %v6966_v8, 5  ;;  %v7582_v4 = vrot.slane %v7580_v41, 4  ;;  %v7583_v5 = vshll.u32 %v16339_v55, 16 }
 0x3f5   : > { %v16358_v39 = vpop.f32.mrb[172].mxu0  ;;  %v16360_v38 = vpop.f32.mrb[142].mxu1  ;;  %v7589_v63 = vshll.u32 %v16343_v57, 16  ;;  %v7578_v40 = vsel %vm12869_vm11, %v7573_v12, %v7577_v11  ;;  %9516 = vmatprep.mubr.bf16.mxu1 %v10579_v22  ;;  %v7593_v59 = vshrl.u32 %v16343_v57, 16  ;;  %v7599_v36 = vshll.u32 %v7310_v32, 16 }
 0x3f6   : > { %v16364_v2 = vpop.f32.mrb[173].mxu0  ;;  %v16366_v47 = vpop.f32.mrb[143].mxu1  ;;  %v6959_v37 = vsel %vm12869_vm11, %v6954_v20, %v6958_v14  ;;  %v6963_v62 = vor.u32 %v6962_v23, %v6958_v14  ;;  %v10611_v53 = vcombine.low %v7568_v29, %v7578_v40  ;;  %v7585_v8 = vrot.slane %v7583_v5, 5  ;;  %v7101_v12 = vld [vmem:[#allocation3 + $0x90] sm:$0xe] }
 0x3f7   : > { %v16373_v26 = vpop.f32.mrb[174].mxu0  ;;  %v7591_v41 = vrot.slane %v7589_v63, 5  ;;  %v7595_v1 = vrot.slane %v7593_v59, 4  ;;  %v10484_v46 = vrot.slane %v7710_v25, 9  ;;  %v7842_v11 = vrot.slane %v16343_v57, 5 }
 0x3f8   : > { %v16375_v43 = vpop.f32.mrb[175].mxu0  ;;  %v6964_v3 = vrot.slane %v6963_v62, 4  ;;  %9677 = vmatprep.mubr.bf16.mxu0 %v10611_v53  ;;  %v7586_v22 = vor.u32 %v7585_v8, %v7582_v4  ;;  %v7601_v20 = vrot.slane %v7599_v36, 5  ;;  %v7845_v23 = vrot.slane %v7310_v32, 5  ;;  %v16392_v4 = vld [vmem:[%s17323_s5] ss:$0 sm:$0xff] }
 0x3f9   : > { %v10596_v14 = vcombine.low %v16339_v55, %v16343_v57  ;;  %v17521_v29 = vcombine.low %v16315_v51, %v16323_v9  ;;  %v7596_v63 = vor.u32 %v7595_v1, %v7591_v41  ;;  %v16387_v25 = vsel %vm12879_vm13, %v10484_v46, %v7842_v11  ;;  %v17523_v57 = vld [vmem:[#allocation16_spill] sm:$0xff]  ;;  %v17524_v32 = vld [vmem:[#allocation9_spill] sm:$0xff]  ;;  %v17526_v8 = vld [vmem:[#allocation7_spill] sm:$0xff] }
 0x3fa   : > { %v6969_v5 = vsel %vm12869_vm11, %v6964_v3, %v6968_v19  ;;  %17522 = vst [vmem:[#allocation14_spill] sm:$0xff] %v16387_v25  ;;  %v7844_v40 = vrot.slane %v7842_v11, 4  ;;  %v7587_v55 = vrot.slane %v7586_v22, 4  ;;  %v11300_v51 = vadd.f32 %v17524_v32, %v17523_v57  ;;  %v12176_v3 = vld [vmem:[#allocation3 + $0x94] sm:$0xf]  ;;  %v17527_v11 = vld [vmem:[#allocation15_spill] sm:$0xff] }
 0x3fb   : > { %9678 = vmatmul.mubr.bf16.gmra.mrb[8].mxu0 %v17521_v29  ;;  %v10563_v36 = vcombine.low %v6959_v37, %v6969_v5  ;;  %v10468_v9 = vrot.slane %v7101_v12, 9  ;;  %v7597_v62 = vrot.slane %v7596_v63, 4  ;;  %v7233_v46 = vrot.slane %v12176_v3, 5  ;;  %v16418_v32 = vld [vmem:[#allocation3 + $0xa8] sm:$0xf] }
 0x3fc   : > { %v16398_v1 = vsel %vm12879_vm13, %v7844_v40, %v7845_v23  ;;  %v7236_v19 = vrot.slane %v6701_v48, 5  ;;  %v7592_v59 = vsel %vm12869_vm11, %v7587_v55, %v7591_v41  ;;  %v9117_v53 = vadd.f32 %v11300_v51, %v16392_v4  ;;  %v17529_v55 = vld [vmem:[#allocation24_spill] sm:$0xff]  ;;  %v16420_v51 = vld [vmem:[#allocation3 + $0xac] sm:$0xf] }
 0x3fd   : > { %17525 = vst [vmem:[#allocation22_spill] sm:$0xff] %v16398_v1  ;;  %9517 = vmatmul.mubr.bf16.gmra.mrb[232].mxu1 %v10563_v36  ;;  %v11303_v12 = vadd.f32 %v17527_v11, %v17526_v8  ;;  %v7602_v22 = vsel %vm12869_vm11, %v7597_v62, %v7601_v20  ;;  %v7234_v23 = vsel %vm12879_vm13, %v10468_v9, %v7233_v46  ;;  %v7235_v29 = vrot.slane %v7233_v46, 4  ;;  %v17528_v36 = vld [vmem:[#allocation19_spill] sm:$0xff]  ;;  %v16430_v11 = vld [vmem:[#allocation3 + $0xb0] sm:$0x1]  ;;  %v17542_v1 = vld [vmem:[#allocation21_spill] sm:$0xff] }
 0x3fe   : > { %v11412_v5 = vadd.f32 %v16151_v42, %v16139_v27  ;;  %v10612_v63 = vcombine.low %v7592_v59, %v7602_v22  ;;  %v11415_v40 = vadd.f32 %v16165_v7, %v16161_v16  ;;  %v6977_v57 = vor.u32 %v17529_v55, %v17528_v36  ;;  %17530 = vst [vmem:[#allocation13_spill] sm:$0xff] %v16420_v51  ;;  %v17532_v27 = vld [vmem:[#allocation18_spill] sm:$0xff] }
 0x3ff   : > { %v9120_v41 = vadd.f32 %v11303_v12, %v16392_v4  ;;  %v7237_v20 = vsel %vm12879_vm13, %v7235_v29, %v7236_v19  ;;  %v6980_v62 = vshll.u32 %v12176_v3, 16  ;;  %v17533_v42 = vshrl.u32 %v17532_v27, 16  ;;  %17535 = vst [vmem:[#allocation7_spill] sm:$0xff] %v16430_v11  ;;  %v17536_v3 = vld [vmem:[#allocation8_spill] sm:$0xff] }
 0x400   : > { %v16424_v9 = vadd.f32 %v11412_v5, %v9117_v53  ;;  %9685 = vmatprep.mubr.bf16.mxu0 %v10612_v63  ;;  %v10580_v59 = vcombine.low %v7234_v23, %v7237_v20  ;;  %v6978_v16 = vrot.slane %v6977_v57, 4  ;;  %v6990_v7 = vshll.u32 %v6701_v48, 16  ;;  %v16439_v63 = vld [vmem:[#allocation3 + $0xb8] sm:$0xf]  ;;  %v12178_v23 = vld [vmem:[#allocation3 + $0xa0] sm:$0xf] }
 0x401   : > { %v6986_v46 = vrot.slane %v17533_v42, 4  ;;  %v16428_v8 = vadd.f32 %v11415_v40, %v9120_v41  ;;  %v6982_v12 = vrot.slane %v6980_v62, 5  ;;  %v7604_v22 = vshrl.u32 %v16418_v32, 16 }
 0x402   : > { %17531 = vst [vmem:[#allocation16_spill] sm:$0xff] %v16424_v9  ;;  %v7607_v19 = vshll.u32 %v16418_v32, 16  ;;  %v7613_v53 = vshll.u32 %v16420_v51, 16  ;;  %v17537_v29 = vshrl.u32 %v17536_v3, 16  ;;  %9524 = vmatprep.mubr.bf16.mxu1 %v10580_v59  ;;  %v6992_v48 = vrot.slane %v6990_v7, 5 }
 0x403   : > { %17534 = vst [vmem:[#allocation9_spill] sm:$0xff] %v16428_v8  ;;  %9686 = vmatmul.mubr.bf16.gmra.mrb[12].mxu0 %v10596_v14  ;;  %v7617_v41 = vshrl.u32 %v16420_v51, 16  ;;  %v7102_v14 = vld [vmem:[#allocation3 + $0x9c] sm:$0xe]  ;;  %v6987_v40 = vor.u32 %v6986_v46, %v6982_v12  ;;  %v7606_v36 = vrot.slane %v7604_v22, 4  ;;  %v7623_v57 = vshll.u32 %v16430_v11, 16 }
 0x404   : > { %v16437_v5 = vrot.slane %v17537_v29, 4  ;;  %v7609_v55 = vrot.slane %v7607_v19, 5  ;;  %v6983_v20 = vsel %vm12869_vm11, %v6978_v16, %v6982_v12  ;;  %v7615_v62 = vrot.slane %v7613_v53, 5  ;;  %v6702_v29 = vld [vmem:[#allocation3 + $0xa4] sm:$0x1] }
 0x405   : > { %v7619_v27 = vrot.slane %v7617_v41, 4  ;;  %v10597_v42 = vcombine.low %v16418_v32, %v16420_v51  ;;  %v6988_v37 = vrot.slane %v6987_v40, 4  ;;  %v10469_v7 = vrot.slane %v7102_v14, 9 }
 0x406   : > { %v7610_v59 = vor.u32 %v7609_v55, %v7606_v36  ;;  %v7240_v8 = vrot.slane %v12178_v23, 5  ;;  %v16450_v46 = vpop.f32.mrb[144].mxu1  ;;  %v16454_v19 = vadd.f32 %v16242_v30, %v16238_v50  ;;  %v16458_v16 = vadd.f32 %v16212_v35, %v16206_v0 }
 0x407   : > { %v16448_v9 = vpop.f32.mrb[176].mxu0  ;;  %v7620_v22 = vor.u32 %v7619_v27, %v7615_v62  ;;  %v16462_v32 = vadd.f32 %v16253_v45, %v16248_v58  ;;  %v16466_v53 = vpop.f32.mrb[145].mxu1  ;;  %v6993_v41 = vsel %vm12869_vm11, %v6988_v37, %v6992_v48  ;;  %v7243_v36 = vrot.slane %v6702_v29, 5 }
 0x408   : > { %17538 = vst [vmem:[#allocation15_spill] sm:$0xff] %v16454_v19  ;;  %v16464_v12 = vpop.f32.mrb[177].mxu0  ;;  %v7611_v14 = vrot.slane %v7610_v59, 4  ;;  %v7242_v40 = vrot.slane %v7240_v8, 4  ;;  %v16472_v30 = vpop.f32.mrb[146].mxu1  ;;  %v10564_v0 = vcombine.low %v6983_v20, %v6993_v41  ;;  %v7625_v55 = vrot.slane %v7623_v57, 5 }
 0x409   : > { %17539 = vst [vmem:[#allocation19_spill] sm:$0xff] %v16462_v32  ;;  %v16470_v50 = vpop.f32.mrb[178].mxu0  ;;  %v7621_v35 = vrot.slane %v7620_v22, 4  ;;  %v16476_v58 = vadd.f32 %v16228_v49, %v16216_v18  ;;  %v16480_v27 = vpop.f32.mrb[147].mxu1  ;;  %v7241_v37 = vsel %vm12879_vm13, %v10469_v7, %v7240_v8  ;;  %v17541_v59 = vld [vmem:[#allocation10_spill] sm:$0xff]  ;;  %v7004_v20 = vshll.u32 %v12178_v23, 16 }
 0x40a   : > { %v16478_v45 = vpop.f32.mrb[179].mxu0  ;;  %v7244_v48 = vsel %vm12879_vm13, %v7242_v40, %v7243_v36  ;;  %v7001_v25 = vor.u32 %v17542_v1, %v17541_v59  ;;  %v16488_v22 = vld [vmem:[#allocation3 + $0xb4] sm:$0xf]  ;;  %v16490_v57 = vld [vmem:[#allocation3 + $0xb8] sm:$0xf]  ;;  %9525 = vmatmul.mubr.bf16.gmra.mrb[236].mxu1 %v10564_v0  ;;  %v7616_v18 = vsel %vm12869_vm11, %v7611_v14, %v7615_v62  ;;  %v7014_v23 = vshll.u32 %v6702_v29, 16 }
 0x40b   : > { %17540 = vst [vmem:[#allocation24_spill] sm:$0xff] %v16476_v58  ;;  %v7626_v49 = vsel %vm12869_vm11, %v7621_v35, %v7625_v55  ;;  %v10581_v41 = vcombine.low %v7241_v37, %v7244_v48  ;;  %v17543_v8 = vld [vmem:[#allocation23_spill] sm:$0xff]  ;;  %v7006_v1 = vrot.slane %v7004_v20, 5  ;;  %v7628_v59 = vshrl.u32 %v16488_v22, 16  ;;  %v7712_v14 = vld [vmem:[#allocation3 + $0xb4] sm:$0xe] }
 0x40c   : > { %v17544_v7 = vshrl.u32 %v17543_v8, 16  ;;  %v7312_v40 = vld [vmem:[#allocation3 + $0xbc] sm:$0x1]  ;;  %v10613_v36 = vcombine.low %v7616_v18, %v7626_v49  ;;  %v7002_v51 = vrot.slane %v7001_v25, 4  ;;  %v7631_v0 = vshll.u32 %v16488_v22, 16 }
 0x40d   : > { %9532 = vmatprep.mubr.bf16.mxu1 %v10581_v41  ;;  %v7637_v54 = vshll.u32 %v16490_v57, 16  ;;  %v7641_v62 = vshrl.u32 %v16490_v57, 16  ;;  %v16502_v35 = vld [vmem:[#allocation3 + $0xc0] sm:$0xf]  ;;  %v7647_v29 = vshll.u32 %v7312_v40, 16  ;;  %v7630_v48 = vrot.slane %v7628_v59, 4 }
 0x40e   : > { %v7010_v11 = vrot.slane %v17544_v7, 4  ;;  %9693 = vmatprep.mubr.bf16.mxu0 %v10613_v36  ;;  %v7007_v25 = vsel %vm12869_vm11, %v7002_v51, %v7006_v1  ;;  %v7633_v20 = vrot.slane %v7631_v0, 5  ;;  %v7016_v8 = vrot.slane %v7014_v23, 5  ;;  %v7103_v36 = vld [vmem:[#allocation3 + $0xa8] sm:$0xe] }
 0x40f   : > { %9694 = vmatmul.mubr.bf16.gmra.mrb[16].mxu0 %v10597_v42  ;;  %v7639_v18 = vrot.slane %v7637_v54, 5  ;;  %v7643_v49 = vrot.slane %v7641_v62, 4  ;;  %v10486_v7 = vrot.slane %v7712_v14, 9  ;;  %v7856_v32 = vrot.slane %v16490_v57, 5  ;;  %v12180_v62 = vld [vmem:[#allocation3 + $0xac] sm:$0xf] }
 0x410   : > { %v7011_v37 = vor.u32 %v7010_v11, %v7006_v1  ;;  %v7634_v19 = vor.u32 %v7633_v20, %v7630_v48  ;;  %v7649_v34 = vrot.slane %v7647_v29, 5  ;;  %v7859_v55 = vrot.slane %v7312_v40, 5  ;;  %v6703_v1 = vld [vmem:[#allocation3 + $0xb0] sm:$0x1]  ;;  %v16542_v20 = vld [vmem:[#allocation3 + $0xc0] sm:$0xf] }
 0x411   : > { %v7644_v33 = vor.u32 %v7643_v49, %v7639_v18  ;;  %v16514_v11 = vsel %vm12879_vm13, %v10486_v7, %v7856_v32  ;;  %v7858_v54 = vrot.slane %v7856_v32, 4  ;;  %v10598_v42 = vcombine.low %v16488_v22, %v16490_v57 }
 0x412   : > { %v7012_v41 = vrot.slane %v7011_v37, 4  ;;  %v16508_v58 = vpop.f32.mrb[180].mxu0  ;;  %17545 = vst [vmem:[#allocation18_spill] sm:$0xff] %v16514_v11  ;;  %v7635_v0 = vrot.slane %v7634_v19, 4  ;;  %v7247_v14 = vrot.slane %v12180_v62, 5  ;;  %v10470_v48 = vrot.slane %v7103_v36, 9 }
 0x413   : > { %v16518_v23 = vpop.f32.mrb[181].mxu0  ;;  %v7645_v40 = vrot.slane %v7644_v33, 4  ;;  %v16524_v29 = vsel %vm12879_vm13, %v7858_v54, %v7859_v55  ;;  %v16528_v32 = vadd.f32 %v16288_v31, %v16283_v21  ;;  %v16532_v22 = vadd.f32 %v16285_v52, %v16279_v24  ;;  %v17552_v36 = vld [vmem:[#allocation20_spill] sm:$0xff]  ;;  %v6704_v11 = vld [vmem:[#allocation3 + $0xbc] sm:$0x1] }
 0x414   : > { %v7017_v51 = vsel %vm12869_vm11, %v7012_v41, %v7016_v8  ;;  %v16520_v37 = vpop.f32.mrb[182].mxu0  ;;  %17546 = vst [vmem:[#allocation8_spill] sm:$0xff] %v16524_v29  ;;  %v7640_v33 = vsel %vm12869_vm11, %v7635_v0, %v7639_v18  ;;  %v7248_v24 = vsel %vm12879_vm13, %v10470_v48, %v7247_v14  ;;  %v7249_v52 = vrot.slane %v7247_v14, 4  ;;  %v17550_v18 = vld [vmem:[#allocation12_spill] sm:$0xff]  ;;  %v17551_v41 = vld [vmem:[#allocation11_spill] sm:$0xff] }
 0x415   : > { %v10565_v59 = vcombine.low %v7007_v25, %v7017_v51  ;;  %17547 = vst [vmem:[#allocation10_spill] sm:$0xff] %v16528_v32  ;;  %v16534_v57 = vpop.f32.mrb[183].mxu0  ;;  %v7650_v19 = vsel %vm12869_vm11, %v7645_v40, %v7649_v34  ;;  %v7250_v25 = vrot.slane %v6703_v1, 5  ;;  %v16548_v31 = vadd.f32 %v16299_v17, %v16293_v44 }
 0x416   : > { %v10614_v21 = vcombine.low %v7640_v33, %v7650_v19  ;;  %v16554_v34 = vadd.f32 %v16295_v15, %v16290_v61  ;;  %v7025_v8 = vor.u32 %v17551_v41, %v17550_v18  ;;  %v7028_v7 = vshll.u32 %v12180_v62, 16  ;;  %v16574_v18 = vld [vmem:[#allocation3 + $0xc8] sm:$0x1] }
 0x417   : > { %9533 = vmatmul.mubr.bf16.gmra.mrb[240].mxu1 %v10565_v59  ;;  %17548 = vst [vmem:[#allocation21_spill] sm:$0xff] %v16548_v31  ;;  %v16550_v49 = vpop.f32.mrb[148].mxu1  ;;  %v17553_v51 = vshrl.u32 %v17552_v36, 16  ;;  %v16560_v59 = vld [vmem:[#allocation3 + $0xc4] sm:$0xf]  ;;  %v7251_v44 = vsel %vm12879_vm13, %v7249_v52, %v7250_v25  ;;  %v7038_v17 = vshll.u32 %v6703_v1, 16 }
 0x418   : > { %17549 = vst [vmem:[#allocation23_spill] sm:$0xff] %v16554_v34  ;;  %17554 = vst [vmem:[#allocation12_spill] sm:$0xff] %v16560_v59  ;;  %v16562_v0 = vpop.f32.mrb[149].mxu1  ;;  %9701 = vmatprep.mubr.bf16.mxu0 %v10614_v21  ;;  %v7652_v40 = vshrl.u32 %v16542_v20, 16  ;;  %v7655_v61 = vshll.u32 %v16542_v20, 16  ;;  %v17555_v62 = vshll.u32 %v17536_v3, 16  ;;  %v10582_v48 = vcombine.low %v7248_v24, %v7251_v44 }
 0x419   : > { %v7034_v54 = vrot.slane %v17553_v51, 4  ;;  %v16568_v15 = vpop.f32.mrb[150].mxu1  ;;  %9702 = vmatmul.mubr.bf16.gmra.mrb[20].mxu0 %v10598_v42  ;;  %v7026_v33 = vrot.slane %v7025_v8, 4  ;;  %v7030_v19 = vrot.slane %v7028_v7, 5  ;;  %17556 = vst [vmem:[#allocation11_spill] sm:$0xff] %v16574_v18  ;;  %v7070_v1 = vshll.u32 %v16502_v35, 16 }
 0x41a   : > { %v16572_v14 = vrot.slane %v17555_v62, 5  ;;  %v16576_v21 = vpop.f32.mrb[151].mxu1  ;;  %v7654_v25 = vrot.slane %v7652_v40, 4  ;;  %v7657_v52 = vrot.slane %v7655_v61, 5  ;;  %v7661_v41 = vshll.u32 %v16560_v59, 16  ;;  %9540 = vmatprep.mubr.bf16.mxu1 %v10582_v48 }
 0x41b   : > { %v16580_v36 = vpop.f32.mrb[184].mxu0  ;;  %v17557_v3 = vshrl.u32 %v16502_v35, 16  ;;  %v16586_v24 = vld [vmem:[#allocation3 + $0xc4] sm:$0xf]  ;;  %v7035_v8 = vor.u32 %v7034_v54, %v7030_v19  ;;  %v7665_v7 = vshrl.u32 %v16560_v59, 16  ;;  %v7040_v40 = vrot.slane %v7038_v17, 5 }
 0x41c   : > { %v7104_v44 = vld [vmem:[#allocation3 + $0xb4] sm:$0xe]  ;;  %v16590_v62 = vpop.f32.mrb[185].mxu0  ;;  %v7658_v61 = vor.u32 %v7657_v52, %v7654_v25  ;;  %v7663_v55 = vrot.slane %v7661_v41, 5  ;;  %v7671_v29 = vshll.u32 %v16574_v18, 16  ;;  %v7254_v54 = vrot.slane %v16439_v63, 5 }
 0x41d   : > { %v16584_v51 = vrot.slane %v17557_v3, 4  ;;  %v16593_v35 = vpop.f32.mrb[186].mxu0  ;;  %v7031_v3 = vsel %vm12869_vm11, %v7026_v33, %v7030_v19  ;;  %v7036_v31 = vrot.slane %v7035_v8, 4  ;;  %v7667_v42 = vrot.slane %v7665_v7, 4 }
 0x41e   : > { %v16598_v48 = vpop.f32.mrb[187].mxu0  ;;  %v7659_v32 = vrot.slane %v7658_v61, 4  ;;  %v10471_v34 = vrot.slane %v7104_v44, 9  ;;  %v16602_v17 = vadd.f32 %v16364_v2, %v16358_v39  ;;  %v16606_v25 = vadd.f32 %v16356_v56, %v16349_v13 }
 0x41f   : > { %v16608_v52 = vpop.f32.mrb[152].mxu1  ;;  %v7041_v33 = vsel %vm12869_vm11, %v7036_v31, %v7040_v40  ;;  %v7668_v19 = vor.u32 %v7667_v42, %v7663_v55  ;;  %v7256_v41 = vrot.slane %v7254_v54, 4  ;;  %v7257_v8 = vrot.slane %v6704_v11, 5 }
 0x420   : > { %17558 = vst [vmem:[#allocation20_spill] sm:$0xff] %v16602_v17  ;;  %v16612_v7 = vpop.f32.mrb[153].mxu1  ;;  %v10566_v61 = vcombine.low %v7031_v3, %v7041_v33  ;;  %v7673_v44 = vrot.slane %v7671_v29, 5  ;;  %v7255_v39 = vsel %vm12879_vm13, %v10471_v34, %v7254_v54  ;;  %v16618_v2 = vadd.f32 %v16375_v43, %v16373_v26  ;;  %v7105_v33 = vld [vmem:[#allocation3 + $0xc0] sm:$0xe] }
 0x421   : > { %v16620_v13 = vpop.f32.mrb[154].mxu1  ;;  %v7669_v56 = vrot.slane %v7668_v19, 4  ;;  %v7258_v31 = vsel %vm12879_vm13, %v7256_v41, %v7257_v8  ;;  %v16626_v42 = vadd.f32 %v16366_v47, %v16360_v38  ;;  %v7049_v29 = vor.u32 %v16572_v14, %v16437_v5  ;;  %v6705_v14 = vld [vmem:[#allocation3 + $0xc8] sm:$0x1] }
 0x422   : > { %17559 = vst [vmem:[#allocation32_spill] sm:$0xff] %v16618_v2  ;;  %v16630_v40 = vpop.f32.mrb[155].mxu1  ;;  %9541 = vmatmul.mubr.bf16.gmra.mrb[244].mxu1 %v10566_v61  ;;  %v10583_v34 = vcombine.low %v7255_v39, %v7258_v31  ;;  %v7052_v43 = vshll.u32 %v16439_v63, 16  ;;  %v17560_v26 = vshrl.u32 %v16439_v63, 16  ;;  %v7062_v54 = vshll.u32 %v6704_v11, 16 }
 0x423   : > { %v16635_v19 = vpop.f32.mrb[188].mxu0  ;;  %v7072_v41 = vrot.slane %v7070_v1, 5  ;;  %v7664_v38 = vsel %vm12869_vm11, %v7659_v32, %v7663_v55  ;;  %v7674_v47 = vsel %vm12869_vm11, %v7669_v56, %v7673_v44  ;;  %v10599_v5 = vcombine.low %v16542_v20, %v16560_v59  ;;  %v7699_v59 = vld [vmem:[#allocation3 + $0x18] sm:$0xe] }
 0x424   : > { %v7058_v3 = vrot.slane %v17560_v26, 4  ;;  %v16643_v8 = vpop.f32.mrb[189].mxu0  ;;  %v10615_v61 = vcombine.low %v7664_v38, %v7674_v47  ;;  %9548 = vmatprep.mubr.bf16.mxu1 %v10583_v34  ;;  %v7050_v63 = vrot.slane %v7049_v29, 4  ;;  %v7054_v11 = vrot.slane %v7052_v43, 5 }
 0x425   : > { %v7261_v39 = vrot.slane %v16586_v24, 5  ;;  %v16646_v31 = vpop.f32.mrb[190].mxu0  ;;  %v10472_v1 = vrot.slane %v7105_v33, 9  ;;  %v16650_v32 = vadd.f32 %v16464_v12, %v16448_v9  ;;  %v16654_v55 = vadd.f32 %v16466_v53, %v16450_v46 }
 0x426   : > { %v16658_v20 = vadd.f32 %v16478_v45, %v16470_v50  ;;  %v16660_v44 = vpop.f32.mrb[191].mxu0  ;;  %9709 = vmatprep.mubr.bf16.mxu0 %v10615_v61  ;;  %v7059_v56 = vor.u32 %v7058_v3, %v7054_v11  ;;  %v7064_v29 = vrot.slane %v7062_v54, 5  ;;  %v7264_v43 = vrot.slane %v6705_v14, 5  ;;  %v16672_v50 = vld [vmem:[#allocation3 + $0xcc] sm:$0xf] }
 0x427   : > { %17561 = vst [vmem:[#allocation33_spill] sm:$0xff] %v16650_v32  ;;  %v7263_v34 = vrot.slane %v7261_v39, 4  ;;  %v16662_v26 = vpop.f32.mrb[156].mxu1  ;;  %9710 = vmatmul.mubr.bf16.gmra.mrb[24].mxu0 %v10599_v5  ;;  %v7262_v9 = vsel %vm12879_vm13, %v10472_v1, %v7261_v39  ;;  %v16668_v46 = vadd.f32 %v16480_v27, %v16472_v30  ;;  %v7073_v12 = vor.u32 %v7072_v41, %v16584_v51  ;;  %v16680_v5 = vld [vmem:[#allocation3 + $0xd0] sm:$0xf] }
 0x428   : > { %17562 = vst [vmem:[#allocation34_spill] sm:$0xff] %v16658_v20  ;;  %v7076_v53 = vshll.u32 %v16586_v24, 16  ;;  %v16674_v45 = vpop.f32.mrb[157].mxu1  ;;  %v7060_v3 = vrot.slane %v7059_v56, 4  ;;  %v17564_v33 = vshrl.u32 %v16586_v24, 16  ;;  %v7086_v47 = vshll.u32 %v6705_v14, 16 }
 0x429   : > { %17563 = vst [vmem:[#allocation35_spill] sm:$0xff] %v16668_v46  ;;  %v7265_v54 = vsel %vm12879_vm13, %v7263_v34, %v7264_v43  ;;  %v16682_v30 = vpop.f32.mrb[158].mxu1  ;;  %v7055_v27 = vsel %vm12869_vm11, %v7050_v63, %v7054_v11  ;;  %v7314_v61 = vld [vmem:[#allocation3 + $0xd4] sm:$0x1]  ;;  %v7074_v56 = vrot.slane %v7073_v12, 4  ;;  %v7676_v24 = vshrl.u32 %v16672_v50, 16 }
 0x42a   : > { %v7082_v38 = vrot.slane %v17564_v33, 4  ;;  %v10584_v51 = vcombine.low %v7262_v9, %v7265_v54  ;;  %v7078_v41 = vrot.slane %v7076_v53, 5  ;;  %v16686_v39 = vpop.f32.mrb[159].mxu1  ;;  %v7065_v1 = vsel %vm12869_vm11, %v7060_v3, %v7064_v29  ;;  %v7714_v34 = vld [vmem:[#allocation3 + $0xcc] sm:$0xe] }
 0x42b   : > { %v7679_v14 = vshll.u32 %v16672_v50, 16  ;;  %v16692_v43 = vpop.f32.mrb[192].mxu0  ;;  %v10567_v33 = vcombine.low %v7055_v27, %v7065_v1  ;;  %v7088_v32 = vrot.slane %v7086_v47, 5  ;;  %v7685_v63 = vshll.u32 %v16680_v5, 16 }
 0x42c   : > { %v7083_v20 = vor.u32 %v7082_v38, %v7078_v41  ;;  %v16695_v11 = vpop.f32.mrb[193].mxu0  ;;  %v7678_v9 = vrot.slane %v7676_v24, 4  ;;  %v7689_v54 = vshrl.u32 %v16680_v5, 16  ;;  %v7695_v29 = vshll.u32 %v7314_v61, 16 }
 0x42d   : > { %v7681_v53 = vrot.slane %v7679_v14, 5  ;;  %v16698_v12 = vpop.f32.mrb[194].mxu0  ;;  %9549 = vmatmul.mubr.bf16.gmra.mrb[248].mxu1 %v10567_v33  ;;  %v7687_v2 = vrot.slane %v7685_v63, 5  ;;  %v10488_v17 = vrot.slane %v7714_v34, 9  ;;  %v7870_v18 = vrot.slane %v16680_v5, 5 }
 0x42e   : > { %v7084_v3 = vrot.slane %v7083_v20, 4  ;;  %v16701_v27 = vpop.f32.mrb[195].mxu0  ;;  %9556 = vmatprep.mubr.bf16.mxu1 %v10584_v51  ;;  %v7691_v47 = vrot.slane %v7689_v54, 4  ;;  %v7873_v1 = vrot.slane %v7314_v61, 5  ;;  %v7079_v14 = vsel %vm12869_vm11, %v7074_v56, %v7078_v41  ;;  %v12182_v56 = vld [vmem:[#allocation3 + $0x1c] sm:$0xf] }
 0x42f   : > { %v7682_v38 = vor.u32 %v7681_v53, %v7678_v9  ;;  %v16703_v24 = vpop.f32.mrb[160].mxu1  ;;  %v16711_v20 = vsel %vm12879_vm13, %v10488_v17, %v7870_v18  ;;  %v7872_v34 = vrot.slane %v7870_v18, 4  ;;  %v7697_v61 = vrot.slane %v7695_v29, 5 }
 0x430   : > { %v7089_v33 = vsel %vm12869_vm11, %v7084_v3, %v7088_v32  ;;  %v16713_v63 = vpop.f32.mrb[161].mxu1  ;;  %v7692_v53 = vor.u32 %v7691_v47, %v7687_v2  ;;  %v10473_v41 = vrot.slane %v7699_v59, 9  ;;  %v7765_v32 = vrot.slane %v12182_v56, 5 }
 0x431   : > { %v10568_v51 = vcombine.low %v7079_v14, %v7089_v33  ;;  %v7683_v9 = vrot.slane %v7682_v38, 4  ;;  %v16715_v54 = vpop.f32.mrb[162].mxu1  ;;  %v16719_v46 = vsel %vm12879_vm13, %v7872_v34, %v7873_v1  ;;  %v16723_v17 = vadd.f32 %v16518_v23, %v16508_v58  ;;  %v12183_v14 = vld [vmem:[#allocation3 + $0x20] sm:$0x1] }
 0x432   : > { %v16725_v18 = vpop.f32.mrb[163].mxu1  ;;  %v7693_v38 = vrot.slane %v7692_v53, 4  ;;  %v10632_v29 = vcombine.low %v16711_v20, %v16719_v46  ;;  %v16733_v47 = vadd.f32 %v16562_v0, %v16550_v49  ;;  %v7767_v1 = vrot.slane %v7765_v32, 4  ;;  %v12184_v0 = vld [vmem:[#allocation3 + $0x34] sm:$0xf] }
 0x433   : > { %v7688_v3 = vsel %vm12869_vm11, %v7683_v9, %v7687_v2  ;;  %v16735_v59 = vpop.f32.mrb[196].mxu0  ;;  %v7768_v33 = vrot.slane %v12183_v14, 5  ;;  %v16739_v58 = vadd.f32 %v16534_v57, %v16520_v37  ;;  %v16743_v23 = vadd.f32 %v16576_v21, %v16568_v15  ;;  %v7701_v14 = vld [vmem:[#allocation3 + $0x30] sm:$0xe] }
 0x434   : > { %v11465_v2 = vpop.f32.mrb[197].mxu0  ;;  %v7698_v34 = vsel %vm12869_vm11, %v7693_v38, %v7697_v61  ;;  %v10600_v49 = vcombine.low %v16672_v50, %v16680_v5  ;;  %v7779_v9 = vrot.slane %v12184_v0, 5  ;;  %v7766_v37 = vsel %vm12879_vm13, %v10473_v41, %v7765_v32  ;;  %v12185_v5 = vld [vmem:[#allocation3 + $0x38] sm:$0x1]  ;;  %v12187_v0 = vld [vmem:[#allocation3 + $0x64] sm:$0xf] }
 0x435   : > { %v16749_v53 = vpop.f32.mrb[198].mxu0  ;;  %9557 = vmatmul.mubr.bf16.gmra.mrb[252].mxu1 %v10568_v51  ;;  %v10616_v56 = vcombine.low %v7688_v3, %v7698_v34  ;;  %v7769_v57 = vsel %vm12879_vm13, %v7767_v1, %v7768_v33  ;;  %v16757_v61 = vadd.f32 %v16590_v62, %v16580_v36  ;;  %v7782_v38 = vrot.slane %v12185_v5, 5 }
 0x436   : > { %v11468_v15 = vpop.f32.mrb[199].mxu0  ;;  %v10617_v21 = vcombine.low %v7766_v37, %v7769_v57  ;;  %v7781_v60 = vrot.slane %v7779_v9, 4  ;;  %v16761_v51 = vadd.f32 %v16612_v7, %v16608_v52  ;;  %v16765_v41 = vadd.f32 %v16598_v48, %v16593_v35  ;;  %v12186_v7 = vld [vmem:[#allocation3 + $0x4c] sm:$0xf]  ;;  %v12188_v57 = vld [vmem:[#allocation3 + $0x50] sm:$0x1] }
 0x437   : > { %v11352_v50 = vpop.f32.mrb[164].mxu1  ;;  %9717 = vmatprep.mubr.bf16.mxu0 %v10616_v56  ;;  %v16769_v32 = vadd.f32 %v16630_v40, %v16620_v13  ;;  %v16773_v36 = vadd.f32 %v16643_v8, %v16635_v19  ;;  %v10475_v1 = vrot.slane %v7701_v14, 9  ;;  %v7793_v33 = vrot.slane %v12186_v7, 5 }
 0x438   : > { %v11353_v3 = vpop.f32.mrb[165].mxu1  ;;  %11818 = vmatprep.mubr.bf16.mxu1 %v10617_v21  ;;  %9718 = vmatmul.mubr.bf16.gmra.mrb[28].mxu0 %v10600_v49  ;;  %v7783_v52 = vsel %vm12879_vm13, %v7781_v60, %v7782_v38  ;;  %v11342_v35 = vadd.f32 %v16674_v45, %v16662_v26  ;;  %v16781_v13 = vadd.f32 %v16660_v44, %v16646_v31  ;;  %v7807_v56 = vrot.slane %v12187_v0, 5 }
 0x439   : > { %v11355_v62 = vpop.f32.mrb[166].mxu1  ;;  %v16785_v40 = vadd.f32 %v16686_v39, %v16682_v30  ;;  %v7780_v8 = vsel %vm12879_vm13, %v10475_v1, %v7779_v9  ;;  %v16791_v26 = vadd.f32 %v16695_v11, %v16692_v43  ;;  %v11348_v31 = vadd.f32 %v16713_v63, %v16703_v24  ;;  %v17566_v43 = vld [vmem:[#allocation24_spill] sm:$0xff] }
 0x43a   : > { %v11356_v48 = vpop.f32.mrb[167].mxu1  ;;  %v10619_v49 = vcombine.low %v7780_v8, %v7783_v52  ;;  %v16797_v45 = vadd.f32 %v16458_v16, %v16392_v4  ;;  %v17565_v30 = vcombine.low %v15987_v28, %v15999_v6  ;;  %v7795_v39 = vrot.slane %v7793_v33, 4  ;;  %v17567_v16 = vld [vmem:[#allocation23_spill] sm:$0xff]  ;;  %v7703_v28 = vld [vmem:[#allocation3 + $0x48] sm:$0xe] }
 0x43b   : > { %v11470_v19 = vpop.f32.mrb[200].mxu0  ;;  %v16804_v9 = vadd.f32 %v16701_v27, %v16698_v12  ;;  %v16808_v11 = vadd.f32 %v17566_v43, %v16392_v4  ;;  %v16812_v24 = vadd.f32 %v16532_v22, %v16392_v4  ;;  %v16816_v63 = vadd.f32 %v17567_v16, %v16392_v4  ;;  %v12189_v8 = vld [vmem:[#allocation3 + $0x68] sm:$0x1]  ;;  %v16852_v43 = vld [vmem:[#allocation3 + $0x7c] sm:$0xf] }
 0x43c   : > { %v11471_v34 = vpop.f32.mrb[201].mxu0  ;;  %v11351_v6 = vadd.f32 %v16725_v18, %v16715_v54  ;;  %v16822_v27 = vadd.f32 %v16606_v25, %v16392_v4  ;;  %v7796_v21 = vrot.slane %v12188_v57, 5  ;;  %v16825_v14 = vadd.f32 %v11465_v2, %v16735_v59  ;;  %v17568_v54 = vld [vmem:[#allocation35_spill] sm:$0xff]  ;;  %v7705_v2 = vld [vmem:[#allocation3 + $0x60] sm:$0xe]  ;;  %v17569_v57 = vld [vmem:[#allocation17_spill] sm:$0xff] }
 0x43d   : > { %v11473_v44 = vpop.f32.mrb[202].mxu0  ;;  %11819 = vmatmul.mubr.bf16.vlgmr.msra.gmra.mrb[0].mxu1 %v17565_v30  ;;  %v11354_v22 = vadd.f32 %v11353_v3, %v11352_v50  ;;  %v16829_v5 = vadd.f32 %v16626_v42, %v16392_v4  ;;  %v16833_v38 = vadd.f32 %v16654_v55, %v16392_v4  ;;  %v16837_v18 = vadd.f32 %v17568_v54, %v16392_v4  ;;  %v7713_v54 = vld [vmem:[#allocation3 + $0xc0] sm:$0xe] }
 0x43e   : > { %v11474_v37 = vpop.f32.mrb[203].mxu0  ;;  %11822 = vmatprep.mubr.bf16.mxu1 %v10619_v49  ;;  %v7809_v25 = vrot.slane %v7807_v56, 4  ;;  %v10477_v52 = vrot.slane %v7703_v28, 9  ;;  %v7797_v59 = vsel %vm12879_vm13, %v7795_v39, %v7796_v21  ;;  %v16842_v50 = vadd.f32 %v11468_v15, %v16749_v53  ;;  %v17570_v21 = vld [vmem:[#allocation25_spill] sm:$0xff] }
 0x43f   : > { %v11358_v12 = vpop.f32.mrb[168].mxu1  ;;  %v11357_v42 = vadd.f32 %v11356_v48, %v11355_v62  ;;  %v9157_v55 = vadd.f32 %v16733_v47, %v16392_v4  ;;  %v9160_v7 = vadd.f32 %v16743_v23, %v16392_v4  ;;  %v7810_v49 = vrot.slane %v12189_v8, 5  ;;  %v17572_v8 = vld [vmem:[#allocation12_spill] sm:$0xff] }
 0x440   : > { %v11359_v60 = vpop.f32.mrb[169].mxu1  ;;  %v16848_v0 = vadd.f32 %v11471_v34, %v11470_v19  ;;  %v7794_v39 = vsel %vm12879_vm13, %v10477_v52, %v7793_v33  ;;  %v7821_v53 = vrot.slane %v16852_v43, 5  ;;  %v16855_v62 = vadd.f32 %v11474_v37, %v11473_v44 }
 0x441   : > { %v11361_v1 = vpop.f32.mrb[170].mxu1  ;;  %v11360_v15 = vadd.f32 %v11359_v60, %v11358_v12  ;;  %v10621_v47 = vcombine.low %v7794_v39, %v7797_v59  ;;  %v10479_v16 = vrot.slane %v7705_v2, 9  ;;  %v7811_v23 = vsel %vm12879_vm13, %v7809_v25, %v7810_v49 }
 0x442   : > { %v11362_v3 = vpop.f32.mrb[171].mxu1  ;;  %v9165_v34 = vadd.f32 %v16761_v51, %v16392_v4  ;;  %v9168_v33 = vadd.f32 %v16769_v32, %v16392_v4  ;;  %v17571_v12 = vcombine.low %v17569_v57, %v17570_v21  ;;  %v9173_v44 = vadd.f32 %v11342_v35, %v16392_v4  ;;  %v17576_v21 = vld [vmem:[#allocation10_spill] sm:$0xff] }
 0x443   : > { %v11476_v30 = vpop.f32.mrb[204].mxu0  ;;  %v16859_v28 = vadd.f32 %v11362_v3, %v11361_v1  ;;  %v9176_v25 = vadd.f32 %v16785_v40, %v16392_v4  ;;  %v7808_v51 = vsel %vm12879_vm13, %v10479_v16, %v7807_v56  ;;  %v9181_v1 = vadd.f32 %v11348_v31, %v16392_v4  ;;  %v17573_v56 = vld [vmem:[#allocation15_spill] sm:$0xff] }
 0x444   : > { %v11477_v48 = vpop.f32.mrb[205].mxu0  ;;  %v10623_v59 = vcombine.low %v7808_v51, %v7811_v23  ;;  %v9184_v2 = vadd.f32 %v11351_v6, %v16392_v4  ;;  %v7823_v35 = vrot.slane %v7821_v53, 4  ;;  %v7863_v49 = vrot.slane %v17572_v8, 5  ;;  %v17574_v31 = vld [vmem:[#allocation19_spill] sm:$0xff]  ;;  %v17577_v51 = vld [vmem:[#allocation21_spill] sm:$0xff] }
 0x445   : > { %v11479_v19 = vpop.f32.mrb[206].mxu0  ;;  %11823 = vmatmul.mubr.bf16.gmra.mrb[4].mxu1 %v17571_v12  ;;  %v16869_v37 = vadd.f32 %v11477_v48, %v11476_v30  ;;  %v10487_v39 = vrot.slane %v7713_v54, 9  ;;  %v16886_v48 = vadd.f32 %v17573_v56, %v16797_v45  ;;  %v9189_v6 = vadd.f32 %v11354_v22, %v16392_v4 }
 0x446   : > { %v11480_v60 = vpop.f32.mrb[207].mxu0  ;;  %11826 = vmatprep.mubr.bf16.mxu1 %v10621_v47  ;;  %v16890_v47 = vadd.f32 %v17574_v31, %v16808_v11  ;;  %v7865_v23 = vrot.slane %v7863_v49, 4  ;;  %v16896_v12 = vadd.f32 %v17576_v21, %v16812_v24  ;;  %v16907_v22 = vadd.f32 %v17577_v51, %v16816_v63  ;;  %v17578_v24 = vld [vmem:[#allocation20_spill] sm:$0xff] }
 0x447   : > { %v11364_v32 = vpop.f32.mrb[172].mxu1  ;;  %v16876_v52 = vadd.f32 %v11480_v60, %v11479_v19  ;;  %v17575_v19 = vld [vmem:[#allocation11_spill] sm:$0xff]  ;;  %v9192_v60 = vadd.f32 %v11357_v42, %v16392_v4  ;;  %v16903_v45 = vsel %vm12879_vm13, %v10487_v39, %v7863_v49  ;;  %v16915_v8 = vadd.f32 %v17578_v24, %v16822_v27  ;;  %v17579_v42 = vld [vmem:[#allocation32_spill] sm:$0xff]  ;;  %v17580_v49 = vld [vmem:[#allocation33_spill] sm:$0xff] }
 0x448   : > { %v11365_v3 = vpop.f32.mrb[173].mxu1  ;;  %v7866_v57 = vrot.slane %v17575_v19, 5  ;;  %v16923_v39 = vadd.f32 %v17580_v49, %v16833_v38  ;;  %v9197_v63 = vadd.f32 %v11360_v15, %v16392_v4  ;;  %v17582_v19 = vld [vmem:[#allocation26_spill] sm:$0xff]  ;;  %v16938_v38 = vadd.f32 %v16723_v17, %v9157_v55  ;;  %v12191_v55 = vld [vmem:[#allocation3 + $0x80] sm:$0x1] }
 0x449   : > { %v16882_v30 = vadd.f32 %v11365_v3, %v11364_v32  ;;  %v11367_v40 = vpop.f32.mrb[174].mxu1  ;;  %v16941_v15 = vadd.f32 %v16739_v58, %v9160_v7  ;;  %v16944_v51 = vadd.f32 %v16757_v61, %v9165_v34  ;;  %v16955_v17 = vadd.f32 %v16781_v13, %v9176_v25 }
 0x44a   : > { %v11368_v16 = vpop.f32.mrb[175].mxu1  ;;  %v16911_v32 = vsel %vm12879_vm13, %v7865_v23, %v7866_v57  ;;  %v17581_v23 = vld [vmem:[#allocation34_spill] sm:$0xff]  ;;  %v17583_v57 = vld [vmem:[#allocation27_spill] sm:$0xff]  ;;  %v16958_v58 = vadd.f32 %v16791_v26, %v9181_v1  ;;  %v7824_v61 = vrot.slane %v12191_v55, 5  ;;  %v16964_v34 = vadd.f32 %v16825_v14, %v9189_v6 }
 0x44b   : > { %v16899_v54 = vadd.f32 %v11368_v16, %v11367_v40  ;;  %v11482_v11 = vpop.f32.mrb[208].mxu0  ;;  %v16919_v40 = vadd.f32 %v17579_v42, %v16829_v5  ;;  %v10631_v56 = vcombine.low %v16903_v45, %v16911_v32  ;;  %v16932_v27 = vadd.f32 %v17581_v23, %v16837_v18  ;;  %v7707_v18 = vld [vmem:[#allocation3 + $0x78] sm:$0xe]  ;;  %v12192_v1 = vld [vmem:[#allocation3 + $0x94] sm:$0xf] }
 0x44c   : > { %v11483_v3 = vpop.f32.mrb[209].mxu0  ;;  %v17584_v5 = vcombine.low %v17582_v19, %v17583_v57  ;;  %v16952_v42 = vadd.f32 %v16773_v36, %v9173_v44  ;;  %v9200_v36 = vadd.f32 %v16859_v28, %v16392_v4  ;;  %v16974_v26 = vadd.f32 %v16848_v0, %v9197_v63 }
 0x44d   : > { %v16928_v31 = vadd.f32 %v11483_v3, %v11482_v11  ;;  %v11485_v16 = vpop.f32.mrb[210].mxu0  ;;  %v16947_v11 = vadd.f32 %v16765_v41, %v9168_v33  ;;  %v16961_v41 = vadd.f32 %v16804_v9, %v9184_v2  ;;  %v16967_v33 = vadd.f32 %v16842_v50, %v9192_v60 }
 0x44e   : > { %11827 = vmatmul.mubr.bf16.gmra.mrb[8].mxu1 %v17584_v5  ;;  %v11486_v21 = vpop.f32.mrb[211].mxu0  ;;  %v10481_v25 = vrot.slane %v7707_v18, 9  ;;  %v7825_v9 = vsel %vm12879_vm13, %v7823_v35, %v7824_v61  ;;  %v16987_v63 = vadd.f32 %v16855_v62, %v9200_v36  ;;  %v17585_v35 = vld [vmem:[#allocation28_spill] sm:$0xff]  ;;  %v7709_v5 = vld [vmem:[#allocation3 + $0x90] sm:$0xe]  ;;  %v17588_v36 = vld [vmem:[#allocation13_spill] sm:$0xff] }
 0x44f   : > { %11830 = vmatprep.mubr.bf16.mxu1 %v10623_v59  ;;  %v11370_v3 = vpop.f32.mrb[176].mxu1  ;;  %v16949_v24 = vadd.f32 %v11486_v21, %v11485_v16  ;;  %v7835_v59 = vrot.slane %v12192_v1, 5  ;;  %v17586_v16 = vld [vmem:[#allocation29_spill] sm:$0xff] }
 0x450   : > { %v11371_v7 = vpop.f32.mrb[177].mxu1  ;;  %v7822_v28 = vsel %vm12879_vm13, %v10481_v25, %v7821_v53  ;;  %v17587_v23 = vcombine.low %v17585_v35, %v17586_v16  ;;  %v12193_v53 = vld [vmem:[#allocation3 + $0x98] sm:$0x1]  ;;  %v17589_v35 = vld [vmem:[#allocation30_spill] sm:$0xff] }
 0x451   : > { %v16971_v13 = vadd.f32 %v11371_v7, %v11370_v3  ;;  %v11373_v44 = vpop.f32.mrb[178].mxu1  ;;  %v10625_v60 = vcombine.low %v7822_v28, %v7825_v9  ;;  %v7837_v19 = vrot.slane %v7835_v59, 4  ;;  %v7838_v18 = vrot.slane %v12193_v53, 5  ;;  %v17590_v16 = vld [vmem:[#allocation31_spill] sm:$0xff] }
 0x452   : > { %v11374_v14 = vpop.f32.mrb[179].mxu1  ;;  %v10483_v7 = vrot.slane %v7709_v5, 9  ;;  %v9205_v9 = vadd.f32 %v16882_v30, %v16392_v4  ;;  %v7711_v5 = vld [vmem:[#allocation3 + $0xa8] sm:$0xe]  ;;  %v9208_v30 = vadd.f32 %v16899_v54, %v16392_v4 }
 0x453   : > { %v16978_v2 = vadd.f32 %v11374_v14, %v11373_v44  ;;  %v11488_v50 = vpop.f32.mrb[212].mxu0  ;;  %v7839_v62 = vsel %vm12879_vm13, %v7837_v19, %v7838_v18  ;;  %v7849_v44 = vrot.slane %v17588_v36, 5  ;;  %v17592_v18 = vld [vmem:[#allocation7_spill] sm:$0xff]  ;;  %v10485_v36 = vrot.slane %v7711_v5, 9 }
 0x454   : > { %v11489_v6 = vpop.f32.mrb[213].mxu0  ;;  %v17025_v54 = vadd.f32 %v16876_v52, %v9208_v30 }
 0x455   : > { %v16984_v49 = vadd.f32 %v11489_v6, %v11488_v50  ;;  %v11491_v0 = vpop.f32.mrb[214].mxu0  ;;  %v7836_v50 = vsel %vm12879_vm13, %v10483_v7, %v7835_v59  ;;  %v7851_v19 = vrot.slane %v7849_v44, 4  ;;  %v17015_v59 = vadd.f32 %v16869_v37, %v9205_v9 }
 0x456   : > { %11831 = vmatmul.mubr.bf16.gmra.mrb[12].mxu1 %v17587_v23  ;;  %v11492_v57 = vpop.f32.mrb[215].mxu0  ;;  %v10627_v6 = vcombine.low %v7836_v50, %v7839_v62  ;;  %v17591_v23 = vcombine.low %v17589_v35, %v17590_v16  ;;  %v7850_v37 = vsel %vm12879_vm13, %v10485_v36, %v7849_v44 }
 0x457   : > { %11834 = vmatprep.mubr.bf16.mxu1 %v10625_v60  ;;  %v11376_v43 = vpop.f32.mrb[180].mxu1  ;;  %v16992_v21 = vadd.f32 %v11492_v57, %v11491_v0 }
 0x458   : > { %v11377_v3 = vpop.f32.mrb[181].mxu1 }
 0x459   : > { %v16994_v55 = vadd.f32 %v11377_v3, %v11376_v43  ;;  %v11379_v61 = vpop.f32.mrb[182].mxu1  ;;  %v7852_v3 = vrot.slane %v17592_v18, 5 }
 0x45a   : > { %v11380_v25 = vpop.f32.mrb[183].mxu1 }
 0x45b   : > { %v17001_v1 = vadd.f32 %v11380_v25, %v11379_v61  ;;  %v11494_v14 = vpop.f32.mrb[216].mxu0  ;;  %v7853_v25 = vsel %vm12879_vm13, %v7851_v19, %v7852_v3  ;;  %v17594_v19 = vld [vmem:[#allocation22_spill] sm:$0xff] }
 0x45c   : > { %v11495_v28 = vpop.f32.mrb[217].mxu0 }
 0x45d   : > { %v17005_v60 = vadd.f32 %v11495_v28, %v11494_v14  ;;  %v11497_v0 = vpop.f32.mrb[218].mxu0  ;;  %v10629_v28 = vcombine.low %v7850_v37, %v7853_v25  ;;  %v17596_v37 = vld [vmem:[#allocation18_spill] sm:$0xff] }
 0x45e   : > { %11835 = vmatmul.mubr.bf16.gmra.mrb[16].mxu1 %v17591_v23  ;;  %v11498_v57 = vpop.f32.mrb[219].mxu0  ;;  %v17593_v23 = vld [vmem:[#allocation14_spill] sm:$0xff] }
 0x45f   : > { %11838 = vmatprep.mubr.bf16.mxu1 %v10627_v6  ;;  %v11382_v43 = vpop.f32.mrb[184].mxu1  ;;  %v17012_v53 = vadd.f32 %v11498_v57, %v11497_v0  ;;  %v17032_v6 = vld [vmem:[%s17323_s5] ss:$0 sm:$0xff]  ;;  %v17595_v52 = vcombine.low %v17593_v23, %v17594_v19 }
 0x460   : > { %v11383_v61 = vpop.f32.mrb[185].mxu1  ;;  %v9213_v0 = vadd.f32 %v17032_v6, %v16971_v13  ;;  %v9216_v30 = vadd.f32 %v17032_v6, %v16978_v2 }
 0x461   : > { %v17018_v7 = vadd.f32 %v11383_v61, %v11382_v43  ;;  %v11385_v62 = vpop.f32.mrb[186].mxu1 }
 0x462   : > { %v11386_v14 = vpop.f32.mrb[187].mxu1  ;;  %v17046_v13 = vadd.f32 %v16928_v31, %v9213_v0 }
 0x463   : > { %v17022_v50 = vadd.f32 %v11386_v14, %v11385_v62  ;;  %v11500_v4 = vpop.f32.mrb[220].mxu0 }
 0x464   : > { %v11501_v9 = vpop.f32.mrb[221].mxu0 }
 0x465   : > { %v17036_v35 = vadd.f32 %v11501_v9, %v11500_v4  ;;  %v11503_v16 = vpop.f32.mrb[222].mxu0  ;;  %v17051_v4 = vadd.f32 %v16949_v24, %v9216_v30  ;;  %v17597_v9 = vld [vmem:[#allocation8_spill] sm:$0xff] }
 0x466   : > { %11839 = vmatmul.mubr.bf16.gmra.mrb[20].mxu1 %v17595_v52  ;;  %v11504_v57 = vpop.f32.mrb[223].mxu0  ;;  %v9221_v52 = vadd.f32 %v17032_v6, %v16994_v55 }
 0x467   : > { %11842 = vmatprep.mubr.bf16.mxu1 %v10629_v28  ;;  %v11388_v10 = vpop.f32.mrb[188].mxu1  ;;  %v17041_v44 = vadd.f32 %v11504_v57, %v11503_v16  ;;  %v17598_v28 = vcombine.low %v17596_v37, %v17597_v9  ;;  %v17599_v57 = vld [vmem:[#allocation16_spill] sm:$0xff] }
 0x468   : > { %v11389_v5 = vpop.f32.mrb[189].mxu1 }
 0x469   : > { %v11390_v43 = vadd.f32 %v11389_v5, %v11388_v10  ;;  %v11391_v18 = vpop.f32.mrb[190].mxu1 }
 0x46a   : > { %v11392_v3 = vpop.f32.mrb[191].mxu1 }
 0x46b   : > { %v11393_v61 = vadd.f32 %v11392_v3, %v11391_v18  ;;  %v11634_v62 = vpop.f32.mrb[224].mxu0  ;;  %v17600_v3 = vld [vmem:[#allocation9_spill] sm:$0xff] }
 0x46c   : > { %v11635_v36 = vpop.f32.mrb[225].mxu0 }
 0x46d   : > { %v17048_v25 = vadd.f32 %v11635_v36, %v11634_v62  ;;  %v11637_v14 = vpop.f32.mrb[226].mxu0  ;;  %v17075_v36 = vadd.f32 %v16984_v49, %v9221_v52 }
 0x46e   : > { %11843 = vmatmul.mubr.bf16.gmra.mrb[24].mxu1 %v17598_v28  ;;  %v11638_v2 = vpop.f32.mrb[227].mxu0 }
 0x46f   : > { %11846 = vmatprep.mubr.bf16.mxu1 %v10631_v56  ;;  %v11522_v31 = vpop.f32.mrb[192].mxu1  ;;  %v17059_v0 = vadd.f32 %v11638_v2, %v11637_v14  ;;  %v9224_v56 = vadd.f32 %v17032_v6, %v17001_v1  ;;  %v9229_v1 = vadd.f32 %v17032_v6, %v17018_v7 }
 0x470   : > { %v11523_v16 = vpop.f32.mrb[193].mxu1 }
 0x471   : > { %v11524_v23 = vadd.f32 %v11523_v16, %v11522_v31  ;;  %v11525_v19 = vpop.f32.mrb[194].mxu1  ;;  %v17078_v16 = vadd.f32 %v16992_v21, %v9224_v56 }
 0x472   : > { %v11526_v24 = vpop.f32.mrb[195].mxu1 }
 0x473   : > { %v17064_v10 = vadd.f32 %v11524_v23, %v17599_v57  ;;  %v11527_v5 = vadd.f32 %v11526_v24, %v11525_v19  ;;  %v11640_v30 = vpop.f32.mrb[228].mxu0 }
 0x474   : > { %v11641_v18 = vpop.f32.mrb[229].mxu0 }
 0x475   : > { %v17067_v62 = vadd.f32 %v11527_v5, %v17600_v3  ;;  %v11642_v45 = vadd.f32 %v11641_v18, %v11640_v30  ;;  %v11643_v32 = vpop.f32.mrb[230].mxu0  ;;  %v9232_v30 = vadd.f32 %v17032_v6, %v17022_v50  ;;  %v17087_v18 = vadd.f32 %v17005_v60, %v9229_v1 }
 0x476   : > { %11847 = vmatmul.mubr.bf16.gmra.mrb[28].mxu1 %v10632_v29  ;;  %v11644_v55 = vpop.f32.mrb[231].mxu0  ;;  %v9240_v60 = vadd.f32 %v17032_v6, %v11393_v61 }
 0x477   : > { %v11528_v14 = vpop.f32.mrb[196].mxu1  ;;  %v11645_v37 = vadd.f32 %v11644_v55, %v11643_v32 }
 0x478   : > { %v11529_v9 = vpop.f32.mrb[197].mxu1 }
 0x479   : > { %v11530_v28 = vadd.f32 %v11529_v9, %v11528_v14  ;;  %v11531_v2 = vpop.f32.mrb[198].mxu1  ;;  %v17092_v14 = vadd.f32 %v17012_v53, %v9232_v30 }
 0x47a   : > { %v11532_v31 = vpop.f32.mrb[199].mxu1 }
 0x47b   : > { %v9447_v23 = vadd.f32 %v11530_v28, %v16886_v48  ;;  %v11533_v46 = vadd.f32 %v11532_v31, %v11531_v2  ;;  %v11646_v20 = vpop.f32.mrb[232].mxu0 }
 0x47c   : > { %v11647_v29 = vpop.f32.mrb[233].mxu0 }
 0x47d   : > { %v9450_v49 = vadd.f32 %v11533_v46, %v16890_v47  ;;  %v11648_v19 = vadd.f32 %v11647_v29, %v11646_v20  ;;  %v11649_v52 = vpop.f32.mrb[234].mxu0  ;;  %v9237_v47 = vadd.f32 %v17032_v6, %v11390_v43  ;;  %v17100_v43 = vadd.f32 %v17041_v44, %v9240_v60 }
 0x47e   : > { %v11650_v24 = vpop.f32.mrb[235].mxu0  ;;  %v17103_v30 = vadd.f32 %v11642_v45, %v9447_v23 }
 0x47f   : > { %v11651_v57 = vadd.f32 %v11650_v24, %v11649_v52  ;;  %v11534_v5 = vpop.f32.mrb[200].mxu1  ;;  %v17097_v20 = vadd.f32 %v17036_v35, %v9237_v47  ;;  %v17111_v45 = vadd.f32 %v11645_v37, %v9450_v49 }
 0x480   : > { %v11535_v21 = vpop.f32.mrb[201].mxu1 }
 0x481   : > { %v11536_v48 = vadd.f32 %v11535_v21, %v11534_v5  ;;  %v11537_v3 = vpop.f32.mrb[202].mxu1 }
 0x482   : > { %v11538_v32 = vpop.f32.mrb[203].mxu1 }
 0x483   : > { %v9455_v56 = vadd.f32 %v11536_v48, %v16896_v12  ;;  %v11539_v7 = vadd.f32 %v11538_v32, %v11537_v3  ;;  %v11652_v55 = vpop.f32.mrb[236].mxu0 }
 0x484   : > { %v11653_v28 = vpop.f32.mrb[237].mxu0 }
 0x485   : > { %v9458_v9 = vadd.f32 %v11539_v7, %v16907_v22  ;;  %v11654_v50 = vadd.f32 %v11653_v28, %v11652_v55  ;;  %v11655_v2 = vpop.f32.mrb[238].mxu0 }
 0x486   : > { %v11656_v31 = vpop.f32.mrb[239].mxu0 }
 0x487   : > { %v11657_v46 = vadd.f32 %v11656_v31, %v11655_v2  ;;  %v17116_v31 = vadd.f32 %v17059_v0, %v17067_v62  ;;  %v17124_v49 = vadd.f32 %v11651_v57, %v9458_v9 }
 0x489   : > { %v11540_v12 = vpop.f32.mrb[204].mxu1 }
 0x48a   : > { %v11541_v29 = vpop.f32.mrb[205].mxu1 }
 0x48b   : > { %v11542_v1 = vadd.f32 %v11541_v29, %v11540_v12  ;;  %v11543_v53 = vpop.f32.mrb[206].mxu1 }
 0x48c   : > { %v11544_v52 = vpop.f32.mrb[207].mxu1 }
 0x48d   : > { %v9463_v22 = vadd.f32 %v11542_v1, %v16915_v8  ;;  %v11545_v24 = vadd.f32 %v11544_v52, %v11543_v53  ;;  %v17109_v8 = vadd.f32 %v17048_v25, %v17064_v10 }
 0x48e   : > { %v11658_v5 = vpop.f32.mrb[240].mxu0 }
 0x48f   : > { %v11659_v21 = vpop.f32.mrb[241].mxu0  ;;  %v9466_v6 = vadd.f32 %v11545_v24, %v16919_v40  ;;  %v17118_v12 = vadd.f32 %v11654_v50, %v9463_v22  ;;  %v17120_v24 = vadd.f32 %v11648_v19, %v9455_v56 }
 0x490   : > { %v11660_v61 = vadd.f32 %v11659_v21, %v11658_v5  ;;  %v11661_v35 = vpop.f32.mrb[242].mxu0 }
 0x491   : > { %v11662_v48 = vpop.f32.mrb[243].mxu0  ;;  %v17122_v10 = vadd.f32 %v11657_v46, %v9466_v6 }
 0x492   : > { %v11546_v3 = vpop.f32.mrb[208].mxu1  ;;  %v11663_v32 = vadd.f32 %v11662_v48, %v11661_v35 }
 0x493   : > { %v11547_v7 = vpop.f32.mrb[209].mxu1 }
 0x494   : > { %v11548_v44 = vadd.f32 %v11547_v7, %v11546_v3  ;;  %v11549_v47 = vpop.f32.mrb[210].mxu1 }
 0x495   : > { %v11550_v55 = vpop.f32.mrb[211].mxu1 }
 0x496   : > { %v9471_v28 = vadd.f32 %v11548_v44, %v16923_v39  ;;  %v11551_v2 = vadd.f32 %v11550_v55, %v11549_v47 }
 0x498   : > { %v9474_v40 = vadd.f32 %v11551_v2, %v16932_v27  ;;  %v11664_v23 = vpop.f32.mrb[244].mxu0  ;;  %v17130_v46 = vadd.f32 %v11660_v61, %v9471_v28 }
 0x499   : > { %v11665_v60 = vpop.f32.mrb[245].mxu0 }
 0x49a   : > { %v11666_v29 = vadd.f32 %v11665_v60, %v11664_v23  ;;  %v11667_v1 = vpop.f32.mrb[246].mxu0 }
 0x49b   : > { %v11668_v39 = vpop.f32.mrb[247].mxu0 }
 0x49c   : > { %v11669_v53 = vadd.f32 %v11668_v39, %v11667_v1 }
 0x49e   : > { %v11552_v52 = vpop.f32.mrb[212].mxu1 }
 0x49f   : > { %v11553_v25 = vpop.f32.mrb[213].mxu1 }
 0x4a0   : > { %v11554_v37 = vadd.f32 %v11553_v25, %v11552_v52  ;;  %v11555_v27 = vpop.f32.mrb[214].mxu1 }
 0x4a1   : > { %v11556_v5 = vpop.f32.mrb[215].mxu1 }
 0x4a2   : > { %v9479_v0 = vadd.f32 %v11554_v37, %v16938_v38  ;;  %v11557_v62 = vadd.f32 %v11556_v5, %v11555_v27  ;;  %v17134_v38 = vadd.f32 %v11663_v32, %v9474_v40 }
 0x4a3   : > { %v11670_v50 = vpop.f32.mrb[248].mxu0 }
 0x4a4   : > { %v9482_v22 = vadd.f32 %v11557_v62, %v16941_v15  ;;  %v11671_v21 = vpop.f32.mrb[249].mxu0  ;;  %v17128_v35 = vadd.f32 %v11666_v29, %v9479_v0 }
 0x4a5   : > { %v11672_v48 = vadd.f32 %v11671_v21, %v11670_v50  ;;  %v11673_v19 = vpop.f32.mrb[250].mxu0 }
 0x4a6   : > { %v11558_v56 = vpop.f32.mrb[216].mxu1  ;;  %v11674_v3 = vpop.f32.mrb[251].mxu0  ;;  %v17132_v57 = vadd.f32 %v11669_v53, %v9482_v22 }
 0x4a7   : > { %v11559_v6 = vpop.f32.mrb[217].mxu1  ;;  %v11675_v7 = vadd.f32 %v11674_v3, %v11673_v19 }
 0x4a8   : > { %v11560_v9 = vadd.f32 %v11559_v6, %v11558_v56  ;;  %v11561_v44 = vpop.f32.mrb[218].mxu1 }
 0x4a9   : > { %v11562_v47 = vpop.f32.mrb[219].mxu1 }
 0x4aa   : > { %v9487_v15 = vadd.f32 %v11560_v9, %v16944_v51  ;;  %v11563_v55 = vadd.f32 %v11562_v47, %v11561_v44 }
 0x4ab   : > { %v11676_v2 = vpop.f32.mrb[252].mxu0 }
 0x4ac   : > { %v9490_v23 = vadd.f32 %v11563_v55, %v16947_v11  ;;  %v11677_v60 = vpop.f32.mrb[253].mxu0  ;;  %v17138_v28 = vadd.f32 %v11672_v48, %v9487_v15 }
 0x4ad   : > { %v11678_v29 = vadd.f32 %v11677_v60, %v11676_v2  ;;  %v11679_v1 = vpop.f32.mrb[254].mxu0 }
 0x4ae   : > { %v11680_v61 = vpop.f32.mrb[255].mxu0  ;;  %v17140_v53 = vadd.f32 %v11675_v7, %v9490_v23 }
 0x4af   : > { %v11681_v39 = vadd.f32 %v11680_v61, %v11679_v1 }
 0x4b2   : > { %v11564_v52 = vpop.f32.mrb[220].mxu1 }
 0x4b3   : > { %v11565_v25 = vpop.f32.mrb[221].mxu1 }
 0x4b4   : > { %v11566_v32 = vadd.f32 %v11565_v25, %v11564_v52  ;;  %v11567_v40 = vpop.f32.mrb[222].mxu1 }
 0x4b5   : > { %v11568_v37 = vpop.f32.mrb[223].mxu1 }
 0x4b6   : > { %v9495_v51 = vadd.f32 %v11566_v32, %v16952_v42  ;;  %v11569_v27 = vadd.f32 %v11568_v37, %v11567_v40 }
 0x4b7   : > { %v11682_v11 = vpop.f32.mrb[0].mxu0 }
 0x4b8   : > { %v9498_v5 = vadd.f32 %v11569_v27, %v16955_v17  ;;  %v17144_v0 = vadd.f32 %v11678_v29, %v9495_v51  ;;  %v11683_v62 = vpop.f32.mrb[1].mxu0 }
 0x4b9   : > { %v11684_v50 = vadd.f32 %v11683_v62, %v11682_v11  ;;  %v11685_v22 = vpop.f32.mrb[2].mxu0 }
 0x4ba   : > { %v17146_v21 = vadd.f32 %v11681_v39, %v9498_v5  ;;  %v11686_v48 = vpop.f32.mrb[3].mxu0 }
 0x4bb   : > { %v11570_v19 = vpop.f32.mrb[224].mxu1  ;;  %v11687_v56 = vadd.f32 %v11686_v48, %v11685_v22 }
 0x4bc   : > { %v11571_v3 = vpop.f32.mrb[225].mxu1 }
 0x4bd   : > { %v11572_v6 = vadd.f32 %v11571_v3, %v11570_v19  ;;  %v11573_v7 = vpop.f32.mrb[226].mxu1 }
 0x4be   : > { %v11574_v9 = vpop.f32.mrb[227].mxu1 }
 0x4bf   : > { %v9503_v42 = vadd.f32 %v11572_v6, %v16958_v58  ;;  %v11575_v44 = vadd.f32 %v11574_v9, %v11573_v7 }
 0x4c1   : > { %v9506_v17 = vadd.f32 %v11575_v44, %v16961_v41  ;;  %v11688_v47 = vpop.f32.mrb[4].mxu0  ;;  %v17150_v15 = vadd.f32 %v11684_v50, %v9503_v42 }
 0x4c2   : > { %v11689_v55 = vpop.f32.mrb[5].mxu0 }
 0x4c3   : > { %v11690_v2 = vadd.f32 %v11689_v55, %v11688_v47  ;;  %v11691_v23 = vpop.f32.mrb[6].mxu0  ;;  %v17152_v60 = vadd.f32 %v11687_v56, %v9506_v17 }
 0x4c4   : > { %v11692_v29 = vpop.f32.mrb[7].mxu0 }
 0x4c5   : > { %v11693_v61 = vadd.f32 %v11692_v29, %v11691_v23 }
 0x4c7   : > { %v11576_v1 = vpop.f32.mrb[228].mxu1 }
 0x4c8   : > { %v11577_v39 = vpop.f32.mrb[229].mxu1 }
 0x4c9   : > { %v11578_v52 = vadd.f32 %v11577_v39, %v11576_v1  ;;  %v11579_v25 = vpop.f32.mrb[230].mxu1 }
 0x4ca   : > { %v11580_v32 = vpop.f32.mrb[231].mxu1 }
 0x4cb   : > { %v9511_v58 = vadd.f32 %v11578_v52, %v16964_v34  ;;  %v11581_v40 = vadd.f32 %v11580_v32, %v11579_v25 }
 0x4cd   : > { %v9514_v41 = vadd.f32 %v11581_v40, %v16967_v33  ;;  %v17156_v37 = vadd.f32 %v11690_v2, %v9511_v58 }
 0x4ce   : > { %v11694_v51 = vpop.f32.mrb[8].mxu0 }
 0x4cf   : > { %v11695_v27 = vpop.f32.mrb[9].mxu0  ;;  %v17158_v5 = vadd.f32 %v11693_v61, %v9514_v41 }
 0x4d0   : > { %v11696_v11 = vadd.f32 %v11695_v27, %v11694_v51  ;;  %v11697_v62 = vpop.f32.mrb[10].mxu0  ;;  %v11582_v50 = vpop.f32.mrb[232].mxu1 }
 0x4d1   : > { %v11698_v22 = vpop.f32.mrb[11].mxu0  ;;  %v11583_v48 = vpop.f32.mrb[233].mxu1 }
 0x4d2   : > { %v11699_v19 = vadd.f32 %v11698_v22, %v11697_v62  ;;  %v11584_v56 = vadd.f32 %v11583_v48, %v11582_v50  ;;  %v11585_v3 = vpop.f32.mrb[234].mxu1 }
 0x4d3   : > { %v11586_v6 = vpop.f32.mrb[235].mxu1 }
 0x4d4   : > { %v9519_v34 = vadd.f32 %v11584_v56, %v16974_v26  ;;  %v11587_v7 = vadd.f32 %v11586_v6, %v11585_v3 }
 0x4d6   : > { %v11700_v9 = vpop.f32.mrb[12].mxu0  ;;  %v9522_v33 = vadd.f32 %v11587_v7, %v16987_v63  ;;  %v17162_v44 = vadd.f32 %v11696_v11, %v9519_v34 }
 0x4d7   : > { %v11701_v42 = vpop.f32.mrb[13].mxu0 }
 0x4d8   : > { %v11702_v17 = vadd.f32 %v11701_v42, %v11700_v9  ;;  %v11703_v47 = vpop.f32.mrb[14].mxu0  ;;  %v17164_v2 = vadd.f32 %v11699_v19, %v9522_v33 }
 0x4d9   : > { %v11704_v55 = vpop.f32.mrb[15].mxu0 }
 0x4da   : > { %v11705_v23 = vadd.f32 %v11704_v55, %v11703_v47 }
 0x4dd   : > { %v11588_v29 = vpop.f32.mrb[236].mxu1 }
 0x4de   : > { %v11589_v1 = vpop.f32.mrb[237].mxu1 }
 0x4df   : > { %v11590_v61 = vadd.f32 %v11589_v1, %v11588_v29  ;;  %v11591_v39 = vpop.f32.mrb[238].mxu1 }
 0x4e0   : > { %v11592_v52 = vpop.f32.mrb[239].mxu1 }
 0x4e1   : > { %v9527_v26 = vadd.f32 %v11590_v61, %v17015_v59  ;;  %v11593_v25 = vadd.f32 %v11592_v52, %v11591_v39 }
 0x4e2   : > { %v11706_v32 = vpop.f32.mrb[16].mxu0 }
 0x4e3   : > { %v11707_v58 = vpop.f32.mrb[17].mxu0  ;;  %v9530_v63 = vadd.f32 %v11593_v25, %v17025_v54  ;;  %v17168_v51 = vadd.f32 %v11702_v17, %v9527_v26 }
 0x4e4   : > { %v11708_v40 = vadd.f32 %v11707_v58, %v11706_v32  ;;  %v11709_v41 = vpop.f32.mrb[18].mxu0 }
 0x4e5   : > { %v11710_v27 = vpop.f32.mrb[19].mxu0  ;;  %v17170_v62 = vadd.f32 %v11705_v23, %v9530_v63 }
 0x4e6   : > { %v11711_v11 = vadd.f32 %v11710_v27, %v11709_v41 }
 0x4ea   : > { %v11594_v50 = vpop.f32.mrb[240].mxu1 }
 0x4eb   : > { %v11595_v22 = vpop.f32.mrb[241].mxu1 }
 0x4ec   : > { %v11596_v48 = vadd.f32 %v11595_v22, %v11594_v50  ;;  %v11597_v19 = vpop.f32.mrb[242].mxu1  ;;  %v11712_v6 = vpop.f32.mrb[20].mxu0 }
 0x4ed   : > { %v11598_v56 = vpop.f32.mrb[243].mxu1  ;;  %v11713_v34 = vpop.f32.mrb[21].mxu0 }
 0x4ee   : > { %v9535_v59 = vadd.f32 %v11596_v48, %v17046_v13  ;;  %v11599_v3 = vadd.f32 %v11598_v56, %v11597_v19  ;;  %v11714_v7 = vadd.f32 %v11713_v34, %v11712_v6  ;;  %v11715_v9 = vpop.f32.mrb[22].mxu0 }
 0x4ef   : > { %v11716_v42 = vpop.f32.mrb[23].mxu0 }
 0x4f0   : > { %v9538_v54 = vadd.f32 %v11599_v3, %v17051_v4  ;;  %v17174_v33 = vadd.f32 %v11708_v40, %v9535_v59  ;;  %v11717_v17 = vadd.f32 %v11716_v42, %v11715_v9 }
 0x4f2   : > { %v17176_v47 = vadd.f32 %v11711_v11, %v9538_v54 }
 0x4f5   : > { %v11600_v55 = vpop.f32.mrb[244].mxu1 }
 0x4f6   : > { %v11601_v23 = vpop.f32.mrb[245].mxu1 }
 0x4f7   : > { %v11602_v29 = vadd.f32 %v11601_v23, %v11600_v55  ;;  %v11603_v1 = vpop.f32.mrb[246].mxu1 }
 0x4f8   : > { %v11604_v61 = vpop.f32.mrb[247].mxu1 }
 0x4f9   : > { %v9543_v13 = vadd.f32 %v11602_v29, %v17075_v36  ;;  %v11605_v39 = vadd.f32 %v11604_v61, %v11603_v1 }
 0x4fa   : > { %v11718_v52 = vpop.f32.mrb[24].mxu0 }
 0x4fb   : > { %v9546_v26 = vadd.f32 %v11605_v39, %v17078_v16  ;;  %v11719_v4 = vpop.f32.mrb[25].mxu0  ;;  %v17180_v25 = vadd.f32 %v11714_v7, %v9543_v13 }
 0x4fc   : > { %v11720_v32 = vadd.f32 %v11719_v4, %v11718_v52  ;;  %v11721_v58 = vpop.f32.mrb[26].mxu0 }
 0x4fd   : > { %v11722_v63 = vpop.f32.mrb[27].mxu0  ;;  %v17182_v40 = vadd.f32 %v11717_v17, %v9546_v26 }
 0x4fe   : > { %v11723_v41 = vadd.f32 %v11722_v63, %v11721_v58 }
 0x500   : > { %v11606_v27 = vpop.f32.mrb[248].mxu1 }
 0x501   : > { %v11607_v11 = vpop.f32.mrb[249].mxu1 }
 0x502   : > { %v11608_v50 = vadd.f32 %v11607_v11, %v11606_v27  ;;  %v11609_v22 = vpop.f32.mrb[250].mxu1 }
 0x503   : > { %v11610_v48 = vpop.f32.mrb[251].mxu1 }
 0x504   : > { %v9551_v36 = vadd.f32 %v11608_v50, %v17087_v18  ;;  %v11611_v19 = vadd.f32 %v11610_v48, %v11609_v22 }
 0x506   : > { %v9554_v56 = vadd.f32 %v11611_v19, %v17092_v14  ;;  %v17186_v16 = vadd.f32 %v11720_v32, %v9551_v36 }
 0x508   : > { %v11612_v59 = vpop.f32.mrb[252].mxu1  ;;  %v17188_v3 = vadd.f32 %v11723_v41, %v9554_v56 }
 0x509   : > { %v11613_v6 = vpop.f32.mrb[253].mxu1 }
 0x50a   : > { %v11614_v34 = vadd.f32 %v11613_v6, %v11612_v59  ;;  %v11615_v54 = vpop.f32.mrb[254].mxu1 }
 0x50b   : > { %v11724_v7 = vpop.f32.mrb[28].mxu0  ;;  %v11616_v9 = vpop.f32.mrb[255].mxu1 }
 0x50c   : > { %v9559_v42 = vadd.f32 %v11614_v34, %v17097_v20  ;;  %v11617_v17 = vadd.f32 %v11616_v9, %v11615_v54  ;;  %v11725_v55 = vpop.f32.mrb[29].mxu0 }
 0x50d   : > { %v11726_v18 = vadd.f32 %v11725_v55, %v11724_v7  ;;  %v11727_v23 = vpop.f32.mrb[30].mxu0 }
 0x50e   : > { %v9562_v14 = vadd.f32 %v11617_v17, %v17100_v43  ;;  %v11728_v29 = vpop.f32.mrb[31].mxu0 }
 0x50f   : > { %v11729_v1 = vadd.f32 %v11728_v29, %v11727_v23  ;;  %v17193_v61 = vadd.f32 %v11726_v18, %v9559_v42 }
 0x510   : > { %v11820_v13 = vpop.f32.mrb[0].mxu1 }
 0x511   : > { %v9769_v39 = vadd.f32 %v11820_v13, %v17103_v30  ;;  %v9760_v52 = vpop.f32.mrb[1].mxu1  ;;  %v17198_v26 = vadd.f32 %v11729_v1, %v9562_v14 }
 0x512   : > { %v9761_v20 = vadd.f32 %v9760_v52, %v17109_v8  ;;  %v11821_v4 = vpop.f32.mrb[2].mxu1 }
 0x513   : > { %v9889_v32 = vmul.f32 0.1, %v9769_v39  ;;  %v9772_v58 = vadd.f32 %v11821_v4, %v17111_v45  ;;  %v9763_v43 = vpop.f32.mrb[3].mxu1 }
 0x514   : > { %v9887_v63 = vmul.f32 0.1, %v9761_v20  ;;  %v9764_v41 = vadd.f32 %v9763_v43, %v17116_v31 }
 0x515   : > { %v9921_v27 = vmax.f32 %v9769_v39, %v9889_v32  ;;  %v9890_v11 = vmul.f32 0.1, %v9772_v58 }
 0x516   : > { %v9919_v50 = vmax.f32 %v9761_v20, %v9887_v63  ;;  %v9888_v22 = vmul.f32 0.1, %v9764_v41 }
 0x517   : > { %9953 = vst [vmem:[%s17203_s10 + $0x10] sm:$0xff] %v9921_v27  ;;  %v9922_v30 = vmax.f32 %v9772_v58, %v9890_v11 }
 0x518   : > { %9951 = vst [vmem:[%s17203_s10] sm:$0xff] %v9919_v50  ;;  %v9920_v8 = vmax.f32 %v9764_v41, %v9888_v22  ;;  %v11824_v48 = vpop.f32.mrb[4].mxu1 }
 0x519   : > { %9954 = vst [vmem:[%s17203_s10 + $0x18] sm:$0xff] %v9922_v30  ;;  %v9785_v45 = vadd.f32 %v11824_v48, %v17118_v12  ;;  %v9776_v31 = vpop.f32.mrb[5].mxu1 }
 0x51a   : > { %9952 = vst [vmem:[%s17203_s10 + $0x8] sm:$0xff] %v9920_v8  ;;  %v9777_v36 = vadd.f32 %v9776_v31, %v17120_v24  ;;  %v11825_v19 = vpop.f32.mrb[6].mxu1 }
 0x51b   : > { %v9893_v56 = vmul.f32 0.1, %v9785_v45  ;;  %v9788_v59 = vadd.f32 %v11825_v19, %v17122_v10  ;;  %v9779_v6 = vpop.f32.mrb[7].mxu1 }
 0x51c   : > { %v9891_v34 = vmul.f32 0.1, %v9777_v36  ;;  %v9780_v54 = vadd.f32 %v9779_v6, %v17124_v49 }
 0x51d   : > { %v9925_v7 = vmax.f32 %v9785_v45, %v9893_v56  ;;  %v9894_v9 = vmul.f32 0.1, %v9788_v59 }
 0x51e   : > { %v9923_v42 = vmax.f32 %v9777_v36, %v9891_v34  ;;  %v9892_v17 = vmul.f32 0.1, %v9780_v54 }
 0x51f   : > { %9957 = vst [vmem:[%s17203_s10 + $0x30] sm:$0xff] %v9925_v7  ;;  %v9926_v12 = vmax.f32 %v9788_v59, %v9894_v9 }
 0x520   : > { %9955 = vst [vmem:[%s17203_s10 + $0x20] sm:$0xff] %v9923_v42  ;;  %v9924_v55 = vmax.f32 %v9780_v54, %v9892_v17 }
 0x521   : > { %v11828_v18 = vpop.f32.mrb[8].mxu1  ;;  %9958 = vst [vmem:[%s17203_s10 + $0x38] sm:$0xff] %v9926_v12 }
 0x522   : > { %v9801_v24 = vadd.f32 %v11828_v18, %v17128_v35  ;;  %v9792_v10 = vpop.f32.mrb[9].mxu1  ;;  %9956 = vst [vmem:[%s17203_s10 + $0x28] sm:$0xff] %v9924_v55 }
 0x523   : > { %v9793_v23 = vadd.f32 %v9792_v10, %v17130_v46  ;;  %v11829_v49 = vpop.f32.mrb[10].mxu1 }
 0x524   : > { %v9897_v14 = vmul.f32 0.1, %v9801_v24  ;;  %v9804_v29 = vadd.f32 %v11829_v49, %v17132_v57  ;;  %v9795_v1 = vpop.f32.mrb[11].mxu1 }
 0x525   : > { %v9895_v13 = vmul.f32 0.1, %v9793_v23  ;;  %v9796_v39 = vadd.f32 %v9795_v1, %v17134_v38 }
 0x526   : > { %v9929_v52 = vmax.f32 %v9801_v24, %v9897_v14  ;;  %v9898_v20 = vmul.f32 0.1, %v9804_v29 }
 0x527   : > { %v9927_v4 = vmax.f32 %v9793_v23, %v9895_v13  ;;  %v9896_v32 = vmul.f32 0.1, %v9796_v39 }
 0x528   : > { %9961 = vst [vmem:[%s17203_s10 + $0x50] sm:$0xff] %v9929_v52  ;;  %v9930_v35 = vmax.f32 %v9804_v29, %v9898_v20 }
 0x529   : > { %9959 = vst [vmem:[%s17203_s10 + $0x40] sm:$0xff] %v9927_v4  ;;  %v9928_v58 = vmax.f32 %v9796_v39, %v9896_v32  ;;  %v11832_v43 = vpop.f32.mrb[12].mxu1 }
 0x52a   : > { %9962 = vst [vmem:[%s17203_s10 + $0x58] sm:$0xff] %v9930_v35  ;;  %v9817_v46 = vadd.f32 %v11832_v43, %v17144_v0  ;;  %v9808_v57 = vpop.f32.mrb[13].mxu1 }
 0x52b   : > { %9960 = vst [vmem:[%s17203_s10 + $0x48] sm:$0xff] %v9928_v58  ;;  %v9809_v63 = vadd.f32 %v9808_v57, %v17138_v28  ;;  %v11833_v38 = vpop.f32.mrb[14].mxu1 }
 0x52c   : > { %v9901_v41 = vmul.f32 0.1, %v9817_v46  ;;  %v9820_v27 = vadd.f32 %v11833_v38, %v17146_v21  ;;  %v9811_v11 = vpop.f32.mrb[15].mxu1 }
 0x52d   : > { %v9899_v50 = vmul.f32 0.1, %v9809_v63  ;;  %v9812_v22 = vadd.f32 %v9811_v11, %v17140_v53 }
 0x52e   : > { %v9933_v30 = vmax.f32 %v9817_v46, %v9901_v41  ;;  %v9902_v8 = vmul.f32 0.1, %v9820_v27 }
 0x52f   : > { %v9931_v48 = vmax.f32 %v9809_v63, %v9899_v50  ;;  %v9900_v45 = vmul.f32 0.1, %v9812_v22 }
 0x530   : > { %9965 = vst [vmem:[%s17203_s10 + $0x70] sm:$0xff] %v9933_v30  ;;  %v9934_v0 = vmax.f32 %v9820_v27, %v9902_v8 }
 0x531   : > { %9963 = vst [vmem:[%s17203_s10 + $0x60] sm:$0xff] %v9931_v48  ;;  %v9932_v31 = vmax.f32 %v9812_v22, %v9900_v45  ;;  %v11836_v36 = vpop.f32.mrb[16].mxu1 }
 0x532   : > { %9966 = vst [vmem:[%s17203_s10 + $0x78] sm:$0xff] %v9934_v0  ;;  %v9833_v28 = vadd.f32 %v11836_v36, %v17156_v37  ;;  %v9824_v21 = vpop.f32.mrb[17].mxu1 }
 0x533   : > { %9964 = vst [vmem:[%s17203_s10 + $0x68] sm:$0xff] %v9932_v31  ;;  %v9825_v19 = vadd.f32 %v9824_v21, %v17150_v15  ;;  %v11837_v53 = vpop.f32.mrb[18].mxu1 }
 0x534   : > { %v9905_v56 = vmul.f32 0.1, %v9833_v28  ;;  %v9836_v59 = vadd.f32 %v11837_v53, %v17158_v5  ;;  %v9827_v6 = vpop.f32.mrb[19].mxu1 }
 0x535   : > { %v9903_v34 = vmul.f32 0.1, %v9825_v19  ;;  %v9828_v54 = vadd.f32 %v9827_v6, %v17152_v60 }
 0x536   : > { %v9937_v7 = vmax.f32 %v9833_v28, %v9905_v56  ;;  %v9906_v9 = vmul.f32 0.1, %v9836_v59 }
 0x537   : > { %v9935_v42 = vmax.f32 %v9825_v19, %v9903_v34  ;;  %v9904_v17 = vmul.f32 0.1, %v9828_v54 }
 0x538   : > { %9969 = vst [vmem:[%s17203_s10 + $0x90] sm:$0xff] %v9937_v7  ;;  %v9938_v37 = vmax.f32 %v9836_v59, %v9906_v9 }
 0x539   : > { %9967 = vst [vmem:[%s17203_s10 + $0x80] sm:$0xff] %v9935_v42  ;;  %v9936_v12 = vmax.f32 %v9828_v54, %v9904_v17  ;;  %v11840_v55 = vpop.f32.mrb[20].mxu1 }
 0x53a   : > { %9970 = vst [vmem:[%s17203_s10 + $0x98] sm:$0xff] %v9938_v37  ;;  %v9849_v15 = vadd.f32 %v11840_v55, %v17168_v51  ;;  %v9840_v5 = vpop.f32.mrb[21].mxu1 }
 0x53b   : > { %9968 = vst [vmem:[%s17203_s10 + $0x88] sm:$0xff] %v9936_v12  ;;  %v9841_v18 = vadd.f32 %v9840_v5, %v17162_v44  ;;  %v11841_v60 = vpop.f32.mrb[22].mxu1 }
 0x53c   : > { %v9909_v24 = vmul.f32 0.1, %v9849_v15  ;;  %v9852_v10 = vadd.f32 %v11841_v60, %v17170_v62  ;;  %v9843_v23 = vpop.f32.mrb[23].mxu1 }
 0x53d   : > { %v9907_v49 = vmul.f32 0.1, %v9841_v18  ;;  %v9844_v14 = vadd.f32 %v9843_v23, %v17164_v2 }
 0x53e   : > { %v9941_v29 = vmax.f32 %v9849_v15, %v9909_v24  ;;  %v9910_v1 = vmul.f32 0.1, %v9852_v10 }
 0x53f   : > { %v9939_v13 = vmax.f32 %v9841_v18, %v9907_v49  ;;  %v9908_v39 = vmul.f32 0.1, %v9844_v14 }
 0x540   : > { %9973 = vst [vmem:[%s17203_s10 + $0xb0] sm:$0xff] %v9941_v29  ;;  %v9942_v51 = vmax.f32 %v9852_v10, %v9910_v1 }
 0x541   : > { %9971 = vst [vmem:[%s17203_s10 + $0xa0] sm:$0xff] %v9939_v13  ;;  %v9940_v52 = vmax.f32 %v9844_v14, %v9908_v39  ;;  %v11844_v20 = vpop.f32.mrb[24].mxu1 }
 0x542   : > { %9974 = vst [vmem:[%s17203_s10 + $0xb8] sm:$0xff] %v9942_v51  ;;  %v9865_v44 = vadd.f32 %v11844_v20, %v17180_v25  ;;  %v9856_v62 = vpop.f32.mrb[25].mxu1 }
 0x543   : > { %9972 = vst [vmem:[%s17203_s10 + $0xa8] sm:$0xff] %v9940_v52  ;;  %v9857_v4 = vadd.f32 %v9856_v62, %v17174_v33  ;;  %v11845_v2 = vpop.f32.mrb[26].mxu1 }
 0x544   : > { %v9913_v32 = vmul.f32 0.1, %v9865_v44  ;;  %v9868_v35 = vadd.f32 %v11845_v2, %v17182_v40  ;;  %v9859_v58 = vpop.f32.mrb[27].mxu1 }
 0x545   : > { %v9911_v43 = vmul.f32 0.1, %v9857_v4  ;;  %v9860_v46 = vadd.f32 %v9859_v58, %v17176_v47 }
 0x546   : > { %v9945_v57 = vmax.f32 %v9865_v44, %v9913_v32  ;;  %v9914_v63 = vmul.f32 0.1, %v9868_v35 }
 0x547   : > { %v9943_v38 = vmax.f32 %v9857_v4, %v9911_v43  ;;  %v9912_v41 = vmul.f32 0.1, %v9860_v46 }
 0x548   : > { %9977 = vst [vmem:[%s17203_s10 + $0xd0] sm:$0xff] %v9945_v57  ;;  %v9946_v25 = vmax.f32 %v9868_v35, %v9914_v63 }
 0x549   : > { %9975 = vst [vmem:[%s17203_s10 + $0xc0] sm:$0xff] %v9943_v38  ;;  %v9944_v27 = vmax.f32 %v9860_v46, %v9912_v41  ;;  %v11848_v33 = vpop.f32.mrb[28].mxu1 }
 0x54a   : > { %9978 = vst [vmem:[%s17203_s10 + $0xd8] sm:$0xff] %v9946_v25  ;;  %v9881_v11 = vadd.f32 %v11848_v33, %v17193_v61  ;;  %v9872_v40 = vpop.f32.mrb[29].mxu1 }
 0x54b   : > { %9976 = vst [vmem:[%s17203_s10 + $0xc8] sm:$0xff] %v9944_v27  ;;  %v9873_v50 = vadd.f32 %v9872_v40, %v17186_v16  ;;  %v11849_v47 = vpop.f32.mrb[30].mxu1 }
 0x54c   : > { %v9917_v22 = vmul.f32 0.1, %v9881_v11  ;;  %v9884_v30 = vadd.f32 %v11849_v47, %v17198_v26  ;;  %v9875_v8 = vpop.f32.mrb[31].mxu1 }
 0x54d   : > { %v9915_v48 = vmul.f32 0.1, %v9873_v50  ;;  %v9876_v45 = vadd.f32 %v9875_v8, %v17188_v3 }
 0x54e   : > { %v9949_v0 = vmax.f32 %v9881_v11, %v9917_v22  ;;  %v9918_v61 = vmul.f32 0.1, %v9884_v30 }
 0x54f   : > { %v9947_v31 = vmax.f32 %v9873_v50, %v9915_v48  ;;  %v9916_v36 = vmul.f32 0.1, %v9876_v45 }
 0x550   : > { %9981 = vst [vmem:[%s17203_s10 + $0xf0] sm:$0xff] %v9949_v0  ;;  %v9950_v16 = vmax.f32 %v9884_v30, %v9918_v61 }
 0x551   : > { %9979 = vst [vmem:[%s17203_s10 + $0xe0] sm:$0xff] %v9947_v31  ;;  %v9948_v26 = vmax.f32 %v9876_v45, %v9916_v36 }
 0x552   : > { %9982 = vst [vmem:[%s17203_s10 + $0xf8] sm:$0xff] %v9950_v16 }
 0x553   : > { %9980 = vst [vmem:[%s17203_s10 + $0xe8] sm:$0xff] %v9948_v26 }
 0x554   : > { %12208 = shalt.err (!%p12205_p3)
}
 0x555   : > { %s12209_s9 = scalar_lea.hbm %s17267_s13, 4096  ;;  %s12213_s29 = scalar_lea.hbm %s17324_s6, 8192 }
 0x556   : > { %p12210_p4 = scmp.ne.s32.totalorder %s17267_s13, %s12209_s9  ;;  %p12214_p9 = scmp.lt.u32.totalorder %s17267_s13, %s17324_s6 }
 0x557   : > { %p12215_p10 = scmp.lt.u32.totalorder %s12213_s29, %s12209_s9  ;;  %p12217_p12 = scmp.lt.u32.totalorder %s12209_s9, %s17267_s13 }
 0x558   : > { %p12211_p7 = pnand %p12210_p4, %p12336_p5 }
 0x559   : > { %p12216_p11 = por %p12215_p10, %p12214_p9 }
 0x55a   : > { %p12212_p8 = pneg %p12211_p7 }
 0x55b   : > { %p12218_p13 = por %p12217_p12, %p12216_p11 }
 0x55d   : > { %p12219_p0 = pnand %p12218_p13, %p12212_p8 }
 0x55f   : > { %12222 = shalt.err (!%p12219_p0)
}
 0x560   : > { %s12262_s12 = smov 128  }
 0x561   : > { %11850 = dma.vmem_to_hbm [thread:$0]  (%p12336_p5), %s17270_s19, 4096, %s17267_s13, %s17276_s25, %s12262_s12, %s12262_s12, %s12260_s28  }
 0x562 PF: > { %p11856_p1 = scmp.ge.s32.totalorder %s12257_s24, 2  ;;  %s10012_s17 = sand.u32 1, %s12245_s21  }
 0x563   : > { %s10013_s15 = scalar_lea.sflag [#allocation5], %s10012_s17 }
 0x564   : > { %p11853_p2 = pnand %p11856_p1, %p12340_p6 }
 0x566   : > { %12240 = dma.done.wait (!%p11853_p2), %s10013_s15, 4096  }
 0x567   : > { %12242 = vsyncadd (!%p11853_p2), %s10013_s15, 4294963200  ;;  %p16_p3 = scmp.ge.s32.totalorder %s12323_s27, 4   ;;  %s17601_s21 = smov %s12249_s22 }
 0x568   : > { %s17602_s22 = smov %s12253_s23  ;;  %s17603_s23 = smov %s12334_s30 }
 0x569   : > { %s17604_s24 = smov %s12323_s27  ;;  %18 = sbr.rel (!%p16_p3) target bundleno = 3 (0x3), region = 86 }
 0x570   :  { %10018 = vsyncpa [#allocation5], 1 }
 0x571   :  { %10020 = vsyncpa [#allocation5 + $0x1], 1 }

</bundles_post_ra>
